<compile_context>
chip_gen: v7x
topology: tpu7x:2x2x1
jax: 0.10.0
libtpu: 0.0.40
codegen_flags: <defaults>
</compile_context>

<pallas_src>
import functools

import jax
import jax.numpy as jnp
from jax.experimental import pallas as pl
from jax.experimental.pallas import tpu as pltpu


# ----------------------------- shared math helpers -----------------------------

def _layernorm(v, eps=1e-6):
    # LayerNorm without affine params (nn.LayerNorm(elementwise_affine=False))
    mu = jnp.mean(v, axis=-1, keepdims=True)
    var = jnp.mean((v - mu) ** 2, axis=-1, keepdims=True)
    return (v - mu) * jax.lax.rsqrt(var + eps)


def _gelu_tanh(v):
    # GELU(approximate='tanh')
    c = 0.7978845608028654  # sqrt(2/pi)
    return 0.5 * v * (1.0 + jnp.tanh(c * (v + 0.044715 * v * v * v)))


def _silu(v):
    return v * jax.nn.sigmoid(v)


# --------------------------------- Pallas kernel --------------------------------

def _mm_dit_kernel(heads, s_label, s_patch, hidden,
                   mods_ref, c_ref, x_ref,
                   wqkv_c_ref, wqkv_x_ref, wo_c_ref, wo_x_ref,
                   w1_c_ref, b1_c_ref, w2_c_ref, b2_c_ref,
                   w1_x_ref, b1_x_ref, w2_x_ref, b2_x_ref,
                   out_c_ref, out_x_ref,
                   q_s, k_s, v_s):
    D = hidden
    hd = D // heads
    s_total = s_label + s_patch
    scale = hd ** (-0.5)
    bf16 = jnp.bfloat16
    f32 = jnp.float32

    # ---- adaLN modulation (precomputed in the wrapper): rows are
    # alpha, beta, gamma, scale_mlp, shift_mlp, gate_mlp.  NOTE: the PyTorch
    # module uses label_affines for BOTH streams -> one shared set of vectors.
    alpha = mods_ref[0, 0:1, :]
    beta = mods_ref[0, 1:2, :]
    gamma = mods_ref[0, 2:3, :]
    scale_mlp = mods_ref[0, 3:4, :]
    shift_mlp = mods_ref[0, 4:5, :]
    gate_mlp = mods_ref[0, 5:6, :]

    # ---- pre-attention LayerNorms (these normalized tensors are also the
    # residual branches, matching the reference module). f32 math.
    c_n = _layernorm(c_ref[0])                               # (S_c, D)
    x_n = _layernorm(x_ref[0])                               # (S_x, D)

    c_mod = (alpha * c_n + beta).astype(bf16)
    x_mod = (alpha * x_n + beta).astype(bf16)

    def split_heads(v2d):
        # (S_strm, D) f32 -> (heads, S_strm, hd) bf16 ; single relayout per call,
        # done once per stream per q/k/v instead of per-head lane slicing.
        s = v2d.shape[0]
        return jnp.transpose(v2d.reshape(s, heads, hd), (1, 0, 2)).astype(bf16)

    # ---- fused QKV projections (bf16 operands, f32 accumulation on the MXU),
    # written head-major into joint-sequence scratch.  Column slices below are
    # at multiples of D (lane-aligned); row offsets are multiples of 16
    # (bf16 sublane tile) as long as S_label is a multiple of 16.
    qkv_c = jnp.dot(c_mod, wqkv_c_ref[...], preferred_element_type=f32)  # (S_c, 3D)
    q_s[:, 0:s_label, :] = split_heads(qkv_c[:, 0:D])
    k_s[:, 0:s_label, :] = split_heads(qkv_c[:, D:2 * D])
    v_s[:, 0:s_label, :] = split_heads(qkv_c[:, 2 * D:3 * D])

    qkv_x = jnp.dot(x_mod, wqkv_x_ref[...], preferred_element_type=f32)  # (S_x, 3D)
    q_s[:, s_label:s_total, :] = split_heads(qkv_x[:, 0:D])
    k_s[:, s_label:s_total, :] = split_heads(qkv_x[:, D:2 * D])
    v_s[:, s_label:s_total, :] = split_heads(qkv_x[:, 2 * D:3 * D])

    # ---- joint multi-head attention, heads batched into single MXU streams.
    att = jnp.einsum('hqd,hkd->hqk', q_s[...], k_s[...],
                     preferred_element_type=f32) * scale                 # (h, S, S) f32
    m = jnp.max(att, axis=-1, keepdims=True)
    e = jnp.exp(att - m)
    p = e * pl.reciprocal(jnp.sum(e, axis=-1, keepdims=True), approx=True)
    o = jnp.einsum('hqk,hkd->hqd', p.astype(bf16), v_s[...],
                   preferred_element_type=f32).astype(bf16)              # (h, S, hd)

    # ---- output projections per stream: sum over heads of (S, hd) @ (hd, D)
    # with head-blocked weights (no relayout of the attention output).
    c_att = jnp.sum(jnp.einsum('hqd,hdn->hqn', o[:, 0:s_label, :], wo_c_ref[...],
                               preferred_element_type=f32), axis=0)      # (S_c, D)
    x_att = jnp.sum(jnp.einsum('hqd,hdn->hqn', o[:, s_label:s_total, :], wo_x_ref[...],
                               preferred_element_type=f32), axis=0)      # (S_x, D)

    # ---- residual against the *normalized* embeddings (as in the reference)
    c2 = gamma * c_att + c_n
    x2 = gamma * x_att + x_n

    # ---- MLP branch with its own LayerNorm + modulation (f32 elementwise)
    c3 = (scale_mlp * _layernorm(c2) + shift_mlp).astype(bf16)
    x3 = (scale_mlp * _layernorm(x2) + shift_mlp).astype(bf16)

    h_c = _gelu_tanh(jnp.dot(c3, w1_c_ref[...], preferred_element_type=f32)
                     + b1_c_ref[...])
    c4 = jnp.dot(h_c.astype(bf16), w2_c_ref[...], preferred_element_type=f32) + b2_c_ref[...]
    h_x = _gelu_tanh(jnp.dot(x3, w1_x_ref[...], preferred_element_type=f32)
                     + b1_x_ref[...])
    x4 = jnp.dot(h_x.astype(bf16), w2_x_ref[...], preferred_element_type=f32) + b2_x_ref[...]

    out_c_ref[0] = gate_mlp * c4 + c_n
    out_x_ref[0] = gate_mlp * x4 + x_n


# --------------------------------- wrapper --------------------------------------

def _adaln_modulations(timestep_embed, w_aff, b_aff):
    # SiLU -> Linear -> (B, 6, D). Hoisted out of the kernel (M=1 matmul + big weight).
    t = _silu(timestep_embed)                                            # (B, D) f32
    aff = jnp.dot(t, w_aff, precision=jax.lax.Precision.HIGHEST) + b_aff  # (B, 6D)
    B = aff.shape[0]
    D = aff.shape[1] // 6
    return aff.reshape(B, 6, D)


def _vmem_capacity_bytes():
    # Generation-aware VMEM cap: 128 MiB on v5e/v6e, 64 MiB per core on v7x.
    try:
        return int(pltpu.get_tpu_info().vmem_capacity_bytes)
    except Exception:
        return 64 * 1024 * 1024


def _vmem_limit_bytes(weights, S_c, S_x, D, heads, single_buffer_weights):
    # Size the scoped VMEM limit to the actual residency (+headroom), capped at
    # ~90% of the generation's physical VMEM; floored at 32 MiB.
    wbytes = sum(int(w.size) * w.dtype.itemsize for w in weights)
    if not single_buffer_weights:
        wbytes *= 2                                      # double-buffered weight blocks
    S = S_c + S_x
    in_blocks = 2 * 4 * (6 * D + 2 * S * D)              # double-buffered f32 input blocks
    out_blocks = 2 * 4 * (2 * S * D)                     # double-buffered f32 OUTPUT blocks
    scratch = 3 * 2 * S * D                              # bf16 head-major q/k/v scratch
    tmp = 4 * (2 * heads * S * S                         # scores + exp/p
               + 3 * S * D                               # per-stream qkv f32 results
               + 2 * heads * S * D                       # out-proj per-head partials
               + 8 * S * D                               # MLP hidden (f32)
               + 4 * S * D)                              # misc residual/norm temporaries
    est = int(1.4 * (wbytes + in_blocks + out_blocks + scratch + tmp))
    cap = int(0.9 * _vmem_capacity_bytes())
    return max(32 * 1024 * 1024, min(est, cap))


def _cost_estimate(B, S_c, S_x, D, heads, weights):
    S = S_c + S_x
    flops = B * (2 * S * D * 3 * D        # fused QKV projections
                 + 4 * S * S * D          # scores + attn @ V
                 + 2 * S * D * D          # output projections
                 + 16 * S * D * D)        # two-layer MLP (4x hidden), both streams
    transcendentals = B * (heads * S * S  # softmax exp
                           + 4 * S * D    # GELU tanh on the 4D-wide hidden
                           + 4 * S)       # LayerNorm rsqrt
    wbytes = sum(int(w.size) * w.dtype.itemsize for w in weights)
    bytes_accessed = wbytes + B * 4 * (6 * D + 4 * S * D)   # weights + f32 activations in/out
    return int(flops), int(transcendentals), int(bytes_accessed)


def mm_dit_forward(timestep_embed, label_embed, patch_embed, params, heads,
                   *, single_buffer_weights=True):
    B, S_c, D = label_embed.shape
    _, S_x, _ = patch_embed.shape
    S = S_c + S_x
    hd = D // heads
    bf16 = jnp.bfloat16

    # adaLN hoisted out of the kernel; modulation vectors stay f32.
    mods = _adaln_modulations(timestep_embed, params["w_aff"], params["b_aff"])  # (B,6,D)

    # Fused QKV weights per stream; head-blocked output-projection weights so the
    # kernel never has to relayout the head-major attention output. All matmul
    # weights cast to bf16 (biases stay f32, they add into the f32 accumulator).
    wqkv_c = jnp.concatenate([params["wq_c"], params["wk_c"], params["wv_c"]], axis=1).astype(bf16)
    wqkv_x = jnp.concatenate([params["wq_x"], params["wk_x"], params["wv_x"]], axis=1).astype(bf16)
    wo_c_hm = params["wo_c"].reshape(heads, hd, D).astype(bf16)
    wo_x_hm = params["wo_x"].reshape(heads, hd, D).astype(bf16)

    weights = [
        wqkv_c, wqkv_x, wo_c_hm, wo_x_hm,
        params["w1_c"].astype(bf16), params["b1_c"],
        params["w2_c"].astype(bf16), params["b2_c"],
        params["w1_x"].astype(bf16), params["b1_x"],
        params["w2_x"].astype(bf16), params["b2_x"],
    ]

    # Weight blocks have a constant index map across the batch grid -> single
    # buffer. (Fallback double-buffers them; for production sizes prefer staging
    # them once via memory_space=pl.ANY + pltpu.sync_copy under pl.when(b == 0).)
    pipeline_mode = pl.Buffered(1) if single_buffer_weights else None

    def w_spec(arr):
        idx = lambda b, _nd=arr.ndim: (0,) * _nd
        if pipeline_mode is None:
            return pl.BlockSpec(arr.shape, idx)
        return pl.BlockSpec(arr.shape, idx, pipeline_mode=pipeline_mode)

    in_specs = [
        pl.BlockSpec((1, 6, D), lambda b: (b, 0, 0)),      # modulations (B,6,D)
        pl.BlockSpec((1, S_c, D), lambda b: (b, 0, 0)),    # labels      (B,S_c,D)
        pl.BlockSpec((1, S_x, D), lambda b: (b, 0, 0)),    # patches     (B,S_x,D)
    ] + [w_spec(w) for w in weights]

    out_specs = [
        pl.BlockSpec((1, S_c, D), lambda b: (b, 0, 0)),
        pl.BlockSpec((1, S_x, D), lambda b: (b, 0, 0)),
    ]
    out_shape = [
        jax.ShapeDtypeStruct((B, S_c, D), jnp.float32),
        jax.ShapeDtypeStruct((B, S_x, D), jnp.float32),
    ]

    # Head-major joint-sequence Q/K/V scratch (replaces lane-sliced (S, 3D) buffer).
    scratch_shapes = [
        pltpu.VMEM((heads, S, hd), bf16),   # Q
        pltpu.VMEM((heads, S, hd), bf16),   # K
        pltpu.VMEM((heads, S, hd), bf16),   # V
    ]

    flops, transc, bytes_acc = _cost_estimate(B, S_c, S_x, D, heads, weights)

    kernel = functools.partial(_mm_dit_kernel, heads, S_c, S_x, D)
    return pl.pallas_call(
        kernel,
        grid=(B,),
        in_specs=in_specs,
        out_specs=out_specs,
        out_shape=out_shape,
        scratch_shapes=scratch_shapes,
        cost_estimate=pl.CostEstimate(flops=flops, transcendentals=transc,
                                      bytes_accessed=bytes_acc),
        compiler_params=pltpu.CompilerParams(
            dimension_semantics=("parallel",),
            vmem_limit_bytes=_vmem_limit_bytes(weights, S_c, S_x, D, heads,
                                               single_buffer_weights),
        ),
    )(mods, label_embed, patch_embed, *weights)


# ------------------------- deterministic parameter init --------------------------

def init_params(key, hidden):
    D = hidden
    shapes = {
        "w_aff": (D, 6 * D), "b_aff": (1, 6 * D),
        "wq_c": (D, D), "wk_c": (D, D), "wv_c": (D, D), "wo_c": (D, D),
        "wq_x": (D, D), "wk_x": (D, D), "wv_x": (D, D), "wo_x": (D, D),
        "w1_c": (D, 4 * D), "b1_c": (1, 4 * D), "w2_c": (4 * D, D), "b2_c": (1, D),
        "w1_x": (D, 4 * D), "b1_x": (1, 4 * D), "w2_x": (4 * D, D), "b2_x": (1, D),
    }
    keys = jax.random.split(key, len(shapes))
    params = {}
    for k, (name, shp) in zip(keys, shapes.items()):
        params[name] = (0.05 * jax.random.normal(k, shp)).astype(jnp.float32)
    return params


# ------------------------------ pure-JAX reference --------------------------------

def mm_dit_reference(t, c, x, p, heads):
    D = c.shape[-1]
    hd = D // heads
    pr = jax.lax.Precision.HIGHEST

    def lin(v, w):
        return jnp.einsum("bsd,de->bse", v, w, precision=pr)

    ts = _silu(t[:, None, :])
    aff = lin(ts, p["w_aff"]) + p["b_aff"][None]
    alpha, beta, gamma, sc_mlp, sh_mlp, g_mlp = jnp.split(aff, 6, axis=-1)

    c_n = _layernorm(c)
    x_n = _layernorm(x)
    cm = alpha * c_n + beta
    xm = alpha * x_n + beta

    q = jnp.concatenate([lin(cm, p["wq_c"]), lin(xm, p["wq_x"])], axis=1)
    k = jnp.concatenate([lin(cm, p["wk_c"]), lin(xm, p["wk_x"])], axis=1)
    v = jnp.concatenate([lin(cm, p["wv_c"]), lin(xm, p["wv_x"])], axis=1)

    B, S, _ = q.shape
    qh = q.reshape(B, S, heads, hd).transpose(0, 2, 1, 3)
    kh = k.reshape(B, S, heads, hd).transpose(0, 2, 1, 3)
    vh = v.reshape(B, S, heads, hd).transpose(0, 2, 1, 3)
    s = jnp.einsum("bhqd,bhkd->bhqk", qh, kh, precision=pr) * (hd ** -0.5)
    a = jax.nn.softmax(s, axis=-1)
    o = jnp.einsum("bhqk,bhkd->bhqd", a, vh, precision=pr)
    o = o.transpose(0, 2, 1, 3).reshape(B, S, D)

    S_c = c.shape[1]
    oc = lin(o[:, :S_c], p["wo_c"])
    ox = lin(o[:, S_c:], p["wo_x"])

    c2 = gamma * oc + c_n
    x2 = gamma * ox + x_n
    c3 = sc_mlp * _layernorm(c2) + sh_mlp
    x3 = sc_mlp * _layernorm(x2) + sh_mlp
    c4 = lin(_gelu_tanh(lin(c3, p["w1_c"]) + p["b1_c"][None]), p["w2_c"]) + p["b2_c"][None]
    x4 = lin(_gelu_tanh(lin(x3, p["w1_x"]) + p["b1_x"][None]), p["w2_x"]) + p["b2_x"][None]
    return g_mlp * c4 + c_n, g_mlp * x4 + x_n


# ------------------------------------- main ---------------------------------------

if __name__ == "__main__":
    # S_LABEL chosen as a multiple of 16 so the joint-sequence scratch writes are
    # bf16 sublane-tile aligned; D a multiple of 128 for lane-dense slices/stores.
    B, S_LABEL, S_PATCH, D, HEADS = 2, 16, 16, 128, 4

    root = jax.random.PRNGKey(0)
    k_t, k_c, k_x, k_p = jax.random.split(root, 4)

    timestep_embed = jax.random.normal(k_t, (B, D), dtype=jnp.float32)
    label_embed = jax.random.normal(k_c, (B, S_LABEL, D), dtype=jnp.float32)
    patch_embed = jax.random.normal(k_x, (B, S_PATCH, D), dtype=jnp.float32)
    params = init_params(k_p, D)

    ref_c, ref_x = mm_dit_reference(timestep_embed, label_embed, patch_embed,
                                    params, HEADS)

    def _run(single_buffer):
        oc, ox = mm_dit_forward(timestep_embed, label_embed, patch_embed,
                                params, HEADS, single_buffer_weights=single_buffer)
        jax.block_until_ready((oc, ox))
        return oc, ox

    try:
        out_c, out_x = _run(True)
        err = max(float(jnp.max(jnp.abs(out_c - ref_c))),
                  float(jnp.max(jnp.abs(out_x - ref_x))))
        if not (err < 2e-2):
            raise ValueError(f"single-buffer path numerics off: {err}")
    except Exception:
        # Fallback for JAX versions that reject single-buffered (pl.Buffered(1))
        # weight blocks; numerics are identical, weights just double-buffer.
        out_c, out_x = _run(False)

    err_c = float(jnp.max(jnp.abs(out_c - ref_c)))
    err_x = float(jnp.max(jnp.abs(out_x - ref_x)))
    # bf16 matmul operands with f32 accumulation vs. an all-f32 HIGHEST reference.
    assert err_c < 2e-2 and err_x < 2e-2, (err_c, err_x)

    print("KERNEL_OK")
</pallas_src>

<mosaic_0001>
module attributes {stable_mosaic.version = 11 : i64} {
  func.func @_mm_dit_kernel(%arg0: i32, %arg1: memref<1x6x128xf32, #tpu.memory_space<vmem>>, %arg2: memref<1x16x128xf32, #tpu.memory_space<vmem>>, %arg3: memref<1x16x128xf32, #tpu.memory_space<vmem>>, %arg4: memref<128x384xbf16, #tpu.memory_space<vmem>>, %arg5: memref<128x384xbf16, #tpu.memory_space<vmem>>, %arg6: memref<4x32x128xbf16, #tpu.memory_space<vmem>>, %arg7: memref<4x32x128xbf16, #tpu.memory_space<vmem>>, %arg8: memref<128x512xbf16, #tpu.memory_space<vmem>>, %arg9: memref<1x512xf32, #tpu.memory_space<vmem>>, %arg10: memref<512x128xbf16, #tpu.memory_space<vmem>>, %arg11: memref<1x128xf32, #tpu.memory_space<vmem>>, %arg12: memref<128x512xbf16, #tpu.memory_space<vmem>>, %arg13: memref<1x512xf32, #tpu.memory_space<vmem>>, %arg14: memref<512x128xbf16, #tpu.memory_space<vmem>>, %arg15: memref<1x128xf32, #tpu.memory_space<vmem>>, %arg16: memref<1x16x128xf32, #tpu.memory_space<vmem>>, %arg17: memref<1x16x128xf32, #tpu.memory_space<vmem>>, %arg18: memref<4x32x32xbf16, #tpu.memory_space<vmem>>, %arg19: memref<4x32x32xbf16, #tpu.memory_space<vmem>>, %arg20: memref<4x32x32xbf16, #tpu.memory_space<vmem>>) attributes {dimension_semantics = [#tpu.dimension_semantics<parallel>], iteration_bounds = array<i64: 2>, scalar_prefetch = 0 : i64, scratch_operands = 3 : i64, tpu.core_type = #tpu.core_type<tc>, window_params = [{transform_indices = @transform_0, window_bounds = array<i64: 1, 6, 128>}, {transform_indices = @transform_1, window_bounds = array<i64: 1, 16, 128>}, {transform_indices = @transform_2, window_bounds = array<i64: 1, 16, 128>}, {pipeline_mode = #tpu.pipeline_mode<synchronous>, transform_indices = @transform_3, window_bounds = array<i64: 128, 384>}, {pipeline_mode = #tpu.pipeline_mode<synchronous>, transform_indices = @transform_4, window_bounds = array<i64: 128, 384>}, {pipeline_mode = #tpu.pipeline_mode<synchronous>, transform_indices = @transform_5, window_bounds = array<i64: 4, 32, 128>}, {pipeline_mode = #tpu.pipeline_mode<synchronous>, transform_indices = @transform_6, window_bounds = array<i64: 4, 32, 128>}, {pipeline_mode = #tpu.pipeline_mode<synchronous>, transform_indices = @transform_7, window_bounds = array<i64: 128, 512>}, {pipeline_mode = #tpu.pipeline_mode<synchronous>, transform_indices = @transform_8, window_bounds = array<i64: 1, 512>}, {pipeline_mode = #tpu.pipeline_mode<synchronous>, transform_indices = @transform_9, window_bounds = array<i64: 512, 128>}, {pipeline_mode = #tpu.pipeline_mode<synchronous>, transform_indices = @transform_10, window_bounds = array<i64: 1, 128>}, {pipeline_mode = #tpu.pipeline_mode<synchronous>, transform_indices = @transform_11, window_bounds = array<i64: 128, 512>}, {pipeline_mode = #tpu.pipeline_mode<synchronous>, transform_indices = @transform_12, window_bounds = array<i64: 1, 512>}, {pipeline_mode = #tpu.pipeline_mode<synchronous>, transform_indices = @transform_13, window_bounds = array<i64: 512, 128>}, {pipeline_mode = #tpu.pipeline_mode<synchronous>, transform_indices = @transform_14, window_bounds = array<i64: 1, 128>}, {transform_indices = @transform_15, window_bounds = array<i64: 1, 16, 128>}, {transform_indices = @transform_16, window_bounds = array<i64: 1, 16, 128>}]} {
    %c0 = arith.constant 0 : index
    %c0_0 = arith.constant 0 : index
    %c0_1 = arith.constant 0 : index
    %0 = vector.load %arg1[%c0, %c0_0, %c0_1] : memref<1x6x128xf32, #tpu.memory_space<vmem>>, vector<1x1x128xf32>
    %1 = vector.shape_cast %0 : vector<1x1x128xf32> to vector<1x128xf32>
    %c0_2 = arith.constant 0 : index
    %c1 = arith.constant 1 : index
    %c0_3 = arith.constant 0 : index
    %2 = vector.load %arg1[%c0_2, %c1, %c0_3] : memref<1x6x128xf32, #tpu.memory_space<vmem>>, vector<1x1x128xf32>
    %3 = vector.shape_cast %2 : vector<1x1x128xf32> to vector<1x128xf32>
    %c0_4 = arith.constant 0 : index
    %c2 = arith.constant 2 : index
    %c0_5 = arith.constant 0 : index
    %4 = vector.load %arg1[%c0_4, %c2, %c0_5] : memref<1x6x128xf32, #tpu.memory_space<vmem>>, vector<1x1x128xf32>
    %5 = vector.shape_cast %4 : vector<1x1x128xf32> to vector<1x128xf32>
    %c0_6 = arith.constant 0 : index
    %c3 = arith.constant 3 : index
    %c0_7 = arith.constant 0 : index
    %6 = vector.load %arg1[%c0_6, %c3, %c0_7] : memref<1x6x128xf32, #tpu.memory_space<vmem>>, vector<1x1x128xf32>
    %7 = vector.shape_cast %6 : vector<1x1x128xf32> to vector<1x128xf32>
    %c0_8 = arith.constant 0 : index
    %c4 = arith.constant 4 : index
    %c0_9 = arith.constant 0 : index
    %8 = vector.load %arg1[%c0_8, %c4, %c0_9] : memref<1x6x128xf32, #tpu.memory_space<vmem>>, vector<1x1x128xf32>
    %9 = vector.shape_cast %8 : vector<1x1x128xf32> to vector<1x128xf32>
    %c0_10 = arith.constant 0 : index
    %c5 = arith.constant 5 : index
    %c0_11 = arith.constant 0 : index
    %10 = vector.load %arg1[%c0_10, %c5, %c0_11] : memref<1x6x128xf32, #tpu.memory_space<vmem>>, vector<1x1x128xf32>
    %11 = vector.shape_cast %10 : vector<1x1x128xf32> to vector<1x128xf32>
    %c0_12 = arith.constant 0 : index
    %c0_13 = arith.constant 0 : index
    %c0_14 = arith.constant 0 : index
    %12 = vector.load %arg2[%c0_12, %c0_13, %c0_14] : memref<1x16x128xf32, #tpu.memory_space<vmem>>, vector<1x16x128xf32>
    %13 = vector.shape_cast %12 : vector<1x16x128xf32> to vector<16x128xf32>
    %cst = arith.constant dense<0.000000e+00> : vector<16xf32>
    %14 = vector.multi_reduction <add>, %13, %cst [1] : vector<16x128xf32> to vector<16xf32>
    %15 = vector.shape_cast %14 : vector<16xf32> to vector<16x1xf32>
    %cst_15 = arith.constant 1.280000e+02 : f32
    %16 = vector.broadcast %cst_15 : f32 to vector<16x1xf32>
    %17 = arith.divf %15, %16 : vector<16x1xf32>
    %18 = vector.broadcast %17 : vector<16x1xf32> to vector<16x128xf32>
    %19 = arith.subf %13, %18 : vector<16x128xf32>
    %20 = arith.mulf %19, %19 : vector<16x128xf32>
    %cst_16 = arith.constant dense<0.000000e+00> : vector<16xf32>
    %21 = vector.multi_reduction <add>, %20, %cst_16 [1] : vector<16x128xf32> to vector<16xf32>
    %22 = vector.shape_cast %21 : vector<16xf32> to vector<16x1xf32>
    %cst_17 = arith.constant 1.280000e+02 : f32
    %23 = vector.broadcast %cst_17 : f32 to vector<16x1xf32>
    %24 = arith.divf %22, %23 : vector<16x1xf32>
    %25 = vector.broadcast %17 : vector<16x1xf32> to vector<16x128xf32>
    %26 = arith.subf %13, %25 : vector<16x128xf32>
    %cst_18 = arith.constant 9.99999997E-7 : f32
    %27 = vector.broadcast %cst_18 : f32 to vector<16x1xf32>
    %28 = arith.addf %24, %27 : vector<16x1xf32>
    %29 = math.rsqrt %28 : vector<16x1xf32>
    %30 = vector.broadcast %29 : vector<16x1xf32> to vector<16x128xf32>
    %31 = arith.mulf %26, %30 : vector<16x128xf32>
    %c0_19 = arith.constant 0 : index
    %c0_20 = arith.constant 0 : index
    %c0_21 = arith.constant 0 : index
    %32 = vector.load %arg3[%c0_19, %c0_20, %c0_21] : memref<1x16x128xf32, #tpu.memory_space<vmem>>, vector<1x16x128xf32>
    %33 = vector.shape_cast %32 : vector<1x16x128xf32> to vector<16x128xf32>
    %cst_22 = arith.constant dense<0.000000e+00> : vector<16xf32>
    %34 = vector.multi_reduction <add>, %33, %cst_22 [1] : vector<16x128xf32> to vector<16xf32>
    %35 = vector.shape_cast %34 : vector<16xf32> to vector<16x1xf32>
    %cst_23 = arith.constant 1.280000e+02 : f32
    %36 = vector.broadcast %cst_23 : f32 to vector<16x1xf32>
    %37 = arith.divf %35, %36 : vector<16x1xf32>
    %38 = vector.broadcast %37 : vector<16x1xf32> to vector<16x128xf32>
    %39 = arith.subf %33, %38 : vector<16x128xf32>
    %40 = arith.mulf %39, %39 : vector<16x128xf32>
    %cst_24 = arith.constant dense<0.000000e+00> : vector<16xf32>
    %41 = vector.multi_reduction <add>, %40, %cst_24 [1] : vector<16x128xf32> to vector<16xf32>
    %42 = vector.shape_cast %41 : vector<16xf32> to vector<16x1xf32>
    %cst_25 = arith.constant 1.280000e+02 : f32
    %43 = vector.broadcast %cst_25 : f32 to vector<16x1xf32>
    %44 = arith.divf %42, %43 : vector<16x1xf32>
    %45 = vector.broadcast %37 : vector<16x1xf32> to vector<16x128xf32>
    %46 = arith.subf %33, %45 : vector<16x128xf32>
    %cst_26 = arith.constant 9.99999997E-7 : f32
    %47 = vector.broadcast %cst_26 : f32 to vector<16x1xf32>
    %48 = arith.addf %44, %47 : vector<16x1xf32>
    %49 = math.rsqrt %48 : vector<16x1xf32>
    %50 = vector.broadcast %49 : vector<16x1xf32> to vector<16x128xf32>
    %51 = arith.mulf %46, %50 : vector<16x128xf32>
    %52 = vector.broadcast %1 : vector<1x128xf32> to vector<16x128xf32>
    %53 = arith.mulf %52, %31 : vector<16x128xf32>
    %54 = vector.broadcast %3 : vector<1x128xf32> to vector<16x128xf32>
    %55 = arith.addf %53, %54 : vector<16x128xf32>
    %56 = arith.truncf %55 : vector<16x128xf32> to vector<16x128xbf16>
    %57 = vector.broadcast %1 : vector<1x128xf32> to vector<16x128xf32>
    %58 = arith.mulf %57, %51 : vector<16x128xf32>
    %59 = vector.broadcast %3 : vector<1x128xf32> to vector<16x128xf32>
    %60 = arith.addf %58, %59 : vector<16x128xf32>
    %61 = arith.truncf %60 : vector<16x128xf32> to vector<16x128xbf16>
    %c0_27 = arith.constant 0 : index
    %c0_28 = arith.constant 0 : index
    %62 = vector.load %arg4[%c0_27, %c0_28] : memref<128x384xbf16, #tpu.memory_space<vmem>>, vector<128x384xbf16>
    %cst_29 = arith.constant dense<0.000000e+00> : vector<16x384xf32>
    %63 = tpu.matmul %56, %62, %cst_29 {dimension_numbers = #tpu.dot_dimension_numbers<[1], [0], [0], [1], [0, 0, 1, 1], [], []>} : vector<16x128xbf16>, vector<128x384xbf16>, vector<16x384xf32> -> vector<16x384xf32>
    %64 = vector.extract_strided_slice %63 {offsets = [0, 0], sizes = [16, 128], strides = [1, 1]} : vector<16x384xf32> to vector<16x128xf32>
    %65 = vector.shape_cast %64 : vector<16x128xf32> to vector<16x4x32xf32>
    %66 = tpu.transpose %65, [1, 0, 2] : vector<16x4x32xf32> -> vector<4x16x32xf32>
    %67 = arith.truncf %66 : vector<4x16x32xf32> to vector<4x16x32xbf16>
    %c0_30 = arith.constant 0 : index
    %c0_31 = arith.constant 0 : index
    %c0_32 = arith.constant 0 : index
    %68 = vector.load %arg18[%c0_30, %c0_31, %c0_32] : memref<4x32x32xbf16, #tpu.memory_space<vmem>>, vector<4x16x32xbf16>
    tpu.vector_store %arg18[%c0_30, %c0_31, %c0_32], %67 {strides = array<i32>} : memref<4x32x32xbf16, #tpu.memory_space<vmem>>, vector<4x16x32xbf16>,
    %69 = vector.extract_strided_slice %63 {offsets = [0, 128], sizes = [16, 128], strides = [1, 1]} : vector<16x384xf32> to vector<16x128xf32>
    %70 = vector.shape_cast %69 : vector<16x128xf32> to vector<16x4x32xf32>
    %71 = tpu.transpose %70, [1, 0, 2] : vector<16x4x32xf32> -> vector<4x16x32xf32>
    %72 = arith.truncf %71 : vector<4x16x32xf32> to vector<4x16x32xbf16>
    %c0_33 = arith.constant 0 : index
    %c0_34 = arith.constant 0 : index
    %c0_35 = arith.constant 0 : index
    %73 = vector.load %arg19[%c0_33, %c0_34, %c0_35] : memref<4x32x32xbf16, #tpu.memory_space<vmem>>, vector<4x16x32xbf16>
    tpu.vector_store %arg19[%c0_33, %c0_34, %c0_35], %72 {strides = array<i32>} : memref<4x32x32xbf16, #tpu.memory_space<vmem>>, vector<4x16x32xbf16>,
    %74 = vector.extract_strided_slice %63 {offsets = [0, 256], sizes = [16, 128], strides = [1, 1]} : vector<16x384xf32> to vector<16x128xf32>
    %75 = vector.shape_cast %74 : vector<16x128xf32> to vector<16x4x32xf32>
    %76 = tpu.transpose %75, [1, 0, 2] : vector<16x4x32xf32> -> vector<4x16x32xf32>
    %77 = arith.truncf %76 : vector<4x16x32xf32> to vector<4x16x32xbf16>
    %c0_36 = arith.constant 0 : index
    %c0_37 = arith.constant 0 : index
    %c0_38 = arith.constant 0 : index
    %78 = vector.load %arg20[%c0_36, %c0_37, %c0_38] : memref<4x32x32xbf16, #tpu.memory_space<vmem>>, vector<4x16x32xbf16>
    tpu.vector_store %arg20[%c0_36, %c0_37, %c0_38], %77 {strides = array<i32>} : memref<4x32x32xbf16, #tpu.memory_space<vmem>>, vector<4x16x32xbf16>,
    %c0_39 = arith.constant 0 : index
    %c0_40 = arith.constant 0 : index
    %79 = vector.load %arg5[%c0_39, %c0_40] : memref<128x384xbf16, #tpu.memory_space<vmem>>, vector<128x384xbf16>
    %cst_41 = arith.constant dense<0.000000e+00> : vector<16x384xf32>
    %80 = tpu.matmul %61, %79, %cst_41 {dimension_numbers = #tpu.dot_dimension_numbers<[1], [0], [0], [1], [0, 0, 1, 1], [], []>} : vector<16x128xbf16>, vector<128x384xbf16>, vector<16x384xf32> -> vector<16x384xf32>
    %81 = vector.extract_strided_slice %80 {offsets = [0, 0], sizes = [16, 128], strides = [1, 1]} : vector<16x384xf32> to vector<16x128xf32>
    %82 = vector.shape_cast %81 : vector<16x128xf32> to vector<16x4x32xf32>
    %83 = tpu.transpose %82, [1, 0, 2] : vector<16x4x32xf32> -> vector<4x16x32xf32>
    %84 = arith.truncf %83 : vector<4x16x32xf32> to vector<4x16x32xbf16>
    %c0_42 = arith.constant 0 : index
    %c16 = arith.constant 16 : index
    %c0_43 = arith.constant 0 : index
    %85 = vector.load %arg18[%c0_42, %c16, %c0_43] : memref<4x32x32xbf16, #tpu.memory_space<vmem>>, vector<4x16x32xbf16>
    tpu.vector_store %arg18[%c0_42, %c16, %c0_43], %84 {strides = array<i32>} : memref<4x32x32xbf16, #tpu.memory_space<vmem>>, vector<4x16x32xbf16>,
    %86 = vector.extract_strided_slice %80 {offsets = [0, 128], sizes = [16, 128], strides = [1, 1]} : vector<16x384xf32> to vector<16x128xf32>
    %87 = vector.shape_cast %86 : vector<16x128xf32> to vector<16x4x32xf32>
    %88 = tpu.transpose %87, [1, 0, 2] : vector<16x4x32xf32> -> vector<4x16x32xf32>
    %89 = arith.truncf %88 : vector<4x16x32xf32> to vector<4x16x32xbf16>
    %c0_44 = arith.constant 0 : index
    %c16_45 = arith.constant 16 : index
    %c0_46 = arith.constant 0 : index
    %90 = vector.load %arg19[%c0_44, %c16_45, %c0_46] : memref<4x32x32xbf16, #tpu.memory_space<vmem>>, vector<4x16x32xbf16>
    tpu.vector_store %arg19[%c0_44, %c16_45, %c0_46], %89 {strides = array<i32>} : memref<4x32x32xbf16, #tpu.memory_space<vmem>>, vector<4x16x32xbf16>,
    %91 = vector.extract_strided_slice %80 {offsets = [0, 256], sizes = [16, 128], strides = [1, 1]} : vector<16x384xf32> to vector<16x128xf32>
    %92 = vector.shape_cast %91 : vector<16x128xf32> to vector<16x4x32xf32>
    %93 = tpu.transpose %92, [1, 0, 2] : vector<16x4x32xf32> -> vector<4x16x32xf32>
    %94 = arith.truncf %93 : vector<4x16x32xf32> to vector<4x16x32xbf16>
    %c0_47 = arith.constant 0 : index
    %c16_48 = arith.constant 16 : index
    %c0_49 = arith.constant 0 : index
    %95 = vector.load %arg20[%c0_47, %c16_48, %c0_49] : memref<4x32x32xbf16, #tpu.memory_space<vmem>>, vector<4x16x32xbf16>
    tpu.vector_store %arg20[%c0_47, %c16_48, %c0_49], %94 {strides = array<i32>} : memref<4x32x32xbf16, #tpu.memory_space<vmem>>, vector<4x16x32xbf16>,
    %c0_50 = arith.constant 0 : index
    %c0_51 = arith.constant 0 : index
    %c0_52 = arith.constant 0 : index
    %96 = vector.load %arg18[%c0_50, %c0_51, %c0_52] : memref<4x32x32xbf16, #tpu.memory_space<vmem>>, vector<4x32x32xbf16>
    %c0_53 = arith.constant 0 : index
    %c0_54 = arith.constant 0 : index
    %c0_55 = arith.constant 0 : index
    %97 = vector.load %arg19[%c0_53, %c0_54, %c0_55] : memref<4x32x32xbf16, #tpu.memory_space<vmem>>, vector<4x32x32xbf16>
    "tpu.trace_start"() <{level = 10 : i32, message = "hqd,hkd->hqk"}> : () -> ()
    %cst_56 = arith.constant dense<0.000000e+00> : vector<4x32x32xf32>
    %98 = tpu.matmul %96, %97, %cst_56 {dimension_numbers = #tpu.dot_dimension_numbers<[2], [2], [1], [1], [0, 0, 0, 1, 1, 1], [0], [0]>} : vector<4x32x32xbf16>, vector<4x32x32xbf16>, vector<4x32x32xf32> -> vector<4x32x32xf32>
    "tpu.trace_stop"() : () -> ()
    %cst_57 = arith.constant 0.176776692 : f32
    %99 = vector.broadcast %cst_57 : f32 to vector<4x32x32xf32>
    %100 = arith.mulf %98, %99 : vector<4x32x32xf32>
    %cst_58 = arith.constant dense<0xFF800000> : vector<4x32xf32>
    %101 = vector.multi_reduction <maximumf>, %100, %cst_58 [2] : vector<4x32x32xf32> to vector<4x32xf32>
    %102 = vector.shape_cast %101 : vector<4x32xf32> to vector<4x32x1xf32>
    %103 = vector.broadcast %102 : vector<4x32x1xf32> to vector<4x32x32xf32>
    %104 = arith.subf %100, %103 : vector<4x32x32xf32>
    %105 = math.exp %104 : vector<4x32x32xf32>
    %cst_59 = arith.constant dense<0.000000e+00> : vector<4x32xf32>
    %106 = vector.multi_reduction <add>, %105, %cst_59 [2] : vector<4x32x32xf32> to vector<4x32xf32>
    %107 = vector.shape_cast %106 : vector<4x32xf32> to vector<4x32x1xf32>
    %108 = tpu.reciprocal %107 {approx = true} : vector<4x32x1xf32> -> vector<4x32x1xf32>
    %109 = vector.broadcast %108 : vector<4x32x1xf32> to vector<4x32x32xf32>
    %110 = arith.mulf %105, %109 : vector<4x32x32xf32>
    %111 = arith.truncf %110 : vector<4x32x32xf32> to vector<4x32x32xbf16>
    %c0_60 = arith.constant 0 : index
    %c0_61 = arith.constant 0 : index
    %c0_62 = arith.constant 0 : index
    %112 = vector.load %arg20[%c0_60, %c0_61, %c0_62] : memref<4x32x32xbf16, #tpu.memory_space<vmem>>, vector<4x32x32xbf16>
    "tpu.trace_start"() <{level = 10 : i32, message = "hqk,hkd->hqd"}> : () -> ()
    %cst_63 = arith.constant dense<0.000000e+00> : vector<4x32x32xf32>
    %113 = tpu.matmul %111, %112, %cst_63 {dimension_numbers = #tpu.dot_dimension_numbers<[2], [1], [1], [2], [0, 0, 0, 1, 1, 2], [0], [0]>} : vector<4x32x32xbf16>, vector<4x32x32xbf16>, vector<4x32x32xf32> -> vector<4x32x32xf32>
    "tpu.trace_stop"() : () -> ()
    %114 = arith.truncf %113 : vector<4x32x32xf32> to vector<4x32x32xbf16>
    %115 = vector.extract_strided_slice %114 {offsets = [0, 0, 0], sizes = [4, 16, 32], strides = [1, 1, 1]} : vector<4x32x32xbf16> to vector<4x16x32xbf16>
    %c0_64 = arith.constant 0 : index
    %c0_65 = arith.constant 0 : index
    %c0_66 = arith.constant 0 : index
    %116 = vector.load %arg6[%c0_64, %c0_65, %c0_66] : memref<4x32x128xbf16, #tpu.memory_space<vmem>>, vector<4x32x128xbf16>
    "tpu.trace_start"() <{level = 10 : i32, message = "hqd,hdn->hqn"}> : () -> ()
    %cst_67 = arith.constant dense<0.000000e+00> : vector<4x16x128xf32>
    %117 = tpu.matmul %115, %116, %cst_67 {dimension_numbers = #tpu.dot_dimension_numbers<[2], [1], [1], [2], [0, 0, 0, 1, 1, 2], [0], [0]>} : vector<4x16x32xbf16>, vector<4x32x128xbf16>, vector<4x16x128xf32> -> vector<4x16x128xf32>
    "tpu.trace_stop"() : () -> ()
    %cst_68 = arith.constant dense<0.000000e+00> : vector<16x128xf32>
    %118 = vector.multi_reduction <add>, %117, %cst_68 [0] : vector<4x16x128xf32> to vector<16x128xf32>
    %119 = vector.extract_strided_slice %114 {offsets = [0, 16, 0], sizes = [4, 16, 32], strides = [1, 1, 1]} : vector<4x32x32xbf16> to vector<4x16x32xbf16>
    %c0_69 = arith.constant 0 : index
    %c0_70 = arith.constant 0 : index
    %c0_71 = arith.constant 0 : index
    %120 = vector.load %arg7[%c0_69, %c0_70, %c0_71] : memref<4x32x128xbf16, #tpu.memory_space<vmem>>, vector<4x32x128xbf16>
    "tpu.trace_start"() <{level = 10 : i32, message = "hqd,hdn->hqn"}> : () -> ()
    %cst_72 = arith.constant dense<0.000000e+00> : vector<4x16x128xf32>
    %121 = tpu.matmul %119, %120, %cst_72 {dimension_numbers = #tpu.dot_dimension_numbers<[2], [1], [1], [2], [0, 0, 0, 1, 1, 2], [0], [0]>} : vector<4x16x32xbf16>, vector<4x32x128xbf16>, vector<4x16x128xf32> -> vector<4x16x128xf32>
    "tpu.trace_stop"() : () -> ()
    %cst_73 = arith.constant dense<0.000000e+00> : vector<16x128xf32>
    %122 = vector.multi_reduction <add>, %121, %cst_73 [0] : vector<4x16x128xf32> to vector<16x128xf32>
    %123 = vector.broadcast %5 : vector<1x128xf32> to vector<16x128xf32>
    %124 = arith.mulf %123, %118 : vector<16x128xf32>
    %125 = arith.addf %124, %31 : vector<16x128xf32>
    %126 = vector.broadcast %5 : vector<1x128xf32> to vector<16x128xf32>
    %127 = arith.mulf %126, %122 : vector<16x128xf32>
    %128 = arith.addf %127, %51 : vector<16x128xf32>
    %cst_74 = arith.constant dense<0.000000e+00> : vector<16xf32>
    %129 = vector.multi_reduction <add>, %125, %cst_74 [1] : vector<16x128xf32> to vector<16xf32>
    %130 = vector.shape_cast %129 : vector<16xf32> to vector<16x1xf32>
    %cst_75 = arith.constant 1.280000e+02 : f32
    %131 = vector.broadcast %cst_75 : f32 to vector<16x1xf32>
    %132 = arith.divf %130, %131 : vector<16x1xf32>
    %133 = vector.broadcast %132 : vector<16x1xf32> to vector<16x128xf32>
    %134 = arith.subf %125, %133 : vector<16x128xf32>
    %135 = arith.mulf %134, %134 : vector<16x128xf32>
    %cst_76 = arith.constant dense<0.000000e+00> : vector<16xf32>
    %136 = vector.multi_reduction <add>, %135, %cst_76 [1] : vector<16x128xf32> to vector<16xf32>
    %137 = vector.shape_cast %136 : vector<16xf32> to vector<16x1xf32>
    %cst_77 = arith.constant 1.280000e+02 : f32
    %138 = vector.broadcast %cst_77 : f32 to vector<16x1xf32>
    %139 = arith.divf %137, %138 : vector<16x1xf32>
    %140 = vector.broadcast %132 : vector<16x1xf32> to vector<16x128xf32>
    %141 = arith.subf %125, %140 : vector<16x128xf32>
    %cst_78 = arith.constant 9.99999997E-7 : f32
    %142 = vector.broadcast %cst_78 : f32 to vector<16x1xf32>
    %143 = arith.addf %139, %142 : vector<16x1xf32>
    %144 = math.rsqrt %143 : vector<16x1xf32>
    %145 = vector.broadcast %144 : vector<16x1xf32> to vector<16x128xf32>
    %146 = arith.mulf %141, %145 : vector<16x128xf32>
    %147 = vector.broadcast %7 : vector<1x128xf32> to vector<16x128xf32>
    %148 = arith.mulf %147, %146 : vector<16x128xf32>
    %149 = vector.broadcast %9 : vector<1x128xf32> to vector<16x128xf32>
    %150 = arith.addf %148, %149 : vector<16x128xf32>
    %151 = arith.truncf %150 : vector<16x128xf32> to vector<16x128xbf16>
    %cst_79 = arith.constant dense<0.000000e+00> : vector<16xf32>
    %152 = vector.multi_reduction <add>, %128, %cst_79 [1] : vector<16x128xf32> to vector<16xf32>
    %153 = vector.shape_cast %152 : vector<16xf32> to vector<16x1xf32>
    %cst_80 = arith.constant 1.280000e+02 : f32
    %154 = vector.broadcast %cst_80 : f32 to vector<16x1xf32>
    %155 = arith.divf %153, %154 : vector<16x1xf32>
    %156 = vector.broadcast %155 : vector<16x1xf32> to vector<16x128xf32>
    %157 = arith.subf %128, %156 : vector<16x128xf32>
    %158 = arith.mulf %157, %157 : vector<16x128xf32>
    %cst_81 = arith.constant dense<0.000000e+00> : vector<16xf32>
    %159 = vector.multi_reduction <add>, %158, %cst_81 [1] : vector<16x128xf32> to vector<16xf32>
    %160 = vector.shape_cast %159 : vector<16xf32> to vector<16x1xf32>
    %cst_82 = arith.constant 1.280000e+02 : f32
    %161 = vector.broadcast %cst_82 : f32 to vector<16x1xf32>
    %162 = arith.divf %160, %161 : vector<16x1xf32>
    %163 = vector.broadcast %155 : vector<16x1xf32> to vector<16x128xf32>
    %164 = arith.subf %128, %163 : vector<16x128xf32>
    %cst_83 = arith.constant 9.99999997E-7 : f32
    %165 = vector.broadcast %cst_83 : f32 to vector<16x1xf32>
    %166 = arith.addf %162, %165 : vector<16x1xf32>
    %167 = math.rsqrt %166 : vector<16x1xf32>
    %168 = vector.broadcast %167 : vector<16x1xf32> to vector<16x128xf32>
    %169 = arith.mulf %164, %168 : vector<16x128xf32>
    %170 = vector.broadcast %7 : vector<1x128xf32> to vector<16x128xf32>
    %171 = arith.mulf %170, %169 : vector<16x128xf32>
    %172 = vector.broadcast %9 : vector<1x128xf32> to vector<16x128xf32>
    %173 = arith.addf %171, %172 : vector<16x128xf32>
    %174 = arith.truncf %173 : vector<16x128xf32> to vector<16x128xbf16>
    %c0_84 = arith.constant 0 : index
    %c0_85 = arith.constant 0 : index
    %175 = vector.load %arg8[%c0_84, %c0_85] : memref<128x512xbf16, #tpu.memory_space<vmem>>, vector<128x512xbf16>
    %cst_86 = arith.constant dense<0.000000e+00> : vector<16x512xf32>
    %176 = tpu.matmul %151, %175, %cst_86 {dimension_numbers = #tpu.dot_dimension_numbers<[1], [0], [0], [1], [0, 0, 1, 1], [], []>} : vector<16x128xbf16>, vector<128x512xbf16>, vector<16x512xf32> -> vector<16x512xf32>
    %c0_87 = arith.constant 0 : index
    %c0_88 = arith.constant 0 : index
    %177 = vector.load %arg9[%c0_87, %c0_88] : memref<1x512xf32, #tpu.memory_space<vmem>>, vector<1x512xf32>
    %178 = vector.broadcast %177 : vector<1x512xf32> to vector<16x512xf32>
    %179 = arith.addf %176, %178 : vector<16x512xf32>
    %cst_89 = arith.constant 5.000000e-01 : f32
    %180 = vector.broadcast %cst_89 : f32 to vector<16x512xf32>
    %181 = arith.mulf %180, %179 : vector<16x512xf32>
    %cst_90 = arith.constant 4.471500e-02 : f32
    %182 = vector.broadcast %cst_90 : f32 to vector<16x512xf32>
    %183 = arith.mulf %182, %179 : vector<16x512xf32>
    %184 = arith.mulf %183, %179 : vector<16x512xf32>
    %185 = arith.mulf %184, %179 : vector<16x512xf32>
    %186 = arith.addf %179, %185 : vector<16x512xf32>
    %cst_91 = arith.constant 0.797884583 : f32
    %187 = vector.broadcast %cst_91 : f32 to vector<16x512xf32>
    %188 = arith.mulf %187, %186 : vector<16x512xf32>
    %189 = math.tanh %188 : vector<16x512xf32>
    %cst_92 = arith.constant 1.000000e+00 : f32
    %190 = vector.broadcast %cst_92 : f32 to vector<16x512xf32>
    %191 = arith.addf %190, %189 : vector<16x512xf32>
    %192 = arith.mulf %181, %191 : vector<16x512xf32>
    %193 = arith.truncf %192 : vector<16x512xf32> to vector<16x512xbf16>
    %c0_93 = arith.constant 0 : index
    %c0_94 = arith.constant 0 : index
    %194 = vector.load %arg10[%c0_93, %c0_94] : memref<512x128xbf16, #tpu.memory_space<vmem>>, vector<512x128xbf16>
    %cst_95 = arith.constant dense<0.000000e+00> : vector<16x128xf32>
    %195 = tpu.matmul %193, %194, %cst_95 {dimension_numbers = #tpu.dot_dimension_numbers<[1], [0], [0], [1], [0, 0, 1, 1], [], []>} : vector<16x512xbf16>, vector<512x128xbf16>, vector<16x128xf32> -> vector<16x128xf32>
    %c0_96 = arith.constant 0 : index
    %c0_97 = arith.constant 0 : index
    %196 = vector.load %arg11[%c0_96, %c0_97] : memref<1x128xf32, #tpu.memory_space<vmem>>, vector<1x128xf32>
    %197 = vector.broadcast %196 : vector<1x128xf32> to vector<16x128xf32>
    %198 = arith.addf %195, %197 : vector<16x128xf32>
    %c0_98 = arith.constant 0 : index
    %c0_99 = arith.constant 0 : index
    %199 = vector.load %arg12[%c0_98, %c0_99] : memref<128x512xbf16, #tpu.memory_space<vmem>>, vector<128x512xbf16>
    %cst_100 = arith.constant dense<0.000000e+00> : vector<16x512xf32>
    %200 = tpu.matmul %174, %199, %cst_100 {dimension_numbers = #tpu.dot_dimension_numbers<[1], [0], [0], [1], [0, 0, 1, 1], [], []>} : vector<16x128xbf16>, vector<128x512xbf16>, vector<16x512xf32> -> vector<16x512xf32>
    %c0_101 = arith.constant 0 : index
    %c0_102 = arith.constant 0 : index
    %201 = vector.load %arg13[%c0_101, %c0_102] : memref<1x512xf32, #tpu.memory_space<vmem>>, vector<1x512xf32>
    %202 = vector.broadcast %201 : vector<1x512xf32> to vector<16x512xf32>
    %203 = arith.addf %200, %202 : vector<16x512xf32>
    %cst_103 = arith.constant 5.000000e-01 : f32
    %204 = vector.broadcast %cst_103 : f32 to vector<16x512xf32>
    %205 = arith.mulf %204, %203 : vector<16x512xf32>
    %cst_104 = arith.constant 4.471500e-02 : f32
    %206 = vector.broadcast %cst_104 : f32 to vector<16x512xf32>
    %207 = arith.mulf %206, %203 : vector<16x512xf32>
    %208 = arith.mulf %207, %203 : vector<16x512xf32>
    %209 = arith.mulf %208, %203 : vector<16x512xf32>
    %210 = arith.addf %203, %209 : vector<16x512xf32>
    %cst_105 = arith.constant 0.797884583 : f32
    %211 = vector.broadcast %cst_105 : f32 to vector<16x512xf32>
    %212 = arith.mulf %211, %210 : vector<16x512xf32>
    %213 = math.tanh %212 : vector<16x512xf32>
    %cst_106 = arith.constant 1.000000e+00 : f32
    %214 = vector.broadcast %cst_106 : f32 to vector<16x512xf32>
    %215 = arith.addf %214, %213 : vector<16x512xf32>
    %216 = arith.mulf %205, %215 : vector<16x512xf32>
    %217 = arith.truncf %216 : vector<16x512xf32> to vector<16x512xbf16>
    %c0_107 = arith.constant 0 : index
    %c0_108 = arith.constant 0 : index
    %218 = vector.load %arg14[%c0_107, %c0_108] : memref<512x128xbf16, #tpu.memory_space<vmem>>, vector<512x128xbf16>
    %cst_109 = arith.constant dense<0.000000e+00> : vector<16x128xf32>
    %219 = tpu.matmul %217, %218, %cst_109 {dimension_numbers = #tpu.dot_dimension_numbers<[1], [0], [0], [1], [0, 0, 1, 1], [], []>} : vector<16x512xbf16>, vector<512x128xbf16>, vector<16x128xf32> -> vector<16x128xf32>
    %c0_110 = arith.constant 0 : index
    %c0_111 = arith.constant 0 : index
    %220 = vector.load %arg15[%c0_110, %c0_111] : memref<1x128xf32, #tpu.memory_space<vmem>>, vector<1x128xf32>
    %221 = vector.broadcast %220 : vector<1x128xf32> to vector<16x128xf32>
    %222 = arith.addf %219, %221 : vector<16x128xf32>
    %223 = vector.broadcast %11 : vector<1x128xf32> to vector<16x128xf32>
    %224 = arith.mulf %223, %198 : vector<16x128xf32>
    %225 = arith.addf %224, %31 : vector<16x128xf32>
    %c0_112 = arith.constant 0 : index
    %c0_113 = arith.constant 0 : index
    %c0_114 = arith.constant 0 : index
    %226 = vector.load %arg16[%c0_112, %c0_113, %c0_114] : memref<1x16x128xf32, #tpu.memory_space<vmem>>, vector<1x16x128xf32>
    %227 = vector.shape_cast %226 : vector<1x16x128xf32> to vector<16x128xf32>
    %228 = vector.shape_cast %225 : vector<16x128xf32> to vector<1x16x128xf32>
    tpu.vector_store %arg16[%c0_112, %c0_113, %c0_114], %228 {strides = array<i32>} : memref<1x16x128xf32, #tpu.memory_space<vmem>>, vector<1x16x128xf32>,
    %229 = vector.broadcast %11 : vector<1x128xf32> to vector<16x128xf32>
    %230 = arith.mulf %229, %222 : vector<16x128xf32>
    %231 = arith.addf %230, %51 : vector<16x128xf32>
    %c0_115 = arith.constant 0 : index
    %c0_116 = arith.constant 0 : index
    %c0_117 = arith.constant 0 : index
    %232 = vector.load %arg17[%c0_115, %c0_116, %c0_117] : memref<1x16x128xf32, #tpu.memory_space<vmem>>, vector<1x16x128xf32>
    %233 = vector.shape_cast %232 : vector<1x16x128xf32> to vector<16x128xf32>
    %234 = vector.shape_cast %231 : vector<16x128xf32> to vector<1x16x128xf32>
    tpu.vector_store %arg17[%c0_115, %c0_116, %c0_117], %234 {strides = array<i32>} : memref<1x16x128xf32, #tpu.memory_space<vmem>>, vector<1x16x128xf32>,
    return
  }
  func.func @transform_0(%arg0: i32) -> (i32, i32, i32) {
    %c0_i32 = arith.constant 0 : i32
    %c0_i32_0 = arith.constant 0 : i32
    %c0_i32_1 = arith.constant 0 : i32
    return %arg0, %c0_i32, %c0_i32_0 : i32, i32, i32
  }
  func.func @transform_1(%arg0: i32) -> (i32, i32, i32) {
    %c0_i32 = arith.constant 0 : i32
    %c0_i32_0 = arith.constant 0 : i32
    %c0_i32_1 = arith.constant 0 : i32
    return %arg0, %c0_i32, %c0_i32_0 : i32, i32, i32
  }
  func.func @transform_2(%arg0: i32) -> (i32, i32, i32) {
    %c0_i32 = arith.constant 0 : i32
    %c0_i32_0 = arith.constant 0 : i32
    %c0_i32_1 = arith.constant 0 : i32
    return %arg0, %c0_i32, %c0_i32_0 : i32, i32, i32
  }
  func.func @transform_3(%arg0: i32) -> (i32, i32) {
    %c0_i32 = arith.constant 0 : i32
    %c0_i32_0 = arith.constant 0 : i32
    %c0_i32_1 = arith.constant 0 : i32
    return %c0_i32, %c0_i32_0 : i32, i32
  }
  func.func @transform_4(%arg0: i32) -> (i32, i32) {
    %c0_i32 = arith.constant 0 : i32
    %c0_i32_0 = arith.constant 0 : i32
    %c0_i32_1 = arith.constant 0 : i32
    return %c0_i32, %c0_i32_0 : i32, i32
  }
  func.func @transform_5(%arg0: i32) -> (i32, i32, i32) {
    %c0_i32 = arith.constant 0 : i32
    %c0_i32_0 = arith.constant 0 : i32
    %c0_i32_1 = arith.constant 0 : i32
    %c0_i32_2 = arith.constant 0 : i32
    return %c0_i32, %c0_i32_0, %c0_i32_1 : i32, i32, i32
  }
  func.func @transform_6(%arg0: i32) -> (i32, i32, i32) {
    %c0_i32 = arith.constant 0 : i32
    %c0_i32_0 = arith.constant 0 : i32
    %c0_i32_1 = arith.constant 0 : i32
    %c0_i32_2 = arith.constant 0 : i32
    return %c0_i32, %c0_i32_0, %c0_i32_1 : i32, i32, i32
  }
  func.func @transform_7(%arg0: i32) -> (i32, i32) {
    %c0_i32 = arith.constant 0 : i32
    %c0_i32_0 = arith.constant 0 : i32
    %c0_i32_1 = arith.constant 0 : i32
    return %c0_i32, %c0_i32_0 : i32, i32
  }
  func.func @transform_8(%arg0: i32) -> (i32, i32) {
    %c0_i32 = arith.constant 0 : i32
    %c0_i32_0 = arith.constant 0 : i32
    %c0_i32_1 = arith.constant 0 : i32
    return %c0_i32, %c0_i32_0 : i32, i32
  }
  func.func @transform_9(%arg0: i32) -> (i32, i32) {
    %c0_i32 = arith.constant 0 : i32
    %c0_i32_0 = arith.constant 0 : i32
    %c0_i32_1 = arith.constant 0 : i32
    return %c0_i32, %c0_i32_0 : i32, i32
  }
  func.func @transform_10(%arg0: i32) -> (i32, i32) {
    %c0_i32 = arith.constant 0 : i32
    %c0_i32_0 = arith.constant 0 : i32
    %c0_i32_1 = arith.constant 0 : i32
    return %c0_i32, %c0_i32_0 : i32, i32
  }
  func.func @transform_11(%arg0: i32) -> (i32, i32) {
    %c0_i32 = arith.constant 0 : i32
    %c0_i32_0 = arith.constant 0 : i32
    %c0_i32_1 = arith.constant 0 : i32
    return %c0_i32, %c0_i32_0 : i32, i32
  }
  func.func @transform_12(%arg0: i32) -> (i32, i32) {
    %c0_i32 = arith.constant 0 : i32
    %c0_i32_0 = arith.constant 0 : i32
    %c0_i32_1 = arith.constant 0 : i32
    return %c0_i32, %c0_i32_0 : i32, i32
  }
  func.func @transform_13(%arg0: i32) -> (i32, i32) {
    %c0_i32 = arith.constant 0 : i32
    %c0_i32_0 = arith.constant 0 : i32
    %c0_i32_1 = arith.constant 0 : i32
    return %c0_i32, %c0_i32_0 : i32, i32
  }
  func.func @transform_14(%arg0: i32) -> (i32, i32) {
    %c0_i32 = arith.constant 0 : i32
    %c0_i32_0 = arith.constant 0 : i32
    %c0_i32_1 = arith.constant 0 : i32
    return %c0_i32, %c0_i32_0 : i32, i32
  }
  func.func @transform_15(%arg0: i32) -> (i32, i32, i32) {
    %c0_i32 = arith.constant 0 : i32
    %c0_i32_0 = arith.constant 0 : i32
    %c0_i32_1 = arith.constant 0 : i32
    return %arg0, %c0_i32, %c0_i32_0 : i32, i32, i32
  }
  func.func @transform_16(%arg0: i32) -> (i32, i32, i32) {
    %c0_i32 = arith.constant 0 : i32
    %c0_i32_0 = arith.constant 0 : i32
    %c0_i32_1 = arith.constant 0 : i32
    return %arg0, %c0_i32, %c0_i32_0 : i32, i32, i32
  }
}

module attributes {stable_mosaic.version = 11 : i64} {
  func.func @_mm_dit_kernel(%arg0: i32, %arg1: memref<1x6x128xf32, #tpu.memory_space<vmem>>, %arg2: memref<1x16x128xf32, #tpu.memory_space<vmem>>, %arg3: memref<1x16x128xf32, #tpu.memory_space<vmem>>, %arg4: memref<128x384xbf16, #tpu.memory_space<vmem>>, %arg5: memref<128x384xbf16, #tpu.memory_space<vmem>>, %arg6: memref<4x32x128xbf16, #tpu.memory_space<vmem>>, %arg7: memref<4x32x128xbf16, #tpu.memory_space<vmem>>, %arg8: memref<128x512xbf16, #tpu.memory_space<vmem>>, %arg9: memref<1x512xf32, #tpu.memory_space<vmem>>, %arg10: memref<512x128xbf16, #tpu.memory_space<vmem>>, %arg11: memref<1x128xf32, #tpu.memory_space<vmem>>, %arg12: memref<128x512xbf16, #tpu.memory_space<vmem>>, %arg13: memref<1x512xf32, #tpu.memory_space<vmem>>, %arg14: memref<512x128xbf16, #tpu.memory_space<vmem>>, %arg15: memref<1x128xf32, #tpu.memory_space<vmem>>, %arg16: memref<1x16x128xf32, #tpu.memory_space<vmem>>, %arg17: memref<1x16x128xf32, #tpu.memory_space<vmem>>, %arg18: memref<4x32x32xbf16, #tpu.memory_space<vmem>>, %arg19: memref<4x32x32xbf16, #tpu.memory_space<vmem>>, %arg20: memref<4x32x32xbf16, #tpu.memory_space<vmem>>) attributes {dimension_semantics = [#tpu.dimension_semantics<parallel>], iteration_bounds = array<i64: 2>, scalar_prefetch = 0 : i64, scratch_operands = 3 : i64, tpu.core_type = #tpu.core_type<tc>, window_params = [{transform_indices = @transform_0, window_bounds = array<i64: 1, 6, 128>}, {transform_indices = @transform_1, window_bounds = array<i64: 1, 16, 128>}, {transform_indices = @transform_2, window_bounds = array<i64: 1, 16, 128>}, {pipeline_mode = #tpu.pipeline_mode<synchronous>, transform_indices = @transform_3, window_bounds = array<i64: 128, 384>}, {pipeline_mode = #tpu.pipeline_mode<synchronous>, transform_indices = @transform_4, window_bounds = array<i64: 128, 384>}, {pipeline_mode = #tpu.pipeline_mode<synchronous>, transform_indices = @transform_5, window_bounds = array<i64: 4, 32, 128>}, {pipeline_mode = #tpu.pipeline_mode<synchronous>, transform_indices = @transform_6, window_bounds = array<i64: 4, 32, 128>}, {pipeline_mode = #tpu.pipeline_mode<synchronous>, transform_indices = @transform_7, window_bounds = array<i64: 128, 512>}, {pipeline_mode = #tpu.pipeline_mode<synchronous>, transform_indices = @transform_8, window_bounds = array<i64: 1, 512>}, {pipeline_mode = #tpu.pipeline_mode<synchronous>, transform_indices = @transform_9, window_bounds = array<i64: 512, 128>}, {pipeline_mode = #tpu.pipeline_mode<synchronous>, transform_indices = @transform_10, window_bounds = array<i64: 1, 128>}, {pipeline_mode = #tpu.pipeline_mode<synchronous>, transform_indices = @transform_11, window_bounds = array<i64: 128, 512>}, {pipeline_mode = #tpu.pipeline_mode<synchronous>, transform_indices = @transform_12, window_bounds = array<i64: 1, 512>}, {pipeline_mode = #tpu.pipeline_mode<synchronous>, transform_indices = @transform_13, window_bounds = array<i64: 512, 128>}, {pipeline_mode = #tpu.pipeline_mode<synchronous>, transform_indices = @transform_14, window_bounds = array<i64: 1, 128>}, {transform_indices = @transform_15, window_bounds = array<i64: 1, 16, 128>}, {transform_indices = @transform_16, window_bounds = array<i64: 1, 16, 128>}]} {
    %c0 = arith.constant 0 : index
    %c0_0 = arith.constant 0 : index
    %c0_1 = arith.constant 0 : index
    %0 = vector.load %arg1[%c0, %c0_0, %c0_1] : memref<1x6x128xf32, #tpu.memory_space<vmem>>, vector<1x1x128xf32>
    %1 = vector.shape_cast %0 : vector<1x1x128xf32> to vector<1x128xf32>
    %c0_2 = arith.constant 0 : index
    %c1 = arith.constant 1 : index
    %c0_3 = arith.constant 0 : index
    %2 = vector.load %arg1[%c0_2, %c1, %c0_3] : memref<1x6x128xf32, #tpu.memory_space<vmem>>, vector<1x1x128xf32>
    %3 = vector.shape_cast %2 : vector<1x1x128xf32> to vector<1x128xf32>
    %c0_4 = arith.constant 0 : index
    %c2 = arith.constant 2 : index
    %c0_5 = arith.constant 0 : index
    %4 = vector.load %arg1[%c0_4, %c2, %c0_5] : memref<1x6x128xf32, #tpu.memory_space<vmem>>, vector<1x1x128xf32>
    %5 = vector.shape_cast %4 : vector<1x1x128xf32> to vector<1x128xf32>
    %c0_6 = arith.constant 0 : index
    %c3 = arith.constant 3 : index
    %c0_7 = arith.constant 0 : index
    %6 = vector.load %arg1[%c0_6, %c3, %c0_7] : memref<1x6x128xf32, #tpu.memory_space<vmem>>, vector<1x1x128xf32>
    %7 = vector.shape_cast %6 : vector<1x1x128xf32> to vector<1x128xf32>
    %c0_8 = arith.constant 0 : index
    %c4 = arith.constant 4 : index
    %c0_9 = arith.constant 0 : index
    %8 = vector.load %arg1[%c0_8, %c4, %c0_9] : memref<1x6x128xf32, #tpu.memory_space<vmem>>, vector<1x1x128xf32>
    %9 = vector.shape_cast %8 : vector<1x1x128xf32> to vector<1x128xf32>
    %c0_10 = arith.constant 0 : index
    %c5 = arith.constant 5 : index
    %c0_11 = arith.constant 0 : index
    %10 = vector.load %arg1[%c0_10, %c5, %c0_11] : memref<1x6x128xf32, #tpu.memory_space<vmem>>, vector<1x1x128xf32>
    %11 = vector.shape_cast %10 : vector<1x1x128xf32> to vector<1x128xf32>
    %c0_12 = arith.constant 0 : index
    %c0_13 = arith.constant 0 : index
    %c0_14 = arith.constant 0 : index
    %12 = vector.load %arg2[%c0_12, %c0_13, %c0_14] : memref<1x16x128xf32, #tpu.memory_space<vmem>>, vector<1x16x128xf32>
    %13 = vector.shape_cast %12 : vector<1x16x128xf32> to vector<16x128xf32>
    %cst = arith.constant dense<0.000000e+00> : vector<16xf32>
    %14 = vector.multi_reduction <add>, %13, %cst [1] : vector<16x128xf32> to vector<16xf32>
    %15 = vector.shape_cast %14 : vector<16xf32> to vector<16x1xf32>
    %cst_15 = arith.constant 1.280000e+02 : f32
    %16 = vector.broadcast %cst_15 : f32 to vector<16x1xf32>
    %17 = arith.divf %15, %16 : vector<16x1xf32>
    %18 = vector.broadcast %17 : vector<16x1xf32> to vector<16x128xf32>
    %19 = arith.subf %13, %18 : vector<16x128xf32>
    %20 = arith.mulf %19, %19 : vector<16x128xf32>
    %cst_16 = arith.constant dense<0.000000e+00> : vector<16xf32>
    %21 = vector.multi_reduction <add>, %20, %cst_16 [1] : vector<16x128xf32> to vector<16xf32>
    %22 = vector.shape_cast %21 : vector<16xf32> to vector<16x1xf32>
    %cst_17 = arith.constant 1.280000e+02 : f32
    %23 = vector.broadcast %cst_17 : f32 to vector<16x1xf32>
    %24 = arith.divf %22, %23 : vector<16x1xf32>
    %25 = vector.broadcast %17 : vector<16x1xf32> to vector<16x128xf32>
    %26 = arith.subf %13, %25 : vector<16x128xf32>
    %cst_18 = arith.constant 9.99999997E-7 : f32
    %27 = vector.broadcast %cst_18 : f32 to vector<16x1xf32>
    %28 = arith.addf %24, %27 : vector<16x1xf32>
    %29 = math.rsqrt %28 : vector<16x1xf32>
    %30 = vector.broadcast %29 : vector<16x1xf32> to vector<16x128xf32>
    %31 = arith.mulf %26, %30 : vector<16x128xf32>
    %c0_19 = arith.constant 0 : index
    %c0_20 = arith.constant 0 : index
    %c0_21 = arith.constant 0 : index
    %32 = vector.load %arg3[%c0_19, %c0_20, %c0_21] : memref<1x16x128xf32, #tpu.memory_space<vmem>>, vector<1x16x128xf32>
    %33 = vector.shape_cast %32 : vector<1x16x128xf32> to vector<16x128xf32>
    %cst_22 = arith.constant dense<0.000000e+00> : vector<16xf32>
    %34 = vector.multi_reduction <add>, %33, %cst_22 [1] : vector<16x128xf32> to vector<16xf32>
    %35 = vector.shape_cast %34 : vector<16xf32> to vector<16x1xf32>
    %cst_23 = arith.constant 1.280000e+02 : f32
    %36 = vector.broadcast %cst_23 : f32 to vector<16x1xf32>
    %37 = arith.divf %35, %36 : vector<16x1xf32>
    %38 = vector.broadcast %37 : vector<16x1xf32> to vector<16x128xf32>
    %39 = arith.subf %33, %38 : vector<16x128xf32>
    %40 = arith.mulf %39, %39 : vector<16x128xf32>
    %cst_24 = arith.constant dense<0.000000e+00> : vector<16xf32>
    %41 = vector.multi_reduction <add>, %40, %cst_24 [1] : vector<16x128xf32> to vector<16xf32>
    %42 = vector.shape_cast %41 : vector<16xf32> to vector<16x1xf32>
    %cst_25 = arith.constant 1.280000e+02 : f32
    %43 = vector.broadcast %cst_25 : f32 to vector<16x1xf32>
    %44 = arith.divf %42, %43 : vector<16x1xf32>
    %45 = vector.broadcast %37 : vector<16x1xf32> to vector<16x128xf32>
    %46 = arith.subf %33, %45 : vector<16x128xf32>
    %cst_26 = arith.constant 9.99999997E-7 : f32
    %47 = vector.broadcast %cst_26 : f32 to vector<16x1xf32>
    %48 = arith.addf %44, %47 : vector<16x1xf32>
    %49 = math.rsqrt %48 : vector<16x1xf32>
    %50 = vector.broadcast %49 : vector<16x1xf32> to vector<16x128xf32>
    %51 = arith.mulf %46, %50 : vector<16x128xf32>
    %52 = vector.broadcast %1 : vector<1x128xf32> to vector<16x128xf32>
    %53 = arith.mulf %52, %31 : vector<16x128xf32>
    %54 = vector.broadcast %3 : vector<1x128xf32> to vector<16x128xf32>
    %55 = arith.addf %53, %54 : vector<16x128xf32>
    %56 = arith.truncf %55 : vector<16x128xf32> to vector<16x128xbf16>
    %57 = vector.broadcast %1 : vector<1x128xf32> to vector<16x128xf32>
    %58 = arith.mulf %57, %51 : vector<16x128xf32>
    %59 = vector.broadcast %3 : vector<1x128xf32> to vector<16x128xf32>
    %60 = arith.addf %58, %59 : vector<16x128xf32>
    %61 = arith.truncf %60 : vector<16x128xf32> to vector<16x128xbf16>
    %c0_27 = arith.constant 0 : index
    %c0_28 = arith.constant 0 : index
    %62 = vector.load %arg4[%c0_27, %c0_28] : memref<128x384xbf16, #tpu.memory_space<vmem>>, vector<128x384xbf16>
    %cst_29 = arith.constant dense<0.000000e+00> : vector<16x384xf32>
    %63 = tpu.matmul %56, %62, %cst_29 {dimension_numbers = #tpu.dot_dimension_numbers<[1], [0], [0], [1], [0, 0, 1, 1], [], []>} : vector<16x128xbf16>, vector<128x384xbf16>, vector<16x384xf32> -> vector<16x384xf32>
    %64 = vector.extract_strided_slice %63 {offsets = [0, 0], sizes = [16, 128], strides = [1, 1]} : vector<16x384xf32> to vector<16x128xf32>
    %65 = vector.shape_cast %64 : vector<16x128xf32> to vector<16x4x32xf32>
    %66 = tpu.transpose %65, [1, 0, 2] : vector<16x4x32xf32> -> vector<4x16x32xf32>
    %67 = arith.truncf %66 : vector<4x16x32xf32> to vector<4x16x32xbf16>
    %c0_30 = arith.constant 0 : index
    %c0_31 = arith.constant 0 : index
    %c0_32 = arith.constant 0 : index
    %68 = vector.load %arg18[%c0_30, %c0_31, %c0_32] : memref<4x32x32xbf16, #tpu.memory_space<vmem>>, vector<4x16x32xbf16>
    tpu.vector_store %arg18[%c0_30, %c0_31, %c0_32], %67 {strides = array<i32>} : memref<4x32x32xbf16, #tpu.memory_space<vmem>>, vector<4x16x32xbf16>,
    %69 = vector.extract_strided_slice %63 {offsets = [0, 128], sizes = [16, 128], strides = [1, 1]} : vector<16x384xf32> to vector<16x128xf32>
    %70 = vector.shape_cast %69 : vector<16x128xf32> to vector<16x4x32xf32>
    %71 = tpu.transpose %70, [1, 0, 2] : vector<16x4x32xf32> -> vector<4x16x32xf32>
    %72 = arith.truncf %71 : vector<4x16x32xf32> to vector<4x16x32xbf16>
    %c0_33 = arith.constant 0 : index
    %c0_34 = arith.constant 0 : index
    %c0_35 = arith.constant 0 : index
    %73 = vector.load %arg19[%c0_33, %c0_34, %c0_35] : memref<4x32x32xbf16, #tpu.memory_space<vmem>>, vector<4x16x32xbf16>
    tpu.vector_store %arg19[%c0_33, %c0_34, %c0_35], %72 {strides = array<i32>} : memref<4x32x32xbf16, #tpu.memory_space<vmem>>, vector<4x16x32xbf16>,
    %74 = vector.extract_strided_slice %63 {offsets = [0, 256], sizes = [16, 128], strides = [1, 1]} : vector<16x384xf32> to vector<16x128xf32>
    %75 = vector.shape_cast %74 : vector<16x128xf32> to vector<16x4x32xf32>
    %76 = tpu.transpose %75, [1, 0, 2] : vector<16x4x32xf32> -> vector<4x16x32xf32>
    %77 = arith.truncf %76 : vector<4x16x32xf32> to vector<4x16x32xbf16>
    %c0_36 = arith.constant 0 : index
    %c0_37 = arith.constant 0 : index
    %c0_38 = arith.constant 0 : index
    %78 = vector.load %arg20[%c0_36, %c0_37, %c0_38] : memref<4x32x32xbf16, #tpu.memory_space<vmem>>, vector<4x16x32xbf16>
    tpu.vector_store %arg20[%c0_36, %c0_37, %c0_38], %77 {strides = array<i32>} : memref<4x32x32xbf16, #tpu.memory_space<vmem>>, vector<4x16x32xbf16>,
    %c0_39 = arith.constant 0 : index
    %c0_40 = arith.constant 0 : index
    %79 = vector.load %arg5[%c0_39, %c0_40] : memref<128x384xbf16, #tpu.memory_space<vmem>>, vector<128x384xbf16>
    %cst_41 = arith.constant dense<0.000000e+00> : vector<16x384xf32>
    %80 = tpu.matmul %61, %79, %cst_41 {dimension_numbers = #tpu.dot_dimension_numbers<[1], [0], [0], [1], [0, 0, 1, 1], [], []>} : vector<16x128xbf16>, vector<128x384xbf16>, vector<16x384xf32> -> vector<16x384xf32>
    %81 = vector.extract_strided_slice %80 {offsets = [0, 0], sizes = [16, 128], strides = [1, 1]} : vector<16x384xf32> to vector<16x128xf32>
    %82 = vector.shape_cast %81 : vector<16x128xf32> to vector<16x4x32xf32>
    %83 = tpu.transpose %82, [1, 0, 2] : vector<16x4x32xf32> -> vector<4x16x32xf32>
    %84 = arith.truncf %83 : vector<4x16x32xf32> to vector<4x16x32xbf16>
    %c0_42 = arith.constant 0 : index
    %c16 = arith.constant 16 : index
    %c0_43 = arith.constant 0 : index
    %85 = vector.load %arg18[%c0_42, %c16, %c0_43] : memref<4x32x32xbf16, #tpu.memory_space<vmem>>, vector<4x16x32xbf16>
    tpu.vector_store %arg18[%c0_42, %c16, %c0_43], %84 {strides = array<i32>} : memref<4x32x32xbf16, #tpu.memory_space<vmem>>, vector<4x16x32xbf16>,
    %86 = vector.extract_strided_slice %80 {offsets = [0, 128], sizes = [16, 128], strides = [1, 1]} : vector<16x384xf32> to vector<16x128xf32>
    %87 = vector.shape_cast %86 : vector<16x128xf32> to vector<16x4x32xf32>
    %88 = tpu.transpose %87, [1, 0, 2] : vector<16x4x32xf32> -> vector<4x16x32xf32>
    %89 = arith.truncf %88 : vector<4x16x32xf32> to vector<4x16x32xbf16>
    %c0_44 = arith.constant 0 : index
    %c16_45 = arith.constant 16 : index
    %c0_46 = arith.constant 0 : index
    %90 = vector.load %arg19[%c0_44, %c16_45, %c0_46] : memref<4x32x32xbf16, #tpu.memory_space<vmem>>, vector<4x16x32xbf16>
    tpu.vector_store %arg19[%c0_44, %c16_45, %c0_46], %89 {strides = array<i32>} : memref<4x32x32xbf16, #tpu.memory_space<vmem>>, vector<4x16x32xbf16>,
    %91 = vector.extract_strided_slice %80 {offsets = [0, 256], sizes = [16, 128], strides = [1, 1]} : vector<16x384xf32> to vector<16x128xf32>
    %92 = vector.shape_cast %91 : vector<16x128xf32> to vector<16x4x32xf32>
    %93 = tpu.transpose %92, [1, 0, 2] : vector<16x4x32xf32> -> vector<4x16x32xf32>
    %94 = arith.truncf %93 : vector<4x16x32xf32> to vector<4x16x32xbf16>
    %c0_47 = arith.constant 0 : index
    %c16_48 = arith.constant 16 : index
    %c0_49 = arith.constant 0 : index
    %95 = vector.load %arg20[%c0_47, %c16_48, %c0_49] : memref<4x32x32xbf16, #tpu.memory_space<vmem>>, vector<4x16x32xbf16>
    tpu.vector_store %arg20[%c0_47, %c16_48, %c0_49], %94 {strides = array<i32>} : memref<4x32x32xbf16, #tpu.memory_space<vmem>>, vector<4x16x32xbf16>,
    %c0_50 = arith.constant 0 : index
    %c0_51 = arith.constant 0 : index
    %c0_52 = arith.constant 0 : index
    %96 = vector.load %arg18[%c0_50, %c0_51, %c0_52] : memref<4x32x32xbf16, #tpu.memory_space<vmem>>, vector<4x32x32xbf16>
    %c0_53 = arith.constant 0 : index
    %c0_54 = arith.constant 0 : index
    %c0_55 = arith.constant 0 : index
    %97 = vector.load %arg19[%c0_53, %c0_54, %c0_55] : memref<4x32x32xbf16, #tpu.memory_space<vmem>>, vector<4x32x32xbf16>
    "tpu.trace_start"() <{level = 10 : i32, message = "hqd,hkd->hqk"}> : () -> ()
    %cst_56 = arith.constant dense<0.000000e+00> : vector<4x32x32xf32>
    %98 = tpu.matmul %96, %97, %cst_56 {dimension_numbers = #tpu.dot_dimension_numbers<[2], [2], [1], [1], [0, 0, 0, 1, 1, 1], [0], [0]>} : vector<4x32x32xbf16>, vector<4x32x32xbf16>, vector<4x32x32xf32> -> vector<4x32x32xf32>
    "tpu.trace_stop"() : () -> ()
    %cst_57 = arith.constant 0.176776692 : f32
    %99 = vector.broadcast %cst_57 : f32 to vector<4x32x32xf32>
    %100 = arith.mulf %98, %99 : vector<4x32x32xf32>
    %cst_58 = arith.constant dense<0xFF800000> : vector<4x32xf32>
    %101 = vector.multi_reduction <maximumf>, %100, %cst_58 [2] : vector<4x32x32xf32> to vector<4x32xf32>
    %102 = vector.shape_cast %101 : vector<4x32xf32> to vector<4x32x1xf32>
    %103 = vector.broadcast %102 : vector<4x32x1xf32> to vector<4x32x32xf32>
    %104 = arith.subf %100, %103 : vector<4x32x32xf32>
    %105 = math.exp %104 : vector<4x32x32xf32>
    %cst_59 = arith.constant dense<0.000000e+00> : vector<4x32xf32>
    %106 = vector.multi_reduction <add>, %105, %cst_59 [2] : vector<4x32x32xf32> to vector<4x32xf32>
    %107 = vector.shape_cast %106 : vector<4x32xf32> to vector<4x32x1xf32>
    %108 = tpu.reciprocal %107 {approx = true} : vector<4x32x1xf32> -> vector<4x32x1xf32>
    %109 = vector.broadcast %108 : vector<4x32x1xf32> to vector<4x32x32xf32>
    %110 = arith.mulf %105, %109 : vector<4x32x32xf32>
    %111 = arith.truncf %110 : vector<4x32x32xf32> to vector<4x32x32xbf16>
    %c0_60 = arith.constant 0 : index
    %c0_61 = arith.constant 0 : index
    %c0_62 = arith.constant 0 : index
    %112 = vector.load %arg20[%c0_60, %c0_61, %c0_62] : memref<4x32x32xbf16, #tpu.memory_space<vmem>>, vector<4x32x32xbf16>
    "tpu.trace_start"() <{level = 10 : i32, message = "hqk,hkd->hqd"}> : () -> ()
    %cst_63 = arith.constant dense<0.000000e+00> : vector<4x32x32xf32>
    %113 = tpu.matmul %111, %112, %cst_63 {dimension_numbers = #tpu.dot_dimension_numbers<[2], [1], [1], [2], [0, 0, 0, 1, 1, 2], [0], [0]>} : vector<4x32x32xbf16>, vector<4x32x32xbf16>, vector<4x32x32xf32> -> vector<4x32x32xf32>
    "tpu.trace_stop"() : () -> ()
    %114 = arith.truncf %113 : vector<4x32x32xf32> to vector<4x32x32xbf16>
    %115 = vector.extract_strided_slice %114 {offsets = [0, 0, 0], sizes = [4, 16, 32], strides = [1, 1, 1]} : vector<4x32x32xbf16> to vector<4x16x32xbf16>
    %c0_64 = arith.constant 0 : index
    %c0_65 = arith.constant 0 : index
    %c0_66 = arith.constant 0 : index
    %116 = vector.load %arg6[%c0_64, %c0_65, %c0_66] : memref<4x32x128xbf16, #tpu.memory_space<vmem>>, vector<4x32x128xbf16>
    "tpu.trace_start"() <{level = 10 : i32, message = "hqd,hdn->hqn"}> : () -> ()
    %cst_67 = arith.constant dense<0.000000e+00> : vector<4x16x128xf32>
    %117 = tpu.matmul %115, %116, %cst_67 {dimension_numbers = #tpu.dot_dimension_numbers<[2], [1], [1], [2], [0, 0, 0, 1, 1, 2], [0], [0]>} : vector<4x16x32xbf16>, vector<4x32x128xbf16>, vector<4x16x128xf32> -> vector<4x16x128xf32>
    "tpu.trace_stop"() : () -> ()
    %cst_68 = arith.constant dense<0.000000e+00> : vector<16x128xf32>
    %118 = vector.multi_reduction <add>, %117, %cst_68 [0] : vector<4x16x128xf32> to vector<16x128xf32>
    %119 = vector.extract_strided_slice %114 {offsets = [0, 16, 0], sizes = [4, 16, 32], strides = [1, 1, 1]} : vector<4x32x32xbf16> to vector<4x16x32xbf16>
    %c0_69 = arith.constant 0 : index
    %c0_70 = arith.constant 0 : index
    %c0_71 = arith.constant 0 : index
    %120 = vector.load %arg7[%c0_69, %c0_70, %c0_71] : memref<4x32x128xbf16, #tpu.memory_space<vmem>>, vector<4x32x128xbf16>
    "tpu.trace_start"() <{level = 10 : i32, message = "hqd,hdn->hqn"}> : () -> ()
    %cst_72 = arith.constant dense<0.000000e+00> : vector<4x16x128xf32>
    %121 = tpu.matmul %119, %120, %cst_72 {dimension_numbers = #tpu.dot_dimension_numbers<[2], [1], [1], [2], [0, 0, 0, 1, 1, 2], [0], [0]>} : vector<4x16x32xbf16>, vector<4x32x128xbf16>, vector<4x16x128xf32> -> vector<4x16x128xf32>
    "tpu.trace_stop"() : () -> ()
    %cst_73 = arith.constant dense<0.000000e+00> : vector<16x128xf32>
    %122 = vector.multi_reduction <add>, %121, %cst_73 [0] : vector<4x16x128xf32> to vector<16x128xf32>
    %123 = vector.broadcast %5 : vector<1x128xf32> to vector<16x128xf32>
    %124 = arith.mulf %123, %118 : vector<16x128xf32>
    %125 = arith.addf %124, %31 : vector<16x128xf32>
    %126 = vector.broadcast %5 : vector<1x128xf32> to vector<16x128xf32>
    %127 = arith.mulf %126, %122 : vector<16x128xf32>
    %128 = arith.addf %127, %51 : vector<16x128xf32>
    %cst_74 = arith.constant dense<0.000000e+00> : vector<16xf32>
    %129 = vector.multi_reduction <add>, %125, %cst_74 [1] : vector<16x128xf32> to vector<16xf32>
    %130 = vector.shape_cast %129 : vector<16xf32> to vector<16x1xf32>
    %cst_75 = arith.constant 1.280000e+02 : f32
    %131 = vector.broadcast %cst_75 : f32 to vector<16x1xf32>
    %132 = arith.divf %130, %131 : vector<16x1xf32>
    %133 = vector.broadcast %132 : vector<16x1xf32> to vector<16x128xf32>
    %134 = arith.subf %125, %133 : vector<16x128xf32>
    %135 = arith.mulf %134, %134 : vector<16x128xf32>
    %cst_76 = arith.constant dense<0.000000e+00> : vector<16xf32>
    %136 = vector.multi_reduction <add>, %135, %cst_76 [1] : vector<16x128xf32> to vector<16xf32>
    %137 = vector.shape_cast %136 : vector<16xf32> to vector<16x1xf32>
    %cst_77 = arith.constant 1.280000e+02 : f32
    %138 = vector.broadcast %cst_77 : f32 to vector<16x1xf32>
    %139 = arith.divf %137, %138 : vector<16x1xf32>
    %140 = vector.broadcast %132 : vector<16x1xf32> to vector<16x128xf32>
    %141 = arith.subf %125, %140 : vector<16x128xf32>
    %cst_78 = arith.constant 9.99999997E-7 : f32
    %142 = vector.broadcast %cst_78 : f32 to vector<16x1xf32>
    %143 = arith.addf %139, %142 : vector<16x1xf32>
    %144 = math.rsqrt %143 : vector<16x1xf32>
    %145 = vector.broadcast %144 : vector<16x1xf32> to vector<16x128xf32>
    %146 = arith.mulf %141, %145 : vector<16x128xf32>
    %147 = vector.broadcast %7 : vector<1x128xf32> to vector<16x128xf32>
    %148 = arith.mulf %147, %146 : vector<16x128xf32>
    %149 = vector.broadcast %9 : vector<1x128xf32> to vector<16x128xf32>
    %150 = arith.addf %148, %149 : vector<16x128xf32>
    %151 = arith.truncf %150 : vector<16x128xf32> to vector<16x128xbf16>
    %cst_79 = arith.constant dense<0.000000e+00> : vector<16xf32>
    %152 = vector.multi_reduction <add>, %128, %cst_79 [1] : vector<16x128xf32> to vector<16xf32>
    %153 = vector.shape_cast %152 : vector<16xf32> to vector<16x1xf32>
    %cst_80 = arith.constant 1.280000e+02 : f32
    %154 = vector.broadcast %cst_80 : f32 to vector<16x1xf32>
    %155 = arith.divf %153, %154 : vector<16x1xf32>
    %156 = vector.broadcast %155 : vector<16x1xf32> to vector<16x128xf32>
    %157 = arith.subf %128, %156 : vector<16x128xf32>
    %158 = arith.mulf %157, %157 : vector<16x128xf32>
    %cst_81 = arith.constant dense<0.000000e+00> : vector<16xf32>
    %159 = vector.multi_reduction <add>, %158, %cst_81 [1] : vector<16x128xf32> to vector<16xf32>
    %160 = vector.shape_cast %159 : vector<16xf32> to vector<16x1xf32>
    %cst_82 = arith.constant 1.280000e+02 : f32
    %161 = vector.broadcast %cst_82 : f32 to vector<16x1xf32>
    %162 = arith.divf %160, %161 : vector<16x1xf32>
    %163 = vector.broadcast %155 : vector<16x1xf32> to vector<16x128xf32>
    %164 = arith.subf %128, %163 : vector<16x128xf32>
    %cst_83 = arith.constant 9.99999997E-7 : f32
    %165 = vector.broadcast %cst_83 : f32 to vector<16x1xf32>
    %166 = arith.addf %162, %165 : vector<16x1xf32>
    %167 = math.rsqrt %166 : vector<16x1xf32>
    %168 = vector.broadcast %167 : vector<16x1xf32> to vector<16x128xf32>
    %169 = arith.mulf %164, %168 : vector<16x128xf32>
    %170 = vector.broadcast %7 : vector<1x128xf32> to vector<16x128xf32>
    %171 = arith.mulf %170, %169 : vector<16x128xf32>
    %172 = vector.broadcast %9 : vector<1x128xf32> to vector<16x128xf32>
    %173 = arith.addf %171, %172 : vector<16x128xf32>
    %174 = arith.truncf %173 : vector<16x128xf32> to vector<16x128xbf16>
    %c0_84 = arith.constant 0 : index
    %c0_85 = arith.constant 0 : index
    %175 = vector.load %arg8[%c0_84, %c0_85] : memref<128x512xbf16, #tpu.memory_space<vmem>>, vector<128x512xbf16>
    %cst_86 = arith.constant dense<0.000000e+00> : vector<16x512xf32>
    %176 = tpu.matmul %151, %175, %cst_86 {dimension_numbers = #tpu.dot_dimension_numbers<[1], [0], [0], [1], [0, 0, 1, 1], [], []>} : vector<16x128xbf16>, vector<128x512xbf16>, vector<16x512xf32> -> vector<16x512xf32>
    %c0_87 = arith.constant 0 : index
    %c0_88 = arith.constant 0 : index
    %177 = vector.load %arg9[%c0_87, %c0_88] : memref<1x512xf32, #tpu.memory_space<vmem>>, vector<1x512xf32>
    %178 = vector.broadcast %177 : vector<1x512xf32> to vector<16x512xf32>
    %179 = arith.addf %176, %178 : vector<16x512xf32>
    %cst_89 = arith.constant 5.000000e-01 : f32
    %180 = vector.broadcast %cst_89 : f32 to vector<16x512xf32>
    %181 = arith.mulf %180, %179 : vector<16x512xf32>
    %cst_90 = arith.constant 4.471500e-02 : f32
    %182 = vector.broadcast %cst_90 : f32 to vector<16x512xf32>
    %183 = arith.mulf %182, %179 : vector<16x512xf32>
    %184 = arith.mulf %183, %179 : vector<16x512xf32>
    %185 = arith.mulf %184, %179 : vector<16x512xf32>
    %186 = arith.addf %179, %185 : vector<16x512xf32>
    %cst_91 = arith.constant 0.797884583 : f32
    %187 = vector.broadcast %cst_91 : f32 to vector<16x512xf32>
    %188 = arith.mulf %187, %186 : vector<16x512xf32>
    %189 = math.tanh %188 : vector<16x512xf32>
    %cst_92 = arith.constant 1.000000e+00 : f32
    %190 = vector.broadcast %cst_92 : f32 to vector<16x512xf32>
    %191 = arith.addf %190, %189 : vector<16x512xf32>
    %192 = arith.mulf %181, %191 : vector<16x512xf32>
    %193 = arith.truncf %192 : vector<16x512xf32> to vector<16x512xbf16>
    %c0_93 = arith.constant 0 : index
    %c0_94 = arith.constant 0 : index
    %194 = vector.load %arg10[%c0_93, %c0_94] : memref<512x128xbf16, #tpu.memory_space<vmem>>, vector<512x128xbf16>
    %cst_95 = arith.constant dense<0.000000e+00> : vector<16x128xf32>
    %195 = tpu.matmul %193, %194, %cst_95 {dimension_numbers = #tpu.dot_dimension_numbers<[1], [0], [0], [1], [0, 0, 1, 1], [], []>} : vector<16x512xbf16>, vector<512x128xbf16>, vector<16x128xf32> -> vector<16x128xf32>
    %c0_96 = arith.constant 0 : index
    %c0_97 = arith.constant 0 : index
    %196 = vector.load %arg11[%c0_96, %c0_97] : memref<1x128xf32, #tpu.memory_space<vmem>>, vector<1x128xf32>
    %197 = vector.broadcast %196 : vector<1x128xf32> to vector<16x128xf32>
    %198 = arith.addf %195, %197 : vector<16x128xf32>
    %c0_98 = arith.constant 0 : index
    %c0_99 = arith.constant 0 : index
    %199 = vector.load %arg12[%c0_98, %c0_99] : memref<128x512xbf16, #tpu.memory_space<vmem>>, vector<128x512xbf16>
    %cst_100 = arith.constant dense<0.000000e+00> : vector<16x512xf32>
    %200 = tpu.matmul %174, %199, %cst_100 {dimension_numbers = #tpu.dot_dimension_numbers<[1], [0], [0], [1], [0, 0, 1, 1], [], []>} : vector<16x128xbf16>, vector<128x512xbf16>, vector<16x512xf32> -> vector<16x512xf32>
    %c0_101 = arith.constant 0 : index
    %c0_102 = arith.constant 0 : index
    %201 = vector.load %arg13[%c0_101, %c0_102] : memref<1x512xf32, #tpu.memory_space<vmem>>, vector<1x512xf32>
    %202 = vector.broadcast %201 : vector<1x512xf32> to vector<16x512xf32>
    %203 = arith.addf %200, %202 : vector<16x512xf32>
    %cst_103 = arith.constant 5.000000e-01 : f32
    %204 = vector.broadcast %cst_103 : f32 to vector<16x512xf32>
    %205 = arith.mulf %204, %203 : vector<16x512xf32>
    %cst_104 = arith.constant 4.471500e-02 : f32
    %206 = vector.broadcast %cst_104 : f32 to vector<16x512xf32>
    %207 = arith.mulf %206, %203 : vector<16x512xf32>
    %208 = arith.mulf %207, %203 : vector<16x512xf32>
    %209 = arith.mulf %208, %203 : vector<16x512xf32>
    %210 = arith.addf %203, %209 : vector<16x512xf32>
    %cst_105 = arith.constant 0.797884583 : f32
    %211 = vector.broadcast %cst_105 : f32 to vector<16x512xf32>
    %212 = arith.mulf %211, %210 : vector<16x512xf32>
    %213 = math.tanh %212 : vector<16x512xf32>
    %cst_106 = arith.constant 1.000000e+00 : f32
    %214 = vector.broadcast %cst_106 : f32 to vector<16x512xf32>
    %215 = arith.addf %214, %213 : vector<16x512xf32>
    %216 = arith.mulf %205, %215 : vector<16x512xf32>
    %217 = arith.truncf %216 : vector<16x512xf32> to vector<16x512xbf16>
    %c0_107 = arith.constant 0 : index
    %c0_108 = arith.constant 0 : index
    %218 = vector.load %arg14[%c0_107, %c0_108] : memref<512x128xbf16, #tpu.memory_space<vmem>>, vector<512x128xbf16>
    %cst_109 = arith.constant dense<0.000000e+00> : vector<16x128xf32>
    %219 = tpu.matmul %217, %218, %cst_109 {dimension_numbers = #tpu.dot_dimension_numbers<[1], [0], [0], [1], [0, 0, 1, 1], [], []>} : vector<16x512xbf16>, vector<512x128xbf16>, vector<16x128xf32> -> vector<16x128xf32>
    %c0_110 = arith.constant 0 : index
    %c0_111 = arith.constant 0 : index
    %220 = vector.load %arg15[%c0_110, %c0_111] : memref<1x128xf32, #tpu.memory_space<vmem>>, vector<1x128xf32>
    %221 = vector.broadcast %220 : vector<1x128xf32> to vector<16x128xf32>
    %222 = arith.addf %219, %221 : vector<16x128xf32>
    %223 = vector.broadcast %11 : vector<1x128xf32> to vector<16x128xf32>
    %224 = arith.mulf %223, %198 : vector<16x128xf32>
    %225 = arith.addf %224, %31 : vector<16x128xf32>
    %c0_112 = arith.constant 0 : index
    %c0_113 = arith.constant 0 : index
    %c0_114 = arith.constant 0 : index
    %226 = vector.load %arg16[%c0_112, %c0_113, %c0_114] : memref<1x16x128xf32, #tpu.memory_space<vmem>>, vector<1x16x128xf32>
    %227 = vector.shape_cast %226 : vector<1x16x128xf32> to vector<16x128xf32>
    %228 = vector.shape_cast %225 : vector<16x128xf32> to vector<1x16x128xf32>
    tpu.vector_store %arg16[%c0_112, %c0_113, %c0_114], %228 {strides = array<i32>} : memref<1x16x128xf32, #tpu.memory_space<vmem>>, vector<1x16x128xf32>,
    %229 = vector.broadcast %11 : vector<1x128xf32> to vector<16x128xf32>
    %230 = arith.mulf %229, %222 : vector<16x128xf32>
    %231 = arith.addf %230, %51 : vector<16x128xf32>
    %c0_115 = arith.constant 0 : index
    %c0_116 = arith.constant 0 : index
    %c0_117 = arith.constant 0 : index
    %232 = vector.load %arg17[%c0_115, %c0_116, %c0_117] : memref<1x16x128xf32, #tpu.memory_space<vmem>>, vector<1x16x128xf32>
    %233 = vector.shape_cast %232 : vector<1x16x128xf32> to vector<16x128xf32>
    %234 = vector.shape_cast %231 : vector<16x128xf32> to vector<1x16x128xf32>
    tpu.vector_store %arg17[%c0_115, %c0_116, %c0_117], %234 {strides = array<i32>} : memref<1x16x128xf32, #tpu.memory_space<vmem>>, vector<1x16x128xf32>,
    return
  }
  func.func @transform_0(%arg0: i32) -> (i32, i32, i32) {
    %c0_i32 = arith.constant 0 : i32
    %c0_i32_0 = arith.constant 0 : i32
    %c0_i32_1 = arith.constant 0 : i32
    return %arg0, %c0_i32, %c0_i32_0 : i32, i32, i32
  }
  func.func @transform_1(%arg0: i32) -> (i32, i32, i32) {
    %c0_i32 = arith.constant 0 : i32
    %c0_i32_0 = arith.constant 0 : i32
    %c0_i32_1 = arith.constant 0 : i32
    return %arg0, %c0_i32, %c0_i32_0 : i32, i32, i32
  }
  func.func @transform_2(%arg0: i32) -> (i32, i32, i32) {
    %c0_i32 = arith.constant 0 : i32
    %c0_i32_0 = arith.constant 0 : i32
    %c0_i32_1 = arith.constant 0 : i32
    return %arg0, %c0_i32, %c0_i32_0 : i32, i32, i32
  }
  func.func @transform_3(%arg0: i32) -> (i32, i32) {
    %c0_i32 = arith.constant 0 : i32
    %c0_i32_0 = arith.constant 0 : i32
    %c0_i32_1 = arith.constant 0 : i32
    return %c0_i32, %c0_i32_0 : i32, i32
  }
  func.func @transform_4(%arg0: i32) -> (i32, i32) {
    %c0_i32 = arith.constant 0 : i32
    %c0_i32_0 = arith.constant 0 : i32
    %c0_i32_1 = arith.constant 0 : i32
    return %c0_i32, %c0_i32_0 : i32, i32
  }
  func.func @transform_5(%arg0: i32) -> (i32, i32, i32) {
    %c0_i32 = arith.constant 0 : i32
    %c0_i32_0 = arith.constant 0 : i32
    %c0_i32_1 = arith.constant 0 : i32
    %c0_i32_2 = arith.constant 0 : i32
    return %c0_i32, %c0_i32_0, %c0_i32_1 : i32, i32, i32
  }
  func.func @transform_6(%arg0: i32) -> (i32, i32, i32) {
    %c0_i32 = arith.constant 0 : i32
    %c0_i32_0 = arith.constant 0 : i32
    %c0_i32_1 = arith.constant 0 : i32
    %c0_i32_2 = arith.constant 0 : i32
    return %c0_i32, %c0_i32_0, %c0_i32_1 : i32, i32, i32
  }
  func.func @transform_7(%arg0: i32) -> (i32, i32) {
    %c0_i32 = arith.constant 0 : i32
    %c0_i32_0 = arith.constant 0 : i32
    %c0_i32_1 = arith.constant 0 : i32
    return %c0_i32, %c0_i32_0 : i32, i32
  }
  func.func @transform_8(%arg0: i32) -> (i32, i32) {
    %c0_i32 = arith.constant 0 : i32
    %c0_i32_0 = arith.constant 0 : i32
    %c0_i32_1 = arith.constant 0 : i32
    return %c0_i32, %c0_i32_0 : i32, i32
  }
  func.func @transform_9(%arg0: i32) -> (i32, i32) {
    %c0_i32 = arith.constant 0 : i32
    %c0_i32_0 = arith.constant 0 : i32
    %c0_i32_1 = arith.constant 0 : i32
    return %c0_i32, %c0_i32_0 : i32, i32
  }
  func.func @transform_10(%arg0: i32) -> (i32, i32) {
    %c0_i32 = arith.constant 0 : i32
    %c0_i32_0 = arith.constant 0 : i32
    %c0_i32_1 = arith.constant 0 : i32
    return %c0_i32, %c0_i32_0 : i32, i32
  }
  func.func @transform_11(%arg0: i32) -> (i32, i32) {
    %c0_i32 = arith.constant 0 : i32
    %c0_i32_0 = arith.constant 0 : i32
    %c0_i32_1 = arith.constant 0 : i32
    return %c0_i32, %c0_i32_0 : i32, i32
  }
  func.func @transform_12(%arg0: i32) -> (i32, i32) {
    %c0_i32 = arith.constant 0 : i32
    %c0_i32_0 = arith.constant 0 : i32
    %c0_i32_1 = arith.constant 0 : i32
    return %c0_i32, %c0_i32_0 : i32, i32
  }
  func.func @transform_13(%arg0: i32) -> (i32, i32) {
    %c0_i32 = arith.constant 0 : i32
    %c0_i32_0 = arith.constant 0 : i32
    %c0_i32_1 = arith.constant 0 : i32
    return %c0_i32, %c0_i32_0 : i32, i32
  }
  func.func @transform_14(%arg0: i32) -> (i32, i32) {
    %c0_i32 = arith.constant 0 : i32
    %c0_i32_0 = arith.constant 0 : i32
    %c0_i32_1 = arith.constant 0 : i32
    return %c0_i32, %c0_i32_0 : i32, i32
  }
  func.func @transform_15(%arg0: i32) -> (i32, i32, i32) {
    %c0_i32 = arith.constant 0 : i32
    %c0_i32_0 = arith.constant 0 : i32
    %c0_i32_1 = arith.constant 0 : i32
    return %arg0, %c0_i32, %c0_i32_0 : i32, i32, i32
  }
  func.func @transform_16(%arg0: i32) -> (i32, i32, i32) {
    %c0_i32 = arith.constant 0 : i32
    %c0_i32_0 = arith.constant 0 : i32
    %c0_i32_1 = arith.constant 0 : i32
    return %arg0, %c0_i32, %c0_i32_0 : i32, i32, i32
  }
}

</mosaic_0001>

<bundles_post_ra>
// kernel: tpu_custom_call.1
= control target key start
LH: loop header
LB: loop body
LE: loop exit
PB: predicated region body
PF: predicated region fallthrough
CT: control target
= control target key end

     0   :  { %s9004_s0 = inlined_call_operand.vmem [shape: f32[2,6,128], index: 0, kind: input, shape index: {}]   ;;  %s9005_s1 = inlined_call_operand.hbm [shape: f32[2,16,128], index: 1, kind: input, shape index: {}]   ;;  %s9006_s2 = inlined_call_operand.vmem [shape: f32[2,16,128], index: 2, kind: input, shape index: {}]   ;;  %s9007_s3 = inlined_call_operand.hbm [shape: bf16[128,384], index: 3, kind: input, shape index: {}]   ;;  %s9008_s4 = inlined_call_operand.hbm [shape: bf16[128,384], index: 4, kind: input, shape index: {}]   ;;  %s9009_s5 = inlined_call_operand.hbm [shape: bf16[4,32,128], index: 5, kind: input, shape index: {}]   ;;  %s9010_s6 = inlined_call_operand.hbm [shape: bf16[4,32,128], index: 6, kind: input, shape index: {}]   ;;  %s9011_s7 = inlined_call_operand.hbm [shape: bf16[128,512], index: 7, kind: input, shape index: {}]   ;;  %s9012_s8 = inlined_call_operand.vmem [shape: f32[1,512], index: 8, kind: input, shape index: {}]   ;;  %s9013_s9 = inlined_call_operand.hbm [shape: bf16[512,128], index: 9, kind: input, shape index: {}]   ;;  %s9014_s10 = inlined_call_operand.vmem [shape: f32[1,128], index: 10, kind: input, shape index: {}]   ;;  %s9015_s11 = inlined_call_operand.hbm [shape: bf16[128,512], index: 11, kind: input, shape index: {}]   ;;  %s9016_s12 = inlined_call_operand.vmem [shape: f32[1,512], index: 12, kind: input, shape index: {}]   ;;  %s9017_s13 = inlined_call_operand.hbm [shape: bf16[512,128], index: 13, kind: input, shape index: {}]   ;;  %s9018_s14 = inlined_call_operand.vmem [shape: f32[1,128], index: 14, kind: input, shape index: {}]   ;;  %s9019_s15 = inlined_call_operand.hbm [shape: f32[2,16,128], index: 15, kind: output, shape index: {0}]   ;;  %s9020_s16 = inlined_call_operand.hbm [shape: f32[2,16,128], index: 16, kind: output, shape index: {1}]  }
   0x1   :  { %9032 = sst [smem:[#allocation30_spill]] %s9004_s0 }
   0x2   :  { %9033 = sst [smem:[#allocation31_spill]] %s9006_s2 }
   0x3   :  { %9034 = sst [smem:[#allocation32_spill]] %s9007_s3 }
   0x4   :  { %9035 = sst [smem:[#allocation33_spill]] %s9009_s5 }
   0x5   :  { %9036 = sst [smem:[#allocation34_spill]] %s9012_s8 }
   0x6   :  { %9037 = sst [smem:[#allocation35_spill]] %s9014_s10 }
   0x7   :  { %9038 = sst [smem:[#allocation36_spill]] %s9016_s12 }
   0x8   :  { %9039 = sst [smem:[#allocation37_spill]] %s9018_s14 }
   0x9   :  { %9040 = sst [smem:[#allocation38_spill]] %s9019_s15 }
   0xa   :  { %9041 = sst [smem:[#allocation39_spill]] %s9020_s16 }
   0xb   :  { %22 = vsyncpa [#allocation6], 0 }
   0xc   :  { %24 = vsyncpa [#allocation6 + $0x1], 0 }
   0xd   :  { %25 = vsyncpa [#allocation9], 0 }
   0xe   :  { %26 = vsyncpa [#allocation12], 0 }
   0xf   :  { %27 = vsyncpa [#allocation15], 0 }
  0x10   :  { %28 = vsyncpa [#allocation18], 0 }
  0x11   :  { %29 = vsyncpa [#allocation7], 0 }
  0x12   :  { %31 = vsyncpa [#allocation7 + $0x1], 0 }
  0x13   :  { %32 = vsyncpa [#allocation22], 0 }
  0x14   :  { %34 = vsyncpa [#allocation22 + $0x1], 0  ;;  %s7664_s21 = smov 0   ;;  %s7666_s22 = smov 0  }
  0x15   :  { %s7668_s23 = smov 0   ;;  %s7670_s24 = smov 0  }
  0x16 LB: > { %s7550_s25 = smov [#allocation8]   ;;  %s7685_s27 = sadd.s32 4294967295, %s7548_s24   ;;  %s7548_s24 = sphi %s7670_s24, %s9080_s24   ;;  %s7544_s23 = sphi %s7668_s23, %s9079_s23   ;;  %s7540_s22 = sphi %s7666_s22, %s9078_s22   ;;  %s7536_s21 = sphi %s7664_s21, %s9077_s21  }
  0x17   : > { %s439_s26 = sshll.u32 %s7550_s25, 4  ;;  %p6028_p0 = scmp.ge.s32.totalorder %s7548_s24, 1  ;;  %s7690_s26 = int_to_ptr.vmem [resolvable:$true] %s439_s26 }
  0x18   : > { %p9024_p1 = scmp.eq.s32.totalorder %s7685_s27, 0  ;;  %p427_p2 = scmp.lt.s32.totalorder %s7548_s24, 3 }
  0x19   : > { %s7551_s29 = smov [#allocation11]   ;;  %s7552_s17 = smov [#allocation14]  }
  0x1a   : > { %p7692_p3 = pnand %p6028_p0, %p427_p2  ;;  %s465_s30 = sshll.u32 %s7551_s29, 4  ;;  %s7705_s30 = int_to_ptr.vmem [resolvable:$true] %s465_s30 }
  0x1b   : > { %s7707_s18 = sshll.u32 %s7552_s17, 4  ;;  %s9044_s3 = sld [smem:[#allocation32_spill]]  ;;  %s492_s18 = int_to_ptr.vmem [resolvable:$true] %s7707_s18 }
  0x1c   : > { %s9042_s28 = scalar_select %p7692_p3, 1, 0 }
  0x1d   : > { %p6716_p5 = pneg %p7692_p3 }
  0x1f   : > { %p7701_p6 = pnand %p6716_p5, %p9024_p1 }
  0x21   : > { %s7180_s25 = scalar_lea.hbm %s9044_s3, 3072  ;;  %p7717_p8 = pneg %p7701_p6 }
  0x22   : > { %p7181_p7 = scmp.ne.s32.totalorder %s9044_s3, %s7180_s25  ;;  %p7187_p11 = scmp.lt.u32.totalorder %s7180_s25, %s9044_s3 }
  0x24   : > { %p7183_p9 = pnand %p7717_p8, %p7181_p7 }
  0x26   : > { %p7184_p10 = pneg %p7183_p9 }
  0x28   : > { %p7189_p12 = pnand %p7187_p11, %p7184_p10 }
  0x2a   : > { %7192 = shalt.err (!%p7189_p12)
}
  0x2b   : > { %s7193_s14 = scalar_lea.vmem %s7690_s26, 3072  ;;  %p7201_p5 = scmp.lt.s32.totalorder %s7690_s26, %s7690_s26 }
  0x2c   : > { %p7194_p13 = scmp.ne.s32.totalorder %s7690_s26, %s7193_s14  ;;  %p7202_p4 = scmp.lt.s32.totalorder %s7193_s14, %s7193_s14 }
  0x2e   : > { %p7196_p0 = pnand %p7194_p13, %p7717_p8  ;;  %p7203_p7 = por %p7202_p4, %p7201_p5 }
  0x30   : > { %p7197_p2 = pneg %p7196_p0 }
  0x32   : > { %p7204_p9 = pnand %p7203_p7, %p7197_p2 }
  0x34   : > { %7207 = shalt.err (!%p7204_p9)
}
  0x35   : > { %s9023_s16 = smov 192   ;;  %s9030_s15 = smov 12  }
  0x36   : > { %6719 = dma.hbm_to_vmem [thread:$0]  (!%p7701_p6), %s9044_s3, 3072, %s7690_s26, [#allocation9], %s9023_s16, %s9023_s16, %s9030_s15  }
  0x37   : > { %s9046_s5 = sld [smem:[#allocation33_spill]] }
  0x3d   : > { %s7208_s14 = scalar_lea.hbm %s9046_s5, 1024 }
  0x3e   : > { %p7209_p4 = scmp.ne.s32.totalorder %s9046_s5, %s7208_s14  ;;  %p7215_p12 = scmp.lt.u32.totalorder %s7208_s14, %s9046_s5 }
  0x40   : > { %p7211_p10 = pnand %p7209_p4, %p7717_p8 }
  0x42   : > { %p7212_p11 = pneg %p7211_p10 }
  0x44   : > { %p7217_p13 = pnand %p7215_p12, %p7212_p11 }
  0x46   : > { %7220 = shalt.err (!%p7217_p13)
}
  0x47   : > { %s7221_s26 = scalar_lea.vmem %s7705_s30, 1024  ;;  %p7229_p7 = scmp.lt.s32.totalorder %s7705_s30, %s7705_s30 }
  0x48   : > { %p7222_p0 = scmp.ne.s32.totalorder %s7705_s30, %s7221_s26  ;;  %p7230_p9 = scmp.lt.s32.totalorder %s7221_s26, %s7221_s26 }
  0x4a   : > { %p7224_p2 = pnand %p7222_p0, %p7717_p8  ;;  %p7231_p4 = por %p7230_p9, %p7229_p7 }
  0x4c   : > { %p7225_p5 = pneg %p7224_p2 }
  0x4e   : > { %p7232_p10 = pnand %p7231_p4, %p7225_p5 }
  0x50   : > { %7235 = shalt.err (!%p7232_p10)
}
  0x51   : > { %s9026_s10 = smov 64   ;;  %s9028_s2 = smov 4  }
  0x52   : > { %6725 = dma.hbm_to_vmem [thread:$0]  (!%p7701_p6), %s9046_s5, 1024, %s7705_s30, [#allocation12], %s9026_s10, %s9026_s10, %s9028_s2  }
  0x53   : > { %s7236_s25 = scalar_lea.hbm %s9011_s7, 4096 }
  0x54   : > { %p7237_p11 = scmp.ne.s32.totalorder %s9011_s7, %s7236_s25  ;;  %p7243_p0 = scmp.lt.u32.totalorder %s7236_s25, %s9011_s7 }
  0x56   : > { %p7239_p12 = pnand %p7237_p11, %p7717_p8 }
  0x58   : > { %p7240_p13 = pneg %p7239_p12 }
  0x5a   : > { %p7245_p2 = pnand %p7243_p0, %p7240_p13 }
  0x5c   : > { %7248 = shalt.err (!%p7245_p2)
}
  0x5d   : > { %s7249_s8 = scalar_lea.vmem %s492_s18, 4096  ;;  %p7257_p4 = scmp.lt.s32.totalorder %s492_s18, %s492_s18 }
  0x5e   : > { %p7250_p5 = scmp.ne.s32.totalorder %s492_s18, %s7249_s8  ;;  %p7258_p10 = scmp.lt.s32.totalorder %s7249_s8, %s7249_s8 }
  0x60   : > { %p7252_p7 = pnand %p7250_p5, %p7717_p8  ;;  %p7259_p1 = por %p7258_p10, %p7257_p4 }
  0x62   : > { %p7253_p9 = pneg %p7252_p7 }
  0x64   : > { %p7260_p3 = pnand %p7259_p1, %p7253_p9 }
  0x66   : > { %7263 = shalt.err (!%p7260_p3)
}
  0x67   : > { %s7557_s30 = smov 256   ;;  %s7558_s12 = smov 16  }
  0x68   : > { %6731 = dma.hbm_to_vmem [thread:$0]  (!%p7701_p6), %s9011_s7, 4096, %s492_s18, [#allocation15], %s7557_s30, %s7557_s30, %s7558_s12  }
  0x69   : > { %s7559_s20 = smov [#allocation17]   ;;  %s7560_s17 = smov [#allocation10]  }
  0x6a   : > { %s523_s25 = sshll.u32 %s7559_s20, 4  ;;  %s452_s14 = sshll.u32 %s7560_s17, 4  ;;  %s524_s25 = int_to_ptr.vmem [resolvable:$true] %s523_s25  ;;  %s453_s14 = int_to_ptr.vmem [resolvable:$true] %s452_s14 }
  0x6b   : > { %s7264_s8 = scalar_lea.hbm %s9015_s11, 4096 }
  0x6c   : > { %p7265_p1 = scmp.ne.s32.totalorder %s9015_s11, %s7264_s8  ;;  %p7271_p12 = scmp.lt.u32.totalorder %s7264_s8, %s9015_s11 }
  0x6e   : > { %p7267_p3 = pnand %p7265_p1, %p7717_p8 }
  0x70   : > { %p7268_p11 = pneg %p7267_p3 }
  0x72   : > { %p7273_p13 = pnand %p7271_p12, %p7268_p11 }
  0x74   : > { %7276 = shalt.err (!%p7273_p13)
}
  0x75   : > { %s7277_s18 = scalar_lea.vmem %s524_s25, 4096  ;;  %p7285_p7 = scmp.lt.s32.totalorder %s524_s25, %s524_s25 }
  0x76   : > { %p7278_p0 = scmp.ne.s32.totalorder %s524_s25, %s7277_s18  ;;  %p7286_p9 = scmp.lt.s32.totalorder %s7277_s18, %s7277_s18 }
  0x78   : > { %p7280_p2 = pnand %p7278_p0, %p7717_p8  ;;  %p7287_p4 = por %p7286_p9, %p7285_p7 }
  0x7a   : > { %p7281_p5 = pneg %p7280_p2 }
  0x7c   : > { %p7288_p10 = pnand %p7287_p4, %p7281_p5 }
  0x7e   : > { %7291 = shalt.err (!%p7288_p10)
}
  0x7f   : > { %6737 = dma.hbm_to_vmem [thread:$0]  (!%p7701_p6), %s9015_s11, 4096, %s524_s25, [#allocation18], %s7557_s30, %s7557_s30, %s7558_s12  }
  0x80   : > { %s7292_s2 = scalar_lea.hbm %s9008_s4, 3072 }
  0x81   : > { %p7293_p1 = scmp.ne.s32.totalorder %s9008_s4, %s7292_s2  ;;  %p7299_p12 = scmp.lt.u32.totalorder %s7292_s2, %s9008_s4 }
  0x83   : > { %p7295_p3 = pnand %p7293_p1, %p7717_p8 }
  0x85   : > { %p7296_p11 = pneg %p7295_p3 }
  0x87   : > { %p7301_p13 = pnand %p7299_p12, %p7296_p11 }
  0x89   : > { %7304 = shalt.err (!%p7301_p13)
}
  0x8a   : > { %s7305_s26 = scalar_lea.vmem %s453_s14, 3072  ;;  %p7313_p7 = scmp.lt.s32.totalorder %s453_s14, %s453_s14 }
  0x8b   : > { %p7306_p0 = scmp.ne.s32.totalorder %s453_s14, %s7305_s26  ;;  %p7314_p9 = scmp.lt.s32.totalorder %s7305_s26, %s7305_s26 }
  0x8d   : > { %p7308_p2 = pnand %p7306_p0, %p7717_p8  ;;  %p7315_p4 = por %p7314_p9, %p7313_p7 }
  0x8f   : > { %p7309_p5 = pneg %p7308_p2 }
  0x91   : > { %p7316_p10 = pnand %p7315_p4, %p7309_p5 }
  0x93   : > { %7319 = shalt.err (!%p7316_p10)
}
  0x94   : > { %s9047_s30 = smov 12   ;;  %s9048_s12 = smov 192  }
  0x95   : > { %6722 = dma.hbm_to_vmem [thread:$0]  (!%p7701_p6), %s9008_s4, 3072, %s453_s14, [#allocation9], %s9048_s12, %s9048_s12, %s9047_s30  }
  0x96   : > { %s7561_s18 = smov [#allocation13]   ;;  %s7562_s10 = smov [#allocation16]  }
  0x97   : > { %s478_s15 = sshll.u32 %s7561_s18, 4  ;;  %s507_s3 = sshll.u32 %s7562_s10, 4  ;;  %s479_s15 = int_to_ptr.vmem [resolvable:$true] %s478_s15  ;;  %s508_s3 = int_to_ptr.vmem [resolvable:$true] %s507_s3 }
  0x98   : > { %s7320_s16 = scalar_lea.hbm %s9010_s6, 1024 }
  0x99   : > { %p7321_p1 = scmp.ne.s32.totalorder %s9010_s6, %s7320_s16  ;;  %p7327_p12 = scmp.lt.u32.totalorder %s7320_s16, %s9010_s6 }
  0x9b   : > { %p7323_p3 = pnand %p7321_p1, %p7717_p8 }
  0x9d   : > { %p7324_p11 = pneg %p7323_p3 }
  0x9f   : > { %p7329_p13 = pnand %p7327_p12, %p7324_p11 }
  0xa1   : > { %7332 = shalt.err (!%p7329_p13)
}
  0xa2   : > { %s7333_s14 = scalar_lea.vmem %s479_s15, 1024  ;;  %p7341_p7 = scmp.lt.s32.totalorder %s479_s15, %s479_s15 }
  0xa3   : > { %p7334_p0 = scmp.ne.s32.totalorder %s479_s15, %s7333_s14  ;;  %p7342_p9 = scmp.lt.s32.totalorder %s7333_s14, %s7333_s14 }
  0xa5   : > { %p7336_p2 = pnand %p7334_p0, %p7717_p8  ;;  %p7343_p4 = por %p7342_p9, %p7341_p7 }
  0xa7   : > { %p7337_p5 = pneg %p7336_p2 }
  0xa9   : > { %p7344_p10 = pnand %p7343_p4, %p7337_p5 }
  0xab   : > { %7347 = shalt.err (!%p7344_p10)
}
  0xac   : > { %s9049_s30 = smov 4   ;;  %s9050_s12 = smov 64  }
  0xad   : > { %6728 = dma.hbm_to_vmem [thread:$0]  (!%p7701_p6), %s9010_s6, 1024, %s479_s15, [#allocation12], %s9050_s12, %s9050_s12, %s9049_s30  }
  0xae   : > { %s7348_s5 = scalar_lea.hbm %s9013_s9, 4096 }
  0xaf   : > { %p7349_p1 = scmp.ne.s32.totalorder %s9013_s9, %s7348_s5  ;;  %p7355_p12 = scmp.lt.u32.totalorder %s7348_s5, %s9013_s9 }
  0xb1   : > { %p7351_p3 = pnand %p7349_p1, %p7717_p8 }
  0xb3   : > { %p7352_p11 = pneg %p7351_p3 }
  0xb5   : > { %p7357_p13 = pnand %p7355_p12, %p7352_p11 }
  0xb7   : > { %7360 = shalt.err (!%p7357_p13)
}
  0xb8   : > { %s7361_s17 = scalar_lea.vmem %s508_s3, 4096  ;;  %p7369_p7 = scmp.lt.s32.totalorder %s508_s3, %s508_s3 }
  0xb9   : > { %p7362_p0 = scmp.ne.s32.totalorder %s508_s3, %s7361_s17  ;;  %p7370_p9 = scmp.lt.s32.totalorder %s7361_s17, %s7361_s17 }
  0xbb   : > { %p7364_p2 = pnand %p7362_p0, %p7717_p8  ;;  %p7371_p4 = por %p7370_p9, %p7369_p7 }
  0xbd   : > { %p7365_p5 = pneg %p7364_p2 }
  0xbf   : > { %p7372_p10 = pnand %p7371_p4, %p7365_p5 }
  0xc1   : > { %7375 = shalt.err (!%p7372_p10)
}
  0xc2   : > { %6734 = dma.hbm_to_vmem [thread:$0]  (!%p7701_p6), %s9013_s9, 4096, %s508_s3, [#allocation15], %s9050_s12, %s9050_s12, %s9049_s30  }
  0xc3   : > { %s7563_s14 = smov [#allocation19]   ;;  %s7376_s10 = scalar_lea.hbm %s9017_s13, 4096 }
  0xc4   : > { %s539_s25 = sshll.u32 %s7563_s14, 4  ;;  %p7377_p1 = scmp.ne.s32.totalorder %s9017_s13, %s7376_s10  ;;  %s540_s25 = int_to_ptr.vmem [resolvable:$true] %s539_s25 }
  0xc5   : > { %p7383_p12 = scmp.lt.u32.totalorder %s7376_s10, %s9017_s13 }
  0xc6   : > { %p7379_p3 = pnand %p7377_p1, %p7717_p8 }
  0xc8   : > { %p7380_p11 = pneg %p7379_p3 }
  0xca   : > { %p7385_p13 = pnand %p7383_p12, %p7380_p11 }
  0xcc   : > { %7388 = shalt.err (!%p7385_p13)
}
  0xcd   : > { %s7389_s3 = scalar_lea.vmem %s540_s25, 4096  ;;  %p7397_p7 = scmp.lt.s32.totalorder %s540_s25, %s540_s25 }
  0xce   : > { %p7390_p0 = scmp.ne.s32.totalorder %s540_s25, %s7389_s3  ;;  %p7398_p9 = scmp.lt.s32.totalorder %s7389_s3, %s7389_s3 }
  0xd0   : > { %p7392_p2 = pnand %p7390_p0, %p7717_p8  ;;  %p7399_p4 = por %p7398_p9, %p7397_p7 }
  0xd2   : > { %p7393_p5 = pneg %p7392_p2 }
  0xd4   : > { %p7400_p10 = pnand %p7399_p4, %p7393_p5 }
  0xd6   : > { %7403 = shalt.err (!%p7400_p10)
}
  0xd7   : > { %6740 = dma.hbm_to_vmem [thread:$0]  (!%p7701_p6), %s9017_s13, 4096, %s540_s25, [#allocation18], %s9050_s12, %s9050_s12, %s9049_s30  }
  0xd8   : > { %s6027_s0 = sadd.s32 4294967294, %s7548_s24   ;;  %s7890_s29 = sadd.s32 1, %s7548_s24  }
  0xd9   : > { %s70_s15 = ssub.s32 %s7548_s24, %s7890_s29  ;;  %s73_s26 = sadd.s32 1, %s7544_s23 }
  0xda   : > { %p71_p8 = scmp.eq.s32.totalorder %s70_s15, 0  ;;  %p80_p1 = scmp.ne.s32.totalorder %s7544_s23, %s7540_s22 }
  0xdb   : > { %p81_p3 = scmp.eq.s32.totalorder %s7548_s24, 0  ;;  %p86_p11 = scmp.ne.s32.totalorder %s7540_s22, %s7536_s21 }
  0xdc   : > { %s7901_s14 = scalar_select %p71_p8, %s7544_s23, %s73_s26  }
  0xdd   : > { %p7903_p12 = por %p81_p3, %p80_p1  ;;  %p9052_p13 = scmp.eq.s32.totalorder %s7685_s27, 0 }
  0xde   : > { %p388_p0 = scmp.eq.s32.totalorder %s7685_s27, 1  ;;  %p394_p2 = scmp.eq.s32.totalorder %s6027_s0, 1 }
  0xdf   : > { %p7909_p6 = por %p9052_p13, %p86_p11  ;;  %p6760_p5 = scmp.lt.s32.totalorder %s7548_s24, 2 }
  0xe0   : > { %s563_s12 = sand.u32 1, %s7544_s23   ;;  %p7916_p7 = por %p388_p0, %p80_p1 }
  0xe1   : > { %p7920_p9 = por %p394_p2, %p86_p11  ;;  %s6038_s10 = sshll.u32 %s563_s12, 4 }
  0xe2   : > { %s9054_s25 = scalar_select %p7916_p7, 1, 0 }
  0xe3   : > { %s9055_s18 = scalar_select %p7920_p9, 1, 0 }
  0xe4   : > { %s6312_s5 = sshll.u32 %s7548_s24, 8  ;;  %s567_s3 = scalar_lea.vmem [#allocation5], %s6038_s10 }
  0xe5   : > { %s7928_s19 = scalar_lea.hbm %s9005_s1, %s6312_s5  ;;  %s574_s20 = sshll.u32 %s567_s3, 4  ;;  %s7930_s20 = int_to_ptr.vmem [resolvable:$true] %s574_s20 }
  0xe6   : > { %p7934_p4 = pnand %p6760_p5, %p7903_p12  ;;  %s7938_s0 = scalar_lea.sflag [#allocation6], %s563_s12 }
  0xe7   : > { %s7404_s15 = scalar_lea.hbm %s7928_s19, 256  ;;  %s7409_s8 = scalar_lea.hbm %s9005_s1, 512 }
  0xe8   : > { %p7405_p10 = scmp.ne.s32.totalorder %s7928_s19, %s7404_s15  ;;  %p7406_p8 = pneg %p7934_p4 }
  0xe9   : > { %p7410_p11 = scmp.lt.u32.totalorder %s7928_s19, %s9005_s1  ;;  %p7411_p12 = scmp.lt.u32.totalorder %s7409_s8, %s7404_s15 }
  0xea   : > { %p7407_p1 = pnand %p7406_p8, %p7405_p10  ;;  %p7413_p0 = scmp.lt.u32.totalorder %s7404_s15, %s7928_s19 }
  0xeb   : > { %p7412_p13 = por %p7411_p12, %p7410_p11 }
  0xec   : > { %p7408_p3 = pneg %p7407_p1 }
  0xed   : > { %p7414_p2 = por %p7413_p0, %p7412_p13 }
  0xef   : > { %p7415_p5 = pnand %p7414_p2, %p7408_p3 }
  0xf1   : > { %7418 = shalt.err (!%p7415_p5)
}
  0xf2   : > { %s7419_s12 = scalar_lea.vmem %s7930_s20, 256  ;;  %s7564_s16 = smov [#allocation5]  }
  0xf3   : > { %p7420_p10 = scmp.ne.s32.totalorder %s7930_s20, %s7419_s12  ;;  %s7424_s3 = sshll.u32 %s7564_s16, 4  ;;  %s7425_s3 = int_to_ptr.vmem [resolvable:$false] %s7424_s3 }
  0xf4   : > { %s7426_s26 = scalar_lea.vmem %s7425_s3, 512  ;;  %p7427_p7 = scmp.lt.s32.totalorder %s7930_s20, %s7425_s3 }
  0xf5   : > { %p7422_p1 = pnand %p7420_p10, %p7406_p8  ;;  %p7428_p11 = scmp.lt.s32.totalorder %s7426_s26, %s7419_s12 }
  0xf7   : > { %p7423_p9 = pneg %p7422_p1  ;;  %p7429_p12 = por %p7428_p11, %p7427_p7 }
  0xf9   : > { %p7430_p13 = pnand %p7429_p12, %p7423_p9 }
  0xfb   : > { %7433 = shalt.err (!%p7430_p13)
}
  0xfc   : > { %s7565_s15 = smov 128   ;;  %s7566_s10 = smov 8  }
  0xfd   : > { %6744 = dma.hbm_to_vmem [thread:$0]  (!%p7934_p4), %s7928_s19, 256, %s7930_s20, %s7938_s0, %s7565_s15, %s7565_s15, %s7566_s10  }
  0xfe   : > { %p9057_p8 = scmp.ne.s32.totalorder %s9042_s28, 0 }
  0xff   : > { %s7969_s8 = sand.u32 (!%p9057_p8), 1, %s7540_s22  }
 0x100   : > { %594 = sbr.rel (%p9057_p8) target bundleno = 3171 (0xc63), region = 80  ;;  %s7972_s5 = sshll.u32 (!%p9057_p8), %s7969_s8, 4 }
 0x101   : > { %s597_s2 = scalar_lea.sflag (!%p9057_p8), [#allocation6], %s7969_s8  ;;  %s600_s12 = scalar_lea.vmem (!%p9057_p8), [#allocation5], %s7972_s5 }
 0x107   : > { %7507 = dma.done.wait (%p7909_p6), %s597_s2, 256  }
 0x108   : > { %7509 = vsyncadd (%p7909_p6), %s597_s2, 4294967040  ;;  %p9058_p7 = scmp.eq.s32.totalorder %s7685_s27, 0 }
 0x10a   : > { %7511 = dma.done.wait (%p9058_p7), [#allocation9], 6144   ;;  %p9059_p9 = pmov %p9058_p7 }
 0x10b   : > { %p9060_p4 = pmov %p9058_p7 }
 0x10c   : > { %7513 = vsyncadd (%p9059_p9), [#allocation9], 4294961152 }
 0x10d   : > { %7515 = dma.done.wait (%p9060_p4), [#allocation12], 2048   ;;  %p9061_p3 = pmov %p9060_p4 }
 0x10f   : > { %7517 = vsyncadd (%p9061_p3), [#allocation12], 4294965248  ;;  %p9062_p0 = pmov %p9061_p3 }
 0x111   : > { %7519 = dma.done.wait (%p9062_p0), [#allocation15], 8192   ;;  %p9063_p2 = pmov %p9062_p0 }
 0x112   : > { %p9064_p6 = pmov %p9062_p0 }
 0x113   : > { %7521 = vsyncadd (%p9063_p2), [#allocation15], 4294959104 }
 0x114   : > { %7523 = dma.done.wait (%p9064_p6), [#allocation18], 8192   ;;  %p9065_p5 = pmov %p9062_p0 }
 0x115   : > { %p695_p10 = scmp.lt.s32.totalorder %s7685_s27, 1  ;;  %s9066_s17 = sld [smem:[#allocation31_spill]]  ;;  %v711_v0 = vld [vmem:[%s600_s12] sm:$0xff]  ;;  %v712_v2 = vld [vmem:[%s600_s12 + $0x8] sm:$0xff]  ;;  %v7567_v6 = vmov 0.0   ;;  %v7568_v46 = vmov 0  }
 0x116   : > { %7525 = vsyncadd (%p9065_p5), [#allocation18], 4294959104  ;;  %713 = vadd.xlane.f32.xlu0 %v711_v0  ;;  %v6828_v4 = vld [vmem:[#allocation8 + $0x4] ss:$12 sps:$4 sm:$0xff]   ;;  %v6830_v5 = vld [vmem:[#allocation8] ss:$12 sps:$4 sm:$0xff]   ;;  %6478 = vmatprep.subr.bf16.mxu1 %v7567_v6 }
 0x117   : > { %s7998_s28 = scalar_select %p695_p10, %s7685_s27, 1  ;;  %v6831_v7 = vld [vmem:[#allocation8 + $0x8] ss:$12 sps:$4 sm:$0xff]   ;;  %v6834_v9 = vld [vmem:[#allocation8 + $0x18] ss:$12 sps:$4 sm:$0xff]   ;;  %938 = vmatprep.subr.bf16.mxu0 %v6828_v4  ;;  %970 = vmatprep.mubr.bf16.mxu0 %v7568_v46  ;;  %vm7569_vm0 = vmmov 0  }
 0x118   : > { %v6832_v8 = vld [vmem:[#allocation8 + $0x1c] ss:$12 sps:$4 sm:$0xff]   ;;  %v6835_v10 = vld [vmem:[#allocation8 + $0x20] ss:$12 sps:$4 sm:$0xff]   ;;  %939 = vmatpush1.bf16.msra.mxu0 %v6830_v5  ;;  %6479 = vmatpush3.bf16.msra.mxu1 %v6831_v7  ;;  %v6839_v29 = vld [vmem:[#allocation8 + $0x38] ss:$12 sps:$4 sm:$0xff]  }
 0x119   : > { %s6313_s30 = sshll.u32 %s7998_s28, 4  ;;  %940 = vmatprep.subr.bf16.mxu0 %v6832_v8  ;;  %6480 = vmatprep.subr.bf16.mxu1 %v7567_v6  ;;  %v6836_v27 = vld [vmem:[#allocation8 + $0x34] ss:$12 sps:$4 sm:$0xff]   ;;  %v6838_v28 = vld [vmem:[#allocation8 + $0x30] ss:$12 sps:$4 sm:$0xff]   ;;  %s6053_s16 = sshll.u32 %s7998_s28, 3 }
 0x11a   : > { %715 = vadd.xlane.f32.xlu0 %v712_v2  ;;  %v6840_v30 = vld [vmem:[#allocation8 + $0x4c] ss:$12 sps:$4 sm:$0xff]   ;;  %v6842_v31 = vld [vmem:[#allocation8 + $0x48] ss:$12 sps:$4 sm:$0xff]   ;;  %v6843_v32 = vld [vmem:[#allocation8 + $0x50] ss:$12 sps:$4 sm:$0xff]   ;;  %6494 = vmatprep.mubr.msk.bf16.mxu1 %vm7569_vm0, %v7567_v6 }
 0x11b   : > { %s703_s0 = scalar_lea.vmem %s9066_s17, %s6313_s30  ;;  %v6844_v33 = vld [vmem:[#allocation8 + $0x64] ss:$12 sps:$4 sm:$0xff]   ;;  %v6846_v34 = vld [vmem:[#allocation8 + $0x60] ss:$12 sps:$4 sm:$0xff]   ;;  %v6847_v35 = vld [vmem:[#allocation8 + $0x68] ss:$12 sps:$4 sm:$0xff]  }
 0x11c   : > { %v736_v1 = vld [vmem:[%s703_s0] sm:$0xff]  ;;  %v737_v3 = vld [vmem:[%s703_s0 + $0x8] sm:$0xff]  ;;  %941 = vmatpush1.bf16.msra.mxu0 %v6834_v9  ;;  %6481 = vmatpush3.bf16.msra.mxu1 %v6835_v10  ;;  %v6854_v40 = vld [vmem:[#allocation8 + $0x90] ss:$12 sps:$4 sm:$0xff]   ;;  %s9067_s15 = sld [smem:[#allocation30_spill]]  ;;  %s7570_s2 = smov 96  }
 0x11d   : > { %738 = vadd.xlane.f32.xlu1 %v736_v1  ;;  %6482 = vmatprep.subr.bf16.mxu1 %v7567_v6  ;;  %v6848_v36 = vld [vmem:[#allocation8 + $0x7c] ss:$12 sps:$4 sm:$0xff]   ;;  %v6850_v37 = vld [vmem:[#allocation8 + $0x78] ss:$12 sps:$4 sm:$0xff]   ;;  %v6851_v38 = vld [vmem:[#allocation8 + $0x80] ss:$12 sps:$4 sm:$0xff]  }
 0x11e   : > { %942 = vmatprep.subr.bf16.mxu0 %v6836_v27  ;;  %v6852_v39 = vld [vmem:[#allocation8 + $0x94] ss:$12 sps:$4 sm:$0xff]   ;;  %v6855_v41 = vld [vmem:[#allocation8 + $0x98] ss:$12 sps:$4 sm:$0xff]   ;;  %v6859_v44 = vld [vmem:[#allocation8 + $0xb0] ss:$12 sps:$4 sm:$0xff]  }
 0x11f   : > { %v6856_v42 = vld [vmem:[#allocation8 + $0xac] ss:$12 sps:$4 sm:$0xff]   ;;  %v6858_v43 = vld [vmem:[#allocation8 + $0xa8] ss:$12 sps:$4 sm:$0xff]   ;;  %v6862_v45 = vld [vmem:[#allocation10 + $0x4] ss:$12 sps:$4 sm:$0xff]  }
 0x120   : > { %943 = vmatpush1.bf16.msra.mxu0 %v6838_v28  ;;  %6483 = vmatpush3.bf16.msra.mxu1 %v6839_v29  ;;  %v6866_v5 = vld [vmem:[#allocation10 + $0x1c] ss:$12 sps:$4 sm:$0xff]   ;;  %v6864_v9 = vld [vmem:[#allocation10 + $0x18] ss:$12 sps:$4 sm:$0xff]   ;;  %v6867_v10 = vld [vmem:[#allocation10 + $0x20] ss:$12 sps:$4 sm:$0xff]  }
 0x121   : > { %740 = vadd.xlane.f32.xlu1 %v737_v3  ;;  %6484 = vmatprep.subr.bf16.mxu1 %v7567_v6  ;;  %v6883_v27 = vld [vmem:[#allocation10 + $0x80] ss:$12 sps:$4 sm:$0xff]   ;;  %s7571_s12 = smov 64   ;;  %s7572_s28 = smov 32   ;;  %vm1318_vm1 = vcmask 261120  }
 0x122   : > { %944 = vmatprep.subr.bf16.mxu0 %v6840_v30  ;;  %s8036_s10 = scalar_lea.vmem %s9067_s15, %s6053_s16  ;;  %v6886_v29 = vld [vmem:[#allocation10 + $0x94] ss:$12 sps:$4 sm:$0xff]   ;;  %s9068_s20 = sld [smem:[#allocation34_spill]] }
 0x123   : > { %v8042_v55 = vld [vmem:[%s8036_s10] ss:$0 sm:$0xff]  ;;  %v8050_v59 = vld [vmem:[%s8036_s10 + $0x1] ss:$0 sm:$0xff]  ;;  %s9069_s16 = sld [smem:[#allocation35_spill]]  ;;  %s8846_s3 = scalar_lea.vmem [#allocation20], %s7972_s5 }
 0x124   : > { %945 = vmatpush1.bf16.msra.mxu0 %v6842_v31  ;;  %6485 = vmatpush3.bf16.msra.mxu1 %v6843_v32  ;;  %v6884_v31 = vld [vmem:[#allocation10 + $0x90] ss:$12 sps:$4 sm:$0xff]   ;;  %v6887_v32 = vld [vmem:[#allocation10 + $0x98] ss:$12 sps:$4 sm:$0xff]   ;;  %s9071_s19 = sld [smem:[#allocation38_spill]]  ;;  %s5788_s17 = scalar_lea.sflag [#allocation7], %s7969_s8 }
 0x125   : > { %6486 = vmatprep.subr.bf16.mxu1 %v7567_v6  ;;  %946 = vmatprep.subr.bf16.mxu0 %v6844_v33  ;;  %v6890_v33 = vld [vmem:[#allocation10 + $0xac] ss:$12 sps:$4 sm:$0xff]   ;;  %p9072_p11 = scmp.ne.s32.totalorder %s9054_s25, 0 }
 0x128   : > { %947 = vmatpush1.bf16.msra.mxu0 %v6846_v34  ;;  %6487 = vmatpush3.bf16.msra.mxu1 %v6847_v35  ;;  %v6888_v35 = vld [vmem:[#allocation10 + $0xa8] ss:$12 sps:$4 sm:$0xff]  }
 0x129   : > { %6488 = vmatprep.subr.bf16.mxu1 %v7567_v6  ;;  %948 = vmatprep.subr.bf16.mxu0 %v6848_v36  ;;  %v6891_v36 = vld [vmem:[#allocation10 + $0xb0] ss:$12 sps:$4 sm:$0xff]  }
 0x12c   : > { %949 = vmatpush1.bf16.msra.mxu0 %v6850_v37  ;;  %6489 = vmatpush3.bf16.msra.mxu1 %v6851_v38 }
 0x12d   : > { %6490 = vmatprep.subr.bf16.mxu1 %v7567_v6  ;;  %950 = vmatprep.subr.bf16.mxu0 %v6852_v39 }
 0x130   : > { %951 = vmatpush1.bf16.msra.mxu0 %v6854_v40  ;;  %6491 = vmatpush3.bf16.msra.mxu1 %v6855_v41 }
 0x131   : > { %6492 = vmatprep.subr.bf16.mxu1 %v7567_v6  ;;  %952 = vmatprep.subr.bf16.mxu0 %v6856_v42 }
 0x134   : > { %953 = vmatpush1.bf16.msra.mxu0 %v6858_v43  ;;  %6493 = vmatpush3.bf16.msra.mxu1 %v6859_v44 }
 0x135   : > { %2083 = vmatprep.subr.bf16.mxu0 %v6862_v45  ;;  %6498 = vmatprep.subr.bf16.mxu1 %v7567_v6 }
 0x1a3   : > { %v714_v11 = vpop.xlane.xlu0 %713 }
 0x1a4   : > { %v718_v13 = vmul.f32 0.0078125, %v714_v11  ;;  %v6870_v11 = vld [vmem:[#allocation10 + $0x34] ss:$12 sps:$4 sm:$0xff]  }
 0x1a6   : > { %v8007_v15 = vsub.f32 %v711_v0, %v718_v13  ;;  %v6868_v13 = vld [vmem:[#allocation10 + $0x30] ss:$12 sps:$4 sm:$0xff]  }
 0x1a7   : > { %v716_v17 = vpop.xlane.xlu0 %715 }
 0x1a8   : > { %v719_v19 = vmul.f32 0.0078125, %v716_v17  ;;  %v722_v20 = vmul.f32 %v8007_v15, %v8007_v15  ;;  %v6872_v17 = vld [vmem:[#allocation10 + $0x48] ss:$12 sps:$4 sm:$0xff]  }
 0x1aa   : > { %v739_v12 = vpop.xlane.xlu1 %738  ;;  %v8013_v22 = vsub.f32 %v712_v2, %v719_v19  ;;  %724 = vadd.xlane.f32.xlu0 %v722_v20  ;;  %v6860_v2 = vld [vmem:[#allocation10] ss:$12 sps:$4 sm:$0xff]   ;;  %v6878_v19 = vld [vmem:[#allocation10 + $0x64] ss:$12 sps:$4 sm:$0xff]  }
 0x1ab   : > { %v742_v14 = vmul.f32 0.0078125, %v739_v12  ;;  %v6876_v20 = vld [vmem:[#allocation10 + $0x60] ss:$12 sps:$4 sm:$0xff]  }
 0x1ac   : > { %v723_v25 = vmul.f32 %v8013_v22, %v8013_v22 }
 0x1ad   : > { %v8009_v16 = vsub.f32 %v736_v1, %v742_v14  ;;  %v6871_v14 = vld [vmem:[#allocation10 + $0x38] ss:$12 sps:$4 sm:$0xff]  }
 0x1ae   : > { %v741_v18 = vpop.xlane.xlu1 %740  ;;  %726 = vadd.xlane.f32.xlu1 %v723_v25 }
 0x1af   : > { %v743_v21 = vmul.f32 0.0078125, %v741_v18  ;;  %v746_v24 = vmul.f32 %v8009_v16, %v8009_v16  ;;  %v6875_v18 = vld [vmem:[#allocation10 + $0x50] ss:$12 sps:$4 sm:$0xff]  }
 0x1b1   : > { %v8015_v23 = vsub.f32 %v737_v3, %v743_v21  ;;  %748 = vadd.xlane.f32.xlu0 %v746_v24  ;;  %v6863_v3 = vld [vmem:[#allocation10 + $0x8] ss:$12 sps:$4 sm:$0xff]  }
 0x1b2   : > { %v6879_v21 = vld [vmem:[#allocation10 + $0x68] ss:$12 sps:$4 sm:$0xff]  }
 0x1b3   : > { %v747_v26 = vmul.f32 %v8015_v23, %v8015_v23 }
 0x1b5   : > { %750 = vadd.xlane.f32.xlu1 %v747_v26  ;;  %v6880_v26 = vld [vmem:[#allocation10 + $0x78] ss:$12 sps:$4 sm:$0xff]  }
 0x237   : > { %v725_v47 = vpop.xlane.xlu0 %724 }
 0x238   : > { %v728_v48 = vmul.f32 0.0078125, %v725_v47 }
 0x23a   : > { %v730_v49 = vadd.f32 1e-06, %v728_v48 }
 0x23b   : > { %v727_v50 = vpop.xlane.xlu1 %726 }
 0x23c   : > { %7068 = vrsqrt.f32 %v730_v49  ;;  %v729_v51 = vmul.f32 0.0078125, %v727_v50 }
 0x23e   : > { %v731_v52 = vadd.f32 1e-06, %v729_v51  ;;  %v749_v62 = vpop.xlane.xlu0 %748 }
 0x23f   : > { %v752_v7 = vmul.f32 0.0078125, %v749_v62 }
 0x240   : > { %7070 = vrsqrt.f32 %v731_v52 }
 0x241   : > { %v754_v12 = vadd.f32 1e-06, %v752_v7 }
 0x242   : > { %v751_v60 = vpop.xlane.xlu1 %750 }
 0x243   : > { %v753_v1 = vmul.f32 0.0078125, %v751_v60 }
 0x245   : > { %v755_v8 = vadd.f32 1e-06, %v753_v1 }
 0x246   : > { %v7069_v53 = vpop.eup %7068 }
 0x247   : > { %v8039_v54 = vmul.f32 %v7069_v53, %v8007_v15  ;;  %7072 = vrsqrt.f32 %v755_v8  ;;  %v6874_v15 = vld [vmem:[#allocation10 + $0x4c] ss:$12 sps:$4 sm:$0xff]  }
 0x248   : > { %7074 = vrsqrt.f32 %v754_v12 }
 0x249   : > { %v764_v58 = vmul.f32 %v8042_v55, %v8039_v54 }
 0x24a   : > { %v7071_v56 = vpop.eup %7070 }
 0x24b   : > { %v8045_v57 = vmul.f32 %v7071_v56, %v8013_v22  ;;  %v770_v63 = vadd.f32 %v8050_v59, %v764_v58  ;;  %v6882_v22 = vld [vmem:[#allocation10 + $0x7c] ss:$12 sps:$4 sm:$0xff]  }
 0x24d   : > { %v765_v61 = vmul.f32 %v8042_v55, %v8045_v57 }
 0x24f   : > { %v771_v0 = vadd.f32 %v8050_v59, %v765_v61  ;;  %v1047_v61 = vlaneseq }
 0x251   : > { %v772_v4 = vpack.c.bf16 %v771_v0, %v770_v63  ;;  %v7073_v24 = vpop.eup %7072  ;;  %v7574_v63 = vmov 1934713408  }
 0x252   : > { %v7075_v25 = vpop.eup %7074  ;;  %v8064_v28 = vmul.f32 %v7073_v24, %v8015_v23  ;;  %v1077_v0 = vunpack.c.l.s4 %v7574_v63 }
 0x253   : > { %971 = vmatmul.mubr.bf16.vlgmr.msra.gmra.mrb[0].mxu0 %v772_v4  ;;  %6495 = vmatmul.mubr.bf16.vlgmr.msra.gmra.mrb[0].mxu1 %v772_v4  ;;  %v8068_v30 = vmul.f32 %v7075_v25, %v8009_v16 }
 0x254   : > { %2084 = vmatpush1.bf16.msra.mxu0 %v6860_v2  ;;  %6499 = vmatpush3.bf16.msra.mxu1 %v6863_v3  ;;  %v774_v34 = vmul.f32 %v8042_v55, %v8064_v28  ;;  %v8168_v3 = vshrl.u32 %v1047_v61, 7 }
 0x255   : > { %2085 = vmatprep.subr.bf16.mxu0 %v6866_v5  ;;  %6500 = vmatprep.subr.bf16.mxu1 %v7567_v6  ;;  %v773_v23 = vmul.f32 %v8042_v55, %v8068_v30  ;;  %v1078_v5 = vunpack.c.0.s8 %v1077_v0 }
 0x256   : > { %2115 = vmatprep.mubr.bf16.mxu0 %v7568_v46  ;;  %6514 = vmatprep.mubr.msk.bf16.mxu1 %vm7569_vm0, %v7567_v6  ;;  %v776_v16 = vadd.f32 %v8050_v59, %v774_v34 }
 0x257   : > { %v775_v37 = vadd.f32 %v8050_v59, %v773_v23  ;;  %v7573_v59 = vmov 1983009808  }
 0x258   : > { %2086 = vmatpush1.bf16.msra.mxu0 %v6864_v9  ;;  %6501 = vmatpush3.bf16.msra.mxu1 %v6867_v10  ;;  %v1045_v60 = vunpack.c.l.s4 %v7573_v59 }
 0x259   : > { %2087 = vmatprep.subr.bf16.mxu0 %v6870_v11  ;;  %6502 = vmatprep.subr.bf16.mxu1 %v7567_v6  ;;  %v777_v38 = vpack.c.bf16 %v776_v16, %v775_v37 }
 0x25a   : > { %v1046_v2 = vunpack.c.0.s8 %v1045_v60 }
 0x25c   : > { %2088 = vmatpush1.bf16.msra.mxu0 %v6868_v13  ;;  %6503 = vmatpush3.bf16.msra.mxu1 %v6871_v14  ;;  %v8173_v10 = vsub.s32 %v1046_v2, %v8168_v3  ;;  %v8176_v14 = vsub.s32 %v1078_v5, %v8168_v3 }
 0x25d   : > { %2089 = vmatprep.subr.bf16.mxu0 %v6874_v15  ;;  %6504 = vmatprep.subr.bf16.mxu1 %v7567_v6 }
 0x260   : > { %2090 = vmatpush1.bf16.msra.mxu0 %v6872_v17  ;;  %6505 = vmatpush3.bf16.msra.mxu1 %v6875_v18 }
 0x261   : > { %2091 = vmatprep.subr.bf16.mxu0 %v6878_v19  ;;  %6506 = vmatprep.subr.bf16.mxu1 %v7567_v6 }
 0x264   : > { %2092 = vmatpush1.bf16.msra.mxu0 %v6876_v20  ;;  %6507 = vmatpush3.bf16.msra.mxu1 %v6879_v21 }
 0x265   : > { %2093 = vmatprep.subr.bf16.mxu0 %v6882_v22  ;;  %6508 = vmatprep.subr.bf16.mxu1 %v7567_v6 }
 0x268   : > { %2094 = vmatpush1.bf16.msra.mxu0 %v6880_v26  ;;  %6509 = vmatpush3.bf16.msra.mxu1 %v6883_v27 }
 0x269   : > { %2095 = vmatprep.subr.bf16.mxu0 %v6886_v29  ;;  %6510 = vmatprep.subr.bf16.mxu1 %v7567_v6 }
 0x26c   : > { %2096 = vmatpush1.bf16.msra.mxu0 %v6884_v31  ;;  %6511 = vmatpush3.bf16.msra.mxu1 %v6887_v32 }
 0x26d   : > { %2097 = vmatprep.subr.bf16.mxu0 %v6890_v33  ;;  %6512 = vmatprep.subr.bf16.mxu1 %v7567_v6 }
 0x270   : > { %2098 = vmatpush1.bf16.msra.mxu0 %v6888_v35  ;;  %6513 = vmatpush3.bf16.msra.mxu1 %v6891_v36 }
 0x273   : > { %2116 = vmatmul.mubr.bf16.vlgmr.msra.gmra.mrb[4].mxu0 %v777_v38  ;;  %6515 = vmatmul.mubr.bf16.vlgmr.msra.gmra.mrb[4].mxu1 %v777_v38 }
 0x326   : > { %v8078_v39 = vpop.f32.mrb[0].mxu0  ;;  %v8080_v40 = vpop.f32.mrb[0].mxu1 }
 0x327   : > { %v6496_v41 = vpop.f32.mrb[1].mxu1  ;;  %1024 = vrot.lane.b32.xlu0 %v8078_v39, %s7570_s2  ;;  %v8084_v42 = vpop.f32.mrb[1].mxu0 }
 0x328   : > { %v8086_v43 = vpop.f32.mrb[2].mxu1  ;;  %1331 = vrot.lane.b32.xlu1 %v8084_v42, %s7571_s12  ;;  %v8090_v44 = vpop.f32.mrb[2].mxu0 }
 0x329   : > { %v8092_v45 = vpop.f32.mrb[3].mxu0  ;;  %v6497_v47 = vpop.f32.mrb[3].mxu1 }
 0x32b   : > { %1030 = vrot.lane.b32.xlu0 %v8078_v39, %s7571_s12 }
 0x32c   : > { %1026 = vrot.lane.b32.xlu1 %v8090_v44, %s7570_s2 }
 0x32f   : > { %1036 = vrot.lane.b32.xlu0 %v8078_v39, %s7572_s28 }
 0x330   : > { %1032 = vrot.lane.b32.xlu1 %v8090_v44, %s7571_s12 }
 0x333   : > { %1325 = vrot.lane.b32.xlu0 %v8084_v42, %s7570_s2 }
 0x334   : > { %1038 = vrot.lane.b32.xlu1 %v8090_v44, %s7572_s28 }
 0x337   : > { %1337 = vrot.lane.b32.xlu0 %v8084_v42, %s7572_s28 }
 0x338   : > { %1327 = vrot.lane.b32.xlu1 %v8092_v45, %s7570_s2 }
 0x33c   : > { %1333 = vrot.lane.b32.xlu1 %v8092_v45, %s7571_s12 }
 0x340   : > { %1339 = vrot.lane.b32.xlu1 %v8092_v45, %s7572_s28 }
 0x346   : > { %v8114_v48 = vpop.f32.mrb[4].mxu0  ;;  %v8116_v49 = vpop.f32.mrb[4].mxu1 }
 0x347   : > { %v6516_v50 = vpop.f32.mrb[5].mxu1  ;;  %2169 = vrot.lane.b32.xlu0 %v8114_v48, %s7570_s2  ;;  %v8120_v51 = vpop.f32.mrb[5].mxu0 }
 0x348   : > { %v8122_v52 = vpop.f32.mrb[6].mxu0  ;;  %v8124_v53 = vpop.f32.mrb[6].mxu1 }
 0x349   : > { %v6517_v55 = vpop.f32.mrb[7].mxu1  ;;  %2171 = vrot.lane.b32.xlu1 %v8122_v52, %s7570_s2  ;;  %v8128_v56 = vpop.f32.mrb[7].mxu0 }
 0x34b   : > { %2469 = vrot.lane.b32.xlu0 %v8120_v51, %s7570_s2 }
 0x34d   : > { %2471 = vrot.lane.b32.xlu1 %v8128_v56, %s7570_s2 }
 0x34f   : > { %2475 = vrot.lane.b32.xlu0 %v8120_v51, %s7571_s12 }
 0x351   : > { %2477 = vrot.lane.b32.xlu1 %v8128_v56, %s7571_s12 }
 0x353   : > { %2481 = vrot.lane.b32.xlu0 %v8120_v51, %s7572_s28 }
 0x355   : > { %2483 = vrot.lane.b32.xlu1 %v8128_v56, %s7572_s28 }
 0x357   : > { %2175 = vrot.lane.b32.xlu0 %v8114_v48, %s7571_s12 }
 0x359   : > { %2177 = vrot.lane.b32.xlu1 %v8122_v52, %s7571_s12 }
 0x35b   : > { %2181 = vrot.lane.b32.xlu0 %v8114_v48, %s7572_s28 }
 0x35d   : > { %2183 = vrot.lane.b32.xlu1 %v8122_v52, %s7572_s28 }
 0x35f   : > { %1625 = vrot.lane.b32.xlu0 %v8080_v40, %s7570_s2 }
 0x361   : > { %1627 = vrot.lane.b32.xlu1 %v8086_v43, %s7570_s2 }
 0x363   : > { %1637 = vrot.lane.b32.xlu0 %v8080_v40, %s7572_s28 }
 0x365   : > { %1631 = vrot.lane.b32.xlu1 %v8080_v40, %s7571_s12 }
 0x367   : > { %2769 = vrot.lane.b32.xlu0 %v8116_v49, %s7570_s2 }
 0x369   : > { %1633 = vrot.lane.b32.xlu1 %v8086_v43, %s7571_s12 }
 0x36d   : > { %1639 = vrot.lane.b32.xlu1 %v8086_v43, %s7572_s28 }
 0x371   : > { %2771 = vrot.lane.b32.xlu1 %v8124_v53, %s7570_s2  ;;  %s5806_s2 = sshll.u32 %s8846_s3, 4  ;;  %s8913_s2 = int_to_ptr.vmem [resolvable:$true] %s5806_s2 }
 0x372   : > { %s7434_s0 = scalar_lea.vmem %s8913_s2, 256 }
 0x373   : > { %p7435_p1 = scmp.ne.s32.totalorder %s8913_s2, %s7434_s0 }
 0x375   : > { %p7436_p12 = pnand %p7435_p1, %p9072_p11 }
 0x377   : > { %p7437_p13 = pneg %p7436_p12 }
 0x399   : > { %v1025_v58 = vpop.permute.xlu0 %1024 }
 0x39a   : > { %v8166_v62 = vpop.permute.xlu1 %1331 }
 0x39b   : > { %v1343_v29 = vcombine.low %v8084_v42, %v8166_v62  ;;  %v1344_v31 = vcombine.high %v8084_v42, %v8166_v62 }
 0x39d   : > { %v1031_v1 = vpop.permute.xlu0 %1030 }
 0x39e   : > { %v1027_v4 = vpop.permute.xlu1 %1026  ;;  %v1042_v7 = vcombine.low %v8078_v39, %v1031_v1  ;;  %v1043_v8 = vcombine.high %v8078_v39, %v1031_v1 }
 0x3a0   : > { %v1050_v15 = vrot.slane %v1042_v7, %v8173_v10  ;;  %v1057_v17 = vrot.slane %v1043_v8, %v8173_v10 }
 0x3a1   : > { %v1037_v9 = vpop.permute.xlu0 %1036 }
 0x3a2   : > { %v1058_v11 = vcombine.low %v1025_v58, %v1037_v9  ;;  %v1059_v12 = vcombine.high %v1025_v58, %v1037_v9  ;;  %v1033_v13 = vpop.permute.xlu1 %1032 }
 0x3a3   : > { %v1110_v20 = vcombine.low %v8090_v44, %v1033_v13  ;;  %v1111_v21 = vcombine.high %v8090_v44, %v1033_v13 }
 0x3a4   : > { %v1066_v18 = vrot.slane %v1058_v11, %v8173_v10  ;;  %v1073_v19 = vrot.slane %v1059_v12, %v8173_v10 }
 0x3a5   : > { %v1118_v16 = vrot.slane %v1110_v20, %v8173_v10  ;;  %v1125_v37 = vrot.slane %v1111_v21, %v8173_v10  ;;  %v1326_v50 = vpop.permute.xlu0 %1325 }
 0x3a6   : > { %v1074_v22 = vcombine.low %v1050_v15, %v1066_v18  ;;  %v1075_v24 = vcombine.high %v1050_v15, %v1066_v18  ;;  %v1090_v25 = vcombine.low %v1057_v17, %v1073_v19  ;;  %v1091_v26 = vcombine.high %v1057_v17, %v1073_v19  ;;  %v1039_v27 = vpop.permute.xlu1 %1038 }
 0x3a7   : > { %v1126_v32 = vcombine.low %v1027_v4, %v1039_v27  ;;  %v1127_v33 = vcombine.high %v1027_v4, %v1039_v27 }
 0x3a8   : > { %v1082_v34 = vrot.slane %v1074_v22, %v8176_v14  ;;  %v1089_v23 = vrot.slane %v1075_v24, %v8176_v14  ;;  %v1098_v35 = vrot.slane %v1090_v25, %v8176_v14  ;;  %v1105_v36 = vrot.slane %v1091_v26, %v8176_v14 }
 0x3a9   : > { %v1134_v38 = vrot.slane %v1126_v32, %v8173_v10  ;;  %v1141_v39 = vrot.slane %v1127_v33, %v8173_v10  ;;  %v1338_v32 = vpop.permute.xlu0 %1337 }
 0x3aa   : > { %v1178_v41 = vcombine.low %v1082_v34, %v1089_v23  ;;  %v6082_v42 = vcombine.high %v1082_v34, %v1089_v23  ;;  %v1194_v44 = vcombine.low %v1098_v35, %v1105_v36  ;;  %v6083_v47 = vcombine.high %v1098_v35, %v1105_v36  ;;  %v8196_v61 = vpop.permute.xlu1 %1327 }
 0x3ab   : > { %v1142_v55 = vcombine.low %v1118_v16, %v1134_v38  ;;  %v1143_v58 = vcombine.high %v1118_v16, %v1134_v38  ;;  %v1158_v59 = vcombine.low %v1125_v37, %v1141_v39  ;;  %v1159_v60 = vcombine.high %v1125_v37, %v1141_v39 }
 0x3ac   : > { %v1185_v62 = vrot.slane %v1178_v41, %v8173_v10  ;;  %v1193_v63 = vrot.slane %v6082_v42, %v8173_v10  ;;  %v1201_v0 = vrot.slane %v1194_v44, %v8173_v10  ;;  %v1209_v1 = vrot.slane %v6083_v47, %v8173_v10 }
 0x3ad   : > { %v1150_v2 = vrot.slane %v1142_v55, %v8176_v14  ;;  %v1157_v4 = vrot.slane %v1143_v58, %v8176_v14  ;;  %v1166_v5 = vrot.slane %v1158_v59, %v8176_v14  ;;  %v1173_v7 = vrot.slane %v1159_v60, %v8176_v14 }
 0x3ae   : > { %v1210_v8 = vcombine.low %v1185_v62, %v1193_v63  ;;  %v1211_v9 = vcombine.high %v1185_v62, %v1193_v63  ;;  %v1226_v11 = vcombine.low %v1201_v0, %v1209_v1  ;;  %v1227_v12 = vcombine.high %v1201_v0, %v1209_v1  ;;  %v1334_v33 = vpop.permute.xlu1 %1333 }
 0x3af   : > { %v1246_v13 = vcombine.low %v1150_v2, %v1157_v4  ;;  %v6084_v15 = vcombine.high %v1150_v2, %v1157_v4  ;;  %v1262_v17 = vcombine.low %v1166_v5, %v1173_v7  ;;  %v6085_v18 = vcombine.high %v1166_v5, %v1173_v7 }
 0x3b0   : > { %v1218_v19 = vrot.slane %v1210_v8, %v8176_v14  ;;  %v1225_v20 = vrot.slane %v1211_v9, %v8176_v14  ;;  %v1234_v21 = vrot.slane %v1226_v11, %v8176_v14  ;;  %v1241_v22 = vrot.slane %v1227_v12, %v8176_v14 }
 0x3b1   : > { %v1253_v24 = vrot.slane %v1246_v13, %v8173_v10  ;;  %v1261_v25 = vrot.slane %v6084_v15, %v8173_v10  ;;  %v1269_v26 = vrot.slane %v1262_v17, %v8173_v10  ;;  %v1277_v27 = vrot.slane %v6085_v18, %v8173_v10 }
 0x3b2   : > { %v1351_v34 = vrot.slane %v1343_v29, %v8173_v10  ;;  %v1358_v23 = vrot.slane %v1344_v31, %v8173_v10  ;;  %v1242_v35 = vcombine.low %v1218_v19, %v1234_v21  ;;  %v1243_v36 = vcombine.high %v1218_v19, %v1234_v21  ;;  %v1340_v4 = vpop.permute.xlu1 %1339 }
 0x3b3   : > { %v1278_v16 = vcombine.low %v1253_v24, %v1261_v25  ;;  %v1279_v37 = vcombine.high %v1253_v24, %v1261_v25  ;;  %v1294_v38 = vcombine.low %v1269_v26, %v1277_v27  ;;  %v1295_v39 = vcombine.high %v1269_v26, %v1277_v27 }
 0x3b4   : > { %v1244_v41 = vcombine.low %v1225_v20, %v1241_v22  ;;  %v1245_v42 = vcombine.high %v1225_v20, %v1241_v22  ;;  %v1359_v44 = vcombine.low %v1326_v50, %v1338_v32  ;;  %v1360_v47 = vcombine.high %v1326_v50, %v1338_v32 }
 0x3b5   : > { %v1286_v55 = vrot.slane %v1278_v16, %v8176_v14  ;;  %v1293_v58 = vrot.slane %v1279_v37, %v8176_v14  ;;  %v1302_v59 = vrot.slane %v1294_v38, %v8176_v14  ;;  %v1309_v29 = vrot.slane %v1295_v39, %v8176_v14 }
 0x3b6   : > { %v1367_v31 = vrot.slane %v1359_v44, %v8173_v10  ;;  %v1374_v60 = vrot.slane %v1360_v47, %v8173_v10  ;;  %v1411_v62 = vcombine.low %v8092_v45, %v1334_v33  ;;  %v1412_v63 = vcombine.high %v8092_v45, %v1334_v33 }
 0x3b7   : > { %v1310_v0 = vcombine.low %v1286_v55, %v1302_v59  ;;  %v1311_v1 = vcombine.high %v1286_v55, %v1302_v59  ;;  %v1312_v2 = vcombine.low %v1293_v58, %v1309_v29  ;;  %v1313_v50 = vcombine.high %v1293_v58, %v1309_v29 }
 0x3b8   : > { %v1375_v5 = vcombine.low %v1351_v34, %v1367_v31  ;;  %v1376_v7 = vcombine.high %v1351_v34, %v1367_v31  ;;  %v1391_v8 = vcombine.low %v1358_v23, %v1374_v60  ;;  %v1392_v9 = vcombine.high %v1358_v23, %v1374_v60 }
 0x3b9   : > { %v1314_v11 = vpack.c.bf16 %v1310_v0, %v1242_v35  ;;  %v1315_v12 = vpack.c.bf16 %v1311_v1, %v1243_v36  ;;  %v1316_v13 = vpack.c.bf16 %v1312_v2, %v1244_v41  ;;  %v1317_v15 = vpack.c.bf16 %v1313_v50, %v1245_v42  ;;  %v8224_v17 = vpop.permute.xlu0 %2169 }
 0x3ba   : > { %v1383_v18 = vrot.slane %v1375_v5, %v8176_v14  ;;  %v1390_v19 = vrot.slane %v1376_v7, %v8176_v14  ;;  %v1399_v45 = vrot.slane %v1391_v8, %v8176_v14  ;;  %v1406_v20 = vrot.slane %v1392_v9, %v8176_v14 }
 0x3bb   : > { %1319 = vst.msk [vmem:[#allocation2] sm:$0xff] %vm1318_vm1, %v1314_v11  ;;  %1320 = vst.msk [vmem:[#allocation2 + $0x10] sm:$0xff] %vm1318_vm1, %v1315_v12  ;;  %v1427_v21 = vcombine.low %v8196_v61, %v1340_v4  ;;  %v1428_v22 = vcombine.high %v8196_v61, %v1340_v4  ;;  %v8236_v24 = vpop.permute.xlu1 %2171  ;;  %v1419_v33 = vrot.slane %v1411_v62, %v8173_v10 }
 0x3bc   : > { %1321 = vst.msk [vmem:[#allocation2 + $0x20] sm:$0xff] %vm1318_vm1, %v1316_v13  ;;  %1322 = vst.msk [vmem:[#allocation2 + $0x30] sm:$0xff] %vm1318_vm1, %v1317_v15  ;;  %v1479_v25 = vcombine.low %v1383_v18, %v1390_v19  ;;  %v6086_v26 = vcombine.high %v1383_v18, %v1390_v19  ;;  %v1495_v27 = vcombine.low %v1399_v45, %v1406_v20 }
 0x3bd   : > { %v6087_v32 = vcombine.high %v1399_v45, %v1406_v20  ;;  %v1426_v34 = vrot.slane %v1412_v63, %v8173_v10  ;;  %v1435_v23 = vrot.slane %v1427_v21, %v8173_v10  ;;  %v1442_v35 = vrot.slane %v1428_v22, %v8173_v10  ;;  %v8242_v36 = vpop.permute.xlu0 %2469 }
 0x3be   : > { %v1486_v16 = vrot.slane %v1479_v25, %v8173_v10  ;;  %v1494_v61 = vrot.slane %v6086_v26, %v8173_v10  ;;  %v1502_v37 = vrot.slane %v1495_v27, %v8173_v10 }
 0x3bf   : > { %v1510_v38 = vrot.slane %v6087_v32, %v8173_v10  ;;  %v1443_v39 = vcombine.low %v1419_v33, %v1435_v23  ;;  %v1444_v41 = vcombine.high %v1419_v33, %v1435_v23  ;;  %v1459_v42 = vcombine.low %v1426_v34, %v1442_v35  ;;  %v2472_v47 = vpop.permute.xlu1 %2471 }
 0x3c0   : > { %v1460_v44 = vcombine.high %v1426_v34, %v1442_v35  ;;  %v1511_v55 = vcombine.low %v1486_v16, %v1494_v61  ;;  %v1512_v58 = vcombine.high %v1486_v16, %v1494_v61 }
 0x3c1   : > { %v1527_v59 = vcombine.low %v1502_v37, %v1510_v38  ;;  %v1528_v29 = vcombine.high %v1502_v37, %v1510_v38  ;;  %v1451_v31 = vrot.slane %v1443_v39, %v8176_v14  ;;  %v1458_v60 = vrot.slane %v1444_v41, %v8176_v14  ;;  %v2476_v0 = vpop.permute.xlu0 %2475 }
 0x3c2   : > { %v1467_v62 = vrot.slane %v1459_v42, %v8176_v14  ;;  %v1474_v63 = vrot.slane %v1460_v44, %v8176_v14  ;;  %v1519_v1 = vrot.slane %v1511_v55, %v8176_v14  ;;  %v1526_v2 = vrot.slane %v1512_v58, %v8176_v14  ;;  %v3067_v5 = vld [vmem:[#allocation2] sm:$0xff]  ;;  %v3069_v7 = vld [vmem:[#allocation2 + $0x10] sm:$0xff] }
 0x3c3   : > { %v1535_v50 = vrot.slane %v1527_v59, %v8176_v14  ;;  %v1542_v4 = vrot.slane %v1528_v29, %v8176_v14  ;;  %v1547_v8 = vcombine.low %v1451_v31, %v1458_v60  ;;  %v6088_v9 = vcombine.high %v1451_v31, %v1458_v60  ;;  %v2478_v13 = vpop.permute.xlu1 %2477  ;;  %6522 = vmatprep.mubr.msk.bf16.mxu0 %vm1318_vm1, %v3067_v5 }
 0x3c4   : > { %v1563_v11 = vcombine.low %v1467_v62, %v1474_v63  ;;  %v6089_v12 = vcombine.high %v1467_v62, %v1474_v63  ;;  %6530 = vmatprep.mubr.msk.bf16.mxu1 %vm1318_vm1, %v3069_v7  ;;  %v2487_v27 = vcombine.low %v8120_v51, %v2476_v0  ;;  %v2488_v32 = vcombine.high %v8120_v51, %v2476_v0 }
 0x3c5   : > { %v1543_v15 = vcombine.low %v1519_v1, %v1535_v50  ;;  %v1544_v18 = vcombine.high %v1519_v1, %v1535_v50  ;;  %v1545_v19 = vcombine.low %v1526_v2, %v1542_v4  ;;  %v1546_v45 = vcombine.high %v1526_v2, %v1542_v4  ;;  %v2482_v26 = vpop.permute.xlu0 %2481 }
 0x3c6   : > { %v1554_v20 = vrot.slane %v1547_v8, %v8173_v10  ;;  %v1562_v21 = vrot.slane %v6088_v9, %v8173_v10  ;;  %v1570_v22 = vrot.slane %v1563_v11, %v8173_v10  ;;  %v1578_v25 = vrot.slane %v6089_v12, %v8173_v10 }
 0x3c7   : > { %v2555_v33 = vcombine.low %v8128_v56, %v2478_v13  ;;  %v2556_v34 = vcombine.high %v8128_v56, %v2478_v13  ;;  %v2484_v37 = vpop.permute.xlu1 %2483  ;;  %v2495_v38 = vrot.slane %v2487_v27, %v8173_v10  ;;  %v2502_v39 = vrot.slane %v2488_v32, %v8173_v10 }
 0x3c8   : > { %v1579_v23 = vcombine.low %v1554_v20, %v1562_v21  ;;  %v1580_v35 = vcombine.high %v1554_v20, %v1562_v21  ;;  %v1595_v16 = vcombine.low %v1570_v22, %v1578_v25  ;;  %v1596_v61 = vcombine.high %v1570_v22, %v1578_v25 }
 0x3c9   : > { %v2563_v41 = vrot.slane %v2555_v33, %v8173_v10  ;;  %v2570_v42 = vrot.slane %v2556_v34, %v8173_v10  ;;  %v2503_v58 = vcombine.low %v8242_v36, %v2482_v26  ;;  %v2504_v59 = vcombine.high %v8242_v36, %v2482_v26  ;;  %v8276_v1 = vpop.permute.xlu0 %2175 }
 0x3ca   : > { %v1587_v44 = vrot.slane %v1579_v23, %v8176_v14  ;;  %v1594_v51 = vrot.slane %v1580_v35, %v8176_v14  ;;  %v1603_v55 = vrot.slane %v1595_v16, %v8176_v14  ;;  %v1610_v56 = vrot.slane %v1596_v61, %v8176_v14 }
 0x3cb   : > { %v2571_v29 = vcombine.low %v2472_v47, %v2484_v37  ;;  %v2572_v31 = vcombine.high %v2472_v47, %v2484_v37  ;;  %v2511_v2 = vrot.slane %v2503_v58, %v8173_v10  ;;  %v2518_v50 = vrot.slane %v2504_v59, %v8173_v10  ;;  %v8282_v11 = vpop.permute.xlu1 %2177 }
 0x3cc   : > { %v1611_v60 = vcombine.low %v1587_v44, %v1603_v55  ;;  %v1612_v62 = vcombine.high %v1587_v44, %v1603_v55  ;;  %v1613_v63 = vcombine.low %v1594_v51, %v1610_v56  ;;  %v1614_v0 = vcombine.high %v1594_v51, %v1610_v56 }
 0x3cd   : > { %v2579_v4 = vrot.slane %v2571_v29, %v8173_v10  ;;  %v2586_v5 = vrot.slane %v2572_v31, %v8173_v10  ;;  %v2519_v47 = vcombine.low %v2495_v38, %v2511_v2  ;;  %v2520_v12 = vcombine.high %v2495_v38, %v2511_v2  ;;  %v8296_v23 = vpop.permute.xlu0 %2181 }
 0x3ce   : > { %v1615_v7 = vpack.c.bf16 %v1611_v60, %v1543_v15  ;;  %v1616_v8 = vpack.c.bf16 %v1612_v62, %v1544_v18  ;;  %v1617_v9 = vpack.c.bf16 %v1613_v63, %v1545_v19  ;;  %v1618_v36 = vpack.c.bf16 %v1614_v0, %v1546_v45 }
 0x3cf   : > { %v2535_v13 = vcombine.low %v2502_v39, %v2518_v50  ;;  %v2536_v20 = vcombine.high %v2502_v39, %v2518_v50  ;;  %v2587_v21 = vcombine.low %v2563_v41, %v2579_v4  ;;  %v2588_v22 = vcombine.high %v2563_v41, %v2579_v4  ;;  %v8298_v44 = vpop.permute.xlu1 %2183 }
 0x3d0   : > { %1619 = vst.msk [vmem:[#allocation3] sm:$0xff] %vm1318_vm1, %v1615_v7  ;;  %1620 = vst.msk [vmem:[#allocation3 + $0x10] sm:$0xff] %vm1318_vm1, %v1616_v8  ;;  %v2603_v15 = vcombine.low %v2570_v42, %v2586_v5  ;;  %v2604_v18 = vcombine.high %v2570_v42, %v2586_v5  ;;  %v2527_v19 = vrot.slane %v2519_v47, %v8176_v14 }
 0x3d1   : > { %1621 = vst.msk [vmem:[#allocation3 + $0x20] sm:$0xff] %vm1318_vm1, %v1617_v9  ;;  %1622 = vst.msk [vmem:[#allocation3 + $0x30] sm:$0xff] %vm1318_vm1, %v1618_v36  ;;  %v2534_v45 = vrot.slane %v2520_v12, %v8176_v14  ;;  %v2543_v25 = vrot.slane %v2535_v13, %v8176_v14  ;;  %v2550_v26 = vrot.slane %v2536_v20, %v8176_v14  ;;  %v1626_v36 = vpop.permute.xlu0 %1625 }
 0x3d2   : > { %v2595_v27 = vrot.slane %v2587_v21, %v8176_v14  ;;  %v2602_v32 = vrot.slane %v2588_v22, %v8176_v14  ;;  %v2611_v33 = vrot.slane %v2603_v15, %v8176_v14  ;;  %v2618_v34 = vrot.slane %v2604_v18, %v8176_v14 }
 0x3d3   : > { %v2623_v35 = vcombine.low %v2527_v19, %v2534_v45  ;;  %v6122_v16 = vcombine.high %v2527_v19, %v2534_v45  ;;  %v2639_v61 = vcombine.low %v2543_v25, %v2550_v26  ;;  %v6123_v37 = vcombine.high %v2543_v25, %v2550_v26  ;;  %v8318_v19 = vpop.permute.xlu1 %1627 }
 0x3d4   : > { %v2691_v38 = vcombine.low %v2595_v27, %v2602_v32  ;;  %v6124_v39 = vcombine.high %v2595_v27, %v2602_v32  ;;  %v2707_v41 = vcombine.low %v2611_v33, %v2618_v34  ;;  %v6125_v42 = vcombine.high %v2611_v33, %v2618_v34 }
 0x3d5   : > { %v2630_v51 = vrot.slane %v2623_v35, %v8173_v10  ;;  %v2638_v55 = vrot.slane %v6122_v16, %v8173_v10  ;;  %v2646_v56 = vrot.slane %v2639_v61, %v8173_v10  ;;  %v2654_v58 = vrot.slane %v6123_v37, %v8173_v10 }
 0x3d6   : > { %v2698_v59 = vrot.slane %v2691_v38, %v8173_v10  ;;  %v2706_v29 = vrot.slane %v6124_v39, %v8173_v10  ;;  %v2714_v31 = vrot.slane %v2707_v41, %v8173_v10  ;;  %v2722_v60 = vrot.slane %v6125_v42, %v8173_v10 }
 0x3d7   : > { %v2655_v62 = vcombine.low %v2630_v51, %v2638_v55  ;;  %v2656_v63 = vcombine.high %v2630_v51, %v2638_v55  ;;  %v2671_v0 = vcombine.low %v2646_v56, %v2654_v58  ;;  %v2672_v2 = vcombine.high %v2646_v56, %v2654_v58  ;;  %v3075_v50 = vld [vmem:[#allocation3] sm:$0xff]  ;;  %v3077_v4 = vld [vmem:[#allocation3 + $0x10] sm:$0xff]  ;;  %v1638_v55 = vpop.permute.xlu0 %1637 }
 0x3d8   : > { %v2723_v5 = vcombine.low %v2698_v59, %v2706_v29  ;;  %v2724_v7 = vcombine.high %v2698_v59, %v2706_v29  ;;  %v2739_v8 = vcombine.low %v2714_v31, %v2722_v60  ;;  %v2740_v9 = vcombine.high %v2714_v31, %v2722_v60  ;;  %6670 = vmatprep.subr.msk.bf16.mxu0 %vm1318_vm1, %v3075_v50  ;;  %v8344_v31 = vpop.permute.xlu1 %1631 }
 0x3d9   : > { %v2663_v47 = vrot.slane %v2655_v62, %v8176_v14  ;;  %v2670_v12 = vrot.slane %v2656_v63, %v8176_v14  ;;  %v2679_v13 = vrot.slane %v2671_v0, %v8176_v14  ;;  %v2686_v20 = vrot.slane %v2672_v2, %v8176_v14  ;;  %6672 = vmatprep.subr.msk.bf16.mxu1 %vm1318_vm1, %v3077_v4 }
 0x3da   : > { %v2731_v21 = vrot.slane %v2723_v5, %v8176_v14  ;;  %v2738_v22 = vrot.slane %v2724_v7, %v8176_v14  ;;  %v2747_v15 = vrot.slane %v2739_v8, %v8176_v14  ;;  %v2754_v18 = vrot.slane %v2740_v9, %v8176_v14 }
 0x3db   : > { %v2687_v45 = vcombine.low %v2663_v47, %v2679_v13  ;;  %v2688_v25 = vcombine.high %v2663_v47, %v2679_v13  ;;  %v2689_v26 = vcombine.low %v2670_v12, %v2686_v20  ;;  %v2690_v27 = vcombine.high %v2670_v12, %v2686_v20 }
 0x3dc   : > { %v2755_v32 = vcombine.low %v2731_v21, %v2747_v15  ;;  %v2756_v33 = vcombine.high %v2731_v21, %v2747_v15  ;;  %v2757_v34 = vcombine.low %v2738_v22, %v2754_v18  ;;  %v2758_v35 = vcombine.high %v2738_v22, %v2754_v18 }
 0x3dd   : > { %v2187_v16 = vcombine.low %v8114_v48, %v8276_v1  ;;  %v2188_v61 = vcombine.high %v8114_v48, %v8276_v1  ;;  %v2255_v37 = vcombine.low %v8122_v52, %v8282_v11  ;;  %v2256_v38 = vcombine.high %v8122_v52, %v8282_v11 }
 0x3de   : > { %v2759_v39 = vpack.c.bf16 %v2755_v32, %v2687_v45  ;;  %v2760_v41 = vpack.c.bf16 %v2756_v33, %v2688_v25  ;;  %v2761_v42 = vpack.c.bf16 %v2757_v34, %v2689_v26  ;;  %v2762_v51 = vpack.c.bf16 %v2758_v35, %v2690_v27 }
 0x3df   : > { %v2195_v56 = vrot.slane %v2187_v16, %v8173_v10  ;;  %v2202_v58 = vrot.slane %v2188_v61, %v8173_v10  ;;  %v2263_v59 = vrot.slane %v2255_v37, %v8173_v10  ;;  %v2270_v29 = vrot.slane %v2256_v38, %v8173_v10 }
 0x3e0   : > { %2763 = vst.msk [vmem:[#allocation3 + $0x8] sm:$0xff] %vm1318_vm1, %v2759_v39  ;;  %2764 = vst.msk [vmem:[#allocation3 + $0x18] sm:$0xff] %vm1318_vm1, %v2760_v41  ;;  %v2203_v48 = vcombine.low %v8224_v17, %v8296_v23  ;;  %v2204_v52 = vcombine.high %v8224_v17, %v8296_v23  ;;  %v2271_v1 = vcombine.low %v8236_v24, %v8298_v44  ;;  %v3090_v60 = vsel %vm1318_vm1, %v3075_v50, 0 }
 0x3e1   : > { %2765 = vst.msk [vmem:[#allocation3 + $0x28] sm:$0xff] %vm1318_vm1, %v2761_v42  ;;  %2766 = vst.msk [vmem:[#allocation3 + $0x38] sm:$0xff] %vm1318_vm1, %v2762_v51  ;;  %v2272_v11 = vcombine.high %v8236_v24, %v8298_v44  ;;  %v3151_v62 = vsel %vm1318_vm1, %v3077_v4, 0  ;;  %v1659_v63 = vcombine.low %v1626_v36, %v1638_v55  ;;  %v1660_v0 = vcombine.high %v1626_v36, %v1638_v55 }
 0x3e2   : > { %v2211_v2 = vrot.slane %v2203_v48, %v8173_v10  ;;  %v2218_v5 = vrot.slane %v2204_v52, %v8173_v10  ;;  %v2279_v17 = vrot.slane %v2271_v1, %v8173_v10  ;;  %6519 = vmatpush3.bf16.xpose.msra.mxu0 %v3090_v60  ;;  %6527 = vmatpush3.bf16.xpose.msra.mxu1 %v3151_v62  ;;  %v1634_v62 = vpop.permute.xlu1 %1633 }
 0x3e3   : > { %v2286_v23 = vrot.slane %v2272_v11, %v8173_v10  ;;  %v8353_v24 = vrot.slane %v1659_v63, %v8173_v10  ;;  %v8356_v44 = vrot.slane %v1660_v0, %v8173_v10  ;;  %v1643_v50 = vcombine.low %v8080_v40, %v8344_v31 }
 0x3e4   : > { %v1644_v4 = vcombine.high %v8080_v40, %v8344_v31  ;;  %v2219_v7 = vcombine.low %v2195_v56, %v2211_v2  ;;  %v2220_v8 = vcombine.high %v2195_v56, %v2211_v2  ;;  %v2235_v9 = vcombine.low %v2202_v58, %v2218_v5 }
 0x3e5   : > { %v2236_v36 = vcombine.high %v2202_v58, %v2218_v5  ;;  %v2287_v47 = vcombine.low %v2263_v59, %v2279_v17  ;;  %v2288_v12 = vcombine.high %v2263_v59, %v2279_v17  ;;  %v2303_v13 = vcombine.low %v2270_v29, %v2286_v23 }
 0x3e6   : > { %v2304_v20 = vcombine.high %v2270_v29, %v2286_v23  ;;  %v2227_v21 = vrot.slane %v2219_v7, %v8176_v14  ;;  %v2234_v22 = vrot.slane %v2220_v8, %v8176_v14  ;;  %v2243_v15 = vrot.slane %v2235_v9, %v8176_v14 }
 0x3e7   : > { %v2250_v18 = vrot.slane %v2236_v36, %v8176_v14  ;;  %v2295_v45 = vrot.slane %v2287_v47, %v8176_v14  ;;  %v2302_v25 = vrot.slane %v2288_v12, %v8176_v14  ;;  %v2311_v26 = vrot.slane %v2303_v13, %v8176_v14  ;;  %v8370_v32 = vld [vmem:[#allocation3 + $0x8] sm:$0xff]  ;;  %v8372_v33 = vld [vmem:[#allocation3 + $0x18] sm:$0xff] }
 0x3e8   : > { %v2318_v27 = vrot.slane %v2304_v20, %v8176_v14  ;;  %v2323_v34 = vcombine.low %v2227_v21, %v2234_v22  ;;  %v6118_v35 = vcombine.high %v2227_v21, %v2234_v22  ;;  %6671 = vmatprep.subr.msk.bf16.mxu0 %vm1318_vm1, %v8370_v32  ;;  %6673 = vmatprep.subr.msk.bf16.mxu1 %vm1318_vm1, %v8372_v33 }
 0x3e9   : > { %v2339_v16 = vcombine.low %v2243_v15, %v2250_v18  ;;  %v6119_v61 = vcombine.high %v2243_v15, %v2250_v18  ;;  %v2391_v37 = vcombine.low %v2295_v45, %v2302_v25  ;;  %v6120_v38 = vcombine.high %v2295_v45, %v2302_v25 }
 0x3ea   : > { %v2407_v39 = vcombine.low %v2311_v26, %v2318_v27  ;;  %v6121_v41 = vcombine.high %v2311_v26, %v2318_v27  ;;  %v2330_v42 = vrot.slane %v2323_v34, %v8173_v10  ;;  %v2338_v51 = vrot.slane %v6118_v35, %v8173_v10 }
 0x3eb   : > { %v2346_v55 = vrot.slane %v2339_v16, %v8173_v10  ;;  %v2354_v56 = vrot.slane %v6119_v61, %v8173_v10  ;;  %v2398_v58 = vrot.slane %v2391_v37, %v8173_v10  ;;  %v2406_v59 = vrot.slane %v6120_v38, %v8173_v10  ;;  %v1640_v16 = vpop.permute.xlu1 %1639 }
 0x3ec   : > { %v2414_v29 = vrot.slane %v2407_v39, %v8173_v10  ;;  %v2422_v48 = vrot.slane %v6121_v41, %v8173_v10  ;;  %v2355_v52 = vcombine.low %v2330_v42, %v2338_v51  ;;  %v2356_v1 = vcombine.high %v2330_v42, %v2338_v51 }
 0x3ed   : > { %v2371_v11 = vcombine.low %v2346_v55, %v2354_v56  ;;  %v2372_v60 = vcombine.high %v2346_v55, %v2354_v56  ;;  %v2423_v63 = vcombine.low %v2398_v58, %v2406_v59  ;;  %v2424_v0 = vcombine.high %v2398_v58, %v2406_v59 }
 0x3ee   : > { %v2439_v2 = vcombine.low %v2414_v29, %v2422_v48  ;;  %v2440_v5 = vcombine.high %v2414_v29, %v2422_v48  ;;  %v2363_v17 = vrot.slane %v2355_v52, %v8176_v14  ;;  %v2370_v23 = vrot.slane %v2356_v1, %v8176_v14 }
 0x3ef   : > { %v2379_v7 = vrot.slane %v2371_v11, %v8176_v14  ;;  %v2386_v8 = vrot.slane %v2372_v60, %v8176_v14  ;;  %v2431_v9 = vrot.slane %v2423_v63, %v8176_v14  ;;  %v2438_v36 = vrot.slane %v2424_v0, %v8176_v14 }
 0x3f0   : > { %v2447_v47 = vrot.slane %v2439_v2, %v8176_v14  ;;  %v2454_v12 = vrot.slane %v2440_v5, %v8176_v14  ;;  %v1651_v26 = vrot.slane %v1643_v50, %v8173_v10  ;;  %v1658_v27 = vrot.slane %v1644_v4, %v8173_v10  ;;  %v3079_v2 = vld [vmem:[#allocation3 + $0x20] sm:$0xff] }
 0x3f1   : > { %v2387_v13 = vcombine.low %v2363_v17, %v2379_v7  ;;  %v2388_v20 = vcombine.high %v2363_v17, %v2379_v7  ;;  %v2389_v21 = vcombine.low %v2370_v23, %v2386_v8  ;;  %v2390_v22 = vcombine.high %v2370_v23, %v2386_v8 }
 0x3f2   : > { %v2455_v15 = vcombine.low %v2431_v9, %v2447_v47  ;;  %v2456_v18 = vcombine.high %v2431_v9, %v2447_v47  ;;  %v2457_v45 = vcombine.low %v2438_v36, %v2454_v12  ;;  %v2458_v25 = vcombine.high %v2438_v36, %v2454_v12 }
 0x3f3   : > { %v1711_v34 = vcombine.low %v8086_v43, %v1634_v62  ;;  %v1712_v35 = vcombine.high %v8086_v43, %v1634_v62  ;;  %v1675_v41 = vcombine.low %v1651_v26, %v8353_v24  ;;  %v1676_v42 = vcombine.high %v1651_v26, %v8353_v24 }
 0x3f4   : > { %v2459_v61 = vpack.c.bf16 %v2455_v15, %v2387_v13  ;;  %v2460_v37 = vpack.c.bf16 %v2456_v18, %v2388_v20  ;;  %v2461_v38 = vpack.c.bf16 %v2457_v45, %v2389_v21  ;;  %v2462_v39 = vpack.c.bf16 %v2458_v25, %v2390_v22 }
 0x3f5   : > { %v1691_v50 = vcombine.low %v1658_v27, %v8356_v44  ;;  %v1692_v51 = vcombine.high %v1658_v27, %v8356_v44  ;;  %v1719_v40 = vrot.slane %v1711_v34, %v8173_v10  ;;  %v1726_v43 = vrot.slane %v1712_v35, %v8173_v10 }
 0x3f6   : > { %2463 = vst.msk [vmem:[#allocation2 + $0x8] sm:$0xff] %vm1318_vm1, %v2459_v61  ;;  %2464 = vst.msk [vmem:[#allocation2 + $0x18] sm:$0xff] %vm1318_vm1, %v2460_v37  ;;  %v1727_v31 = vcombine.low %v8318_v19, %v1640_v16  ;;  %v1728_v24 = vcombine.high %v8318_v19, %v1640_v16  ;;  %v1683_v4 = vrot.slane %v1675_v41, %v8176_v14  ;;  %v3093_v29 = vsel %vm1318_vm1, %v8370_v32, 0 }
 0x3f7   : > { %2465 = vst.msk [vmem:[#allocation2 + $0x28] sm:$0xff] %vm1318_vm1, %v2461_v38  ;;  %2466 = vst.msk [vmem:[#allocation2 + $0x38] sm:$0xff] %vm1318_vm1, %v2462_v39  ;;  %v1690_v44 = vrot.slane %v1676_v42, %v8176_v14  ;;  %v1699_v55 = vrot.slane %v1691_v50, %v8176_v14  ;;  %v1706_v56 = vrot.slane %v1692_v51, %v8176_v14  ;;  %v3154_v48 = vsel %vm1318_vm1, %v8372_v33, 0  ;;  %v3081_v33 = vld [vmem:[#allocation3 + $0x30] sm:$0xff]  ;;  %v3071_v39 = vld [vmem:[#allocation2 + $0x20] sm:$0xff] }
 0x3f8   : > { %v1735_v58 = vrot.slane %v1727_v31, %v8173_v10  ;;  %v1742_v59 = vrot.slane %v1728_v24, %v8173_v10  ;;  %6521 = vmatpush3.bf16.xpose.msra.mxu0 %v3093_v29  ;;  %6529 = vmatpush3.bf16.xpose.msra.mxu1 %v3154_v48  ;;  %v3212_v31 = vsel %vm1318_vm1, %v3079_v2, 0  ;;  %v3273_v24 = vsel %vm1318_vm1, %v3081_v33, 0 }
 0x3f9   : > { %v1779_v52 = vcombine.low %v1683_v4, %v1690_v44  ;;  %v6090_v19 = vcombine.high %v1683_v4, %v1690_v44  ;;  %v1795_v1 = vcombine.low %v1699_v55, %v1706_v56  ;;  %v6091_v11 = vcombine.high %v1699_v55, %v1706_v56  ;;  %6674 = vmatprep.subr.msk.bf16.mxu0 %vm1318_vm1, %v3079_v2 }
 0x3fa   : > { %v1743_v60 = vcombine.low %v1719_v40, %v1735_v58  ;;  %v1744_v62 = vcombine.high %v1719_v40, %v1735_v58  ;;  %v1759_v63 = vcombine.low %v1726_v43, %v1742_v59  ;;  %v1760_v0 = vcombine.high %v1726_v43, %v1742_v59  ;;  %6676 = vmatprep.subr.msk.bf16.mxu1 %vm1318_vm1, %v3081_v33  ;;  %v3073_v40 = vld [vmem:[#allocation2 + $0x30] sm:$0xff]  ;;  %v3080_v58 = vld [vmem:[#allocation3 + $0x28] sm:$0xff] }
 0x3fb   : > { %v1786_v5 = vrot.slane %v1779_v52, %v8173_v10  ;;  %v1794_v17 = vrot.slane %v6090_v19, %v8173_v10  ;;  %v1802_v32 = vrot.slane %v1795_v1, %v8173_v10  ;;  %v1810_v23 = vrot.slane %v6091_v11, %v8173_v10  ;;  %v3082_v52 = vld [vmem:[#allocation3 + $0x38] sm:$0xff] }
 0x3fc   : > { %v1751_v7 = vrot.slane %v1743_v60, %v8176_v14  ;;  %v1758_v8 = vrot.slane %v1744_v62, %v8176_v14  ;;  %v1767_v9 = vrot.slane %v1759_v63, %v8176_v14  ;;  %v1774_v36 = vrot.slane %v1760_v0, %v8176_v14 }
 0x3fd   : > { %v1811_v47 = vcombine.low %v1786_v5, %v1794_v17  ;;  %v1812_v12 = vcombine.high %v1786_v5, %v1794_v17  ;;  %v1827_v13 = vcombine.low %v1802_v32, %v1810_v23  ;;  %v1828_v20 = vcombine.high %v1802_v32, %v1810_v23  ;;  %v3068_v21 = vld [vmem:[#allocation2 + $0x8] sm:$0xff]  ;;  %v3070_v25 = vld [vmem:[#allocation2 + $0x18] sm:$0xff] }
 0x3fe   : > { %v1847_v22 = vcombine.low %v1751_v7, %v1758_v8  ;;  %v6092_v15 = vcombine.high %v1751_v7, %v1758_v8  ;;  %v1863_v18 = vcombine.low %v1767_v9, %v1774_v36  ;;  %v6093_v45 = vcombine.high %v1767_v9, %v1774_v36  ;;  %v3072_v33 = vld [vmem:[#allocation2 + $0x28] sm:$0xff]  ;;  %v3074_v7 = vld [vmem:[#allocation2 + $0x38] sm:$0xff] }
 0x3ff   : > { %v1819_v26 = vrot.slane %v1811_v47, %v8176_v14  ;;  %v1835_v27 = vrot.slane %v1827_v13, %v8176_v14  ;;  %6523 = vmatmul.mubr.msk.bf16.vlgmr.msra.gmra.mrb[8].mxu0 %vm1318_vm1, %v3068_v21  ;;  %v1826_v37 = vrot.slane %v1812_v12, %v8176_v14  ;;  %v1842_v38 = vrot.slane %v1828_v20, %v8176_v14 }
 0x400   : > { %v1854_v34 = vrot.slane %v1847_v22, %v8173_v10  ;;  %v1862_v35 = vrot.slane %v6092_v15, %v8173_v10  ;;  %v1870_v16 = vrot.slane %v1863_v18, %v8173_v10  ;;  %v1878_v61 = vrot.slane %v6093_v45, %v8173_v10  ;;  %6531 = vmatmul.mubr.msk.bf16.vlgmr.msra.gmra.mrb[8].mxu1 %vm1318_vm1, %v3070_v25 }
 0x401   : > { %6538 = vmatprep.mubr.msk.bf16.mxu0 %vm1318_vm1, %v3071_v39  ;;  %v1843_v43 = vcombine.low %v1819_v26, %v1835_v27  ;;  %6546 = vmatprep.mubr.msk.bf16.mxu1 %vm1318_vm1, %v3073_v40  ;;  %v1844_v59 = vcombine.high %v1819_v26, %v1835_v27  ;;  %v1845_v29 = vcombine.low %v1826_v37, %v1842_v38  ;;  %v3215_v5 = vsel %vm1318_vm1, %v3080_v58, 0 }
 0x402   : > { %v1879_v41 = vcombine.low %v1854_v34, %v1862_v35  ;;  %v1880_v42 = vcombine.high %v1854_v34, %v1862_v35  ;;  %v1895_v50 = vcombine.low %v1870_v16, %v1878_v61  ;;  %v1896_v51 = vcombine.high %v1870_v16, %v1878_v61  ;;  %6535 = vmatpush3.bf16.xpose.msra.mxu0 %v3212_v31 }
 0x403   : > { %v1846_v48 = vcombine.high %v1826_v37, %v1842_v38  ;;  %6543 = vmatpush3.bf16.xpose.msra.mxu1 %v3273_v24  ;;  %6675 = vmatprep.subr.msk.bf16.mxu0 %vm1318_vm1, %v3080_v58  ;;  %v3276_v17 = vsel %vm1318_vm1, %v3082_v52, 0 }
 0x404   : > { %v1887_v4 = vrot.slane %v1879_v41, %v8176_v14  ;;  %v1894_v44 = vrot.slane %v1880_v42, %v8176_v14  ;;  %v1903_v55 = vrot.slane %v1895_v50, %v8176_v14  ;;  %v1910_v56 = vrot.slane %v1896_v51, %v8176_v14  ;;  %6677 = vmatprep.subr.msk.bf16.mxu1 %vm1318_vm1, %v3082_v52 }
 0x406   : > { %v1911_v19 = vcombine.low %v1887_v4, %v1903_v55  ;;  %v1912_v1 = vcombine.high %v1887_v4, %v1903_v55  ;;  %v1913_v11 = vcombine.low %v1894_v44, %v1910_v56  ;;  %v1914_v60 = vcombine.high %v1894_v44, %v1910_v56 }
 0x408   : > { %v1915_v62 = vpack.c.bf16 %v1911_v19, %v1843_v43  ;;  %v1916_v63 = vpack.c.bf16 %v1912_v1, %v1844_v59  ;;  %v1917_v0 = vpack.c.bf16 %v1913_v11, %v1845_v29  ;;  %v1918_v2 = vpack.c.bf16 %v1914_v60, %v1846_v48 }
 0x40a   : > { %1919 = vst.msk [vmem:[#allocation4] sm:$0xff] %vm1318_vm1, %v1915_v62  ;;  %1920 = vst.msk [vmem:[#allocation4 + $0x10] sm:$0xff] %vm1318_vm1, %v1916_v63  ;;  %6537 = vmatpush3.bf16.xpose.msra.mxu0 %v3215_v5 }
 0x40b   : > { %1921 = vst.msk [vmem:[#allocation4 + $0x20] sm:$0xff] %vm1318_vm1, %v1917_v0  ;;  %1922 = vst.msk [vmem:[#allocation4 + $0x30] sm:$0xff] %vm1318_vm1, %v1918_v2  ;;  %6545 = vmatpush3.bf16.xpose.msra.mxu1 %v3276_v17  ;;  %v8536_v17 = vpop.permute.xlu0 %2769 }
 0x411   : > { %v3527_v32 = vld [vmem:[#allocation4] sm:$0xff]  ;;  %v3529_v23 = vld [vmem:[#allocation4 + $0x10] sm:$0xff]  ;;  %6539 = vmatmul.mubr.msk.bf16.vlgmr.msra.gmra.mrb[12].mxu0 %vm1318_vm1, %v3072_v33 }
 0x412   : > { %6550 = vmatprep.subr.bf16.mxu0 %v3527_v32  ;;  %6558 = vmatprep.subr.bf16.mxu1 %v3529_v23 }
 0x413   : > { %6547 = vmatmul.mubr.msk.bf16.vlgmr.msra.gmra.mrb[12].mxu1 %vm1318_vm1, %v3074_v7  ;;  %6551 = vmatpush3.bf16.msra.mxu0 %v3527_v32  ;;  %v8538_v32 = vpop.permute.xlu1 %2771 }
 0x414   : > { %6559 = vmatpush3.bf16.msra.mxu1 %v3529_v23 }
 0x4d2   : > { %v6524_v8 = vpop.f32.mrb[8].mxu0 }
 0x4d3   : > { %v8464_v9 = vmul.f32 0.17677669, %v6524_v8  ;;  %v6532_v36 = vpop.f32.mrb[8].mxu1  ;;  %v3129_v47 = vpop.f32.mrb[9].mxu0 }
 0x4d4   : > { %v3190_v12 = vpop.f32.mrb[9].mxu1  ;;  %v6525_v13 = vpop.f32.mrb[10].mxu0  ;;  %v8466_v22 = vmul.f32 0.17677669, %v6532_v36  ;;  %v8476_v27 = vmul.f32 0.17677669, %v3129_v47 }
 0x4d5   : > { %v6533_v20 = vpop.f32.mrb[10].mxu1  ;;  %v3132_v21 = vpop.f32.mrb[11].mxu0  ;;  %v3349_v45 = vsel %vm1318_vm1, %v8464_v9, -inf  ;;  %v8484_v61 = vmul.f32 0.17677669, %v3190_v12 }
 0x4d6   : > { %v8468_v15 = vmul.f32 0.17677669, %v6533_v20  ;;  %v3193_v18 = vpop.f32.mrb[11].mxu1  ;;  %3350 = vmax.xlane.f32.xlu0 %v3349_v45  ;;  %v8472_v25 = vmul.f32 0.17677669, %v3132_v21  ;;  %v3361_v34 = vsel %vm1318_vm1, %v8466_v22, -inf }
 0x4d7   : > { %v8480_v35 = vmul.f32 0.17677669, %v3193_v18  ;;  %v3343_v37 = vsel %vm1318_vm1, %v8476_v27, -inf  ;;  %v8490_v39 = vmul.f32 0.17677669, %v6525_v13  ;;  %v3355_v41 = vsel %vm1318_vm1, %v8484_v61, -inf }
 0x4d8   : > { %v3364_v26 = vsel %vm1318_vm1, %v8468_v15, -inf  ;;  %v3346_v16 = vsel %vm1318_vm1, %v8472_v25, -inf }
 0x4d9   : > { %3365 = vmax.xlane.f32.xlu1 %v3364_v26  ;;  %v3358_v38 = vsel %vm1318_vm1, %v8480_v35, -inf  ;;  %v3352_v40 = vsel %vm1318_vm1, %v8490_v39, -inf }
 0x4da   : > { %3362 = vmax.xlane.f32.xlu0 %v3361_v34 }
 0x4dd   : > { %3347 = vmax.xlane.f32.xlu1 %v3346_v16 }
 0x4de   : > { %3344 = vmax.xlane.f32.xlu0 %v3343_v37 }
 0x4e1   : > { %3359 = vmax.xlane.f32.xlu1 %v3358_v38 }
 0x4e2   : > { %3356 = vmax.xlane.f32.xlu0 %v3355_v41 }
 0x4e4   : > { %v6540_v42 = vpop.f32.mrb[12].mxu0 }
 0x4e5   : > { %v3251_v51 = vpop.f32.mrb[13].mxu0  ;;  %v8512_v52 = vmul.f32 0.17677669, %v6540_v42 }
 0x4e6   : > { %v6548_v50 = vpop.f32.mrb[12].mxu1  ;;  %v6541_v31 = vpop.f32.mrb[14].mxu0  ;;  %3353 = vmax.xlane.f32.xlu0 %v3352_v40  ;;  %v8518_v11 = vmul.f32 0.17677669, %v3251_v51 }
 0x4e7   : > { %v3312_v43 = vpop.f32.mrb[13].mxu1  ;;  %v8496_v24 = vmul.f32 0.17677669, %v6541_v31  ;;  %v3254_v44 = vpop.f32.mrb[15].mxu0  ;;  %v8514_v19 = vmul.f32 0.17677669, %v6548_v50 }
 0x4e8   : > { %v6549_v4 = vpop.f32.mrb[14].mxu1  ;;  %v8502_v59 = vmul.f32 0.17677669, %v3254_v44  ;;  %v3373_v1 = vsel %vm1318_vm1, %v8512_v52, -inf  ;;  %v8522_v62 = vmul.f32 0.17677669, %v3312_v43 }
 0x4e9   : > { %v3315_v55 = vpop.f32.mrb[15].mxu1  ;;  %v8498_v56 = vmul.f32 0.17677669, %v6549_v4  ;;  %v3376_v58 = vsel %vm1318_vm1, %v8496_v24, -inf  ;;  %v3385_v60 = vsel %vm1318_vm1, %v8514_v19, -inf  ;;  %v3367_v0 = vsel %vm1318_vm1, %v8518_v11, -inf }
 0x4ea   : > { %3377 = vmax.xlane.f32.xlu1 %v3376_v58  ;;  %v3370_v48 = vsel %vm1318_vm1, %v8502_v59, -inf  ;;  %v8524_v63 = vmul.f32 0.17677669, %v3315_v55  ;;  %v3379_v5 = vsel %vm1318_vm1, %v8522_v62, -inf }
 0x4eb   : > { %v3388_v29 = vsel %vm1318_vm1, %v8498_v56, -inf }
 0x4ec   : > { %v3382_v2 = vsel %vm1318_vm1, %v8524_v63, -inf }
 0x4ee   : > { %3389 = vmax.xlane.f32.xlu1 %v3388_v29 }
 0x4f2   : > { %3371 = vmax.xlane.f32.xlu1 %v3370_v48 }
 0x4fc   : > { %2775 = vrot.lane.b32.xlu0 %v8116_v49, %s7571_s12 }
 0x503   : > { %2777 = vrot.lane.b32.xlu1 %v8124_v53, %s7571_s12  ;;  %s6314_s12 = sshll.u32 %s7685_s27, 8 }
 0x51b   : > { %3374 = vmax.xlane.f32.xlu0 %v3373_v1 }
 0x51f   : > { %3386 = vmax.xlane.f32.xlu0 %v3385_v60 }
 0x523   : > { %3368 = vmax.xlane.f32.xlu0 %v3367_v0 }
 0x527   : > { %3383 = vmax.xlane.f32.xlu1 %v3382_v2  ;;  %3380 = vmax.xlane.f32.xlu0 %v3379_v5 }
 0x538   : > { %2783 = vrot.lane.b32.xlu1 %v8124_v53, %s7572_s28 }
 0x53d   : > { %2781 = vrot.lane.b32.xlu0 %v8116_v49, %s7572_s28 }
 0x563   : > { %v3351_v23 = vpop.xlane.xlu0 %3350 }
 0x564   : > { %v3393_v8 = vsub.f32 %v8464_v9, %v3351_v23 }
 0x566   : > { %v3366_v33 = vpop.xlane.xlu1 %3365  ;;  %v3411_v18 = vmul.f32 1.442695, %v3393_v8 }
 0x567   : > { %v3363_v7 = vpop.xlane.xlu0 %3362  ;;  %v3398_v13 = vsub.f32 %v8468_v15, %v3366_v33 }
 0x569   : > { %v3421_v37 = vmul.f32 1.442695, %v3398_v13 }
 0x56a   : > { %v3348_v36 = vpop.xlane.xlu1 %3347 }
 0x56b   : > { %v3392_v47 = vsub.f32 %v8472_v25, %v3348_v36  ;;  %v3345_v12 = vpop.xlane.xlu0 %3344 }
 0x56c   : > { %v3391_v21 = vsub.f32 %v8476_v27, %v3345_v12  ;;  %v3397_v27 = vsub.f32 %v8466_v22, %v3363_v7 }
 0x56d   : > { %v3409_v20 = vmul.f32 1.442695, %v3392_v47 }
 0x56e   : > { %v3360_v45 = vpop.xlane.xlu1 %3359  ;;  %v3407_v26 = vmul.f32 1.442695, %v3391_v21  ;;  %v3419_v43 = vmul.f32 1.442695, %v3397_v27 }
 0x56f   : > { %7076 = vpow2.f32 %v3409_v20  ;;  %v3396_v34 = vsub.f32 %v8480_v35, %v3360_v45  ;;  %v3357_v16 = vpop.xlane.xlu0 %3356 }
 0x570   : > { %7078 = vpow2.f32 %v3407_v26  ;;  %v3395_v9 = vsub.f32 %v8484_v61, %v3357_v16 }
 0x571   : > { %v3417_v38 = vmul.f32 1.442695, %v3396_v34  ;;  %7080 = vpow2.f32 %v3411_v18 }
 0x572   : > { %v3415_v41 = vmul.f32 1.442695, %v3395_v9 }
 0x573   : > { %7082 = vpow2.f32 %v3417_v38  ;;  %v3354_v25 = vpop.xlane.xlu0 %3353 }
 0x574   : > { %7084 = vpow2.f32 %v3421_v37  ;;  %v3394_v15 = vsub.f32 %v8490_v39, %v3354_v25 }
 0x576   : > { %v3413_v42 = vmul.f32 1.442695, %v3394_v15 }
 0x577   : > { %v3378_v50 = vpop.xlane.xlu1 %3377  ;;  %v2776_v12 = vpop.permute.xlu0 %2775 }
 0x578   : > { %7086 = vpow2.f32 %v3413_v42  ;;  %v3402_v55 = vsub.f32 %v8496_v24, %v3378_v50 }
 0x579   : > { %v8548_v51 = vpop.eup %7076  ;;  %7088 = vpow2.f32 %v3415_v41 }
 0x57a   : > { %v3442_v35 = vsel %vm1318_vm1, %v8548_v51, 0.0  ;;  %v8552_v40 = vpop.eup %7078  ;;  %7090 = vpow2.f32 %v3419_v43  ;;  %v3429_v0 = vmul.f32 1.442695, %v3402_v55 }
 0x57b   : > { %3443 = vadd.xlane.f32.xlu1 %v3442_v35  ;;  %v8554_v61 = vpop.eup %7080  ;;  %v3390_v31 = vpop.xlane.xlu1 %3389  ;;  %v3439_v22 = vsel %vm1318_vm1, %v8552_v40, 0.0 }
 0x57c   : > { %3440 = vadd.xlane.f32.xlu0 %v3439_v22  ;;  %v3445_v29 = vsel %vm1318_vm1, %v8554_v61, 0.0  ;;  %v3406_v21 = vsub.f32 %v8498_v56, %v3390_v31 }
 0x57d   : > { %v8558_v39 = vpop.eup %7082 }
 0x57e   : > { %v3454_v4 = vsel %vm1318_vm1, %v8558_v39, 0.0  ;;  %v8562_v44 = vpop.eup %7084  ;;  %v3437_v37 = vmul.f32 1.442695, %v3406_v21 }
 0x57f   : > { %3455 = vadd.xlane.f32.xlu1 %v3454_v4  ;;  %v3372_v58 = vpop.xlane.xlu1 %3371  ;;  %v3460_v1 = vsel %vm1318_vm1, %v8562_v44, 0.0 }
 0x580   : > { %v3400_v48 = vsub.f32 %v8502_v59, %v3372_v58  ;;  %3446 = vadd.xlane.f32.xlu0 %v3445_v29 }
 0x582   : > { %v8570_v60 = vpop.eup %7086  ;;  %v3425_v2 = vmul.f32 1.442695, %v3400_v48 }
 0x583   : > { %3461 = vadd.xlane.f32.xlu1 %v3460_v1  ;;  %v3448_v5 = vsel %vm1318_vm1, %v8570_v60, 0.0  ;;  %v8574_v24 = vpop.eup %7088  ;;  %v2778_v18 = vpop.permute.xlu1 %2777 }
 0x584   : > { %7092 = vpow2.f32 %v3425_v2  ;;  %3449 = vadd.xlane.f32.xlu0 %v3448_v5  ;;  %v3451_v59 = vsel %vm1318_vm1, %v8574_v24, 0.0  ;;  %v8578_v23 = vpop.eup %7090  ;;  %v2855_v42 = vcombine.low %v8124_v53, %v2778_v18  ;;  %v2856_v56 = vcombine.high %v8124_v53, %v2778_v18 }
 0x585   : > { %7094 = vpow2.f32 %v3429_v0  ;;  %v3457_v33 = vsel %vm1318_vm1, %v8578_v23, 0.0 }
 0x586   : > { %7096 = vpow2.f32 %v3437_v37  ;;  %v2863_v53 = vrot.slane %v2855_v42, %v8173_v10  ;;  %v2870_v4 = vrot.slane %v2856_v56, %v8173_v10 }
 0x588   : > { %3452 = vadd.xlane.f32.xlu0 %v3451_v59 }
 0x58c   : > { %3458 = vadd.xlane.f32.xlu0 %v3457_v33 }
 0x58e   : > { %v8582_v7 = vpop.eup %7092 }
 0x58f   : > { %v3466_v8 = vsel %vm1318_vm1, %v8582_v7, 0.0  ;;  %v8586_v36 = vpop.eup %7094 }
 0x590   : > { %3467 = vadd.xlane.f32.xlu1 %v3466_v8  ;;  %v3472_v47 = vsel %vm1318_vm1, %v8586_v36, 0.0 }
 0x594   : > { %3473 = vadd.xlane.f32.xlu1 %v3472_v47 }
 0x5a8   : > { %v3375_v13 = vpop.xlane.xlu0 %3374 }
 0x5a9   : > { %v3401_v45 = vsub.f32 %v8512_v52, %v3375_v13 }
 0x5ab   : > { %v3427_v38 = vmul.f32 1.442695, %v3401_v45 }
 0x5ac   : > { %v3387_v20 = vpop.xlane.xlu0 %3386 }
 0x5ad   : > { %v3405_v34 = vsub.f32 %v8514_v19, %v3387_v20  ;;  %v2787_v19 = vcombine.low %v8116_v49, %v2776_v12  ;;  %7098 = vpow2.f32 %v3427_v38 }
 0x5af   : > { %v3435_v15 = vmul.f32 1.442695, %v3405_v34  ;;  %v2795_v48 = vrot.slane %v2787_v19, %v8173_v10 }
 0x5b0   : > { %v3369_v26 = vpop.xlane.xlu0 %3368 }
 0x5b1   : > { %v3399_v16 = vsub.f32 %v8518_v11, %v3369_v26  ;;  %v2788_v11 = vcombine.high %v8116_v49, %v2776_v12  ;;  %7100 = vpow2.f32 %v3435_v15 }
 0x5b3   : > { %v3423_v50 = vmul.f32 1.442695, %v3399_v16  ;;  %v8620_v16 = vpop.eup %7096 }
 0x5b4   : > { %v3384_v9 = vpop.xlane.xlu1 %3383  ;;  %v3381_v25 = vpop.xlane.xlu0 %3380 }
 0x5b5   : > { %v3404_v27 = vsub.f32 %v8524_v63, %v3384_v9  ;;  %v3403_v41 = vsub.f32 %v8522_v62, %v3381_v25  ;;  %7102 = vpow2.f32 %v3423_v50 }
 0x5b7   : > { %v3433_v52 = vmul.f32 1.442695, %v3404_v27  ;;  %v3431_v35 = vmul.f32 1.442695, %v3403_v41  ;;  %v8622_v15 = vpop.eup %7098 }
 0x5b8   : > { %v2784_v43 = vpop.permute.xlu1 %2783  ;;  %v2782_v31 = vpop.permute.xlu0 %2781 }
 0x5b9   : > { %v2871_v63 = vcombine.low %v8538_v32, %v2784_v43  ;;  %v2872_v62 = vcombine.high %v8538_v32, %v2784_v43  ;;  %v2803_v22 = vcombine.low %v8536_v17, %v2782_v31  ;;  %v2804_v55 = vcombine.high %v8536_v17, %v2782_v31 }
 0x5ba   : > { %7104 = vpow2.f32 %v3433_v52  ;;  %v2802_v32 = vrot.slane %v2788_v11, %v8173_v10 }
 0x5bb   : > { %v2879_v49 = vrot.slane %v2871_v63, %v8173_v10  ;;  %v2886_v58 = vrot.slane %v2872_v62, %v8173_v10  ;;  %v2811_v29 = vrot.slane %v2803_v22, %v8173_v10  ;;  %7106 = vpow2.f32 %v3431_v35  ;;  %v8624_v50 = vpop.eup %7100 }
 0x5bc   : > { %v2818_v1 = vrot.slane %v2804_v55, %v8173_v10 }
 0x5bd   : > { %v2887_v0 = vcombine.low %v2863_v53, %v2879_v49  ;;  %v2888_v2 = vcombine.high %v2863_v53, %v2879_v49  ;;  %v2903_v5 = vcombine.low %v2870_v4, %v2886_v58  ;;  %v2904_v59 = vcombine.high %v2870_v4, %v2886_v58 }
 0x5be   : > { %v2819_v33 = vcombine.low %v2795_v48, %v2811_v29  ;;  %v2820_v17 = vcombine.high %v2795_v48, %v2811_v29  ;;  %v2835_v8 = vcombine.low %v2802_v32, %v2818_v1  ;;  %v2836_v47 = vcombine.high %v2802_v32, %v2818_v1 }
 0x5bf   : > { %v2895_v12 = vrot.slane %v2887_v0, %v8176_v14  ;;  %v2902_v13 = vrot.slane %v2888_v2, %v8176_v14  ;;  %v2911_v20 = vrot.slane %v2903_v5, %v8176_v14  ;;  %v2918_v21 = vrot.slane %v2904_v59, %v8176_v14  ;;  %v8630_v43 = vpop.eup %7102 }
 0x5c0   : > { %v2827_v18 = vrot.slane %v2819_v33, %v8176_v14  ;;  %v2834_v45 = vrot.slane %v2820_v17, %v8176_v14  ;;  %v2843_v26 = vrot.slane %v2835_v8, %v8176_v14  ;;  %v2850_v34 = vrot.slane %v2836_v47, %v8176_v14 }
 0x5c1   : > { %v2991_v37 = vcombine.low %v2895_v12, %v2902_v13  ;;  %v6128_v38 = vcombine.high %v2895_v12, %v2902_v13  ;;  %v3007_v9 = vcombine.low %v2911_v20, %v2918_v21  ;;  %v6129_v25 = vcombine.high %v2911_v20, %v2918_v21 }
 0x5c2   : > { %v2923_v27 = vcombine.low %v2827_v18, %v2834_v45  ;;  %v6126_v41 = vcombine.high %v2827_v18, %v2834_v45  ;;  %v2939_v42 = vcombine.low %v2843_v26, %v2850_v34  ;;  %v6127_v56 = vcombine.high %v2843_v26, %v2850_v34 }
 0x5c3   : > { %v2998_v52 = vrot.slane %v2991_v37, %v8173_v10  ;;  %v3006_v19 = vrot.slane %v6128_v38, %v8173_v10  ;;  %v3014_v11 = vrot.slane %v3007_v9, %v8173_v10  ;;  %v3022_v35 = vrot.slane %v6129_v25, %v8173_v10 }
 0x5c4   : > { %v2930_v31 = vrot.slane %v2923_v27, %v8173_v10  ;;  %v2938_v63 = vrot.slane %v6126_v41, %v8173_v10  ;;  %v2946_v62 = vrot.slane %v2939_v42, %v8173_v10  ;;  %v2954_v22 = vrot.slane %v6127_v56, %v8173_v10  ;;  %v8636_v53 = vpop.eup %7104 }
 0x5c5   : > { %v3023_v4 = vcombine.low %v2998_v52, %v3006_v19  ;;  %v3024_v55 = vcombine.high %v2998_v52, %v3006_v19  ;;  %v3039_v49 = vcombine.low %v3014_v11, %v3022_v35  ;;  %v3040_v58 = vcombine.high %v3014_v11, %v3022_v35  ;;  %v8638_v29 = vpop.eup %7106  ;;  %v3531_v35 = vld [vmem:[#allocation4 + $0x20] sm:$0xff] }
 0x5c6   : > { %v2955_v48 = vcombine.low %v2930_v31, %v2938_v63  ;;  %v2956_v32 = vcombine.high %v2930_v31, %v2938_v63  ;;  %v2971_v1 = vcombine.low %v2946_v62, %v2954_v22  ;;  %v2972_v0 = vcombine.high %v2946_v62, %v2954_v22  ;;  %v3533_v31 = vld [vmem:[#allocation4 + $0x30] sm:$0xff] }
 0x5c7   : > { %v3031_v2 = vrot.slane %v3023_v4, %v8176_v14  ;;  %v3038_v5 = vrot.slane %v3024_v55, %v8176_v14  ;;  %v3047_v59 = vrot.slane %v3039_v49, %v8176_v14  ;;  %v3054_v10 = vrot.slane %v3040_v58, %v8176_v14 }
 0x5c8   : > { %v2963_v33 = vrot.slane %v2955_v48, %v8176_v14  ;;  %v2970_v17 = vrot.slane %v2956_v32, %v8176_v14  ;;  %v2979_v8 = vrot.slane %v2971_v1, %v8176_v14  ;;  %v2986_v47 = vrot.slane %v2972_v0, %v8176_v14 }
 0x5c9   : > { %v3055_v12 = vcombine.low %v3031_v2, %v3047_v59  ;;  %v3056_v13 = vcombine.high %v3031_v2, %v3047_v59  ;;  %v3057_v20 = vcombine.low %v3038_v5, %v3054_v10  ;;  %v3058_v21 = vcombine.high %v3038_v5, %v3054_v10 }
 0x5ca   : > { %v2987_v18 = vcombine.low %v2963_v33, %v2979_v8  ;;  %v2988_v45 = vcombine.high %v2963_v33, %v2979_v8  ;;  %v2989_v26 = vcombine.low %v2970_v17, %v2986_v47  ;;  %v2990_v34 = vcombine.high %v2970_v17, %v2986_v47 }
 0x5cb   : > { %v3463_v37 = vsel %vm1318_vm1, %v8630_v43, 0.0  ;;  %v3478_v38 = vsel %vm1318_vm1, %v8636_v53, 0.0  ;;  %v3469_v14 = vsel %vm1318_vm1, %v8622_v15, 0.0  ;;  %v3484_v42 = vsel %vm1318_vm1, %v8620_v16, 0.0 }
 0x5cc   : > { %v3059_v9 = vpack.c.bf16 %v3055_v12, %v2987_v18  ;;  %v3060_v25 = vpack.c.bf16 %v3056_v13, %v2988_v45  ;;  %v3061_v27 = vpack.c.bf16 %v3057_v20, %v2989_v26  ;;  %v3062_v41 = vpack.c.bf16 %v3058_v21, %v2990_v34  ;;  %3464 = vadd.xlane.f32.xlu0 %v3463_v37 }
 0x5cd   : > { %3479 = vadd.xlane.f32.xlu1 %v3478_v38  ;;  %v3475_v56 = vsel %vm1318_vm1, %v8638_v29, 0.0  ;;  %v3481_v11 = vsel %vm1318_vm1, %v8624_v50, 0.0 }
 0x5ce   : > { %3063 = vst.msk [vmem:[#allocation4 + $0x8] sm:$0xff] %vm1318_vm1, %v3059_v9  ;;  %3064 = vst.msk [vmem:[#allocation4 + $0x18] sm:$0xff] %vm1318_vm1, %v3060_v25 }
 0x5cf   : > { %3065 = vst.msk [vmem:[#allocation4 + $0x28] sm:$0xff] %vm1318_vm1, %v3061_v27  ;;  %3066 = vst.msk [vmem:[#allocation4 + $0x38] sm:$0xff] %vm1318_vm1, %v3062_v41 }
 0x5d0   : > { %3470 = vadd.xlane.f32.xlu0 %v3469_v14 }
 0x5d1   : > { %3485 = vadd.xlane.f32.xlu1 %v3484_v42 }
 0x5d4   : > { %3476 = vadd.xlane.f32.xlu0 %v3475_v56 }
 0x5d5   : > { %v3528_v52 = vld [vmem:[#allocation4 + $0x8] sm:$0xff]  ;;  %v3530_v19 = vld [vmem:[#allocation4 + $0x18] sm:$0xff] }
 0x5d6   : > { %6552 = vmatprep.subr.bf16.mxu0 %v3528_v52  ;;  %6560 = vmatprep.subr.bf16.mxu1 %v3530_v19  ;;  %v3532_v20 = vld [vmem:[#allocation4 + $0x28] sm:$0xff] }
 0x5d7   : > { %6553 = vmatpush3.bf16.msra.mxu0 %v3528_v52  ;;  %6561 = vmatpush3.bf16.msra.mxu1 %v3530_v19 }
 0x5d8   : > { %3482 = vadd.xlane.f32.xlu0 %v3481_v11  ;;  %6566 = vmatprep.subr.bf16.mxu0 %v3531_v35 }
 0x5d9   : > { %6574 = vmatprep.subr.bf16.mxu1 %v3533_v31 }
 0x608   : > { %v3444_v63 = vpop.xlane.xlu1 %3443 }
 0x609   : > { %7108 = vrcp.f32 %v3444_v63  ;;  %v3441_v62 = vpop.xlane.xlu0 %3440 }
 0x60a   : > { %7110 = vrcp.f32 %v3441_v62 }
 0x60c   : > { %v3456_v4 = vpop.xlane.xlu1 %3455 }
 0x60d   : > { %v3447_v22 = vpop.xlane.xlu0 %3446 }
 0x60e   : > { %7112 = vrcp.f32 %v3447_v22 }
 0x610   : > { %v3462_v48 = vpop.xlane.xlu1 %3461 }
 0x611   : > { %v3450_v55 = vpop.xlane.xlu0 %3449 }
 0x612   : > { %7114 = vrcp.f32 %v3450_v55 }
 0x613   : > { %v7109_v49 = vpop.eup %7108  ;;  %7116 = vrcp.f32 %v3456_v4 }
 0x614   : > { %v7111_v58 = vpop.eup %7110  ;;  %v3504_v0 = vmul.f32 %v7109_v49, %v8548_v51  ;;  %v6892_v49 = vld [vmem:[#allocation13] sm:$0xff]  }
 0x615   : > { %v3453_v32 = vpop.xlane.xlu0 %3452  ;;  %v3503_v1 = vmul.f32 %v7111_v58, %v8552_v40 }
 0x616   : > { %7118 = vrcp.f32 %v3453_v32  ;;  %v6896_v32 = vld [vmem:[#allocation13 + $0x10] sm:$0xff]  }
 0x617   : > { %v3519_v2 = vpack.c.bf16 %v3504_v0, %v3503_v1  ;;  %7120 = vrcp.f32 %v3462_v48 }
 0x618   : > { %v7113_v59 = vpop.eup %7112 }
 0x619   : > { %v3459_v5 = vpop.xlane.xlu0 %3458  ;;  %6554 = vmatprep.mubr.msk.bf16.mxu0 %vm1318_vm1, %v3519_v2  ;;  %v3505_v33 = vmul.f32 %v7113_v59, %v8554_v61  ;;  %v6897_v2 = vld [vmem:[#allocation11 + $0x10] sm:$0xff]   ;;  %v6898_v59 = vld [vmem:[#allocation13 + $0x18] sm:$0xff]  }
 0x61a   : > { %7122 = vrcp.f32 %v3459_v5 }
 0x61c   : > { %v7115_v10 = vpop.eup %7114 }
 0x61d   : > { %v3506_v17 = vmul.f32 %v7115_v10, %v8570_v60  ;;  %v7117_v8 = vpop.eup %7116  ;;  %v6899_v10 = vld [vmem:[#allocation11 + $0x18] sm:$0xff]  }
 0x61e   : > { %v3508_v40 = vmul.f32 %v7117_v8, %v8558_v39  ;;  %v3534_v39 = vld [vmem:[#allocation4 + $0x38] sm:$0xff] }
 0x61f   : > { %v3520_v47 = vpack.c.bf16 %v3506_v17, %v3505_v33 }
 0x620   : > { %v7119_v12 = vpop.eup %7118 }
 0x621   : > { %6555 = vmatmul.mubr.msk.bf16.vlgmr.msra.gmra.mrb[16].mxu0 %vm1318_vm1, %v3520_v47  ;;  %v3507_v51 = vmul.f32 %v7119_v12, %v8574_v24  ;;  %v7121_v13 = vpop.eup %7120  ;;  %v3468_v24 = vpop.xlane.xlu1 %3467 }
 0x622   : > { %6567 = vmatpush3.bf16.msra.mxu0 %v3531_v35  ;;  %v3510_v45 = vmul.f32 %v7121_v13, %v8562_v44  ;;  %7124 = vrcp.f32 %v3468_v24  ;;  %v6900_v13 = vld [vmem:[#allocation11 + $0x20] sm:$0xff]  }
 0x623   : > { %6568 = vmatprep.subr.bf16.mxu0 %v3532_v20  ;;  %v3521_v21 = vpack.c.bf16 %v3508_v40, %v3507_v51  ;;  %v6901_v40 = vld [vmem:[#allocation13 + $0x20] sm:$0xff]  }
 0x624   : > { %v7123_v18 = vpop.eup %7122 }
 0x625   : > { %v3509_v61 = vmul.f32 %v7123_v18, %v8578_v23  ;;  %6562 = vmatprep.mubr.msk.bf16.mxu1 %vm1318_vm1, %v3521_v21  ;;  %v3474_v26 = vpop.xlane.xlu1 %3473  ;;  %v6902_v21 = vld [vmem:[#allocation11 + $0x28] sm:$0xff]  }
 0x626   : > { %6569 = vmatpush3.bf16.msra.mxu0 %v3532_v20  ;;  %v6903_v20 = vld [vmem:[#allocation13 + $0x28] sm:$0xff]  }
 0x627   : > { %v3522_v60 = vpack.c.bf16 %v3510_v45, %v3509_v61  ;;  %6582 = vmatprep.subr.bf16.mxu0 %v7567_v6 }
 0x629   : > { %6563 = vmatmul.mubr.msk.bf16.vlgmr.msra.gmra.mrb[16].mxu1 %vm1318_vm1, %v3522_v60  ;;  %v6905_v60 = vld [vmem:[#allocation13 + $0x30] sm:$0xff]  }
 0x62a   : > { %6575 = vmatpush3.bf16.msra.mxu1 %v3533_v31  ;;  %v6893_v31 = vld [vmem:[#allocation11] sm:$0xff]  }
 0x62b   : > { %6576 = vmatprep.subr.bf16.mxu1 %v3534_v39 }
 0x62c   : > { %v7125_v9 = vpop.eup %7124 }
 0x62d   : > { %v3512_v14 = vmul.f32 %v7125_v9, %v8582_v7 }
 0x62e   : > { %6577 = vmatpush3.bf16.msra.mxu1 %v3534_v39 }
 0x62f   : > { %6614 = vmatprep.subr.bf16.mxu1 %v7567_v6 }
 0x659   : > { %v3465_v44 = vpop.xlane.xlu0 %3464 }
 0x65a   : > { %7126 = vrcp.f32 %v3465_v44  ;;  %v3480_v23 = vpop.xlane.xlu1 %3479 }
 0x65b   : > { %7128 = vrcp.f32 %v3474_v26  ;;  %v6904_v26 = vld [vmem:[#allocation11 + $0x30] sm:$0xff]  }
 0x65d   : > { %v3471_v34 = vpop.xlane.xlu0 %3470 }
 0x65e   : > { %7130 = vrcp.f32 %v3471_v34  ;;  %v3486_v37 = vpop.xlane.xlu1 %3485  ;;  %v6906_v34 = vld [vmem:[#allocation11 + $0x38] sm:$0xff]  }
 0x65f   : > { %7132 = vrcp.f32 %v3480_v23  ;;  %v6907_v23 = vld [vmem:[#allocation13 + $0x38] sm:$0xff]  }
 0x661   : > { %v3477_v38 = vpop.xlane.xlu0 %3476 }
 0x662   : > { %7134 = vrcp.f32 %v3477_v38 }
 0x663   : > { %7136 = vrcp.f32 %v3486_v37 }
 0x664   : > { %v7127_v25 = vpop.eup %7126 }
 0x665   : > { %v3483_v27 = vpop.xlane.xlu0 %3482  ;;  %v3511_v41 = vmul.f32 %v7127_v25, %v8630_v43  ;;  %v7129_v42 = vpop.eup %7128 }
 0x666   : > { %7138 = vrcp.f32 %v3483_v27  ;;  %v3514_v19 = vmul.f32 %v7129_v42, %v8586_v36 }
 0x667   : > { %v3523_v56 = vpack.c.bf16 %v3512_v14, %v3511_v41  ;;  %v6170_v14 = vld [vmem:[%s8036_s10 + $0x2] ss:$0 sm:$0xff] }
 0x668   : > { %v7131_v52 = vpop.eup %7130 }
 0x669   : > { %v3513_v11 = vmul.f32 %v7131_v52, %v8622_v15  ;;  %6570 = vmatprep.mubr.msk.bf16.mxu0 %vm1318_vm1, %v3523_v56  ;;  %v7133_v35 = vpop.eup %7132 }
 0x66a   : > { %v3516_v7 = vmul.f32 %v7133_v35, %v8636_v53  ;;  %v6894_v53 = vld [vmem:[#allocation13 + $0x8] sm:$0xff]  }
 0x66b   : > { %v3524_v63 = vpack.c.bf16 %v3514_v19, %v3513_v11 }
 0x66c   : > { %v7135_v62 = vpop.eup %7134 }
 0x66d   : > { %6571 = vmatmul.mubr.msk.bf16.vlgmr.msra.gmra.mrb[20].mxu0 %vm1318_vm1, %v3524_v63  ;;  %v3515_v43 = vmul.f32 %v7135_v62, %v8638_v29  ;;  %v7137_v22 = vpop.eup %7136  ;;  %v6895_v29 = vld [vmem:[#allocation11 + $0x8] sm:$0xff]  }
 0x66e   : > { %6583 = vmatpush3.bf16.msra.mxu0 %v6893_v31  ;;  %6586 = vmatprep.mubr.msk.bf16.mxu0 %vm7569_vm0, %v7567_v6  ;;  %v3518_v4 = vmul.f32 %v7137_v22, %v8620_v16 }
 0x66f   : > { %v3525_v36 = vpack.c.bf16 %v3516_v7, %v3515_v43  ;;  %6584 = vmatprep.subr.bf16.mxu0 %v7567_v6 }
 0x670   : > { %v7139_v15 = vpop.eup %7138 }
 0x671   : > { %v3517_v55 = vmul.f32 %v7139_v15, %v8624_v50  ;;  %6578 = vmatprep.mubr.msk.bf16.mxu1 %vm1318_vm1, %v3525_v36  ;;  %v6908_v15 = vld [vmem:[#allocation14] ss:$16 sps:$4 sm:$0xff]  }
 0x672   : > { %6585 = vmatpush3.bf16.msra.mxu0 %v6895_v29  ;;  %v6914_v29 = vld [vmem:[#allocation14 + $0x20] ss:$16 sps:$4 sm:$0xff]  }
 0x673   : > { %v3526_v58 = vpack.c.bf16 %v3518_v4, %v3517_v55  ;;  %6590 = vmatprep.subr.bf16.mxu0 %v7567_v6  ;;  %v6910_v4 = vld [vmem:[#allocation14 + $0x4] ss:$16 sps:$4 sm:$0xff]   ;;  %v6911_v55 = vld [vmem:[#allocation14 + $0x8] ss:$16 sps:$4 sm:$0xff]  }
 0x675   : > { %6579 = vmatmul.mubr.msk.bf16.vlgmr.msra.gmra.mrb[20].mxu1 %vm1318_vm1, %v3526_v58  ;;  %v6916_v58 = vld [vmem:[#allocation14 + $0x24] ss:$16 sps:$4 sm:$0xff]  }
 0x676   : > { %6615 = vmatpush3.bf16.msra.mxu1 %v6892_v49  ;;  %6618 = vmatprep.mubr.msk.bf16.mxu1 %vm7569_vm0, %v7567_v6  ;;  %v6913_v49 = vld [vmem:[#allocation14 + $0xc] ss:$16 sps:$4 sm:$0xff]  }
 0x677   : > { %6616 = vmatprep.subr.bf16.mxu1 %v7567_v6 }
 0x67a   : > { %6617 = vmatpush3.bf16.msra.mxu1 %v6894_v53  ;;  %v6919_v53 = vld [vmem:[#allocation14 + $0x2c] ss:$16 sps:$4 sm:$0xff]  }
 0x67b   : > { %6622 = vmatprep.subr.bf16.mxu1 %v7567_v6 }
 0x6f4   : > { %v6556_v16 = vpop.f32.mrb[16].mxu0 }
 0x6f5   : > { %v3575_v50 = vpop.f32.mrb[17].mxu0 }
 0x6f6   : > { %v6557_v48 = vpop.f32.mrb[18].mxu0 }
 0x6f7   : > { %v3756_v1 = vpack.c.bf16 %v6557_v48, %v6556_v16  ;;  %v3578_v0 = vpop.f32.mrb[19].mxu0  ;;  %v6917_v16 = vld [vmem:[#allocation14 + $0x28] ss:$16 sps:$4 sm:$0xff]  }
 0x6f8   : > { %v3755_v5 = vpack.c.bf16 %v3578_v0, %v3575_v50 }
 0x6f9   : > { %6619 = vmatmul.mubr.msk.bf16.vlgmr.msra.gmra.mrb[24].mxu1 %vm1318_vm1, %v3756_v1 }
 0x6fa   : > { %6587 = vmatmul.mubr.msk.bf16.vlgmr.msra.gmra.mrb[24].mxu0 %vm1318_vm1, %v3755_v5  ;;  %6623 = vmatpush3.bf16.msra.mxu1 %v6896_v32 }
 0x6fb   : > { %6591 = vmatpush3.bf16.msra.mxu0 %v6897_v2  ;;  %6624 = vmatprep.subr.bf16.mxu1 %v7567_v6 }
 0x6fc   : > { %v6564_v33 = vpop.f32.mrb[16].mxu1  ;;  %6592 = vmatprep.subr.bf16.mxu0 %v7567_v6  ;;  %6626 = vmatprep.mubr.msk.bf16.mxu1 %vm7569_vm0, %v7567_v6 }
 0x6fd   : > { %v3630_v17 = vpop.f32.mrb[17].mxu1  ;;  %6594 = vmatprep.mubr.msk.bf16.mxu0 %vm7569_vm0, %v7567_v6 }
 0x6fe   : > { %v6565_v8 = vpop.f32.mrb[18].mxu1  ;;  %6625 = vmatpush3.bf16.msra.mxu1 %v6898_v59 }
 0x6ff   : > { %v3758_v47 = vpack.c.bf16 %v6565_v8, %v6564_v33  ;;  %v3633_v12 = vpop.f32.mrb[19].mxu1  ;;  %6593 = vmatpush3.bf16.msra.mxu0 %v6899_v10  ;;  %6630 = vmatprep.subr.bf16.mxu1 %v7567_v6  ;;  %v6922_v8 = vld [vmem:[#allocation14 + $0x44] ss:$16 sps:$4 sm:$0xff]  }
 0x700   : > { %v3757_v51 = vpack.c.bf16 %v3633_v12, %v3630_v17  ;;  %6598 = vmatprep.subr.bf16.mxu0 %v7567_v6  ;;  %v6920_v17 = vld [vmem:[#allocation14 + $0x40] ss:$16 sps:$4 sm:$0xff]   ;;  %v6925_v12 = vld [vmem:[#allocation14 + $0x4c] ss:$16 sps:$4 sm:$0xff]  }
 0x705   : > { %6627 = vmatmul.mubr.msk.bf16.vlgmr.msra.gmra.mrb[24].mxu1 %vm1318_vm1, %v3758_v47  ;;  %v6923_v47 = vld [vmem:[#allocation14 + $0x48] ss:$16 sps:$4 sm:$0xff]  }
 0x706   : > { %6595 = vmatmul.mubr.msk.bf16.vlgmr.msra.gmra.mrb[24].mxu0 %vm1318_vm1, %v3757_v51  ;;  %6631 = vmatpush3.bf16.msra.mxu1 %v6901_v40  ;;  %v6928_v51 = vld [vmem:[#allocation14 + $0x64] ss:$16 sps:$4 sm:$0xff]   ;;  %v6926_v40 = vld [vmem:[#allocation14 + $0x60] ss:$16 sps:$4 sm:$0xff]  }
 0x707   : > { %6599 = vmatpush3.bf16.msra.mxu0 %v6900_v13  ;;  %6632 = vmatprep.subr.bf16.mxu1 %v7567_v6  ;;  %v6931_v13 = vld [vmem:[#allocation14 + $0x6c] ss:$16 sps:$4 sm:$0xff]  }
 0x708   : > { %6600 = vmatprep.subr.bf16.mxu0 %v7567_v6  ;;  %6634 = vmatprep.mubr.msk.bf16.mxu1 %vm7569_vm0, %v7567_v6 }
 0x709   : > { %6602 = vmatprep.mubr.msk.bf16.mxu0 %vm7569_vm0, %v7567_v6 }
 0x70a   : > { %6633 = vmatpush3.bf16.msra.mxu1 %v6903_v20  ;;  %v6929_v20 = vld [vmem:[#allocation14 + $0x68] ss:$16 sps:$4 sm:$0xff]  }
 0x70b   : > { %6601 = vmatpush3.bf16.msra.mxu0 %v6902_v21  ;;  %6638 = vmatprep.subr.bf16.mxu1 %v7567_v6  ;;  %v6934_v21 = vld [vmem:[#allocation14 + $0x84] ss:$16 sps:$4 sm:$0xff]  }
 0x70c   : > { %6606 = vmatprep.subr.bf16.mxu0 %v7567_v6 }
 0x740   : > { %v6572_v18 = vpop.f32.mrb[20].mxu0 }
 0x741   : > { %v3685_v45 = vpop.f32.mrb[21].mxu0 }
 0x742   : > { %v6573_v61 = vpop.f32.mrb[22].mxu0 }
 0x743   : > { %v3760_v39 = vpack.c.bf16 %v6573_v61, %v6572_v18  ;;  %v3688_v24 = vpop.f32.mrb[23].mxu0  ;;  %v6937_v18 = vld [vmem:[#allocation14 + $0x8c] ss:$16 sps:$4 sm:$0xff]   ;;  %v6935_v61 = vld [vmem:[#allocation14 + $0x88] ss:$16 sps:$4 sm:$0xff]  }
 0x744   : > { %v3759_v44 = vpack.c.bf16 %v3688_v24, %v3685_v45  ;;  %v6932_v45 = vld [vmem:[#allocation14 + $0x80] ss:$16 sps:$4 sm:$0xff]  }
 0x745   : > { %6635 = vmatmul.mubr.msk.bf16.vlgmr.msra.gmra.mrb[24].mxu1 %vm1318_vm1, %v3760_v39  ;;  %v6943_v39 = vld [vmem:[#allocation14 + $0xac] ss:$16 sps:$4 sm:$0xff]   ;;  %v6938_v24 = vld [vmem:[#allocation14 + $0xa0] ss:$16 sps:$4 sm:$0xff]  }
 0x746   : > { %6603 = vmatmul.mubr.msk.bf16.vlgmr.msra.gmra.mrb[24].mxu0 %vm1318_vm1, %v3759_v44  ;;  %6639 = vmatpush3.bf16.msra.mxu1 %v6905_v60  ;;  %v6940_v60 = vld [vmem:[#allocation14 + $0xa4] ss:$16 sps:$4 sm:$0xff]  }
 0x747   : > { %6607 = vmatpush3.bf16.msra.mxu0 %v6904_v26  ;;  %6640 = vmatprep.subr.bf16.mxu1 %v7567_v6  ;;  %v6941_v26 = vld [vmem:[#allocation14 + $0xa8] ss:$16 sps:$4 sm:$0xff]   ;;  %v6946_v44 = vld [vmem:[#allocation14 + $0xc4] ss:$16 sps:$4 sm:$0xff]  }
 0x748   : > { %v6580_v37 = vpop.f32.mrb[20].mxu1  ;;  %6608 = vmatprep.subr.bf16.mxu0 %v7567_v6  ;;  %6642 = vmatprep.mubr.msk.bf16.mxu1 %vm7569_vm0, %v7567_v6 }
 0x749   : > { %v3740_v38 = vpop.f32.mrb[21].mxu1  ;;  %6610 = vmatprep.mubr.msk.bf16.mxu0 %vm7569_vm0, %v7567_v6 }
 0x74a   : > { %v6581_v9 = vpop.f32.mrb[22].mxu1  ;;  %6641 = vmatpush3.bf16.msra.mxu1 %v6907_v23  ;;  %v6949_v23 = vld [vmem:[#allocation14 + $0xcc] ss:$16 sps:$4 sm:$0xff]  }
 0x74b   : > { %v3762_v25 = vpack.c.bf16 %v6581_v9, %v6580_v37  ;;  %v3743_v27 = vpop.f32.mrb[23].mxu1  ;;  %6609 = vmatpush3.bf16.msra.mxu0 %v6906_v34  ;;  %4586 = vmatprep.subr.bf16.mxu1 %v6913_v49  ;;  %v6944_v34 = vld [vmem:[#allocation14 + $0xc0] ss:$16 sps:$4 sm:$0xff]   ;;  %v6947_v37 = vld [vmem:[#allocation14 + $0xc8] ss:$16 sps:$4 sm:$0xff]  }
 0x74c   : > { %v3761_v41 = vpack.c.bf16 %v3743_v27, %v3740_v38  ;;  %4543 = vmatprep.subr.bf16.mxu0 %v6910_v4  ;;  %v6952_v38 = vld [vmem:[#allocation14 + $0xe4] ss:$16 sps:$4 sm:$0xff]   ;;  %v6955_v9 = vld [vmem:[#allocation14 + $0xec] ss:$16 sps:$4 sm:$0xff]   ;;  %v6953_v27 = vld [vmem:[#allocation14 + $0xe8] ss:$16 sps:$4 sm:$0xff]  }
 0x751   : > { %6643 = vmatmul.mubr.msk.bf16.vlgmr.msra.gmra.mrb[24].mxu1 %vm1318_vm1, %v3762_v25  ;;  %v6950_v25 = vld [vmem:[#allocation14 + $0xe0] ss:$16 sps:$4 sm:$0xff]  }
 0x752   : > { %6611 = vmatmul.mubr.msk.bf16.vlgmr.msra.gmra.mrb[24].mxu0 %vm1318_vm1, %v3761_v41  ;;  %4618 = vmatprep.mubr.bf16.mxu1 %v7568_v46 }
 0x753   : > { %4575 = vmatprep.mubr.bf16.mxu0 %v7568_v46  ;;  %4544 = vmatpush1.bf16.msra.mxu0 %v6908_v15 }
 0x754   : > { %4587 = vmatpush1.bf16.msra.mxu1 %v6911_v55  ;;  %4545 = vmatprep.subr.bf16.mxu0 %v6916_v58  ;;  %v8766_v58 = vld [vmem:[%s8036_s10 + $0x4] ss:$0 sm:$0xff] }
 0x755   : > { %4588 = vmatprep.subr.bf16.mxu1 %v6919_v53 }
 0x757   : > { %4546 = vmatpush1.bf16.msra.mxu0 %v6914_v29 }
 0x758   : > { %4589 = vmatpush1.bf16.msra.mxu1 %v6917_v16  ;;  %4547 = vmatprep.subr.bf16.mxu0 %v6922_v8  ;;  %v6966_v8 = vld [vmem:[#allocation16 + $0x10] sm:$0xff]  }
 0x759   : > { %4590 = vmatprep.subr.bf16.mxu1 %v6925_v12  ;;  %v6968_v12 = vld [vmem:[#allocation16 + $0x58] sm:$0xff]  }
 0x75b   : > { %4548 = vmatpush1.bf16.msra.mxu0 %v6920_v17  ;;  %v6965_v17 = vld [vmem:[#allocation16 + $0xd0] sm:$0xff]  }
 0x75c   : > { %4591 = vmatpush1.bf16.msra.mxu1 %v6923_v47  ;;  %4549 = vmatprep.subr.bf16.mxu0 %v6928_v51  ;;  %v6967_v47 = vld [vmem:[#allocation16 + $0x90] sm:$0xff]   ;;  %v6969_v51 = vld [vmem:[#allocation16 + $0xd8] sm:$0xff]  }
 0x75d   : > { %4592 = vmatprep.subr.bf16.mxu1 %v6931_v13  ;;  %v6971_v13 = vld [vmem:[#allocation16 + $0x98] sm:$0xff]  }
 0x75f   : > { %4550 = vmatpush1.bf16.msra.mxu0 %v6926_v40  ;;  %v6970_v40 = vld [vmem:[#allocation16 + $0x18] sm:$0xff]  }
 0x760   : > { %4593 = vmatpush1.bf16.msra.mxu1 %v6929_v20  ;;  %4551 = vmatprep.subr.bf16.mxu0 %v6934_v21  ;;  %v6972_v20 = vld [vmem:[#allocation16 + $0x60] sm:$0xff]  }
 0x761   : > { %4594 = vmatprep.subr.bf16.mxu1 %v6937_v18  ;;  %v6973_v21 = vld [vmem:[#allocation16 + $0xe0] sm:$0xff]  }
 0x762   : > { %v6974_v18 = vld [vmem:[#allocation16 + $0x20] sm:$0xff]  }
 0x763   : > { %4552 = vmatpush1.bf16.msra.mxu0 %v6932_v45  ;;  %v6975_v45 = vld [vmem:[#allocation16 + $0xa0] sm:$0xff]  }
 0x764   : > { %4595 = vmatpush1.bf16.msra.mxu1 %v6935_v61  ;;  %4553 = vmatprep.subr.bf16.mxu0 %v6940_v60  ;;  %v6976_v61 = vld [vmem:[#allocation16 + $0x68] sm:$0xff]  }
 0x765   : > { %4596 = vmatprep.subr.bf16.mxu1 %v6943_v39  ;;  %v6977_v60 = vld [vmem:[#allocation16 + $0xe8] sm:$0xff]  }
 0x766   : > { %v6978_v39 = vld [vmem:[#allocation16 + $0x28] sm:$0xff]  }
 0x767   : > { %4554 = vmatpush1.bf16.msra.mxu0 %v6938_v24  ;;  %v6979_v24 = vld [vmem:[#allocation16 + $0xa8] sm:$0xff]  }
 0x768   : > { %4597 = vmatpush1.bf16.msra.mxu1 %v6941_v26  ;;  %4555 = vmatprep.subr.bf16.mxu0 %v6946_v44  ;;  %v6980_v26 = vld [vmem:[#allocation16 + $0x70] sm:$0xff]  }
 0x769   : > { %4598 = vmatprep.subr.bf16.mxu1 %v6949_v23  ;;  %v6981_v44 = vld [vmem:[#allocation16 + $0xf0] sm:$0xff]  }
 0x76a   : > { %v6982_v23 = vld [vmem:[#allocation16 + $0x30] sm:$0xff]  }
 0x76b   : > { %4556 = vmatpush1.bf16.msra.mxu0 %v6944_v34  ;;  %v6983_v34 = vld [vmem:[#allocation16 + $0xb0] sm:$0xff]  }
 0x76c   : > { %4599 = vmatpush1.bf16.msra.mxu1 %v6947_v37  ;;  %4557 = vmatprep.subr.bf16.mxu0 %v6952_v38  ;;  %v6984_v37 = vld [vmem:[#allocation16 + $0x78] sm:$0xff]  }
 0x76d   : > { %4600 = vmatprep.subr.bf16.mxu1 %v6955_v9  ;;  %v6985_v38 = vld [vmem:[#allocation16 + $0xf8] sm:$0xff]  }
 0x76e   : > { %v6986_v9 = vld [vmem:[#allocation16 + $0x38] sm:$0xff]  }
 0x76f   : > { %4558 = vmatpush1.bf16.msra.mxu0 %v6950_v25  ;;  %v6987_v25 = vld [vmem:[#allocation16 + $0xb8] sm:$0xff]  }
 0x770   : > { %4601 = vmatpush1.bf16.msra.mxu1 %v6953_v27  ;;  %v6990_v27 = vld [vmem:[#allocation17 + $0x4] ss:$16 sps:$4 sm:$0xff]  }
 0x824   : > { %v4242_v42 = vpop.f32.mrb[24].mxu1 }
 0x825   : > { %v4263_v56 = vmul.f32 %v6170_v14, %v4242_v42  ;;  %v3996_v52 = vpop.f32.mrb[24].mxu0  ;;  %v6644_v19 = vpop.f32.mrb[25].mxu1 }
 0x826   : > { %v4259_v6 = vmul.f32 %v6170_v14, %v3996_v52  ;;  %v6612_v11 = vpop.f32.mrb[25].mxu0  ;;  %v4245_v35 = vpop.f32.mrb[26].mxu1 }
 0x827   : > { %v4264_v31 = vmul.f32 %v6170_v14, %v4245_v35  ;;  %v3999_v63 = vpop.f32.mrb[26].mxu0  ;;  %v6645_v62 = vpop.f32.mrb[27].mxu1  ;;  %v8742_v10 = vadd.f32 %v4263_v56, %v8068_v30 }
 0x828   : > { %v4260_v43 = vmul.f32 %v6170_v14, %v3999_v63  ;;  %v6613_v7 = vpop.f32.mrb[27].mxu0  ;;  %v4261_v22 = vadd.f32 %v4259_v6, %v8039_v54 }
 0x829   : > { %v8746_v33 = vadd.f32 %v4264_v31, %v8064_v28 }
 0x82a   : > { %4267 = vadd.xlane.f32.xlu0 %v4261_v22  ;;  %v4262_v36 = vadd.f32 %v4260_v43, %v8045_v57 }
 0x82c   : > { %4269 = vadd.xlane.f32.xlu1 %v4262_v36 }
 0x8b7   : > { %v4268_v50 = vpop.xlane.xlu0 %4267 }
 0x8b8   : > { %v4271_v48 = vmul.f32 0.0078125, %v4268_v50 }
 0x8b9   : > { %v4270_v32 = vpop.xlane.xlu1 %4269 }
 0x8ba   : > { %v8733_v1 = vsub.f32 %v4261_v22, %v4271_v48  ;;  %v4272_v0 = vmul.f32 0.0078125, %v4270_v32  ;;  %v6956_v48 = vld [vmem:[#allocation16 + $0x40] sm:$0xff]  }
 0x8bb   : > { %v6957_v32 = vld [vmem:[#allocation16 + $0xc0] sm:$0xff]   ;;  %6390 = vmatprep.subr.bf16.mxu0 %v6956_v48 }
 0x8bc   : > { %v8735_v2 = vsub.f32 %v4262_v36, %v4272_v0  ;;  %v4275_v5 = vmul.f32 %v8733_v1, %v8733_v1  ;;  %v8760_v36 = vld [vmem:[%s8036_s10 + $0x3] ss:$0 sm:$0xff]  ;;  %6412 = vmatprep.subr.bf16.mxu1 %v6957_v32 }
 0x8bd   : > { %v6959_v0 = vld [vmem:[#allocation16 + $0x80] sm:$0xff]  }
 0x8be   : > { %4277 = vadd.xlane.f32.xlu0 %v4275_v5  ;;  %v4276_v59 = vmul.f32 %v8735_v2, %v8735_v2  ;;  %v6961_v5 = vld [vmem:[#allocation16 + $0xc8] sm:$0xff]  }
 0x8c0   : > { %4279 = vadd.xlane.f32.xlu1 %v4276_v59  ;;  %v6962_v59 = vld [vmem:[#allocation16 + $0x8] sm:$0xff]  }
 0x8c2   : > { %4302 = vadd.xlane.f32.xlu0 %v8742_v10 }
 0x8c4   : > { %4304 = vadd.xlane.f32.xlu1 %v8746_v33 }
 0x94b   : > { %v4278_v41 = vpop.xlane.xlu0 %4277 }
 0x94c   : > { %v4281_v14 = vmul.f32 0.0078125, %v4278_v41  ;;  %v6993_v41 = vld [vmem:[#allocation17 + $0xc] ss:$16 sps:$4 sm:$0xff]  }
 0x94d   : > { %v4280_v42 = vpop.xlane.xlu1 %4279 }
 0x94e   : > { %v4283_v56 = vadd.f32 1e-06, %v4281_v14  ;;  %v4282_v52 = vmul.f32 0.0078125, %v4280_v42  ;;  %v4365_v14 = vsub.s32 0, %v8168_v3  ;;  %v4373_v42 = vsub.s32 2, %v8168_v3 }
 0x94f   : > { %v4303_v19 = vpop.xlane.xlu0 %4302 }
 0x950   : > { %7140 = vrsqrt.f32 %v4283_v56  ;;  %v4284_v6 = vadd.f32 1e-06, %v4282_v52  ;;  %v4306_v11 = vmul.f32 0.0078125, %v4303_v19  ;;  %v4361_v56 = vld [vmem:[%s9068_s20] sm:$0xf]  ;;  %v4369_v52 = vsub.s32 1, %v8168_v3  ;;  %s8911_s20 = scalar_lea.hbm %s9071_s19, %s6314_s12 }
 0x951   : > { %v4305_v35 = vpop.xlane.xlu1 %4304  ;;  %v4377_v19 = vsub.s32 3, %v8168_v3 }
 0x952   : > { %7142 = vrsqrt.f32 %v4284_v6  ;;  %v8750_v31 = vsub.f32 %v8742_v10, %v4306_v11  ;;  %v4307_v63 = vmul.f32 0.0078125, %v4305_v35  ;;  %v6963_v10 = vld [vmem:[#allocation16 + $0x88] sm:$0xff]   ;;  %v4366_v6 = vrot.slane %v4361_v56, %v4365_v14 }
 0x953   : > { %v4374_v11 = vrot.slane %v4361_v56, %v4373_v42  ;;  %v4370_v35 = vrot.slane %v4361_v56, %v4369_v52 }
 0x954   : > { %v8753_v62 = vsub.f32 %v8746_v33, %v4307_v63  ;;  %v4310_v43 = vmul.f32 %v8750_v31, %v8750_v31  ;;  %v6964_v33 = vld [vmem:[#allocation16 + $0x50] sm:$0xff]   ;;  %v4378_v63 = vrot.slane %v4361_v56, %v4377_v19 }
 0x956   : > { %4312 = vadd.xlane.f32.xlu0 %v4310_v43  ;;  %v4311_v7 = vmul.f32 %v8753_v62, %v8753_v62 }
 0x958   : > { %4314 = vadd.xlane.f32.xlu1 %v4311_v7 }
 0x95a   : > { %v7141_v22 = vpop.eup %7140 }
 0x95b   : > { %v4287_v15 = vmul.f32 %v7141_v22, %v8733_v1  ;;  %v6958_v1 = vld [vmem:[#allocation16] sm:$0xff]  }
 0x95c   : > { %v7143_v4 = vpop.eup %7142 }
 0x95d   : > { %v4288_v55 = vmul.f32 %v7143_v4, %v8735_v2  ;;  %v4293_v49 = vmul.f32 %v8760_v36, %v4287_v15  ;;  %v6960_v2 = vld [vmem:[#allocation16 + $0x48] sm:$0xff]  }
 0x95f   : > { %v4294_v53 = vmul.f32 %v8760_v36, %v4288_v55  ;;  %v4299_v29 = vadd.f32 %v8766_v58, %v4293_v49 }
 0x961   : > { %v4300_v16 = vadd.f32 %v8766_v58, %v4294_v53 }
 0x963   : > { %v4301_v50 = vpack.c.bf16 %v4300_v16, %v4299_v29 }
 0x965   : > { %4576 = vmatmul.mubr.bf16.vlgmr.msra.gmra.mrb[28].mxu0 %v4301_v50  ;;  %4619 = vmatmul.mubr.bf16.vlgmr.msra.gmra.mrb[28].mxu1 %v4301_v50 }
 0x966   : > { %6391 = vmatpush3.bf16.msra.mxu0 %v6958_v1  ;;  %6413 = vmatpush3.bf16.msra.mxu1 %v6959_v0 }
 0x967   : > { %6392 = vmatprep.subr.bf16.mxu0 %v6960_v2  ;;  %6414 = vmatprep.subr.bf16.mxu1 %v6961_v5 }
 0x96a   : > { %6393 = vmatpush3.bf16.msra.mxu0 %v6962_v59  ;;  %6415 = vmatpush3.bf16.msra.mxu1 %v6963_v10 }
 0x96b   : > { %6394 = vmatprep.subr.bf16.mxu0 %v6964_v33  ;;  %6416 = vmatprep.subr.bf16.mxu1 %v6965_v17 }
 0x96e   : > { %6395 = vmatpush3.bf16.msra.mxu0 %v6966_v8  ;;  %6417 = vmatpush3.bf16.msra.mxu1 %v6967_v47 }
 0x96f   : > { %6396 = vmatprep.subr.bf16.mxu0 %v6968_v12  ;;  %6418 = vmatprep.subr.bf16.mxu1 %v6969_v51 }
 0x972   : > { %6397 = vmatpush3.bf16.msra.mxu0 %v6970_v40  ;;  %6419 = vmatpush3.bf16.msra.mxu1 %v6971_v13 }
 0x973   : > { %6398 = vmatprep.subr.bf16.mxu0 %v6972_v20  ;;  %6420 = vmatprep.subr.bf16.mxu1 %v6973_v21 }
 0x976   : > { %6399 = vmatpush3.bf16.msra.mxu0 %v6974_v18  ;;  %6421 = vmatpush3.bf16.msra.mxu1 %v6975_v45 }
 0x977   : > { %6400 = vmatprep.subr.bf16.mxu0 %v6976_v61  ;;  %6422 = vmatprep.subr.bf16.mxu1 %v6977_v60 }
 0x97a   : > { %6401 = vmatpush3.bf16.msra.mxu0 %v6978_v39  ;;  %6423 = vmatpush3.bf16.msra.mxu1 %v6979_v24 }
 0x97b   : > { %6402 = vmatprep.subr.bf16.mxu0 %v6980_v26  ;;  %6424 = vmatprep.subr.bf16.mxu1 %v6981_v44 }
 0x97e   : > { %6403 = vmatpush3.bf16.msra.mxu0 %v6982_v23  ;;  %6425 = vmatpush3.bf16.msra.mxu1 %v6983_v34 }
 0x97f   : > { %6404 = vmatprep.subr.bf16.mxu0 %v6984_v37  ;;  %6426 = vmatprep.subr.bf16.mxu1 %v6985_v38 }
 0x982   : > { %6405 = vmatpush3.bf16.msra.mxu0 %v6986_v9  ;;  %6427 = vmatpush3.bf16.msra.mxu1 %v6987_v25 }
 0x983   : > { %5264 = vmatprep.subr.bf16.mxu0 %v6990_v27  ;;  %5307 = vmatprep.subr.bf16.mxu1 %v6993_v41 }
 0xa38   : > { %v4577_v43 = vpop.f32.mrb[28].mxu0  ;;  %v4620_v7 = vpop.f32.mrb[28].mxu1 }
 0xa39   : > { %v8786_v22 = vadd.f32 %v4577_v43, %v4366_v6  ;;  %v8788_v15 = vadd.f32 %v4620_v7, %v4374_v11  ;;  %v4579_v4 = vpop.f32.mrb[29].mxu0  ;;  %v4622_v55 = vpop.f32.mrb[29].mxu1 }
 0xa3a   : > { %v8790_v49 = vadd.f32 %v4579_v4, %v4370_v35  ;;  %v8792_v53 = vadd.f32 %v4622_v55, %v4378_v63  ;;  %v4581_v29 = vpop.f32.mrb[30].mxu0  ;;  %v4624_v16 = vpop.f32.mrb[30].mxu1 }
 0xa3b   : > { %v4637_v50 = vmul.f32 0.044715, %v8786_v22  ;;  %v4639_v48 = vmul.f32 0.044715, %v8788_v15  ;;  %v4582_v32 = vadd.f32 %v4581_v29, %v4366_v6  ;;  %v4625_v1 = vadd.f32 %v4624_v16, %v4374_v11  ;;  %v4583_v0 = vpop.f32.mrb[31].mxu0  ;;  %v4626_v2 = vpop.f32.mrb[31].mxu1 }
 0xa3c   : > { %v4638_v5 = vmul.f32 0.044715, %v8790_v49  ;;  %v4640_v59 = vmul.f32 0.044715, %v8792_v53  ;;  %v8798_v10 = vadd.f32 %v4583_v0, %v4370_v35  ;;  %v8800_v33 = vadd.f32 %v4626_v2, %v4378_v63 }
 0xa3d   : > { %v4645_v17 = vmul.f32 %v4637_v50, %v8786_v22  ;;  %v4647_v8 = vmul.f32 %v4639_v48, %v8788_v15  ;;  %v4641_v47 = vmul.f32 0.044715, %v4582_v32  ;;  %v4643_v12 = vmul.f32 0.044715, %v4625_v1 }
 0xa3e   : > { %v4646_v51 = vmul.f32 %v4638_v5, %v8790_v49  ;;  %v4648_v40 = vmul.f32 %v4640_v59, %v8792_v53  ;;  %v4642_v13 = vmul.f32 0.044715, %v8798_v10  ;;  %v4644_v20 = vmul.f32 0.044715, %v8800_v33 }
 0xa3f   : > { %v4653_v21 = vmul.f32 %v4645_v17, %v8786_v22  ;;  %v4655_v18 = vmul.f32 %v4647_v8, %v8788_v15  ;;  %v4649_v45 = vmul.f32 %v4641_v47, %v4582_v32  ;;  %v4651_v61 = vmul.f32 %v4643_v12, %v4625_v1 }
 0xa40   : > { %v4654_v60 = vmul.f32 %v4646_v51, %v8790_v49  ;;  %v4656_v39 = vmul.f32 %v4648_v40, %v8792_v53  ;;  %v4650_v24 = vmul.f32 %v4642_v13, %v8798_v10  ;;  %v4652_v26 = vmul.f32 %v4644_v20, %v8800_v33 }
 0xa41   : > { %v4661_v44 = vadd.f32 %v4653_v21, %v8786_v22  ;;  %v4663_v23 = vadd.f32 %v4655_v18, %v8788_v15  ;;  %v4657_v34 = vmul.f32 %v4649_v45, %v4582_v32  ;;  %v4659_v37 = vmul.f32 %v4651_v61, %v4625_v1 }
 0xa42   : > { %v4658_v38 = vmul.f32 %v4650_v24, %v8798_v10  ;;  %v4660_v9 = vmul.f32 %v4652_v26, %v8800_v33  ;;  %v4662_v6 = vadd.f32 %v4654_v60, %v8790_v49  ;;  %v4664_v43 = vadd.f32 %v4656_v39, %v8792_v53 }
 0xa43   : > { %v4669_v25 = vmul.f32 0.7978846, %v4661_v44  ;;  %v4671_v27 = vmul.f32 0.7978846, %v4663_v23  ;;  %v4665_v41 = vadd.f32 %v4657_v34, %v4582_v32  ;;  %v4667_v56 = vadd.f32 %v4659_v37, %v4625_v1 }
 0xa44   : > { %v4666_v11 = vadd.f32 %v4658_v38, %v8798_v10  ;;  %v4670_v7 = vmul.f32 0.7978846, %v4662_v6  ;;  %v4668_v55 = vadd.f32 %v4660_v9, %v8800_v33  ;;  %v4672_v29 = vmul.f32 0.7978846, %v4664_v43  ;;  %v6988_v6 = vld [vmem:[#allocation17] ss:$16 sps:$4 sm:$0xff]  }
 0xa45   : > { %7144 = vtanh.f32 %v4669_v25  ;;  %v4673_v35 = vmul.f32 0.7978846, %v4665_v41  ;;  %v4675_v63 = vmul.f32 0.7978846, %v4667_v56  ;;  %v4629_v17 = vmul.f32 0.5, %v8786_v22  ;;  %v4313_v25 = vpop.xlane.xlu0 %4312 }
 0xa46   : > { %7146 = vtanh.f32 %v4671_v27  ;;  %v4674_v4 = vmul.f32 0.7978846, %v4666_v11  ;;  %v4676_v16 = vmul.f32 0.7978846, %v4668_v55  ;;  %v4633_v8 = vmul.f32 0.5, %v4582_v32  ;;  %v4315_v32 = vpop.xlane.xlu1 %4314 }
 0xa47   : > { %7148 = vtanh.f32 %v4673_v35  ;;  %v4631_v51 = vmul.f32 0.5, %v8788_v15  ;;  %v4635_v40 = vmul.f32 0.5, %v4625_v1  ;;  %v4630_v21 = vmul.f32 0.5, %v8790_v49  ;;  %v6996_v11 = vld [vmem:[#allocation17 + $0x24] ss:$16 sps:$4 sm:$0xff]  }
 0xa48   : > { %7150 = vtanh.f32 %v4675_v63  ;;  %v4634_v39 = vmul.f32 0.5, %v8798_v10  ;;  %v4632_v23 = vmul.f32 0.5, %v8792_v53  ;;  %v4636_v15 = vmul.f32 0.5, %v8800_v33  ;;  %v6991_v43 = vld [vmem:[#allocation17 + $0x8] ss:$16 sps:$4 sm:$0xff]  }
 0xa49   : > { %7152 = vtanh.f32 %v4670_v7  ;;  %v4317_v27 = vmul.f32 0.0078125, %v4315_v32  ;;  %v4316_v35 = vmul.f32 0.0078125, %v4313_v25  ;;  %v6999_v53 = vld [vmem:[#allocation17 + $0x2c] ss:$16 sps:$4 sm:$0xff]   ;;  %v6994_v7 = vld [vmem:[#allocation17 + $0x20] ss:$16 sps:$4 sm:$0xff]  }
 0xa4a   : > { %7154 = vtanh.f32 %v4674_v4  ;;  %v7002_v4 = vld [vmem:[#allocation17 + $0x44] ss:$16 sps:$4 sm:$0xff]   ;;  %v7030_v32 = vld [vmem:[#allocation17 + $0xe0] ss:$16 sps:$4 sm:$0xff]   ;;  %v7042_v25 = vld [vmem:[#allocation19 + $0x8] sm:$0xff]  }
 0xa4b   : > { %7156 = vtanh.f32 %v4672_v29  ;;  %v4319_v33 = vadd.f32 1e-06, %v4317_v27  ;;  %v4318_v55 = vadd.f32 1e-06, %v4316_v35  ;;  %v6997_v29 = vld [vmem:[#allocation17 + $0x28] ss:$16 sps:$4 sm:$0xff]  }
 0xa4c   : > { %7158 = vtanh.f32 %v4676_v16  ;;  %v7005_v16 = vld [vmem:[#allocation17 + $0x4c] ss:$16 sps:$4 sm:$0xff]  }
 0xa4d   : > { %7160 = vrsqrt.f32 %v4319_v33  ;;  %v7043_v27 = vld [vmem:[#allocation19 + $0x88] sm:$0xff]   ;;  %v7050_v35 = vld [vmem:[#allocation19 + $0x18] sm:$0xff]   ;;  %v7054_v33 = vld [vmem:[#allocation19 + $0x20] sm:$0xff]  }
 0xa4e   : > { %7162 = vrsqrt.f32 %v4318_v55  ;;  %v7057_v55 = vld [vmem:[#allocation19 + $0xe8] sm:$0xff]  }
 0xa4f   : > { %v7145_v50 = vpop.eup %7144 }
 0xa50   : > { %v7147_v48 = vpop.eup %7146  ;;  %v4685_v0 = vadd.f32 1.0, %v7145_v50  ;;  %v7000_v50 = vld [vmem:[#allocation17 + $0x40] ss:$16 sps:$4 sm:$0xff]  }
 0xa51   : > { %v7149_v2 = vpop.eup %7148  ;;  %v4687_v5 = vadd.f32 1.0, %v7147_v48  ;;  %v7008_v48 = vld [vmem:[#allocation17 + $0x64] ss:$16 sps:$4 sm:$0xff]  }
 0xa52   : > { %v7151_v59 = vpop.eup %7150  ;;  %v4689_v47 = vadd.f32 1.0, %v7149_v2  ;;  %v4693_v45 = vmul.f32 %v4685_v0, %v4629_v17  ;;  %v7003_v0 = vld [vmem:[#allocation17 + $0x48] ss:$16 sps:$4 sm:$0xff]   ;;  %v7011_v2 = vld [vmem:[#allocation17 + $0x6c] ss:$16 sps:$4 sm:$0xff]  }
 0xa53   : > { %v7153_v12 = vpop.eup %7152  ;;  %v4691_v13 = vadd.f32 1.0, %v7151_v59  ;;  %v4695_v26 = vmul.f32 %v4687_v5, %v4631_v51  ;;  %v7006_v5 = vld [vmem:[#allocation17 + $0x60] ss:$16 sps:$4 sm:$0xff]   ;;  %v7014_v59 = vld [vmem:[#allocation17 + $0x84] ss:$16 sps:$4 sm:$0xff]  }
 0xa54   : > { %v7155_v20 = vpop.eup %7154  ;;  %v4686_v18 = vadd.f32 1.0, %v7153_v12  ;;  %v4697_v61 = vmul.f32 %v4689_v47, %v4633_v8  ;;  %v7009_v17 = vld [vmem:[#allocation17 + $0x68] ss:$16 sps:$4 sm:$0xff]   ;;  %v7017_v8 = vld [vmem:[#allocation17 + $0x8c] ss:$16 sps:$4 sm:$0xff]  }
 0xa55   : > { %v7157_v60 = vpop.eup %7156  ;;  %v4690_v24 = vadd.f32 1.0, %v7155_v20  ;;  %v4699_v44 = vmul.f32 %v4691_v13, %v4635_v40  ;;  %v7020_v47 = vld [vmem:[#allocation17 + $0xa4] ss:$16 sps:$4 sm:$0xff]   ;;  %v7015_v51 = vld [vmem:[#allocation17 + $0x88] ss:$16 sps:$4 sm:$0xff]  }
 0xa56   : > { %v7159_v22 = vpop.eup %7158  ;;  %v4688_v1 = vadd.f32 1.0, %v7157_v60  ;;  %v4701_v34 = vpack.c.bf16 %v4697_v61, %v4693_v45  ;;  %v4694_v37 = vmul.f32 %v4686_v18, %v4630_v21  ;;  %v7023_v40 = vld [vmem:[#allocation17 + $0xac] ss:$16 sps:$4 sm:$0xff]   ;;  %v7018_v20 = vld [vmem:[#allocation17 + $0xa0] ss:$16 sps:$4 sm:$0xff]  }
 0xa57   : > { %v4698_v38 = vmul.f32 %v4690_v24, %v4634_v39  ;;  %v4692_v49 = vadd.f32 1.0, %v7159_v22  ;;  %v4703_v9 = vpack.c.bf16 %v4699_v44, %v4695_v26  ;;  %v7161_v12 = vpop.eup %7160  ;;  %v7026_v18 = vld [vmem:[#allocation17 + $0xc4] ss:$16 sps:$4 sm:$0xff]   ;;  %v7021_v45 = vld [vmem:[#allocation17 + $0xa8] ss:$16 sps:$4 sm:$0xff]  }
 0xa58   : > { %v4696_v56 = vmul.f32 %v4688_v1, %v4632_v23  ;;  %v7163_v13 = vpop.eup %7162  ;;  %v4323_v21 = vmul.f32 %v7161_v12, %v8753_v62  ;;  %v7029_v60 = vld [vmem:[#allocation17 + $0xcc] ss:$16 sps:$4 sm:$0xff]   ;;  %v7024_v39 = vld [vmem:[#allocation17 + $0xc0] ss:$16 sps:$4 sm:$0xff]   ;;  %v7032_v24 = vld [vmem:[#allocation17 + $0xe4] ss:$16 sps:$4 sm:$0xff]  }
 0xa59   : > { %v4702_v41 = vpack.c.bf16 %v4698_v38, %v4694_v37  ;;  %v4700_v10 = vmul.f32 %v4692_v49, %v4636_v15  ;;  %v4322_v61 = vmul.f32 %v7163_v13, %v8750_v31  ;;  %v7027_v44 = vld [vmem:[#allocation17 + $0xc8] ss:$16 sps:$4 sm:$0xff]   ;;  %v7035_v22 = vld [vmem:[#allocation17 + $0xec] ss:$16 sps:$4 sm:$0xff]   ;;  %v7037_v37 = vld [vmem:[#allocation19 + $0xc0] sm:$0xff]  }
 0xa5a   : > { %v4325_v26 = vmul.f32 %v8760_v36, %v4323_v21  ;;  %v7033_v31 = vld [vmem:[#allocation17 + $0xe8] ss:$16 sps:$4 sm:$0xff]   ;;  %v7038_v38 = vld [vmem:[#allocation19] sm:$0xff]  }
 0xa5b   : > { %5000 = vmatprep.mubr.bf16.mxu0 %v4702_v41  ;;  %v4704_v63 = vpack.c.bf16 %v4700_v10, %v4696_v56  ;;  %v4324_v62 = vmul.f32 %v8760_v36, %v4322_v61  ;;  %v7039_v49 = vld [vmem:[#allocation19 + $0x80] sm:$0xff]   ;;  %v7040_v36 = vld [vmem:[#allocation19 + $0x48] sm:$0xff]   ;;  %v7045_v41 = vld [vmem:[#allocation19 + $0xd0] sm:$0xff]  }
 0xa5c   : > { %5001 = vmatmul.mubr.bf16.vlgmr.msra.gmra.mrb[32].mxu0 %v4701_v34  ;;  %v4327_v23 = vadd.f32 %v8766_v58, %v4325_v26  ;;  %v7036_v34 = vld [vmem:[#allocation19 + $0x40] sm:$0xff]   ;;  %v7046_v56 = vld [vmem:[#allocation19 + $0x10] sm:$0xff]  }
 0xa5d   : > { %5041 = vmatprep.mubr.bf16.mxu1 %v4704_v63  ;;  %5265 = vmatpush1.bf16.msra.mxu0 %v6988_v6  ;;  %v4326_v15 = vadd.f32 %v8766_v58, %v4324_v62  ;;  %v7044_v58 = vld [vmem:[#allocation19 + $0x50] sm:$0xff]   ;;  %v7048_v6 = vld [vmem:[#allocation19 + $0x58] sm:$0xff]  }
 0xa5e   : > { %5042 = vmatmul.mubr.bf16.vlgmr.msra.gmra.mrb[32].mxu1 %v4703_v9  ;;  %5266 = vmatprep.subr.bf16.mxu0 %v6996_v11  ;;  %v7041_v9 = vld [vmem:[#allocation19 + $0xc8] sm:$0xff]   ;;  %v7047_v10 = vld [vmem:[#allocation19 + $0x90] sm:$0xff]   ;;  %v7049_v11 = vld [vmem:[#allocation19 + $0xd8] sm:$0xff]  }
 0xa5f   : > { %5308 = vmatpush1.bf16.msra.mxu1 %v6991_v43  ;;  %5296 = vmatprep.mubr.bf16.mxu0 %v7568_v46  ;;  %v4328_v1 = vpack.c.bf16 %v4327_v23, %v4326_v15  ;;  %v7051_v63 = vld [vmem:[#allocation19 + $0x98] sm:$0xff]   ;;  %v7052_v43 = vld [vmem:[#allocation19 + $0x60] sm:$0xff]  }
 0xa60   : > { %5309 = vmatprep.subr.bf16.mxu1 %v6999_v53  ;;  %5339 = vmatprep.mubr.bf16.mxu1 %v7568_v46  ;;  %v7012_v46 = vld [vmem:[#allocation17 + $0x80] ss:$16 sps:$4 sm:$0xff]  }
 0xa61   : > { %5267 = vmatpush1.bf16.msra.mxu0 %v6994_v7  ;;  %v7053_v53 = vld [vmem:[#allocation19 + $0xe0] sm:$0xff]  }
 0xa62   : > { %5268 = vmatprep.subr.bf16.mxu0 %v7002_v4  ;;  %v7055_v7 = vld [vmem:[#allocation19 + $0xa0] sm:$0xff]   ;;  %v7056_v4 = vld [vmem:[#allocation19 + $0x68] sm:$0xff]  }
 0xa63   : > { %5310 = vmatpush1.bf16.msra.mxu1 %v6997_v29  ;;  %v7058_v29 = vld [vmem:[#allocation19 + $0x28] sm:$0xff]  }
 0xa64   : > { %5311 = vmatprep.subr.bf16.mxu1 %v7005_v16  ;;  %v7059_v16 = vld [vmem:[#allocation19 + $0xa8] sm:$0xff]  }
 0xa65   : > { %5269 = vmatpush1.bf16.msra.mxu0 %v7000_v50  ;;  %v7060_v50 = vld [vmem:[#allocation19 + $0x70] sm:$0xff]  }
 0xa66   : > { %5270 = vmatprep.subr.bf16.mxu0 %v7008_v48  ;;  %v7061_v48 = vld [vmem:[#allocation19 + $0xf0] sm:$0xff]  }
 0xa67   : > { %5312 = vmatpush1.bf16.msra.mxu1 %v7003_v0  ;;  %v7062_v0 = vld [vmem:[#allocation19 + $0x30] sm:$0xff]  }
 0xa68   : > { %5313 = vmatprep.subr.bf16.mxu1 %v7011_v2  ;;  %v7063_v2 = vld [vmem:[#allocation19 + $0xb0] sm:$0xff]  }
 0xa69   : > { %5271 = vmatpush1.bf16.msra.mxu0 %v7006_v5  ;;  %v7064_v5 = vld [vmem:[#allocation19 + $0x78] sm:$0xff]  }
 0xa6a   : > { %5272 = vmatprep.subr.bf16.mxu0 %v7014_v59  ;;  %v7065_v59 = vld [vmem:[#allocation19 + $0xf8] sm:$0xff]  }
 0xa6b   : > { %5314 = vmatpush1.bf16.msra.mxu1 %v7009_v17  ;;  %v7066_v17 = vld [vmem:[#allocation19 + $0x38] sm:$0xff]  }
 0xa6c   : > { %5315 = vmatprep.subr.bf16.mxu1 %v7017_v8  ;;  %v7067_v8 = vld [vmem:[#allocation19 + $0xb8] sm:$0xff]  }
 0xa6d   : > { %5273 = vmatpush1.bf16.msra.mxu0 %v7012_v46 }
 0xa6e   : > { %5274 = vmatprep.subr.bf16.mxu0 %v7020_v47  ;;  %v6205_v47 = vld [vmem:[%s9069_s16] ss:$0 sm:$0xff]  ;;  %s7575_s16 = smov [#allocation20]  }
 0xa6f   : > { %5316 = vmatpush1.bf16.msra.mxu1 %v7015_v51 }
 0xa70   : > { %5317 = vmatprep.subr.bf16.mxu1 %v7023_v40 }
 0xa71   : > { %5275 = vmatpush1.bf16.msra.mxu0 %v7018_v20 }
 0xa72   : > { %5276 = vmatprep.subr.bf16.mxu0 %v7026_v18 }
 0xa73   : > { %5318 = vmatpush1.bf16.msra.mxu1 %v7021_v45 }
 0xa74   : > { %5319 = vmatprep.subr.bf16.mxu1 %v7029_v60 }
 0xa75   : > { %5277 = vmatpush1.bf16.msra.mxu0 %v7024_v39  ;;  %v8840_v39 = vld [vmem:[%s8036_s10 + $0x5] ss:$0 sm:$0xff]  ;;  %s9070_s10 = sld [smem:[#allocation36_spill]] }
 0xa76   : > { %5278 = vmatprep.subr.bf16.mxu0 %v7032_v24 }
 0xa77   : > { %5320 = vmatpush1.bf16.msra.mxu1 %v7027_v44 }
 0xa78   : > { %5321 = vmatprep.subr.bf16.mxu1 %v7035_v22 }
 0xa79   : > { %5279 = vmatpush1.bf16.msra.mxu0 %v7030_v32 }
 0xa7a   : > { %6434 = vmatprep.subr.bf16.mxu0 %v7036_v34 }
 0xa7b   : > { %5322 = vmatpush1.bf16.msra.mxu1 %v7033_v31 }
 0xa7c   : > { %5297 = vmatmul.mubr.bf16.vlgmr.msra.gmra.mrb[36].mxu0 %v4328_v1  ;;  %6456 = vmatprep.subr.bf16.mxu1 %v7037_v37 }
 0xa7d   : > { %6435 = vmatpush3.bf16.msra.mxu0 %v7038_v38 }
 0xa7e   : > { %5340 = vmatmul.mubr.bf16.vlgmr.msra.gmra.mrb[36].mxu1 %v4328_v1  ;;  %6436 = vmatprep.subr.bf16.mxu0 %v7040_v36  ;;  %v5082_v1 = vld [vmem:[%s9070_s10] sm:$0xf] }
 0xa7f   : > { %6457 = vmatpush3.bf16.msra.mxu1 %v7039_v49  ;;  %v5087_v34 = vrot.slane %v5082_v1, %v4365_v14  ;;  %v5095_v37 = vrot.slane %v5082_v1, %v4373_v42  ;;  %v5099_v49 = vrot.slane %v5082_v1, %v4377_v19 }
 0xa80   : > { %6458 = vmatprep.subr.bf16.mxu1 %v7041_v9 }
 0xa81   : > { %6437 = vmatpush3.bf16.msra.mxu0 %v7042_v25 }
 0xa82   : > { %6438 = vmatprep.subr.bf16.mxu0 %v7044_v58 }
 0xa83   : > { %6459 = vmatpush3.bf16.msra.mxu1 %v7043_v27 }
 0xa84   : > { %6460 = vmatprep.subr.bf16.mxu1 %v7045_v41 }
 0xa85   : > { %6439 = vmatpush3.bf16.msra.mxu0 %v7046_v56 }
 0xa86   : > { %6440 = vmatprep.subr.bf16.mxu0 %v7048_v6 }
 0xa87   : > { %6461 = vmatpush3.bf16.msra.mxu1 %v7047_v10 }
 0xa88   : > { %6462 = vmatprep.subr.bf16.mxu1 %v7049_v11 }
 0xa89   : > { %6441 = vmatpush3.bf16.msra.mxu0 %v7050_v35 }
 0xa8a   : > { %6442 = vmatprep.subr.bf16.mxu0 %v7052_v43 }
 0xa8b   : > { %6463 = vmatpush3.bf16.msra.mxu1 %v7051_v63 }
 0xa8c   : > { %6464 = vmatprep.subr.bf16.mxu1 %v7053_v53 }
 0xa8d   : > { %6443 = vmatpush3.bf16.msra.mxu0 %v7054_v33 }
 0xa8e   : > { %6444 = vmatprep.subr.bf16.mxu0 %v7056_v4 }
 0xa8f   : > { %6465 = vmatpush3.bf16.msra.mxu1 %v7055_v7 }
 0xa90   : > { %6466 = vmatprep.subr.bf16.mxu1 %v7057_v55 }
 0xa91   : > { %6445 = vmatpush3.bf16.msra.mxu0 %v7058_v29 }
 0xa92   : > { %6446 = vmatprep.subr.bf16.mxu0 %v7060_v50 }
 0xa93   : > { %6467 = vmatpush3.bf16.msra.mxu1 %v7059_v16 }
 0xa94   : > { %6468 = vmatprep.subr.bf16.mxu1 %v7061_v48 }
 0xa95   : > { %6447 = vmatpush3.bf16.msra.mxu0 %v7062_v0 }
 0xa96   : > { %6448 = vmatprep.subr.bf16.mxu0 %v7064_v5 }
 0xa97   : > { %6469 = vmatpush3.bf16.msra.mxu1 %v7063_v2 }
 0xa98   : > { %6470 = vmatprep.subr.bf16.mxu1 %v7065_v59 }
 0xa99   : > { %6449 = vmatpush3.bf16.msra.mxu0 %v7066_v17 }
 0xa9b   : > { %6471 = vmatpush3.bf16.msra.mxu1 %v7067_v8 }
 0xb2f   : > { %v6406_v46 = vpop.f32.mrb[32].mxu0 }
 0xb30   : > { %v6407_v12 = vpop.f32.mrb[33].mxu0 }
 0xb31   : > { %v6428_v51 = vpop.f32.mrb[32].mxu1  ;;  %v6408_v40 = vadd.f32 %v6407_v12, %v6406_v46  ;;  %v6409_v13 = vpop.f32.mrb[34].mxu0 }
 0xb32   : > { %v6429_v20 = vpop.f32.mrb[33].mxu1  ;;  %v6410_v21 = vpop.f32.mrb[35].mxu0 }
 0xb33   : > { %v5003_v18 = vadd.f32 %v6408_v40, %v6205_v47  ;;  %v6430_v45 = vadd.f32 %v6429_v20, %v6428_v51  ;;  %v6431_v61 = vpop.f32.mrb[34].mxu1  ;;  %v6411_v60 = vadd.f32 %v6410_v21, %v6409_v13 }
 0xb34   : > { %v6432_v24 = vpop.f32.mrb[35].mxu1 }
 0xb35   : > { %v5044_v26 = vadd.f32 %v6430_v45, %v5003_v18  ;;  %v5006_v44 = vadd.f32 %v6411_v60, %v6205_v47  ;;  %v6433_v22 = vadd.f32 %v6432_v24, %v6431_v61 }
 0xb37   : > { %v5775_v62 = vmul.f32 %v8840_v39, %v5044_v26  ;;  %v5047_v32 = vadd.f32 %v6433_v22, %v5006_v44 }
 0xb39   : > { %v5777_v23 = vadd.f32 %v5775_v62, %v8039_v54  ;;  %v5776_v31 = vmul.f32 %v8840_v39, %v5047_v32  ;;  %v5091_v54 = vrot.slane %v5082_v1, %v4369_v52 }
 0xb3b   : > { %5779 = vst [vmem:[%s8846_s3] sm:$0xff] %v5777_v23  ;;  %v5778_v15 = vadd.f32 %v5776_v31, %v8045_v57 }
 0xb3d   : > { %5780 = vst [vmem:[%s8846_s3 + $0x8] sm:$0xff] %v5778_v15  ;;  %s7438_s3 = sshll.u32 %s7575_s16, 4  ;;  %s7439_s3 = int_to_ptr.vmem [resolvable:$false] %s7438_s3 }
 0xb3e   : > { %s7440_s26 = scalar_lea.vmem %s7439_s3, 512  ;;  %p7441_p8 = scmp.lt.s32.totalorder %s8913_s2, %s7439_s3 }
 0xb3f   : > { %p7442_p7 = scmp.lt.s32.totalorder %s7440_s26, %s7434_s0 }
 0xb41   : > { %p7443_p9 = por %p7442_p7, %p7441_p8 }
 0xb43   : > { %p7444_p4 = pnand %p7443_p9, %p7437_p13 }
 0xb4f   : > { %v5298_v38 = vpop.f32.mrb[36].mxu0 }
 0xb50   : > { %v8862_v36 = vadd.f32 %v5298_v38, %v5087_v34  ;;  %v5300_v57 = vpop.f32.mrb[37].mxu0 }
 0xb51   : > { %v5341_v9 = vpop.f32.mrb[36].mxu1  ;;  %v8864_v25 = vadd.f32 %v5300_v57, %v5091_v54  ;;  %v5302_v27 = vpop.f32.mrb[38].mxu0 }
 0xb52   : > { %v5358_v58 = vmul.f32 0.044715, %v8862_v36  ;;  %v8867_v14 = vadd.f32 %v5341_v9, %v5095_v37  ;;  %v5343_v41 = vpop.f32.mrb[37].mxu1  ;;  %v5303_v52 = vadd.f32 %v5302_v27, %v5087_v34  ;;  %v5304_v56 = vpop.f32.mrb[39].mxu0  ;;  %v5350_v57 = vmul.f32 0.5, %v8862_v36 }
 0xb53   : > { %v5359_v42 = vmul.f32 0.044715, %v8864_v25  ;;  %v8870_v10 = vadd.f32 %v5343_v41, %v5099_v49  ;;  %v5345_v3 = vpop.f32.mrb[38].mxu1  ;;  %v8872_v19 = vadd.f32 %v5304_v56, %v5091_v54 }
 0xb54   : > { %v5366_v6 = vmul.f32 %v5358_v58, %v8862_v36  ;;  %v5360_v11 = vmul.f32 0.044715, %v8867_v14  ;;  %v5362_v35 = vmul.f32 0.044715, %v5303_v52  ;;  %v5346_v63 = vadd.f32 %v5345_v3, %v5095_v37  ;;  %v5347_v43 = vpop.f32.mrb[39].mxu1 }
 0xb55   : > { %v5367_v53 = vmul.f32 %v5359_v42, %v8864_v25  ;;  %v5361_v33 = vmul.f32 0.044715, %v8870_v10  ;;  %v5363_v7 = vmul.f32 0.044715, %v8872_v19  ;;  %v8879_v4 = vadd.f32 %v5347_v43, %v5099_v49 }
 0xb56   : > { %v5374_v55 = vmul.f32 %v5366_v6, %v8862_v36  ;;  %v5368_v29 = vmul.f32 %v5360_v11, %v8867_v14  ;;  %v5370_v16 = vmul.f32 %v5362_v35, %v5303_v52  ;;  %v5364_v50 = vmul.f32 0.044715, %v5346_v63 }
 0xb57   : > { %v5375_v48 = vmul.f32 %v5367_v53, %v8864_v25  ;;  %v5369_v0 = vmul.f32 %v5361_v33, %v8870_v10  ;;  %v5371_v2 = vmul.f32 %v5363_v7, %v8872_v19  ;;  %v5365_v5 = vmul.f32 0.044715, %v8879_v4 }
 0xb58   : > { %v5382_v59 = vadd.f32 %v5374_v55, %v8862_v36  ;;  %v5376_v17 = vmul.f32 %v5368_v29, %v8867_v14  ;;  %v5378_v8 = vmul.f32 %v5370_v16, %v5303_v52  ;;  %v5372_v46 = vmul.f32 %v5364_v50, %v5346_v63 }
 0xb59   : > { %v5377_v47 = vmul.f32 %v5369_v0, %v8870_v10  ;;  %v5379_v12 = vmul.f32 %v5371_v2, %v8872_v19  ;;  %v5373_v51 = vmul.f32 %v5365_v5, %v8879_v4  ;;  %v5383_v45 = vadd.f32 %v5375_v48, %v8864_v25 }
 0xb5a   : > { %v5390_v40 = vmul.f32 0.7978846, %v5382_v59  ;;  %v5384_v13 = vadd.f32 %v5376_v17, %v8867_v14  ;;  %v5386_v20 = vadd.f32 %v5378_v8, %v5303_v52  ;;  %v5380_v21 = vmul.f32 %v5372_v46, %v5346_v63 }
 0xb5b   : > { %v5381_v18 = vmul.f32 %v5373_v51, %v8879_v4  ;;  %v5387_v61 = vadd.f32 %v5379_v12, %v8872_v19  ;;  %v5391_v44 = vmul.f32 0.7978846, %v5383_v45  ;;  %v5385_v22 = vadd.f32 %v5377_v47, %v8870_v10 }
 0xb5c   : > { %7164 = vtanh.f32 %v5390_v40  ;;  %v5392_v60 = vmul.f32 0.7978846, %v5384_v13  ;;  %v5394_v24 = vmul.f32 0.7978846, %v5386_v20  ;;  %v5388_v26 = vadd.f32 %v5380_v21, %v5346_v63 }
 0xb5d   : > { %v5395_v32 = vmul.f32 0.7978846, %v5387_v61  ;;  %v5389_v23 = vadd.f32 %v5381_v18, %v8879_v4  ;;  %v5393_v31 = vmul.f32 0.7978846, %v5385_v22  ;;  %v5354_v9 = vmul.f32 0.5, %v5303_v52 }
 0xb5e   : > { %7166 = vtanh.f32 %v5392_v60  ;;  %v5396_v62 = vmul.f32 0.7978846, %v5388_v26  ;;  %v5352_v41 = vmul.f32 0.5, %v8867_v14  ;;  %v5356_v56 = vmul.f32 0.5, %v5346_v63 }
 0xb5f   : > { %7168 = vtanh.f32 %v5394_v24  ;;  %v5397_v15 = vmul.f32 0.7978846, %v5389_v23  ;;  %v5351_v6 = vmul.f32 0.5, %v8864_v25  ;;  %v5355_v33 = vmul.f32 0.5, %v8872_v19 }
 0xb60   : > { %7170 = vtanh.f32 %v5396_v62  ;;  %v5353_v52 = vmul.f32 0.5, %v8870_v10  ;;  %v5357_v14 = vmul.f32 0.5, %v8879_v4 }
 0xb61   : > { %7172 = vtanh.f32 %v5391_v44 }
 0xb62   : > { %7174 = vtanh.f32 %v5395_v32 }
 0xb63   : > { %7176 = vtanh.f32 %v5393_v31 }
 0xb64   : > { %7178 = vtanh.f32 %v5397_v15 }
 0xb66   : > { %v7165_v1 = vpop.eup %7164 }
 0xb67   : > { %v5406_v54 = vadd.f32 1.0, %v7165_v1 }
 0xb68   : > { %v7167_v34 = vpop.eup %7166 }
 0xb69   : > { %v7169_v37 = vpop.eup %7168  ;;  %v5408_v38 = vadd.f32 1.0, %v7167_v34  ;;  %v5414_v35 = vmul.f32 %v5406_v54, %v5350_v57 }
 0xb6a   : > { %v7171_v49 = vpop.eup %7170  ;;  %v5410_v27 = vadd.f32 1.0, %v7169_v37 }
 0xb6b   : > { %v7173_v58 = vpop.eup %7172  ;;  %v5412_v42 = vadd.f32 1.0, %v7171_v49  ;;  %v5416_v55 = vmul.f32 %v5408_v38, %v5352_v41 }
 0xb6c   : > { %v7175_v3 = vpop.eup %7174  ;;  %v5407_v11 = vadd.f32 1.0, %v7173_v58  ;;  %v5418_v43 = vmul.f32 %v5410_v27, %v5354_v9 }
 0xb6d   : > { %v7177_v53 = vpop.eup %7176  ;;  %v5411_v7 = vadd.f32 1.0, %v7175_v3  ;;  %v5420_v29 = vmul.f32 %v5412_v42, %v5356_v56 }
 0xb6e   : > { %v7179_v36 = vpop.eup %7178  ;;  %v5409_v63 = vadd.f32 1.0, %v7177_v53  ;;  %v5422_v16 = vpack.c.bf16 %v5418_v43, %v5414_v35  ;;  %v5415_v25 = vmul.f32 %v5407_v11, %v5351_v6 }
 0xb6f   : > { %v5419_v50 = vmul.f32 %v5411_v7, %v5355_v33  ;;  %v5413_v48 = vadd.f32 1.0, %v7179_v36  ;;  %v5424_v0 = vpack.c.bf16 %v5420_v29, %v5416_v55 }
 0xb70   : > { %v5417_v2 = vmul.f32 %v5409_v63, %v5353_v52 }
 0xb71   : > { %v5423_v19 = vpack.c.bf16 %v5419_v50, %v5415_v25  ;;  %v5421_v5 = vmul.f32 %v5413_v48, %v5357_v14 }
 0xb73   : > { %5721 = vmatprep.mubr.bf16.mxu0 %v5423_v19  ;;  %v5425_v59 = vpack.c.bf16 %v5421_v5, %v5417_v2 }
 0xb74   : > { %5722 = vmatmul.mubr.bf16.vlgmr.msra.gmra.mrb[40].mxu0 %v5422_v16 }
 0xb75   : > { %5762 = vmatprep.mubr.bf16.mxu1 %v5425_v59 }
 0xb76   : > { %5763 = vmatmul.mubr.bf16.vlgmr.msra.gmra.mrb[40].mxu1 %v5424_v0 }
 0xb77   : > { %7447 = shalt.err (!%p7444_p4)
}
 0xb78   : > { %s7448_s15 = scalar_lea.hbm %s8911_s20, 256  ;;  %s7452_s30 = scalar_lea.hbm %s9071_s19, 512 }
 0xb79   : > { %p7449_p3 = scmp.ne.s32.totalorder %s8911_s20, %s7448_s15  ;;  %p7453_p6 = scmp.lt.u32.totalorder %s8911_s20, %s9071_s19 }
 0xb7a   : > { %p7454_p5 = scmp.lt.u32.totalorder %s7452_s30, %s7448_s15  ;;  %p7456_p1 = scmp.lt.u32.totalorder %s7448_s15, %s8911_s20 }
 0xb7b   : > { %p7450_p0 = pnand %p7449_p3, %p9072_p11 }
 0xb7c   : > { %p7455_p10 = por %p7454_p5, %p7453_p6 }
 0xb7d   : > { %p7451_p2 = pneg %p7450_p0 }
 0xb7e   : > { %p7457_p12 = por %p7456_p1, %p7455_p10 }
 0xb80   : > { %p7458_p13 = pnand %p7457_p12, %p7451_p2 }
 0xb82   : > { %7461 = shalt.err (!%p7458_p13)
}
 0xb83   : > { %s7576_s0 = smov 128   ;;  %s7577_s26 = smov 8  }
 0xb84   : > { %6712 = dma.vmem_to_hbm [thread:$0]  (%p9072_p11), %s8913_s2, 256, %s8911_s20, %s5788_s17, %s7576_s0, %s7576_s0, %s7577_s26  }
 0xb85   : > { %s9073_s30 = sld [smem:[#allocation37_spill]]  ;;  %s694_s2 = scalar_lea.vmem [#allocation21], %s7972_s5 }
 0xb86   : > { %s5822_s20 = sshll.u32 %s694_s2, 4  ;;  %s9074_s16 = sld [smem:[#allocation39_spill]]  ;;  %s8957_s20 = int_to_ptr.vmem [resolvable:$true] %s5822_s20 }
 0xb87   : > { %s5793_s5 = scalar_lea.sflag [#allocation22], %s7969_s8  ;;  %s7462_s10 = scalar_lea.vmem %s8957_s20, 256 }
 0xb88   : > { %p7463_p8 = scmp.ne.s32.totalorder %s8957_s20, %s7462_s10  ;;  %s7578_s28 = smov [#allocation21]  }
 0xb8a   : > { %p7464_p7 = pnand %p7463_p8, %p9072_p11 }
 0xb8b   : > { %v6270_v4 = vld [vmem:[%s9073_s30] ss:$0 sm:$0xff]  ;;  %s7466_s30 = sshll.u32 %s7578_s28, 4  ;;  %s7467_s30 = int_to_ptr.vmem [resolvable:$false] %s7466_s30 }
 0xb8c   : > { %s8955_s3 = scalar_lea.hbm %s9074_s16, %s6314_s12  ;;  %p7465_p9 = pneg %p7464_p7 }
 0xb8d   : > { %s7468_s27 = scalar_lea.vmem %s7467_s30, 512  ;;  %p7469_p4 = scmp.lt.s32.totalorder %s8957_s20, %s7467_s30 }
 0xb8e   : > { %p7470_p3 = scmp.lt.s32.totalorder %s7468_s27, %s7462_s10 }
 0xb90   : > { %p7471_p0 = por %p7470_p3, %p7469_p4 }
 0xb92   : > { %p7472_p2 = pnand %p7471_p0, %p7465_p9 }
 0xc47   : > { %v6450_v10 = vpop.f32.mrb[40].mxu0 }
 0xc48   : > { %v6451_v17 = vpop.f32.mrb[41].mxu0 }
 0xc49   : > { %v6472_v8 = vpop.f32.mrb[40].mxu1  ;;  %v6452_v46 = vadd.f32 %v6451_v17, %v6450_v10  ;;  %v6453_v47 = vpop.f32.mrb[42].mxu0 }
 0xc4a   : > { %v6473_v12 = vpop.f32.mrb[41].mxu1  ;;  %v6454_v51 = vpop.f32.mrb[43].mxu0 }
 0xc4b   : > { %v5724_v40 = vadd.f32 %v6452_v46, %v6270_v4  ;;  %v6474_v13 = vadd.f32 %v6473_v12, %v6472_v8  ;;  %v6475_v20 = vpop.f32.mrb[42].mxu1  ;;  %v6455_v21 = vadd.f32 %v6454_v51, %v6453_v47 }
 0xc4c   : > { %v6476_v18 = vpop.f32.mrb[43].mxu1 }
 0xc4d   : > { %v5765_v45 = vadd.f32 %v6474_v13, %v5724_v40  ;;  %v5727_v61 = vadd.f32 %v6455_v21, %v6270_v4  ;;  %v6477_v60 = vadd.f32 %v6476_v18, %v6475_v20 }
 0xc4f   : > { %v5781_v24 = vmul.f32 %v8840_v39, %v5765_v45  ;;  %v5768_v26 = vadd.f32 %v6477_v60, %v5727_v61 }
 0xc51   : > { %v5783_v44 = vadd.f32 %v5781_v24, %v8068_v30  ;;  %v5782_v22 = vmul.f32 %v8840_v39, %v5768_v26 }
 0xc53   : > { %5785 = vst [vmem:[%s694_s2] sm:$0xff] %v5783_v44  ;;  %v5784_v62 = vadd.f32 %v5782_v22, %v8064_v28 }
 0xc55   : > { %5786 = vst [vmem:[%s694_s2 + $0x8] sm:$0xff] %v5784_v62 }
 0xc56   : > { %7475 = shalt.err (!%p7472_p2)
}
 0xc57   : > { %s7476_s12 = scalar_lea.hbm %s8955_s3, 256  ;;  %s7480_s15 = scalar_lea.hbm %s9074_s16, 512 }
 0xc58   : > { %p7477_p6 = scmp.ne.s32.totalorder %s8955_s3, %s7476_s12  ;;  %p7481_p1 = scmp.lt.u32.totalorder %s8955_s3, %s9074_s16 }
 0xc59   : > { %p7482_p12 = scmp.lt.u32.totalorder %s7480_s15, %s7476_s12  ;;  %p7484_p8 = scmp.lt.u32.totalorder %s7476_s12, %s8955_s3 }
 0xc5a   : > { %p7478_p5 = pnand %p7477_p6, %p9072_p11 }
 0xc5b   : > { %p7483_p13 = por %p7482_p12, %p7481_p1 }
 0xc5c   : > { %p7479_p10 = pneg %p7478_p5 }
 0xc5d   : > { %p7485_p7 = por %p7484_p8, %p7483_p13 }
 0xc5f   : > { %p7486_p9 = pnand %p7485_p7, %p7479_p10 }
 0xc61   : > { %7489 = shalt.err (!%p7486_p9)
}
 0xc62   : > { %6713 = dma.vmem_to_hbm [thread:$0]  (%p9072_p11), %s8957_s20, 256, %s8955_s3, %s5793_s5, %s7576_s0, %s7576_s0, %s7577_s26  }
 0xc63 PF: > { %s5837_s10 = sand.u32 1, %s7536_s21   ;;  %p9075_p4 = scmp.ne.s32.totalorder %s9055_s18, 0 }
 0xc64   : > { %p9076_p3 = scmp.ge.s32.totalorder %s7548_s24, 2  ;;  %s5838_s27 = scalar_lea.sflag [#allocation7], %s5837_s10 }
 0xc66   : > { %p6746_p0 = pnand %p9076_p3, %p9075_p4 }
 0xc68   : > { %7527 = dma.done.wait (!%p6746_p0), %s5838_s27, 256  }
 0xc69   : > { %7529 = vsyncadd (!%p6746_p0), %s5838_s27, 4294967040  ;;  %s5847_s25 = scalar_lea.sflag [#allocation22], %s5837_s10 }
 0xc6a   : > { %7531 = dma.done.wait (!%p6746_p0), %s5847_s25, 256  }
 0xc6b   : > { %7533 = vsyncadd (!%p6746_p0), %s5847_s25, 4294967040  ;;  %p37_p11 = scmp.ge.s32.totalorder %s7890_s29, 4   ;;  %s9077_s21 = smov %s7540_s22 }
 0xc6c   : > { %s9078_s22 = smov %s7544_s23  ;;  %s9079_s23 = smov %s7901_s14 }
 0xc6d   : > { %s9080_s24 = smov %s7890_s29  ;;  %39 = sbr.rel (!%p37_p11) target bundleno = 22 (0x16), region = 180 }
 0xc74   :  { %5852 = vsyncpa [#allocation6], 1 }
 0xc75   :  { %5854 = vsyncpa [#allocation6 + $0x1], 1 }
 0xc76   :  { %5855 = vsyncpa [#allocation9], 1 }
 0xc77   :  { %5856 = vsyncpa [#allocation12], 1 }
 0xc78   :  { %5857 = vsyncpa [#allocation15], 1 }
 0xc79   :  { %5858 = vsyncpa [#allocation18], 1 }
 0xc7a   :  { %5859 = vsyncpa [#allocation7], 1 }
 0xc7b   :  { %5861 = vsyncpa [#allocation7 + $0x1], 1 }
 0xc7c   :  { %5862 = vsyncpa [#allocation22], 1 }
 0xc7d   :  { %5864 = vsyncpa [#allocation22 + $0x1], 1 }

// kernel: tpu_custom_call.1
= control target key start
LH: loop header
LB: loop body
LE: loop exit
PB: predicated region body
PF: predicated region fallthrough
CT: control target
= control target key end

     0   :  { %s9004_s0 = inlined_call_operand.vmem [shape: f32[2,6,128], index: 0, kind: input, shape index: {}]   ;;  %s9005_s1 = inlined_call_operand.hbm [shape: f32[2,16,128], index: 1, kind: input, shape index: {}]   ;;  %s9006_s2 = inlined_call_operand.vmem [shape: f32[2,16,128], index: 2, kind: input, shape index: {}]   ;;  %s9007_s3 = inlined_call_operand.hbm [shape: bf16[128,384], index: 3, kind: input, shape index: {}]   ;;  %s9008_s4 = inlined_call_operand.hbm [shape: bf16[128,384], index: 4, kind: input, shape index: {}]   ;;  %s9009_s5 = inlined_call_operand.hbm [shape: bf16[4,32,128], index: 5, kind: input, shape index: {}]   ;;  %s9010_s6 = inlined_call_operand.hbm [shape: bf16[4,32,128], index: 6, kind: input, shape index: {}]   ;;  %s9011_s7 = inlined_call_operand.hbm [shape: bf16[128,512], index: 7, kind: input, shape index: {}]   ;;  %s9012_s8 = inlined_call_operand.vmem [shape: f32[1,512], index: 8, kind: input, shape index: {}]   ;;  %s9013_s9 = inlined_call_operand.hbm [shape: bf16[512,128], index: 9, kind: input, shape index: {}]   ;;  %s9014_s10 = inlined_call_operand.vmem [shape: f32[1,128], index: 10, kind: input, shape index: {}]   ;;  %s9015_s11 = inlined_call_operand.hbm [shape: bf16[128,512], index: 11, kind: input, shape index: {}]   ;;  %s9016_s12 = inlined_call_operand.vmem [shape: f32[1,512], index: 12, kind: input, shape index: {}]   ;;  %s9017_s13 = inlined_call_operand.hbm [shape: bf16[512,128], index: 13, kind: input, shape index: {}]   ;;  %s9018_s14 = inlined_call_operand.vmem [shape: f32[1,128], index: 14, kind: input, shape index: {}]   ;;  %s9019_s15 = inlined_call_operand.hbm [shape: f32[2,16,128], index: 15, kind: output, shape index: {0}]   ;;  %s9020_s16 = inlined_call_operand.hbm [shape: f32[2,16,128], index: 16, kind: output, shape index: {1}]  }
   0x1   :  { %9032 = sst [smem:[#allocation30_spill]] %s9004_s0 }
   0x2   :  { %9033 = sst [smem:[#allocation31_spill]] %s9006_s2 }
   0x3   :  { %9034 = sst [smem:[#allocation32_spill]] %s9007_s3 }
   0x4   :  { %9035 = sst [smem:[#allocation33_spill]] %s9009_s5 }
   0x5   :  { %9036 = sst [smem:[#allocation34_spill]] %s9012_s8 }
   0x6   :  { %9037 = sst [smem:[#allocation35_spill]] %s9014_s10 }
   0x7   :  { %9038 = sst [smem:[#allocation36_spill]] %s9016_s12 }
   0x8   :  { %9039 = sst [smem:[#allocation37_spill]] %s9018_s14 }
   0x9   :  { %9040 = sst [smem:[#allocation38_spill]] %s9019_s15 }
   0xa   :  { %9041 = sst [smem:[#allocation39_spill]] %s9020_s16 }
   0xb   :  { %22 = vsyncpa [#allocation6], 0 }
   0xc   :  { %24 = vsyncpa [#allocation6 + $0x1], 0 }
   0xd   :  { %25 = vsyncpa [#allocation9], 0 }
   0xe   :  { %26 = vsyncpa [#allocation12], 0 }
   0xf   :  { %27 = vsyncpa [#allocation15], 0 }
  0x10   :  { %28 = vsyncpa [#allocation18], 0 }
  0x11   :  { %29 = vsyncpa [#allocation7], 0 }
  0x12   :  { %31 = vsyncpa [#allocation7 + $0x1], 0 }
  0x13   :  { %32 = vsyncpa [#allocation22], 0 }
  0x14   :  { %34 = vsyncpa [#allocation22 + $0x1], 0  ;;  %s7664_s21 = smov 0   ;;  %s7666_s22 = smov 0  }
  0x15   :  { %s7668_s23 = smov 0   ;;  %s7670_s24 = smov 0  }
  0x16 LB: > { %s7550_s25 = smov [#allocation8]   ;;  %s7685_s27 = sadd.s32 4294967295, %s7548_s24   ;;  %s7548_s24 = sphi %s7670_s24, %s9080_s24   ;;  %s7544_s23 = sphi %s7668_s23, %s9079_s23   ;;  %s7540_s22 = sphi %s7666_s22, %s9078_s22   ;;  %s7536_s21 = sphi %s7664_s21, %s9077_s21  }
  0x17   : > { %s439_s26 = sshll.u32 %s7550_s25, 4  ;;  %p6028_p0 = scmp.ge.s32.totalorder %s7548_s24, 1  ;;  %s7690_s26 = int_to_ptr.vmem [resolvable:$true] %s439_s26 }
  0x18   : > { %p9024_p1 = scmp.eq.s32.totalorder %s7685_s27, 0  ;;  %p427_p2 = scmp.lt.s32.totalorder %s7548_s24, 3 }
  0x19   : > { %s7551_s29 = smov [#allocation11]   ;;  %s7552_s17 = smov [#allocation14]  }
  0x1a   : > { %p7692_p3 = pnand %p6028_p0, %p427_p2  ;;  %s465_s30 = sshll.u32 %s7551_s29, 4  ;;  %s7705_s30 = int_to_ptr.vmem [resolvable:$true] %s465_s30 }
  0x1b   : > { %s7707_s18 = sshll.u32 %s7552_s17, 4  ;;  %s9044_s3 = sld [smem:[#allocation32_spill]]  ;;  %s492_s18 = int_to_ptr.vmem [resolvable:$true] %s7707_s18 }
  0x1c   : > { %s9042_s28 = scalar_select %p7692_p3, 1, 0 }
  0x1d   : > { %p6716_p5 = pneg %p7692_p3 }
  0x1f   : > { %p7701_p6 = pnand %p6716_p5, %p9024_p1 }
  0x21   : > { %s7180_s25 = scalar_lea.hbm %s9044_s3, 3072  ;;  %p7717_p8 = pneg %p7701_p6 }
  0x22   : > { %p7181_p7 = scmp.ne.s32.totalorder %s9044_s3, %s7180_s25  ;;  %p7187_p11 = scmp.lt.u32.totalorder %s7180_s25, %s9044_s3 }
  0x24   : > { %p7183_p9 = pnand %p7717_p8, %p7181_p7 }
  0x26   : > { %p7184_p10 = pneg %p7183_p9 }
  0x28   : > { %p7189_p12 = pnand %p7187_p11, %p7184_p10 }
  0x2a   : > { %7192 = shalt.err (!%p7189_p12)
}
  0x2b   : > { %s7193_s14 = scalar_lea.vmem %s7690_s26, 3072  ;;  %p7201_p5 = scmp.lt.s32.totalorder %s7690_s26, %s7690_s26 }
  0x2c   : > { %p7194_p13 = scmp.ne.s32.totalorder %s7690_s26, %s7193_s14  ;;  %p7202_p4 = scmp.lt.s32.totalorder %s7193_s14, %s7193_s14 }
  0x2e   : > { %p7196_p0 = pnand %p7194_p13, %p7717_p8  ;;  %p7203_p7 = por %p7202_p4, %p7201_p5 }
  0x30   : > { %p7197_p2 = pneg %p7196_p0 }
  0x32   : > { %p7204_p9 = pnand %p7203_p7, %p7197_p2 }
  0x34   : > { %7207 = shalt.err (!%p7204_p9)
}
  0x35   : > { %s9023_s16 = smov 192   ;;  %s9030_s15 = smov 12  }
  0x36   : > { %6719 = dma.hbm_to_vmem [thread:$0]  (!%p7701_p6), %s9044_s3, 3072, %s7690_s26, [#allocation9], %s9023_s16, %s9023_s16, %s9030_s15  }
  0x37   : > { %s9046_s5 = sld [smem:[#allocation33_spill]] }
  0x3d   : > { %s7208_s14 = scalar_lea.hbm %s9046_s5, 1024 }
  0x3e   : > { %p7209_p4 = scmp.ne.s32.totalorder %s9046_s5, %s7208_s14  ;;  %p7215_p12 = scmp.lt.u32.totalorder %s7208_s14, %s9046_s5 }
  0x40   : > { %p7211_p10 = pnand %p7209_p4, %p7717_p8 }
  0x42   : > { %p7212_p11 = pneg %p7211_p10 }
  0x44   : > { %p7217_p13 = pnand %p7215_p12, %p7212_p11 }
  0x46   : > { %7220 = shalt.err (!%p7217_p13)
}
  0x47   : > { %s7221_s26 = scalar_lea.vmem %s7705_s30, 1024  ;;  %p7229_p7 = scmp.lt.s32.totalorder %s7705_s30, %s7705_s30 }
  0x48   : > { %p7222_p0 = scmp.ne.s32.totalorder %s7705_s30, %s7221_s26  ;;  %p7230_p9 = scmp.lt.s32.totalorder %s7221_s26, %s7221_s26 }
  0x4a   : > { %p7224_p2 = pnand %p7222_p0, %p7717_p8  ;;  %p7231_p4 = por %p7230_p9, %p7229_p7 }
  0x4c   : > { %p7225_p5 = pneg %p7224_p2 }
  0x4e   : > { %p7232_p10 = pnand %p7231_p4, %p7225_p5 }
  0x50   : > { %7235 = shalt.err (!%p7232_p10)
}
  0x51   : > { %s9026_s10 = smov 64   ;;  %s9028_s2 = smov 4  }
  0x52   : > { %6725 = dma.hbm_to_vmem [thread:$0]  (!%p7701_p6), %s9046_s5, 1024, %s7705_s30, [#allocation12], %s9026_s10, %s9026_s10, %s9028_s2  }
  0x53   : > { %s7236_s25 = scalar_lea.hbm %s9011_s7, 4096 }
  0x54   : > { %p7237_p11 = scmp.ne.s32.totalorder %s9011_s7, %s7236_s25  ;;  %p7243_p0 = scmp.lt.u32.totalorder %s7236_s25, %s9011_s7 }
  0x56   : > { %p7239_p12 = pnand %p7237_p11, %p7717_p8 }
  0x58   : > { %p7240_p13 = pneg %p7239_p12 }
  0x5a   : > { %p7245_p2 = pnand %p7243_p0, %p7240_p13 }
  0x5c   : > { %7248 = shalt.err (!%p7245_p2)
}
  0x5d   : > { %s7249_s8 = scalar_lea.vmem %s492_s18, 4096  ;;  %p7257_p4 = scmp.lt.s32.totalorder %s492_s18, %s492_s18 }
  0x5e   : > { %p7250_p5 = scmp.ne.s32.totalorder %s492_s18, %s7249_s8  ;;  %p7258_p10 = scmp.lt.s32.totalorder %s7249_s8, %s7249_s8 }
  0x60   : > { %p7252_p7 = pnand %p7250_p5, %p7717_p8  ;;  %p7259_p1 = por %p7258_p10, %p7257_p4 }
  0x62   : > { %p7253_p9 = pneg %p7252_p7 }
  0x64   : > { %p7260_p3 = pnand %p7259_p1, %p7253_p9 }
  0x66   : > { %7263 = shalt.err (!%p7260_p3)
}
  0x67   : > { %s7557_s30 = smov 256   ;;  %s7558_s12 = smov 16  }
  0x68   : > { %6731 = dma.hbm_to_vmem [thread:$0]  (!%p7701_p6), %s9011_s7, 4096, %s492_s18, [#allocation15], %s7557_s30, %s7557_s30, %s7558_s12  }
  0x69   : > { %s7559_s20 = smov [#allocation17]   ;;  %s7560_s17 = smov [#allocation10]  }
  0x6a   : > { %s523_s25 = sshll.u32 %s7559_s20, 4  ;;  %s452_s14 = sshll.u32 %s7560_s17, 4  ;;  %s524_s25 = int_to_ptr.vmem [resolvable:$true] %s523_s25  ;;  %s453_s14 = int_to_ptr.vmem [resolvable:$true] %s452_s14 }
  0x6b   : > { %s7264_s8 = scalar_lea.hbm %s9015_s11, 4096 }
  0x6c   : > { %p7265_p1 = scmp.ne.s32.totalorder %s9015_s11, %s7264_s8  ;;  %p7271_p12 = scmp.lt.u32.totalorder %s7264_s8, %s9015_s11 }
  0x6e   : > { %p7267_p3 = pnand %p7265_p1, %p7717_p8 }
  0x70   : > { %p7268_p11 = pneg %p7267_p3 }
  0x72   : > { %p7273_p13 = pnand %p7271_p12, %p7268_p11 }
  0x74   : > { %7276 = shalt.err (!%p7273_p13)
}
  0x75   : > { %s7277_s18 = scalar_lea.vmem %s524_s25, 4096  ;;  %p7285_p7 = scmp.lt.s32.totalorder %s524_s25, %s524_s25 }
  0x76   : > { %p7278_p0 = scmp.ne.s32.totalorder %s524_s25, %s7277_s18  ;;  %p7286_p9 = scmp.lt.s32.totalorder %s7277_s18, %s7277_s18 }
  0x78   : > { %p7280_p2 = pnand %p7278_p0, %p7717_p8  ;;  %p7287_p4 = por %p7286_p9, %p7285_p7 }
  0x7a   : > { %p7281_p5 = pneg %p7280_p2 }
  0x7c   : > { %p7288_p10 = pnand %p7287_p4, %p7281_p5 }
  0x7e   : > { %7291 = shalt.err (!%p7288_p10)
}
  0x7f   : > { %6737 = dma.hbm_to_vmem [thread:$0]  (!%p7701_p6), %s9015_s11, 4096, %s524_s25, [#allocation18], %s7557_s30, %s7557_s30, %s7558_s12  }
  0x80   : > { %s7292_s2 = scalar_lea.hbm %s9008_s4, 3072 }
  0x81   : > { %p7293_p1 = scmp.ne.s32.totalorder %s9008_s4, %s7292_s2  ;;  %p7299_p12 = scmp.lt.u32.totalorder %s7292_s2, %s9008_s4 }
  0x83   : > { %p7295_p3 = pnand %p7293_p1, %p7717_p8 }
  0x85   : > { %p7296_p11 = pneg %p7295_p3 }
  0x87   : > { %p7301_p13 = pnand %p7299_p12, %p7296_p11 }
  0x89   : > { %7304 = shalt.err (!%p7301_p13)
}
  0x8a   : > { %s7305_s26 = scalar_lea.vmem %s453_s14, 3072  ;;  %p7313_p7 = scmp.lt.s32.totalorder %s453_s14, %s453_s14 }
  0x8b   : > { %p7306_p0 = scmp.ne.s32.totalorder %s453_s14, %s7305_s26  ;;  %p7314_p9 = scmp.lt.s32.totalorder %s7305_s26, %s7305_s26 }
  0x8d   : > { %p7308_p2 = pnand %p7306_p0, %p7717_p8  ;;  %p7315_p4 = por %p7314_p9, %p7313_p7 }
  0x8f   : > { %p7309_p5 = pneg %p7308_p2 }
  0x91   : > { %p7316_p10 = pnand %p7315_p4, %p7309_p5 }
  0x93   : > { %7319 = shalt.err (!%p7316_p10)
}
  0x94   : > { %s9047_s30 = smov 12   ;;  %s9048_s12 = smov 192  }
  0x95   : > { %6722 = dma.hbm_to_vmem [thread:$0]  (!%p7701_p6), %s9008_s4, 3072, %s453_s14, [#allocation9], %s9048_s12, %s9048_s12, %s9047_s30  }
  0x96   : > { %s7561_s18 = smov [#allocation13]   ;;  %s7562_s10 = smov [#allocation16]  }
  0x97   : > { %s478_s15 = sshll.u32 %s7561_s18, 4  ;;  %s507_s3 = sshll.u32 %s7562_s10, 4  ;;  %s479_s15 = int_to_ptr.vmem [resolvable:$true] %s478_s15  ;;  %s508_s3 = int_to_ptr.vmem [resolvable:$true] %s507_s3 }
  0x98   : > { %s7320_s16 = scalar_lea.hbm %s9010_s6, 1024 }
  0x99   : > { %p7321_p1 = scmp.ne.s32.totalorder %s9010_s6, %s7320_s16  ;;  %p7327_p12 = scmp.lt.u32.totalorder %s7320_s16, %s9010_s6 }
  0x9b   : > { %p7323_p3 = pnand %p7321_p1, %p7717_p8 }
  0x9d   : > { %p7324_p11 = pneg %p7323_p3 }
  0x9f   : > { %p7329_p13 = pnand %p7327_p12, %p7324_p11 }
  0xa1   : > { %7332 = shalt.err (!%p7329_p13)
}
  0xa2   : > { %s7333_s14 = scalar_lea.vmem %s479_s15, 1024  ;;  %p7341_p7 = scmp.lt.s32.totalorder %s479_s15, %s479_s15 }
  0xa3   : > { %p7334_p0 = scmp.ne.s32.totalorder %s479_s15, %s7333_s14  ;;  %p7342_p9 = scmp.lt.s32.totalorder %s7333_s14, %s7333_s14 }
  0xa5   : > { %p7336_p2 = pnand %p7334_p0, %p7717_p8  ;;  %p7343_p4 = por %p7342_p9, %p7341_p7 }
  0xa7   : > { %p7337_p5 = pneg %p7336_p2 }
  0xa9   : > { %p7344_p10 = pnand %p7343_p4, %p7337_p5 }
  0xab   : > { %7347 = shalt.err (!%p7344_p10)
}
  0xac   : > { %s9049_s30 = smov 4   ;;  %s9050_s12 = smov 64  }
  0xad   : > { %6728 = dma.hbm_to_vmem [thread:$0]  (!%p7701_p6), %s9010_s6, 1024, %s479_s15, [#allocation12], %s9050_s12, %s9050_s12, %s9049_s30  }
  0xae   : > { %s7348_s5 = scalar_lea.hbm %s9013_s9, 4096 }
  0xaf   : > { %p7349_p1 = scmp.ne.s32.totalorder %s9013_s9, %s7348_s5  ;;  %p7355_p12 = scmp.lt.u32.totalorder %s7348_s5, %s9013_s9 }
  0xb1   : > { %p7351_p3 = pnand %p7349_p1, %p7717_p8 }
  0xb3   : > { %p7352_p11 = pneg %p7351_p3 }
  0xb5   : > { %p7357_p13 = pnand %p7355_p12, %p7352_p11 }
  0xb7   : > { %7360 = shalt.err (!%p7357_p13)
}
  0xb8   : > { %s7361_s17 = scalar_lea.vmem %s508_s3, 4096  ;;  %p7369_p7 = scmp.lt.s32.totalorder %s508_s3, %s508_s3 }
  0xb9   : > { %p7362_p0 = scmp.ne.s32.totalorder %s508_s3, %s7361_s17  ;;  %p7370_p9 = scmp.lt.s32.totalorder %s7361_s17, %s7361_s17 }
  0xbb   : > { %p7364_p2 = pnand %p7362_p0, %p7717_p8  ;;  %p7371_p4 = por %p7370_p9, %p7369_p7 }
  0xbd   : > { %p7365_p5 = pneg %p7364_p2 }
  0xbf   : > { %p7372_p10 = pnand %p7371_p4, %p7365_p5 }
  0xc1   : > { %7375 = shalt.err (!%p7372_p10)
}
  0xc2   : > { %6734 = dma.hbm_to_vmem [thread:$0]  (!%p7701_p6), %s9013_s9, 4096, %s508_s3, [#allocation15], %s9050_s12, %s9050_s12, %s9049_s30  }
  0xc3   : > { %s7563_s14 = smov [#allocation19]   ;;  %s7376_s10 = scalar_lea.hbm %s9017_s13, 4096 }
  0xc4   : > { %s539_s25 = sshll.u32 %s7563_s14, 4  ;;  %p7377_p1 = scmp.ne.s32.totalorder %s9017_s13, %s7376_s10  ;;  %s540_s25 = int_to_ptr.vmem [resolvable:$true] %s539_s25 }
  0xc5   : > { %p7383_p12 = scmp.lt.u32.totalorder %s7376_s10, %s9017_s13 }
  0xc6   : > { %p7379_p3 = pnand %p7377_p1, %p7717_p8 }
  0xc8   : > { %p7380_p11 = pneg %p7379_p3 }
  0xca   : > { %p7385_p13 = pnand %p7383_p12, %p7380_p11 }
  0xcc   : > { %7388 = shalt.err (!%p7385_p13)
}
  0xcd   : > { %s7389_s3 = scalar_lea.vmem %s540_s25, 4096  ;;  %p7397_p7 = scmp.lt.s32.totalorder %s540_s25, %s540_s25 }
  0xce   : > { %p7390_p0 = scmp.ne.s32.totalorder %s540_s25, %s7389_s3  ;;  %p7398_p9 = scmp.lt.s32.totalorder %s7389_s3, %s7389_s3 }
  0xd0   : > { %p7392_p2 = pnand %p7390_p0, %p7717_p8  ;;  %p7399_p4 = por %p7398_p9, %p7397_p7 }
  0xd2   : > { %p7393_p5 = pneg %p7392_p2 }
  0xd4   : > { %p7400_p10 = pnand %p7399_p4, %p7393_p5 }
  0xd6   : > { %7403 = shalt.err (!%p7400_p10)
}
  0xd7   : > { %6740 = dma.hbm_to_vmem [thread:$0]  (!%p7701_p6), %s9017_s13, 4096, %s540_s25, [#allocation18], %s9050_s12, %s9050_s12, %s9049_s30  }
  0xd8   : > { %s6027_s0 = sadd.s32 4294967294, %s7548_s24   ;;  %s7890_s29 = sadd.s32 1, %s7548_s24  }
  0xd9   : > { %s70_s15 = ssub.s32 %s7548_s24, %s7890_s29  ;;  %s73_s26 = sadd.s32 1, %s7544_s23 }
  0xda   : > { %p71_p8 = scmp.eq.s32.totalorder %s70_s15, 0  ;;  %p80_p1 = scmp.ne.s32.totalorder %s7544_s23, %s7540_s22 }
  0xdb   : > { %p81_p3 = scmp.eq.s32.totalorder %s7548_s24, 0  ;;  %p86_p11 = scmp.ne.s32.totalorder %s7540_s22, %s7536_s21 }
  0xdc   : > { %s7901_s14 = scalar_select %p71_p8, %s7544_s23, %s73_s26  }
  0xdd   : > { %p7903_p12 = por %p81_p3, %p80_p1  ;;  %p9052_p13 = scmp.eq.s32.totalorder %s7685_s27, 0 }
  0xde   : > { %p388_p0 = scmp.eq.s32.totalorder %s7685_s27, 1  ;;  %p394_p2 = scmp.eq.s32.totalorder %s6027_s0, 1 }
  0xdf   : > { %p7909_p6 = por %p9052_p13, %p86_p11  ;;  %p6760_p5 = scmp.lt.s32.totalorder %s7548_s24, 2 }
  0xe0   : > { %s563_s12 = sand.u32 1, %s7544_s23   ;;  %p7916_p7 = por %p388_p0, %p80_p1 }
  0xe1   : > { %p7920_p9 = por %p394_p2, %p86_p11  ;;  %s6038_s10 = sshll.u32 %s563_s12, 4 }
  0xe2   : > { %s9054_s25 = scalar_select %p7916_p7, 1, 0 }
  0xe3   : > { %s9055_s18 = scalar_select %p7920_p9, 1, 0 }
  0xe4   : > { %s6312_s5 = sshll.u32 %s7548_s24, 8  ;;  %s567_s3 = scalar_lea.vmem [#allocation5], %s6038_s10 }
  0xe5   : > { %s7928_s19 = scalar_lea.hbm %s9005_s1, %s6312_s5  ;;  %s574_s20 = sshll.u32 %s567_s3, 4  ;;  %s7930_s20 = int_to_ptr.vmem [resolvable:$true] %s574_s20 }
  0xe6   : > { %p7934_p4 = pnand %p6760_p5, %p7903_p12  ;;  %s7938_s0 = scalar_lea.sflag [#allocation6], %s563_s12 }
  0xe7   : > { %s7404_s15 = scalar_lea.hbm %s7928_s19, 256  ;;  %s7409_s8 = scalar_lea.hbm %s9005_s1, 512 }
  0xe8   : > { %p7405_p10 = scmp.ne.s32.totalorder %s7928_s19, %s7404_s15  ;;  %p7406_p8 = pneg %p7934_p4 }
  0xe9   : > { %p7410_p11 = scmp.lt.u32.totalorder %s7928_s19, %s9005_s1  ;;  %p7411_p12 = scmp.lt.u32.totalorder %s7409_s8, %s7404_s15 }
  0xea   : > { %p7407_p1 = pnand %p7406_p8, %p7405_p10  ;;  %p7413_p0 = scmp.lt.u32.totalorder %s7404_s15, %s7928_s19 }
  0xeb   : > { %p7412_p13 = por %p7411_p12, %p7410_p11 }
  0xec   : > { %p7408_p3 = pneg %p7407_p1 }
  0xed   : > { %p7414_p2 = por %p7413_p0, %p7412_p13 }
  0xef   : > { %p7415_p5 = pnand %p7414_p2, %p7408_p3 }
  0xf1   : > { %7418 = shalt.err (!%p7415_p5)
}
  0xf2   : > { %s7419_s12 = scalar_lea.vmem %s7930_s20, 256  ;;  %s7564_s16 = smov [#allocation5]  }
  0xf3   : > { %p7420_p10 = scmp.ne.s32.totalorder %s7930_s20, %s7419_s12  ;;  %s7424_s3 = sshll.u32 %s7564_s16, 4  ;;  %s7425_s3 = int_to_ptr.vmem [resolvable:$false] %s7424_s3 }
  0xf4   : > { %s7426_s26 = scalar_lea.vmem %s7425_s3, 512  ;;  %p7427_p7 = scmp.lt.s32.totalorder %s7930_s20, %s7425_s3 }
  0xf5   : > { %p7422_p1 = pnand %p7420_p10, %p7406_p8  ;;  %p7428_p11 = scmp.lt.s32.totalorder %s7426_s26, %s7419_s12 }
  0xf7   : > { %p7423_p9 = pneg %p7422_p1  ;;  %p7429_p12 = por %p7428_p11, %p7427_p7 }
  0xf9   : > { %p7430_p13 = pnand %p7429_p12, %p7423_p9 }
  0xfb   : > { %7433 = shalt.err (!%p7430_p13)
}
  0xfc   : > { %s7565_s15 = smov 128   ;;  %s7566_s10 = smov 8  }
  0xfd   : > { %6744 = dma.hbm_to_vmem [thread:$0]  (!%p7934_p4), %s7928_s19, 256, %s7930_s20, %s7938_s0, %s7565_s15, %s7565_s15, %s7566_s10  }
  0xfe   : > { %p9057_p8 = scmp.ne.s32.totalorder %s9042_s28, 0 }
  0xff   : > { %s7969_s8 = sand.u32 (!%p9057_p8), 1, %s7540_s22  }
 0x100   : > { %594 = sbr.rel (%p9057_p8) target bundleno = 3171 (0xc63), region = 80  ;;  %s7972_s5 = sshll.u32 (!%p9057_p8), %s7969_s8, 4 }
 0x101   : > { %s597_s2 = scalar_lea.sflag (!%p9057_p8), [#allocation6], %s7969_s8  ;;  %s600_s12 = scalar_lea.vmem (!%p9057_p8), [#allocation5], %s7972_s5 }
 0x107   : > { %7507 = dma.done.wait (%p7909_p6), %s597_s2, 256  }
 0x108   : > { %7509 = vsyncadd (%p7909_p6), %s597_s2, 4294967040  ;;  %p9058_p7 = scmp.eq.s32.totalorder %s7685_s27, 0 }
 0x10a   : > { %7511 = dma.done.wait (%p9058_p7), [#allocation9], 6144   ;;  %p9059_p9 = pmov %p9058_p7 }
 0x10b   : > { %p9060_p4 = pmov %p9058_p7 }
 0x10c   : > { %7513 = vsyncadd (%p9059_p9), [#allocation9], 4294961152 }
 0x10d   : > { %7515 = dma.done.wait (%p9060_p4), [#allocation12], 2048   ;;  %p9061_p3 = pmov %p9060_p4 }
 0x10f   : > { %7517 = vsyncadd (%p9061_p3), [#allocation12], 4294965248  ;;  %p9062_p0 = pmov %p9061_p3 }
 0x111   : > { %7519 = dma.done.wait (%p9062_p0), [#allocation15], 8192   ;;  %p9063_p2 = pmov %p9062_p0 }
 0x112   : > { %p9064_p6 = pmov %p9062_p0 }
 0x113   : > { %7521 = vsyncadd (%p9063_p2), [#allocation15], 4294959104 }
 0x114   : > { %7523 = dma.done.wait (%p9064_p6), [#allocation18], 8192   ;;  %p9065_p5 = pmov %p9062_p0 }
 0x115   : > { %p695_p10 = scmp.lt.s32.totalorder %s7685_s27, 1  ;;  %s9066_s17 = sld [smem:[#allocation31_spill]]  ;;  %v711_v0 = vld [vmem:[%s600_s12] sm:$0xff]  ;;  %v712_v2 = vld [vmem:[%s600_s12 + $0x8] sm:$0xff]  ;;  %v7567_v6 = vmov 0.0   ;;  %v7568_v46 = vmov 0  }
 0x116   : > { %7525 = vsyncadd (%p9065_p5), [#allocation18], 4294959104  ;;  %713 = vadd.xlane.f32.xlu0 %v711_v0  ;;  %v6828_v4 = vld [vmem:[#allocation8 + $0x4] ss:$12 sps:$4 sm:$0xff]   ;;  %v6830_v5 = vld [vmem:[#allocation8] ss:$12 sps:$4 sm:$0xff]   ;;  %6478 = vmatprep.subr.bf16.mxu1 %v7567_v6 }
 0x117   : > { %s7998_s28 = scalar_select %p695_p10, %s7685_s27, 1  ;;  %v6831_v7 = vld [vmem:[#allocation8 + $0x8] ss:$12 sps:$4 sm:$0xff]   ;;  %v6834_v9 = vld [vmem:[#allocation8 + $0x18] ss:$12 sps:$4 sm:$0xff]   ;;  %938 = vmatprep.subr.bf16.mxu0 %v6828_v4  ;;  %970 = vmatprep.mubr.bf16.mxu0 %v7568_v46  ;;  %vm7569_vm0 = vmmov 0  }
 0x118   : > { %v6832_v8 = vld [vmem:[#allocation8 + $0x1c] ss:$12 sps:$4 sm:$0xff]   ;;  %v6835_v10 = vld [vmem:[#allocation8 + $0x20] ss:$12 sps:$4 sm:$0xff]   ;;  %939 = vmatpush1.bf16.msra.mxu0 %v6830_v5  ;;  %6479 = vmatpush3.bf16.msra.mxu1 %v6831_v7  ;;  %v6839_v29 = vld [vmem:[#allocation8 + $0x38] ss:$12 sps:$4 sm:$0xff]  }
 0x119   : > { %s6313_s30 = sshll.u32 %s7998_s28, 4  ;;  %940 = vmatprep.subr.bf16.mxu0 %v6832_v8  ;;  %6480 = vmatprep.subr.bf16.mxu1 %v7567_v6  ;;  %v6836_v27 = vld [vmem:[#allocation8 + $0x34] ss:$12 sps:$4 sm:$0xff]   ;;  %v6838_v28 = vld [vmem:[#allocation8 + $0x30] ss:$12 sps:$4 sm:$0xff]   ;;  %s6053_s16 = sshll.u32 %s7998_s28, 3 }
 0x11a   : > { %715 = vadd.xlane.f32.xlu0 %v712_v2  ;;  %v6840_v30 = vld [vmem:[#allocation8 + $0x4c] ss:$12 sps:$4 sm:$0xff]   ;;  %v6842_v31 = vld [vmem:[#allocation8 + $0x48] ss:$12 sps:$4 sm:$0xff]   ;;  %v6843_v32 = vld [vmem:[#allocation8 + $0x50] ss:$12 sps:$4 sm:$0xff]   ;;  %6494 = vmatprep.mubr.msk.bf16.mxu1 %vm7569_vm0, %v7567_v6 }
 0x11b   : > { %s703_s0 = scalar_lea.vmem %s9066_s17, %s6313_s30  ;;  %v6844_v33 = vld [vmem:[#allocation8 + $0x64] ss:$12 sps:$4 sm:$0xff]   ;;  %v6846_v34 = vld [vmem:[#allocation8 + $0x60] ss:$12 sps:$4 sm:$0xff]   ;;  %v6847_v35 = vld [vmem:[#allocation8 + $0x68] ss:$12 sps:$4 sm:$0xff]  }
 0x11c   : > { %v736_v1 = vld [vmem:[%s703_s0] sm:$0xff]  ;;  %v737_v3 = vld [vmem:[%s703_s0 + $0x8] sm:$0xff]  ;;  %941 = vmatpush1.bf16.msra.mxu0 %v6834_v9  ;;  %6481 = vmatpush3.bf16.msra.mxu1 %v6835_v10  ;;  %v6854_v40 = vld [vmem:[#allocation8 + $0x90] ss:$12 sps:$4 sm:$0xff]   ;;  %s9067_s15 = sld [smem:[#allocation30_spill]]  ;;  %s7570_s2 = smov 96  }
 0x11d   : > { %738 = vadd.xlane.f32.xlu1 %v736_v1  ;;  %6482 = vmatprep.subr.bf16.mxu1 %v7567_v6  ;;  %v6848_v36 = vld [vmem:[#allocation8 + $0x7c] ss:$12 sps:$4 sm:$0xff]   ;;  %v6850_v37 = vld [vmem:[#allocation8 + $0x78] ss:$12 sps:$4 sm:$0xff]   ;;  %v6851_v38 = vld [vmem:[#allocation8 + $0x80] ss:$12 sps:$4 sm:$0xff]  }
 0x11e   : > { %942 = vmatprep.subr.bf16.mxu0 %v6836_v27  ;;  %v6852_v39 = vld [vmem:[#allocation8 + $0x94] ss:$12 sps:$4 sm:$0xff]   ;;  %v6855_v41 = vld [vmem:[#allocation8 + $0x98] ss:$12 sps:$4 sm:$0xff]   ;;  %v6859_v44 = vld [vmem:[#allocation8 + $0xb0] ss:$12 sps:$4 sm:$0xff]  }
 0x11f   : > { %v6856_v42 = vld [vmem:[#allocation8 + $0xac] ss:$12 sps:$4 sm:$0xff]   ;;  %v6858_v43 = vld [vmem:[#allocation8 + $0xa8] ss:$12 sps:$4 sm:$0xff]   ;;  %v6862_v45 = vld [vmem:[#allocation10 + $0x4] ss:$12 sps:$4 sm:$0xff]  }
 0x120   : > { %943 = vmatpush1.bf16.msra.mxu0 %v6838_v28  ;;  %6483 = vmatpush3.bf16.msra.mxu1 %v6839_v29  ;;  %v6866_v5 = vld [vmem:[#allocation10 + $0x1c] ss:$12 sps:$4 sm:$0xff]   ;;  %v6864_v9 = vld [vmem:[#allocation10 + $0x18] ss:$12 sps:$4 sm:$0xff]   ;;  %v6867_v10 = vld [vmem:[#allocation10 + $0x20] ss:$12 sps:$4 sm:$0xff]  }
 0x121   : > { %740 = vadd.xlane.f32.xlu1 %v737_v3  ;;  %6484 = vmatprep.subr.bf16.mxu1 %v7567_v6  ;;  %v6883_v27 = vld [vmem:[#allocation10 + $0x80] ss:$12 sps:$4 sm:$0xff]   ;;  %s7571_s12 = smov 64   ;;  %s7572_s28 = smov 32   ;;  %vm1318_vm1 = vcmask 261120  }
 0x122   : > { %944 = vmatprep.subr.bf16.mxu0 %v6840_v30  ;;  %s8036_s10 = scalar_lea.vmem %s9067_s15, %s6053_s16  ;;  %v6886_v29 = vld [vmem:[#allocation10 + $0x94] ss:$12 sps:$4 sm:$0xff]   ;;  %s9068_s20 = sld [smem:[#allocation34_spill]] }
 0x123   : > { %v8042_v55 = vld [vmem:[%s8036_s10] ss:$0 sm:$0xff]  ;;  %v8050_v59 = vld [vmem:[%s8036_s10 + $0x1] ss:$0 sm:$0xff]  ;;  %s9069_s16 = sld [smem:[#allocation35_spill]]  ;;  %s8846_s3 = scalar_lea.vmem [#allocation20], %s7972_s5 }
 0x124   : > { %945 = vmatpush1.bf16.msra.mxu0 %v6842_v31  ;;  %6485 = vmatpush3.bf16.msra.mxu1 %v6843_v32  ;;  %v6884_v31 = vld [vmem:[#allocation10 + $0x90] ss:$12 sps:$4 sm:$0xff]   ;;  %v6887_v32 = vld [vmem:[#allocation10 + $0x98] ss:$12 sps:$4 sm:$0xff]   ;;  %s9071_s19 = sld [smem:[#allocation38_spill]]  ;;  %s5788_s17 = scalar_lea.sflag [#allocation7], %s7969_s8 }
 0x125   : > { %6486 = vmatprep.subr.bf16.mxu1 %v7567_v6  ;;  %946 = vmatprep.subr.bf16.mxu0 %v6844_v33  ;;  %v6890_v33 = vld [vmem:[#allocation10 + $0xac] ss:$12 sps:$4 sm:$0xff]   ;;  %p9072_p11 = scmp.ne.s32.totalorder %s9054_s25, 0 }
 0x128   : > { %947 = vmatpush1.bf16.msra.mxu0 %v6846_v34  ;;  %6487 = vmatpush3.bf16.msra.mxu1 %v6847_v35  ;;  %v6888_v35 = vld [vmem:[#allocation10 + $0xa8] ss:$12 sps:$4 sm:$0xff]  }
 0x129   : > { %6488 = vmatprep.subr.bf16.mxu1 %v7567_v6  ;;  %948 = vmatprep.subr.bf16.mxu0 %v6848_v36  ;;  %v6891_v36 = vld [vmem:[#allocation10 + $0xb0] ss:$12 sps:$4 sm:$0xff]  }
 0x12c   : > { %949 = vmatpush1.bf16.msra.mxu0 %v6850_v37  ;;  %6489 = vmatpush3.bf16.msra.mxu1 %v6851_v38 }
 0x12d   : > { %6490 = vmatprep.subr.bf16.mxu1 %v7567_v6  ;;  %950 = vmatprep.subr.bf16.mxu0 %v6852_v39 }
 0x130   : > { %951 = vmatpush1.bf16.msra.mxu0 %v6854_v40  ;;  %6491 = vmatpush3.bf16.msra.mxu1 %v6855_v41 }
 0x131   : > { %6492 = vmatprep.subr.bf16.mxu1 %v7567_v6  ;;  %952 = vmatprep.subr.bf16.mxu0 %v6856_v42 }
 0x134   : > { %953 = vmatpush1.bf16.msra.mxu0 %v6858_v43  ;;  %6493 = vmatpush3.bf16.msra.mxu1 %v6859_v44 }
 0x135   : > { %2083 = vmatprep.subr.bf16.mxu0 %v6862_v45  ;;  %6498 = vmatprep.subr.bf16.mxu1 %v7567_v6 }
 0x1a3   : > { %v714_v11 = vpop.xlane.xlu0 %713 }
 0x1a4   : > { %v718_v13 = vmul.f32 0.0078125, %v714_v11  ;;  %v6870_v11 = vld [vmem:[#allocation10 + $0x34] ss:$12 sps:$4 sm:$0xff]  }
 0x1a6   : > { %v8007_v15 = vsub.f32 %v711_v0, %v718_v13  ;;  %v6868_v13 = vld [vmem:[#allocation10 + $0x30] ss:$12 sps:$4 sm:$0xff]  }
 0x1a7   : > { %v716_v17 = vpop.xlane.xlu0 %715 }
 0x1a8   : > { %v719_v19 = vmul.f32 0.0078125, %v716_v17  ;;  %v722_v20 = vmul.f32 %v8007_v15, %v8007_v15  ;;  %v6872_v17 = vld [vmem:[#allocation10 + $0x48] ss:$12 sps:$4 sm:$0xff]  }
 0x1aa   : > { %v739_v12 = vpop.xlane.xlu1 %738  ;;  %v8013_v22 = vsub.f32 %v712_v2, %v719_v19  ;;  %724 = vadd.xlane.f32.xlu0 %v722_v20  ;;  %v6860_v2 = vld [vmem:[#allocation10] ss:$12 sps:$4 sm:$0xff]   ;;  %v6878_v19 = vld [vmem:[#allocation10 + $0x64] ss:$12 sps:$4 sm:$0xff]  }
 0x1ab   : > { %v742_v14 = vmul.f32 0.0078125, %v739_v12  ;;  %v6876_v20 = vld [vmem:[#allocation10 + $0x60] ss:$12 sps:$4 sm:$0xff]  }
 0x1ac   : > { %v723_v25 = vmul.f32 %v8013_v22, %v8013_v22 }
 0x1ad   : > { %v8009_v16 = vsub.f32 %v736_v1, %v742_v14  ;;  %v6871_v14 = vld [vmem:[#allocation10 + $0x38] ss:$12 sps:$4 sm:$0xff]  }
 0x1ae   : > { %v741_v18 = vpop.xlane.xlu1 %740  ;;  %726 = vadd.xlane.f32.xlu1 %v723_v25 }
 0x1af   : > { %v743_v21 = vmul.f32 0.0078125, %v741_v18  ;;  %v746_v24 = vmul.f32 %v8009_v16, %v8009_v16  ;;  %v6875_v18 = vld [vmem:[#allocation10 + $0x50] ss:$12 sps:$4 sm:$0xff]  }
 0x1b1   : > { %v8015_v23 = vsub.f32 %v737_v3, %v743_v21  ;;  %748 = vadd.xlane.f32.xlu0 %v746_v24  ;;  %v6863_v3 = vld [vmem:[#allocation10 + $0x8] ss:$12 sps:$4 sm:$0xff]  }
 0x1b2   : > { %v6879_v21 = vld [vmem:[#allocation10 + $0x68] ss:$12 sps:$4 sm:$0xff]  }
 0x1b3   : > { %v747_v26 = vmul.f32 %v8015_v23, %v8015_v23 }
 0x1b5   : > { %750 = vadd.xlane.f32.xlu1 %v747_v26  ;;  %v6880_v26 = vld [vmem:[#allocation10 + $0x78] ss:$12 sps:$4 sm:$0xff]  }
 0x237   : > { %v725_v47 = vpop.xlane.xlu0 %724 }
 0x238   : > { %v728_v48 = vmul.f32 0.0078125, %v725_v47 }
 0x23a   : > { %v730_v49 = vadd.f32 1e-06, %v728_v48 }
 0x23b   : > { %v727_v50 = vpop.xlane.xlu1 %726 }
 0x23c   : > { %7068 = vrsqrt.f32 %v730_v49  ;;  %v729_v51 = vmul.f32 0.0078125, %v727_v50 }
 0x23e   : > { %v731_v52 = vadd.f32 1e-06, %v729_v51  ;;  %v749_v62 = vpop.xlane.xlu0 %748 }
 0x23f   : > { %v752_v7 = vmul.f32 0.0078125, %v749_v62 }
 0x240   : > { %7070 = vrsqrt.f32 %v731_v52 }
 0x241   : > { %v754_v12 = vadd.f32 1e-06, %v752_v7 }
 0x242   : > { %v751_v60 = vpop.xlane.xlu1 %750 }
 0x243   : > { %v753_v1 = vmul.f32 0.0078125, %v751_v60 }
 0x245   : > { %v755_v8 = vadd.f32 1e-06, %v753_v1 }
 0x246   : > { %v7069_v53 = vpop.eup %7068 }
 0x247   : > { %v8039_v54 = vmul.f32 %v7069_v53, %v8007_v15  ;;  %7072 = vrsqrt.f32 %v755_v8  ;;  %v6874_v15 = vld [vmem:[#allocation10 + $0x4c] ss:$12 sps:$4 sm:$0xff]  }
 0x248   : > { %7074 = vrsqrt.f32 %v754_v12 }
 0x249   : > { %v764_v58 = vmul.f32 %v8042_v55, %v8039_v54 }
 0x24a   : > { %v7071_v56 = vpop.eup %7070 }
 0x24b   : > { %v8045_v57 = vmul.f32 %v7071_v56, %v8013_v22  ;;  %v770_v63 = vadd.f32 %v8050_v59, %v764_v58  ;;  %v6882_v22 = vld [vmem:[#allocation10 + $0x7c] ss:$12 sps:$4 sm:$0xff]  }
 0x24d   : > { %v765_v61 = vmul.f32 %v8042_v55, %v8045_v57 }
 0x24f   : > { %v771_v0 = vadd.f32 %v8050_v59, %v765_v61  ;;  %v1047_v61 = vlaneseq }
 0x251   : > { %v772_v4 = vpack.c.bf16 %v771_v0, %v770_v63  ;;  %v7073_v24 = vpop.eup %7072  ;;  %v7574_v63 = vmov 1934713408  }
 0x252   : > { %v7075_v25 = vpop.eup %7074  ;;  %v8064_v28 = vmul.f32 %v7073_v24, %v8015_v23  ;;  %v1077_v0 = vunpack.c.l.s4 %v7574_v63 }
 0x253   : > { %971 = vmatmul.mubr.bf16.vlgmr.msra.gmra.mrb[0].mxu0 %v772_v4  ;;  %6495 = vmatmul.mubr.bf16.vlgmr.msra.gmra.mrb[0].mxu1 %v772_v4  ;;  %v8068_v30 = vmul.f32 %v7075_v25, %v8009_v16 }
 0x254   : > { %2084 = vmatpush1.bf16.msra.mxu0 %v6860_v2  ;;  %6499 = vmatpush3.bf16.msra.mxu1 %v6863_v3  ;;  %v774_v34 = vmul.f32 %v8042_v55, %v8064_v28  ;;  %v8168_v3 = vshrl.u32 %v1047_v61, 7 }
 0x255   : > { %2085 = vmatprep.subr.bf16.mxu0 %v6866_v5  ;;  %6500 = vmatprep.subr.bf16.mxu1 %v7567_v6  ;;  %v773_v23 = vmul.f32 %v8042_v55, %v8068_v30  ;;  %v1078_v5 = vunpack.c.0.s8 %v1077_v0 }
 0x256   : > { %2115 = vmatprep.mubr.bf16.mxu0 %v7568_v46  ;;  %6514 = vmatprep.mubr.msk.bf16.mxu1 %vm7569_vm0, %v7567_v6  ;;  %v776_v16 = vadd.f32 %v8050_v59, %v774_v34 }
 0x257   : > { %v775_v37 = vadd.f32 %v8050_v59, %v773_v23  ;;  %v7573_v59 = vmov 1983009808  }
 0x258   : > { %2086 = vmatpush1.bf16.msra.mxu0 %v6864_v9  ;;  %6501 = vmatpush3.bf16.msra.mxu1 %v6867_v10  ;;  %v1045_v60 = vunpack.c.l.s4 %v7573_v59 }
 0x259   : > { %2087 = vmatprep.subr.bf16.mxu0 %v6870_v11  ;;  %6502 = vmatprep.subr.bf16.mxu1 %v7567_v6  ;;  %v777_v38 = vpack.c.bf16 %v776_v16, %v775_v37 }
 0x25a   : > { %v1046_v2 = vunpack.c.0.s8 %v1045_v60 }
 0x25c   : > { %2088 = vmatpush1.bf16.msra.mxu0 %v6868_v13  ;;  %6503 = vmatpush3.bf16.msra.mxu1 %v6871_v14  ;;  %v8173_v10 = vsub.s32 %v1046_v2, %v8168_v3  ;;  %v8176_v14 = vsub.s32 %v1078_v5, %v8168_v3 }
 0x25d   : > { %2089 = vmatprep.subr.bf16.mxu0 %v6874_v15  ;;  %6504 = vmatprep.subr.bf16.mxu1 %v7567_v6 }
 0x260   : > { %2090 = vmatpush1.bf16.msra.mxu0 %v6872_v17  ;;  %6505 = vmatpush3.bf16.msra.mxu1 %v6875_v18 }
 0x261   : > { %2091 = vmatprep.subr.bf16.mxu0 %v6878_v19  ;;  %6506 = vmatprep.subr.bf16.mxu1 %v7567_v6 }
 0x264   : > { %2092 = vmatpush1.bf16.msra.mxu0 %v6876_v20  ;;  %6507 = vmatpush3.bf16.msra.mxu1 %v6879_v21 }
 0x265   : > { %2093 = vmatprep.subr.bf16.mxu0 %v6882_v22  ;;  %6508 = vmatprep.subr.bf16.mxu1 %v7567_v6 }
 0x268   : > { %2094 = vmatpush1.bf16.msra.mxu0 %v6880_v26  ;;  %6509 = vmatpush3.bf16.msra.mxu1 %v6883_v27 }
 0x269   : > { %2095 = vmatprep.subr.bf16.mxu0 %v6886_v29  ;;  %6510 = vmatprep.subr.bf16.mxu1 %v7567_v6 }
 0x26c   : > { %2096 = vmatpush1.bf16.msra.mxu0 %v6884_v31  ;;  %6511 = vmatpush3.bf16.msra.mxu1 %v6887_v32 }
 0x26d   : > { %2097 = vmatprep.subr.bf16.mxu0 %v6890_v33  ;;  %6512 = vmatprep.subr.bf16.mxu1 %v7567_v6 }
 0x270   : > { %2098 = vmatpush1.bf16.msra.mxu0 %v6888_v35  ;;  %6513 = vmatpush3.bf16.msra.mxu1 %v6891_v36 }
 0x273   : > { %2116 = vmatmul.mubr.bf16.vlgmr.msra.gmra.mrb[4].mxu0 %v777_v38  ;;  %6515 = vmatmul.mubr.bf16.vlgmr.msra.gmra.mrb[4].mxu1 %v777_v38 }
 0x326   : > { %v8078_v39 = vpop.f32.mrb[0].mxu0  ;;  %v8080_v40 = vpop.f32.mrb[0].mxu1 }
 0x327   : > { %v6496_v41 = vpop.f32.mrb[1].mxu1  ;;  %1024 = vrot.lane.b32.xlu0 %v8078_v39, %s7570_s2  ;;  %v8084_v42 = vpop.f32.mrb[1].mxu0 }
 0x328   : > { %v8086_v43 = vpop.f32.mrb[2].mxu1  ;;  %1331 = vrot.lane.b32.xlu1 %v8084_v42, %s7571_s12  ;;  %v8090_v44 = vpop.f32.mrb[2].mxu0 }
 0x329   : > { %v8092_v45 = vpop.f32.mrb[3].mxu0  ;;  %v6497_v47 = vpop.f32.mrb[3].mxu1 }
 0x32b   : > { %1030 = vrot.lane.b32.xlu0 %v8078_v39, %s7571_s12 }
 0x32c   : > { %1026 = vrot.lane.b32.xlu1 %v8090_v44, %s7570_s2 }
 0x32f   : > { %1036 = vrot.lane.b32.xlu0 %v8078_v39, %s7572_s28 }
 0x330   : > { %1032 = vrot.lane.b32.xlu1 %v8090_v44, %s7571_s12 }
 0x333   : > { %1325 = vrot.lane.b32.xlu0 %v8084_v42, %s7570_s2 }
 0x334   : > { %1038 = vrot.lane.b32.xlu1 %v8090_v44, %s7572_s28 }
 0x337   : > { %1337 = vrot.lane.b32.xlu0 %v8084_v42, %s7572_s28 }
 0x338   : > { %1327 = vrot.lane.b32.xlu1 %v8092_v45, %s7570_s2 }
 0x33c   : > { %1333 = vrot.lane.b32.xlu1 %v8092_v45, %s7571_s12 }
 0x340   : > { %1339 = vrot.lane.b32.xlu1 %v8092_v45, %s7572_s28 }
 0x346   : > { %v8114_v48 = vpop.f32.mrb[4].mxu0  ;;  %v8116_v49 = vpop.f32.mrb[4].mxu1 }
 0x347   : > { %v6516_v50 = vpop.f32.mrb[5].mxu1  ;;  %2169 = vrot.lane.b32.xlu0 %v8114_v48, %s7570_s2  ;;  %v8120_v51 = vpop.f32.mrb[5].mxu0 }
 0x348   : > { %v8122_v52 = vpop.f32.mrb[6].mxu0  ;;  %v8124_v53 = vpop.f32.mrb[6].mxu1 }
 0x349   : > { %v6517_v55 = vpop.f32.mrb[7].mxu1  ;;  %2171 = vrot.lane.b32.xlu1 %v8122_v52, %s7570_s2  ;;  %v8128_v56 = vpop.f32.mrb[7].mxu0 }
 0x34b   : > { %2469 = vrot.lane.b32.xlu0 %v8120_v51, %s7570_s2 }
 0x34d   : > { %2471 = vrot.lane.b32.xlu1 %v8128_v56, %s7570_s2 }
 0x34f   : > { %2475 = vrot.lane.b32.xlu0 %v8120_v51, %s7571_s12 }
 0x351   : > { %2477 = vrot.lane.b32.xlu1 %v8128_v56, %s7571_s12 }
 0x353   : > { %2481 = vrot.lane.b32.xlu0 %v8120_v51, %s7572_s28 }
 0x355   : > { %2483 = vrot.lane.b32.xlu1 %v8128_v56, %s7572_s28 }
 0x357   : > { %2175 = vrot.lane.b32.xlu0 %v8114_v48, %s7571_s12 }
 0x359   : > { %2177 = vrot.lane.b32.xlu1 %v8122_v52, %s7571_s12 }
 0x35b   : > { %2181 = vrot.lane.b32.xlu0 %v8114_v48, %s7572_s28 }
 0x35d   : > { %2183 = vrot.lane.b32.xlu1 %v8122_v52, %s7572_s28 }
 0x35f   : > { %1625 = vrot.lane.b32.xlu0 %v8080_v40, %s7570_s2 }
 0x361   : > { %1627 = vrot.lane.b32.xlu1 %v8086_v43, %s7570_s2 }
 0x363   : > { %1637 = vrot.lane.b32.xlu0 %v8080_v40, %s7572_s28 }
 0x365   : > { %1631 = vrot.lane.b32.xlu1 %v8080_v40, %s7571_s12 }
 0x367   : > { %2769 = vrot.lane.b32.xlu0 %v8116_v49, %s7570_s2 }
 0x369   : > { %1633 = vrot.lane.b32.xlu1 %v8086_v43, %s7571_s12 }
 0x36d   : > { %1639 = vrot.lane.b32.xlu1 %v8086_v43, %s7572_s28 }
 0x371   : > { %2771 = vrot.lane.b32.xlu1 %v8124_v53, %s7570_s2  ;;  %s5806_s2 = sshll.u32 %s8846_s3, 4  ;;  %s8913_s2 = int_to_ptr.vmem [resolvable:$true] %s5806_s2 }
 0x372   : > { %s7434_s0 = scalar_lea.vmem %s8913_s2, 256 }
 0x373   : > { %p7435_p1 = scmp.ne.s32.totalorder %s8913_s2, %s7434_s0 }
 0x375   : > { %p7436_p12 = pnand %p7435_p1, %p9072_p11 }
 0x377   : > { %p7437_p13 = pneg %p7436_p12 }
 0x399   : > { %v1025_v58 = vpop.permute.xlu0 %1024 }
 0x39a   : > { %v8166_v62 = vpop.permute.xlu1 %1331 }
 0x39b   : > { %v1343_v29 = vcombine.low %v8084_v42, %v8166_v62  ;;  %v1344_v31 = vcombine.high %v8084_v42, %v8166_v62 }
 0x39d   : > { %v1031_v1 = vpop.permute.xlu0 %1030 }
 0x39e   : > { %v1027_v4 = vpop.permute.xlu1 %1026  ;;  %v1042_v7 = vcombine.low %v8078_v39, %v1031_v1  ;;  %v1043_v8 = vcombine.high %v8078_v39, %v1031_v1 }
 0x3a0   : > { %v1050_v15 = vrot.slane %v1042_v7, %v8173_v10  ;;  %v1057_v17 = vrot.slane %v1043_v8, %v8173_v10 }
 0x3a1   : > { %v1037_v9 = vpop.permute.xlu0 %1036 }
 0x3a2   : > { %v1058_v11 = vcombine.low %v1025_v58, %v1037_v9  ;;  %v1059_v12 = vcombine.high %v1025_v58, %v1037_v9  ;;  %v1033_v13 = vpop.permute.xlu1 %1032 }
 0x3a3   : > { %v1110_v20 = vcombine.low %v8090_v44, %v1033_v13  ;;  %v1111_v21 = vcombine.high %v8090_v44, %v1033_v13 }
 0x3a4   : > { %v1066_v18 = vrot.slane %v1058_v11, %v8173_v10  ;;  %v1073_v19 = vrot.slane %v1059_v12, %v8173_v10 }
 0x3a5   : > { %v1118_v16 = vrot.slane %v1110_v20, %v8173_v10  ;;  %v1125_v37 = vrot.slane %v1111_v21, %v8173_v10  ;;  %v1326_v50 = vpop.permute.xlu0 %1325 }
 0x3a6   : > { %v1074_v22 = vcombine.low %v1050_v15, %v1066_v18  ;;  %v1075_v24 = vcombine.high %v1050_v15, %v1066_v18  ;;  %v1090_v25 = vcombine.low %v1057_v17, %v1073_v19  ;;  %v1091_v26 = vcombine.high %v1057_v17, %v1073_v19  ;;  %v1039_v27 = vpop.permute.xlu1 %1038 }
 0x3a7   : > { %v1126_v32 = vcombine.low %v1027_v4, %v1039_v27  ;;  %v1127_v33 = vcombine.high %v1027_v4, %v1039_v27 }
 0x3a8   : > { %v1082_v34 = vrot.slane %v1074_v22, %v8176_v14  ;;  %v1089_v23 = vrot.slane %v1075_v24, %v8176_v14  ;;  %v1098_v35 = vrot.slane %v1090_v25, %v8176_v14  ;;  %v1105_v36 = vrot.slane %v1091_v26, %v8176_v14 }
 0x3a9   : > { %v1134_v38 = vrot.slane %v1126_v32, %v8173_v10  ;;  %v1141_v39 = vrot.slane %v1127_v33, %v8173_v10  ;;  %v1338_v32 = vpop.permute.xlu0 %1337 }
 0x3aa   : > { %v1178_v41 = vcombine.low %v1082_v34, %v1089_v23  ;;  %v6082_v42 = vcombine.high %v1082_v34, %v1089_v23  ;;  %v1194_v44 = vcombine.low %v1098_v35, %v1105_v36  ;;  %v6083_v47 = vcombine.high %v1098_v35, %v1105_v36  ;;  %v8196_v61 = vpop.permute.xlu1 %1327 }
 0x3ab   : > { %v1142_v55 = vcombine.low %v1118_v16, %v1134_v38  ;;  %v1143_v58 = vcombine.high %v1118_v16, %v1134_v38  ;;  %v1158_v59 = vcombine.low %v1125_v37, %v1141_v39  ;;  %v1159_v60 = vcombine.high %v1125_v37, %v1141_v39 }
 0x3ac   : > { %v1185_v62 = vrot.slane %v1178_v41, %v8173_v10  ;;  %v1193_v63 = vrot.slane %v6082_v42, %v8173_v10  ;;  %v1201_v0 = vrot.slane %v1194_v44, %v8173_v10  ;;  %v1209_v1 = vrot.slane %v6083_v47, %v8173_v10 }
 0x3ad   : > { %v1150_v2 = vrot.slane %v1142_v55, %v8176_v14  ;;  %v1157_v4 = vrot.slane %v1143_v58, %v8176_v14  ;;  %v1166_v5 = vrot.slane %v1158_v59, %v8176_v14  ;;  %v1173_v7 = vrot.slane %v1159_v60, %v8176_v14 }
 0x3ae   : > { %v1210_v8 = vcombine.low %v1185_v62, %v1193_v63  ;;  %v1211_v9 = vcombine.high %v1185_v62, %v1193_v63  ;;  %v1226_v11 = vcombine.low %v1201_v0, %v1209_v1  ;;  %v1227_v12 = vcombine.high %v1201_v0, %v1209_v1  ;;  %v1334_v33 = vpop.permute.xlu1 %1333 }
 0x3af   : > { %v1246_v13 = vcombine.low %v1150_v2, %v1157_v4  ;;  %v6084_v15 = vcombine.high %v1150_v2, %v1157_v4  ;;  %v1262_v17 = vcombine.low %v1166_v5, %v1173_v7  ;;  %v6085_v18 = vcombine.high %v1166_v5, %v1173_v7 }
 0x3b0   : > { %v1218_v19 = vrot.slane %v1210_v8, %v8176_v14  ;;  %v1225_v20 = vrot.slane %v1211_v9, %v8176_v14  ;;  %v1234_v21 = vrot.slane %v1226_v11, %v8176_v14  ;;  %v1241_v22 = vrot.slane %v1227_v12, %v8176_v14 }
 0x3b1   : > { %v1253_v24 = vrot.slane %v1246_v13, %v8173_v10  ;;  %v1261_v25 = vrot.slane %v6084_v15, %v8173_v10  ;;  %v1269_v26 = vrot.slane %v1262_v17, %v8173_v10  ;;  %v1277_v27 = vrot.slane %v6085_v18, %v8173_v10 }
 0x3b2   : > { %v1351_v34 = vrot.slane %v1343_v29, %v8173_v10  ;;  %v1358_v23 = vrot.slane %v1344_v31, %v8173_v10  ;;  %v1242_v35 = vcombine.low %v1218_v19, %v1234_v21  ;;  %v1243_v36 = vcombine.high %v1218_v19, %v1234_v21  ;;  %v1340_v4 = vpop.permute.xlu1 %1339 }
 0x3b3   : > { %v1278_v16 = vcombine.low %v1253_v24, %v1261_v25  ;;  %v1279_v37 = vcombine.high %v1253_v24, %v1261_v25  ;;  %v1294_v38 = vcombine.low %v1269_v26, %v1277_v27  ;;  %v1295_v39 = vcombine.high %v1269_v26, %v1277_v27 }
 0x3b4   : > { %v1244_v41 = vcombine.low %v1225_v20, %v1241_v22  ;;  %v1245_v42 = vcombine.high %v1225_v20, %v1241_v22  ;;  %v1359_v44 = vcombine.low %v1326_v50, %v1338_v32  ;;  %v1360_v47 = vcombine.high %v1326_v50, %v1338_v32 }
 0x3b5   : > { %v1286_v55 = vrot.slane %v1278_v16, %v8176_v14  ;;  %v1293_v58 = vrot.slane %v1279_v37, %v8176_v14  ;;  %v1302_v59 = vrot.slane %v1294_v38, %v8176_v14  ;;  %v1309_v29 = vrot.slane %v1295_v39, %v8176_v14 }
 0x3b6   : > { %v1367_v31 = vrot.slane %v1359_v44, %v8173_v10  ;;  %v1374_v60 = vrot.slane %v1360_v47, %v8173_v10  ;;  %v1411_v62 = vcombine.low %v8092_v45, %v1334_v33  ;;  %v1412_v63 = vcombine.high %v8092_v45, %v1334_v33 }
 0x3b7   : > { %v1310_v0 = vcombine.low %v1286_v55, %v1302_v59  ;;  %v1311_v1 = vcombine.high %v1286_v55, %v1302_v59  ;;  %v1312_v2 = vcombine.low %v1293_v58, %v1309_v29  ;;  %v1313_v50 = vcombine.high %v1293_v58, %v1309_v29 }
 0x3b8   : > { %v1375_v5 = vcombine.low %v1351_v34, %v1367_v31  ;;  %v1376_v7 = vcombine.high %v1351_v34, %v1367_v31  ;;  %v1391_v8 = vcombine.low %v1358_v23, %v1374_v60  ;;  %v1392_v9 = vcombine.high %v1358_v23, %v1374_v60 }
 0x3b9   : > { %v1314_v11 = vpack.c.bf16 %v1310_v0, %v1242_v35  ;;  %v1315_v12 = vpack.c.bf16 %v1311_v1, %v1243_v36  ;;  %v1316_v13 = vpack.c.bf16 %v1312_v2, %v1244_v41  ;;  %v1317_v15 = vpack.c.bf16 %v1313_v50, %v1245_v42  ;;  %v8224_v17 = vpop.permute.xlu0 %2169 }
 0x3ba   : > { %v1383_v18 = vrot.slane %v1375_v5, %v8176_v14  ;;  %v1390_v19 = vrot.slane %v1376_v7, %v8176_v14  ;;  %v1399_v45 = vrot.slane %v1391_v8, %v8176_v14  ;;  %v1406_v20 = vrot.slane %v1392_v9, %v8176_v14 }
 0x3bb   : > { %1319 = vst.msk [vmem:[#allocation2] sm:$0xff] %vm1318_vm1, %v1314_v11  ;;  %1320 = vst.msk [vmem:[#allocation2 + $0x10] sm:$0xff] %vm1318_vm1, %v1315_v12  ;;  %v1427_v21 = vcombine.low %v8196_v61, %v1340_v4  ;;  %v1428_v22 = vcombine.high %v8196_v61, %v1340_v4  ;;  %v8236_v24 = vpop.permute.xlu1 %2171  ;;  %v1419_v33 = vrot.slane %v1411_v62, %v8173_v10 }
 0x3bc   : > { %1321 = vst.msk [vmem:[#allocation2 + $0x20] sm:$0xff] %vm1318_vm1, %v1316_v13  ;;  %1322 = vst.msk [vmem:[#allocation2 + $0x30] sm:$0xff] %vm1318_vm1, %v1317_v15  ;;  %v1479_v25 = vcombine.low %v1383_v18, %v1390_v19  ;;  %v6086_v26 = vcombine.high %v1383_v18, %v1390_v19  ;;  %v1495_v27 = vcombine.low %v1399_v45, %v1406_v20 }
 0x3bd   : > { %v6087_v32 = vcombine.high %v1399_v45, %v1406_v20  ;;  %v1426_v34 = vrot.slane %v1412_v63, %v8173_v10  ;;  %v1435_v23 = vrot.slane %v1427_v21, %v8173_v10  ;;  %v1442_v35 = vrot.slane %v1428_v22, %v8173_v10  ;;  %v8242_v36 = vpop.permute.xlu0 %2469 }
 0x3be   : > { %v1486_v16 = vrot.slane %v1479_v25, %v8173_v10  ;;  %v1494_v61 = vrot.slane %v6086_v26, %v8173_v10  ;;  %v1502_v37 = vrot.slane %v1495_v27, %v8173_v10 }
 0x3bf   : > { %v1510_v38 = vrot.slane %v6087_v32, %v8173_v10  ;;  %v1443_v39 = vcombine.low %v1419_v33, %v1435_v23  ;;  %v1444_v41 = vcombine.high %v1419_v33, %v1435_v23  ;;  %v1459_v42 = vcombine.low %v1426_v34, %v1442_v35  ;;  %v2472_v47 = vpop.permute.xlu1 %2471 }
 0x3c0   : > { %v1460_v44 = vcombine.high %v1426_v34, %v1442_v35  ;;  %v1511_v55 = vcombine.low %v1486_v16, %v1494_v61  ;;  %v1512_v58 = vcombine.high %v1486_v16, %v1494_v61 }
 0x3c1   : > { %v1527_v59 = vcombine.low %v1502_v37, %v1510_v38  ;;  %v1528_v29 = vcombine.high %v1502_v37, %v1510_v38  ;;  %v1451_v31 = vrot.slane %v1443_v39, %v8176_v14  ;;  %v1458_v60 = vrot.slane %v1444_v41, %v8176_v14  ;;  %v2476_v0 = vpop.permute.xlu0 %2475 }
 0x3c2   : > { %v1467_v62 = vrot.slane %v1459_v42, %v8176_v14  ;;  %v1474_v63 = vrot.slane %v1460_v44, %v8176_v14  ;;  %v1519_v1 = vrot.slane %v1511_v55, %v8176_v14  ;;  %v1526_v2 = vrot.slane %v1512_v58, %v8176_v14  ;;  %v3067_v5 = vld [vmem:[#allocation2] sm:$0xff]  ;;  %v3069_v7 = vld [vmem:[#allocation2 + $0x10] sm:$0xff] }
 0x3c3   : > { %v1535_v50 = vrot.slane %v1527_v59, %v8176_v14  ;;  %v1542_v4 = vrot.slane %v1528_v29, %v8176_v14  ;;  %v1547_v8 = vcombine.low %v1451_v31, %v1458_v60  ;;  %v6088_v9 = vcombine.high %v1451_v31, %v1458_v60  ;;  %v2478_v13 = vpop.permute.xlu1 %2477  ;;  %6522 = vmatprep.mubr.msk.bf16.mxu0 %vm1318_vm1, %v3067_v5 }
 0x3c4   : > { %v1563_v11 = vcombine.low %v1467_v62, %v1474_v63  ;;  %v6089_v12 = vcombine.high %v1467_v62, %v1474_v63  ;;  %6530 = vmatprep.mubr.msk.bf16.mxu1 %vm1318_vm1, %v3069_v7  ;;  %v2487_v27 = vcombine.low %v8120_v51, %v2476_v0  ;;  %v2488_v32 = vcombine.high %v8120_v51, %v2476_v0 }
 0x3c5   : > { %v1543_v15 = vcombine.low %v1519_v1, %v1535_v50  ;;  %v1544_v18 = vcombine.high %v1519_v1, %v1535_v50  ;;  %v1545_v19 = vcombine.low %v1526_v2, %v1542_v4  ;;  %v1546_v45 = vcombine.high %v1526_v2, %v1542_v4  ;;  %v2482_v26 = vpop.permute.xlu0 %2481 }
 0x3c6   : > { %v1554_v20 = vrot.slane %v1547_v8, %v8173_v10  ;;  %v1562_v21 = vrot.slane %v6088_v9, %v8173_v10  ;;  %v1570_v22 = vrot.slane %v1563_v11, %v8173_v10  ;;  %v1578_v25 = vrot.slane %v6089_v12, %v8173_v10 }
 0x3c7   : > { %v2555_v33 = vcombine.low %v8128_v56, %v2478_v13  ;;  %v2556_v34 = vcombine.high %v8128_v56, %v2478_v13  ;;  %v2484_v37 = vpop.permute.xlu1 %2483  ;;  %v2495_v38 = vrot.slane %v2487_v27, %v8173_v10  ;;  %v2502_v39 = vrot.slane %v2488_v32, %v8173_v10 }
 0x3c8   : > { %v1579_v23 = vcombine.low %v1554_v20, %v1562_v21  ;;  %v1580_v35 = vcombine.high %v1554_v20, %v1562_v21  ;;  %v1595_v16 = vcombine.low %v1570_v22, %v1578_v25  ;;  %v1596_v61 = vcombine.high %v1570_v22, %v1578_v25 }
 0x3c9   : > { %v2563_v41 = vrot.slane %v2555_v33, %v8173_v10  ;;  %v2570_v42 = vrot.slane %v2556_v34, %v8173_v10  ;;  %v2503_v58 = vcombine.low %v8242_v36, %v2482_v26  ;;  %v2504_v59 = vcombine.high %v8242_v36, %v2482_v26  ;;  %v8276_v1 = vpop.permute.xlu0 %2175 }
 0x3ca   : > { %v1587_v44 = vrot.slane %v1579_v23, %v8176_v14  ;;  %v1594_v51 = vrot.slane %v1580_v35, %v8176_v14  ;;  %v1603_v55 = vrot.slane %v1595_v16, %v8176_v14  ;;  %v1610_v56 = vrot.slane %v1596_v61, %v8176_v14 }
 0x3cb   : > { %v2571_v29 = vcombine.low %v2472_v47, %v2484_v37  ;;  %v2572_v31 = vcombine.high %v2472_v47, %v2484_v37  ;;  %v2511_v2 = vrot.slane %v2503_v58, %v8173_v10  ;;  %v2518_v50 = vrot.slane %v2504_v59, %v8173_v10  ;;  %v8282_v11 = vpop.permute.xlu1 %2177 }
 0x3cc   : > { %v1611_v60 = vcombine.low %v1587_v44, %v1603_v55  ;;  %v1612_v62 = vcombine.high %v1587_v44, %v1603_v55  ;;  %v1613_v63 = vcombine.low %v1594_v51, %v1610_v56  ;;  %v1614_v0 = vcombine.high %v1594_v51, %v1610_v56 }
 0x3cd   : > { %v2579_v4 = vrot.slane %v2571_v29, %v8173_v10  ;;  %v2586_v5 = vrot.slane %v2572_v31, %v8173_v10  ;;  %v2519_v47 = vcombine.low %v2495_v38, %v2511_v2  ;;  %v2520_v12 = vcombine.high %v2495_v38, %v2511_v2  ;;  %v8296_v23 = vpop.permute.xlu0 %2181 }
 0x3ce   : > { %v1615_v7 = vpack.c.bf16 %v1611_v60, %v1543_v15  ;;  %v1616_v8 = vpack.c.bf16 %v1612_v62, %v1544_v18  ;;  %v1617_v9 = vpack.c.bf16 %v1613_v63, %v1545_v19  ;;  %v1618_v36 = vpack.c.bf16 %v1614_v0, %v1546_v45 }
 0x3cf   : > { %v2535_v13 = vcombine.low %v2502_v39, %v2518_v50  ;;  %v2536_v20 = vcombine.high %v2502_v39, %v2518_v50  ;;  %v2587_v21 = vcombine.low %v2563_v41, %v2579_v4  ;;  %v2588_v22 = vcombine.high %v2563_v41, %v2579_v4  ;;  %v8298_v44 = vpop.permute.xlu1 %2183 }
 0x3d0   : > { %1619 = vst.msk [vmem:[#allocation3] sm:$0xff] %vm1318_vm1, %v1615_v7  ;;  %1620 = vst.msk [vmem:[#allocation3 + $0x10] sm:$0xff] %vm1318_vm1, %v1616_v8  ;;  %v2603_v15 = vcombine.low %v2570_v42, %v2586_v5  ;;  %v2604_v18 = vcombine.high %v2570_v42, %v2586_v5  ;;  %v2527_v19 = vrot.slane %v2519_v47, %v8176_v14 }
 0x3d1   : > { %1621 = vst.msk [vmem:[#allocation3 + $0x20] sm:$0xff] %vm1318_vm1, %v1617_v9  ;;  %1622 = vst.msk [vmem:[#allocation3 + $0x30] sm:$0xff] %vm1318_vm1, %v1618_v36  ;;  %v2534_v45 = vrot.slane %v2520_v12, %v8176_v14  ;;  %v2543_v25 = vrot.slane %v2535_v13, %v8176_v14  ;;  %v2550_v26 = vrot.slane %v2536_v20, %v8176_v14  ;;  %v1626_v36 = vpop.permute.xlu0 %1625 }
 0x3d2   : > { %v2595_v27 = vrot.slane %v2587_v21, %v8176_v14  ;;  %v2602_v32 = vrot.slane %v2588_v22, %v8176_v14  ;;  %v2611_v33 = vrot.slane %v2603_v15, %v8176_v14  ;;  %v2618_v34 = vrot.slane %v2604_v18, %v8176_v14 }
 0x3d3   : > { %v2623_v35 = vcombine.low %v2527_v19, %v2534_v45  ;;  %v6122_v16 = vcombine.high %v2527_v19, %v2534_v45  ;;  %v2639_v61 = vcombine.low %v2543_v25, %v2550_v26  ;;  %v6123_v37 = vcombine.high %v2543_v25, %v2550_v26  ;;  %v8318_v19 = vpop.permute.xlu1 %1627 }
 0x3d4   : > { %v2691_v38 = vcombine.low %v2595_v27, %v2602_v32  ;;  %v6124_v39 = vcombine.high %v2595_v27, %v2602_v32  ;;  %v2707_v41 = vcombine.low %v2611_v33, %v2618_v34  ;;  %v6125_v42 = vcombine.high %v2611_v33, %v2618_v34 }
 0x3d5   : > { %v2630_v51 = vrot.slane %v2623_v35, %v8173_v10  ;;  %v2638_v55 = vrot.slane %v6122_v16, %v8173_v10  ;;  %v2646_v56 = vrot.slane %v2639_v61, %v8173_v10  ;;  %v2654_v58 = vrot.slane %v6123_v37, %v8173_v10 }
 0x3d6   : > { %v2698_v59 = vrot.slane %v2691_v38, %v8173_v10  ;;  %v2706_v29 = vrot.slane %v6124_v39, %v8173_v10  ;;  %v2714_v31 = vrot.slane %v2707_v41, %v8173_v10  ;;  %v2722_v60 = vrot.slane %v6125_v42, %v8173_v10 }
 0x3d7   : > { %v2655_v62 = vcombine.low %v2630_v51, %v2638_v55  ;;  %v2656_v63 = vcombine.high %v2630_v51, %v2638_v55  ;;  %v2671_v0 = vcombine.low %v2646_v56, %v2654_v58  ;;  %v2672_v2 = vcombine.high %v2646_v56, %v2654_v58  ;;  %v3075_v50 = vld [vmem:[#allocation3] sm:$0xff]  ;;  %v3077_v4 = vld [vmem:[#allocation3 + $0x10] sm:$0xff]  ;;  %v1638_v55 = vpop.permute.xlu0 %1637 }
 0x3d8   : > { %v2723_v5 = vcombine.low %v2698_v59, %v2706_v29  ;;  %v2724_v7 = vcombine.high %v2698_v59, %v2706_v29  ;;  %v2739_v8 = vcombine.low %v2714_v31, %v2722_v60  ;;  %v2740_v9 = vcombine.high %v2714_v31, %v2722_v60  ;;  %6670 = vmatprep.subr.msk.bf16.mxu0 %vm1318_vm1, %v3075_v50  ;;  %v8344_v31 = vpop.permute.xlu1 %1631 }
 0x3d9   : > { %v2663_v47 = vrot.slane %v2655_v62, %v8176_v14  ;;  %v2670_v12 = vrot.slane %v2656_v63, %v8176_v14  ;;  %v2679_v13 = vrot.slane %v2671_v0, %v8176_v14  ;;  %v2686_v20 = vrot.slane %v2672_v2, %v8176_v14  ;;  %6672 = vmatprep.subr.msk.bf16.mxu1 %vm1318_vm1, %v3077_v4 }
 0x3da   : > { %v2731_v21 = vrot.slane %v2723_v5, %v8176_v14  ;;  %v2738_v22 = vrot.slane %v2724_v7, %v8176_v14  ;;  %v2747_v15 = vrot.slane %v2739_v8, %v8176_v14  ;;  %v2754_v18 = vrot.slane %v2740_v9, %v8176_v14 }
 0x3db   : > { %v2687_v45 = vcombine.low %v2663_v47, %v2679_v13  ;;  %v2688_v25 = vcombine.high %v2663_v47, %v2679_v13  ;;  %v2689_v26 = vcombine.low %v2670_v12, %v2686_v20  ;;  %v2690_v27 = vcombine.high %v2670_v12, %v2686_v20 }
 0x3dc   : > { %v2755_v32 = vcombine.low %v2731_v21, %v2747_v15  ;;  %v2756_v33 = vcombine.high %v2731_v21, %v2747_v15  ;;  %v2757_v34 = vcombine.low %v2738_v22, %v2754_v18  ;;  %v2758_v35 = vcombine.high %v2738_v22, %v2754_v18 }
 0x3dd   : > { %v2187_v16 = vcombine.low %v8114_v48, %v8276_v1  ;;  %v2188_v61 = vcombine.high %v8114_v48, %v8276_v1  ;;  %v2255_v37 = vcombine.low %v8122_v52, %v8282_v11  ;;  %v2256_v38 = vcombine.high %v8122_v52, %v8282_v11 }
 0x3de   : > { %v2759_v39 = vpack.c.bf16 %v2755_v32, %v2687_v45  ;;  %v2760_v41 = vpack.c.bf16 %v2756_v33, %v2688_v25  ;;  %v2761_v42 = vpack.c.bf16 %v2757_v34, %v2689_v26  ;;  %v2762_v51 = vpack.c.bf16 %v2758_v35, %v2690_v27 }
 0x3df   : > { %v2195_v56 = vrot.slane %v2187_v16, %v8173_v10  ;;  %v2202_v58 = vrot.slane %v2188_v61, %v8173_v10  ;;  %v2263_v59 = vrot.slane %v2255_v37, %v8173_v10  ;;  %v2270_v29 = vrot.slane %v2256_v38, %v8173_v10 }
 0x3e0   : > { %2763 = vst.msk [vmem:[#allocation3 + $0x8] sm:$0xff] %vm1318_vm1, %v2759_v39  ;;  %2764 = vst.msk [vmem:[#allocation3 + $0x18] sm:$0xff] %vm1318_vm1, %v2760_v41  ;;  %v2203_v48 = vcombine.low %v8224_v17, %v8296_v23  ;;  %v2204_v52 = vcombine.high %v8224_v17, %v8296_v23  ;;  %v2271_v1 = vcombine.low %v8236_v24, %v8298_v44  ;;  %v3090_v60 = vsel %vm1318_vm1, %v3075_v50, 0 }
 0x3e1   : > { %2765 = vst.msk [vmem:[#allocation3 + $0x28] sm:$0xff] %vm1318_vm1, %v2761_v42  ;;  %2766 = vst.msk [vmem:[#allocation3 + $0x38] sm:$0xff] %vm1318_vm1, %v2762_v51  ;;  %v2272_v11 = vcombine.high %v8236_v24, %v8298_v44  ;;  %v3151_v62 = vsel %vm1318_vm1, %v3077_v4, 0  ;;  %v1659_v63 = vcombine.low %v1626_v36, %v1638_v55  ;;  %v1660_v0 = vcombine.high %v1626_v36, %v1638_v55 }
 0x3e2   : > { %v2211_v2 = vrot.slane %v2203_v48, %v8173_v10  ;;  %v2218_v5 = vrot.slane %v2204_v52, %v8173_v10  ;;  %v2279_v17 = vrot.slane %v2271_v1, %v8173_v10  ;;  %6519 = vmatpush3.bf16.xpose.msra.mxu0 %v3090_v60  ;;  %6527 = vmatpush3.bf16.xpose.msra.mxu1 %v3151_v62  ;;  %v1634_v62 = vpop.permute.xlu1 %1633 }
 0x3e3   : > { %v2286_v23 = vrot.slane %v2272_v11, %v8173_v10  ;;  %v8353_v24 = vrot.slane %v1659_v63, %v8173_v10  ;;  %v8356_v44 = vrot.slane %v1660_v0, %v8173_v10  ;;  %v1643_v50 = vcombine.low %v8080_v40, %v8344_v31 }
 0x3e4   : > { %v1644_v4 = vcombine.high %v8080_v40, %v8344_v31  ;;  %v2219_v7 = vcombine.low %v2195_v56, %v2211_v2  ;;  %v2220_v8 = vcombine.high %v2195_v56, %v2211_v2  ;;  %v2235_v9 = vcombine.low %v2202_v58, %v2218_v5 }
 0x3e5   : > { %v2236_v36 = vcombine.high %v2202_v58, %v2218_v5  ;;  %v2287_v47 = vcombine.low %v2263_v59, %v2279_v17  ;;  %v2288_v12 = vcombine.high %v2263_v59, %v2279_v17  ;;  %v2303_v13 = vcombine.low %v2270_v29, %v2286_v23 }
 0x3e6   : > { %v2304_v20 = vcombine.high %v2270_v29, %v2286_v23  ;;  %v2227_v21 = vrot.slane %v2219_v7, %v8176_v14  ;;  %v2234_v22 = vrot.slane %v2220_v8, %v8176_v14  ;;  %v2243_v15 = vrot.slane %v2235_v9, %v8176_v14 }
 0x3e7   : > { %v2250_v18 = vrot.slane %v2236_v36, %v8176_v14  ;;  %v2295_v45 = vrot.slane %v2287_v47, %v8176_v14  ;;  %v2302_v25 = vrot.slane %v2288_v12, %v8176_v14  ;;  %v2311_v26 = vrot.slane %v2303_v13, %v8176_v14  ;;  %v8370_v32 = vld [vmem:[#allocation3 + $0x8] sm:$0xff]  ;;  %v8372_v33 = vld [vmem:[#allocation3 + $0x18] sm:$0xff] }
 0x3e8   : > { %v2318_v27 = vrot.slane %v2304_v20, %v8176_v14  ;;  %v2323_v34 = vcombine.low %v2227_v21, %v2234_v22  ;;  %v6118_v35 = vcombine.high %v2227_v21, %v2234_v22  ;;  %6671 = vmatprep.subr.msk.bf16.mxu0 %vm1318_vm1, %v8370_v32  ;;  %6673 = vmatprep.subr.msk.bf16.mxu1 %vm1318_vm1, %v8372_v33 }
 0x3e9   : > { %v2339_v16 = vcombine.low %v2243_v15, %v2250_v18  ;;  %v6119_v61 = vcombine.high %v2243_v15, %v2250_v18  ;;  %v2391_v37 = vcombine.low %v2295_v45, %v2302_v25  ;;  %v6120_v38 = vcombine.high %v2295_v45, %v2302_v25 }
 0x3ea   : > { %v2407_v39 = vcombine.low %v2311_v26, %v2318_v27  ;;  %v6121_v41 = vcombine.high %v2311_v26, %v2318_v27  ;;  %v2330_v42 = vrot.slane %v2323_v34, %v8173_v10  ;;  %v2338_v51 = vrot.slane %v6118_v35, %v8173_v10 }
 0x3eb   : > { %v2346_v55 = vrot.slane %v2339_v16, %v8173_v10  ;;  %v2354_v56 = vrot.slane %v6119_v61, %v8173_v10  ;;  %v2398_v58 = vrot.slane %v2391_v37, %v8173_v10  ;;  %v2406_v59 = vrot.slane %v6120_v38, %v8173_v10  ;;  %v1640_v16 = vpop.permute.xlu1 %1639 }
 0x3ec   : > { %v2414_v29 = vrot.slane %v2407_v39, %v8173_v10  ;;  %v2422_v48 = vrot.slane %v6121_v41, %v8173_v10  ;;  %v2355_v52 = vcombine.low %v2330_v42, %v2338_v51  ;;  %v2356_v1 = vcombine.high %v2330_v42, %v2338_v51 }
 0x3ed   : > { %v2371_v11 = vcombine.low %v2346_v55, %v2354_v56  ;;  %v2372_v60 = vcombine.high %v2346_v55, %v2354_v56  ;;  %v2423_v63 = vcombine.low %v2398_v58, %v2406_v59  ;;  %v2424_v0 = vcombine.high %v2398_v58, %v2406_v59 }
 0x3ee   : > { %v2439_v2 = vcombine.low %v2414_v29, %v2422_v48  ;;  %v2440_v5 = vcombine.high %v2414_v29, %v2422_v48  ;;  %v2363_v17 = vrot.slane %v2355_v52, %v8176_v14  ;;  %v2370_v23 = vrot.slane %v2356_v1, %v8176_v14 }
 0x3ef   : > { %v2379_v7 = vrot.slane %v2371_v11, %v8176_v14  ;;  %v2386_v8 = vrot.slane %v2372_v60, %v8176_v14  ;;  %v2431_v9 = vrot.slane %v2423_v63, %v8176_v14  ;;  %v2438_v36 = vrot.slane %v2424_v0, %v8176_v14 }
 0x3f0   : > { %v2447_v47 = vrot.slane %v2439_v2, %v8176_v14  ;;  %v2454_v12 = vrot.slane %v2440_v5, %v8176_v14  ;;  %v1651_v26 = vrot.slane %v1643_v50, %v8173_v10  ;;  %v1658_v27 = vrot.slane %v1644_v4, %v8173_v10  ;;  %v3079_v2 = vld [vmem:[#allocation3 + $0x20] sm:$0xff] }
 0x3f1   : > { %v2387_v13 = vcombine.low %v2363_v17, %v2379_v7  ;;  %v2388_v20 = vcombine.high %v2363_v17, %v2379_v7  ;;  %v2389_v21 = vcombine.low %v2370_v23, %v2386_v8  ;;  %v2390_v22 = vcombine.high %v2370_v23, %v2386_v8 }
 0x3f2   : > { %v2455_v15 = vcombine.low %v2431_v9, %v2447_v47  ;;  %v2456_v18 = vcombine.high %v2431_v9, %v2447_v47  ;;  %v2457_v45 = vcombine.low %v2438_v36, %v2454_v12  ;;  %v2458_v25 = vcombine.high %v2438_v36, %v2454_v12 }
 0x3f3   : > { %v1711_v34 = vcombine.low %v8086_v43, %v1634_v62  ;;  %v1712_v35 = vcombine.high %v8086_v43, %v1634_v62  ;;  %v1675_v41 = vcombine.low %v1651_v26, %v8353_v24  ;;  %v1676_v42 = vcombine.high %v1651_v26, %v8353_v24 }
 0x3f4   : > { %v2459_v61 = vpack.c.bf16 %v2455_v15, %v2387_v13  ;;  %v2460_v37 = vpack.c.bf16 %v2456_v18, %v2388_v20  ;;  %v2461_v38 = vpack.c.bf16 %v2457_v45, %v2389_v21  ;;  %v2462_v39 = vpack.c.bf16 %v2458_v25, %v2390_v22 }
 0x3f5   : > { %v1691_v50 = vcombine.low %v1658_v27, %v8356_v44  ;;  %v1692_v51 = vcombine.high %v1658_v27, %v8356_v44  ;;  %v1719_v40 = vrot.slane %v1711_v34, %v8173_v10  ;;  %v1726_v43 = vrot.slane %v1712_v35, %v8173_v10 }
 0x3f6   : > { %2463 = vst.msk [vmem:[#allocation2 + $0x8] sm:$0xff] %vm1318_vm1, %v2459_v61  ;;  %2464 = vst.msk [vmem:[#allocation2 + $0x18] sm:$0xff] %vm1318_vm1, %v2460_v37  ;;  %v1727_v31 = vcombine.low %v8318_v19, %v1640_v16  ;;  %v1728_v24 = vcombine.high %v8318_v19, %v1640_v16  ;;  %v1683_v4 = vrot.slane %v1675_v41, %v8176_v14  ;;  %v3093_v29 = vsel %vm1318_vm1, %v8370_v32, 0 }
 0x3f7   : > { %2465 = vst.msk [vmem:[#allocation2 + $0x28] sm:$0xff] %vm1318_vm1, %v2461_v38  ;;  %2466 = vst.msk [vmem:[#allocation2 + $0x38] sm:$0xff] %vm1318_vm1, %v2462_v39  ;;  %v1690_v44 = vrot.slane %v1676_v42, %v8176_v14  ;;  %v1699_v55 = vrot.slane %v1691_v50, %v8176_v14  ;;  %v1706_v56 = vrot.slane %v1692_v51, %v8176_v14  ;;  %v3154_v48 = vsel %vm1318_vm1, %v8372_v33, 0  ;;  %v3081_v33 = vld [vmem:[#allocation3 + $0x30] sm:$0xff]  ;;  %v3071_v39 = vld [vmem:[#allocation2 + $0x20] sm:$0xff] }
 0x3f8   : > { %v1735_v58 = vrot.slane %v1727_v31, %v8173_v10  ;;  %v1742_v59 = vrot.slane %v1728_v24, %v8173_v10  ;;  %6521 = vmatpush3.bf16.xpose.msra.mxu0 %v3093_v29  ;;  %6529 = vmatpush3.bf16.xpose.msra.mxu1 %v3154_v48  ;;  %v3212_v31 = vsel %vm1318_vm1, %v3079_v2, 0  ;;  %v3273_v24 = vsel %vm1318_vm1, %v3081_v33, 0 }
 0x3f9   : > { %v1779_v52 = vcombine.low %v1683_v4, %v1690_v44  ;;  %v6090_v19 = vcombine.high %v1683_v4, %v1690_v44  ;;  %v1795_v1 = vcombine.low %v1699_v55, %v1706_v56  ;;  %v6091_v11 = vcombine.high %v1699_v55, %v1706_v56  ;;  %6674 = vmatprep.subr.msk.bf16.mxu0 %vm1318_vm1, %v3079_v2 }
 0x3fa   : > { %v1743_v60 = vcombine.low %v1719_v40, %v1735_v58  ;;  %v1744_v62 = vcombine.high %v1719_v40, %v1735_v58  ;;  %v1759_v63 = vcombine.low %v1726_v43, %v1742_v59  ;;  %v1760_v0 = vcombine.high %v1726_v43, %v1742_v59  ;;  %6676 = vmatprep.subr.msk.bf16.mxu1 %vm1318_vm1, %v3081_v33  ;;  %v3073_v40 = vld [vmem:[#allocation2 + $0x30] sm:$0xff]  ;;  %v3080_v58 = vld [vmem:[#allocation3 + $0x28] sm:$0xff] }
 0x3fb   : > { %v1786_v5 = vrot.slane %v1779_v52, %v8173_v10  ;;  %v1794_v17 = vrot.slane %v6090_v19, %v8173_v10  ;;  %v1802_v32 = vrot.slane %v1795_v1, %v8173_v10  ;;  %v1810_v23 = vrot.slane %v6091_v11, %v8173_v10  ;;  %v3082_v52 = vld [vmem:[#allocation3 + $0x38] sm:$0xff] }
 0x3fc   : > { %v1751_v7 = vrot.slane %v1743_v60, %v8176_v14  ;;  %v1758_v8 = vrot.slane %v1744_v62, %v8176_v14  ;;  %v1767_v9 = vrot.slane %v1759_v63, %v8176_v14  ;;  %v1774_v36 = vrot.slane %v1760_v0, %v8176_v14 }
 0x3fd   : > { %v1811_v47 = vcombine.low %v1786_v5, %v1794_v17  ;;  %v1812_v12 = vcombine.high %v1786_v5, %v1794_v17  ;;  %v1827_v13 = vcombine.low %v1802_v32, %v1810_v23  ;;  %v1828_v20 = vcombine.high %v1802_v32, %v1810_v23  ;;  %v3068_v21 = vld [vmem:[#allocation2 + $0x8] sm:$0xff]  ;;  %v3070_v25 = vld [vmem:[#allocation2 + $0x18] sm:$0xff] }
 0x3fe   : > { %v1847_v22 = vcombine.low %v1751_v7, %v1758_v8  ;;  %v6092_v15 = vcombine.high %v1751_v7, %v1758_v8  ;;  %v1863_v18 = vcombine.low %v1767_v9, %v1774_v36  ;;  %v6093_v45 = vcombine.high %v1767_v9, %v1774_v36  ;;  %v3072_v33 = vld [vmem:[#allocation2 + $0x28] sm:$0xff]  ;;  %v3074_v7 = vld [vmem:[#allocation2 + $0x38] sm:$0xff] }
 0x3ff   : > { %v1819_v26 = vrot.slane %v1811_v47, %v8176_v14  ;;  %v1835_v27 = vrot.slane %v1827_v13, %v8176_v14  ;;  %6523 = vmatmul.mubr.msk.bf16.vlgmr.msra.gmra.mrb[8].mxu0 %vm1318_vm1, %v3068_v21  ;;  %v1826_v37 = vrot.slane %v1812_v12, %v8176_v14  ;;  %v1842_v38 = vrot.slane %v1828_v20, %v8176_v14 }
 0x400   : > { %v1854_v34 = vrot.slane %v1847_v22, %v8173_v10  ;;  %v1862_v35 = vrot.slane %v6092_v15, %v8173_v10  ;;  %v1870_v16 = vrot.slane %v1863_v18, %v8173_v10  ;;  %v1878_v61 = vrot.slane %v6093_v45, %v8173_v10  ;;  %6531 = vmatmul.mubr.msk.bf16.vlgmr.msra.gmra.mrb[8].mxu1 %vm1318_vm1, %v3070_v25 }
 0x401   : > { %6538 = vmatprep.mubr.msk.bf16.mxu0 %vm1318_vm1, %v3071_v39  ;;  %v1843_v43 = vcombine.low %v1819_v26, %v1835_v27  ;;  %6546 = vmatprep.mubr.msk.bf16.mxu1 %vm1318_vm1, %v3073_v40  ;;  %v1844_v59 = vcombine.high %v1819_v26, %v1835_v27  ;;  %v1845_v29 = vcombine.low %v1826_v37, %v1842_v38  ;;  %v3215_v5 = vsel %vm1318_vm1, %v3080_v58, 0 }
 0x402   : > { %v1879_v41 = vcombine.low %v1854_v34, %v1862_v35  ;;  %v1880_v42 = vcombine.high %v1854_v34, %v1862_v35  ;;  %v1895_v50 = vcombine.low %v1870_v16, %v1878_v61  ;;  %v1896_v51 = vcombine.high %v1870_v16, %v1878_v61  ;;  %6535 = vmatpush3.bf16.xpose.msra.mxu0 %v3212_v31 }
 0x403   : > { %v1846_v48 = vcombine.high %v1826_v37, %v1842_v38  ;;  %6543 = vmatpush3.bf16.xpose.msra.mxu1 %v3273_v24  ;;  %6675 = vmatprep.subr.msk.bf16.mxu0 %vm1318_vm1, %v3080_v58  ;;  %v3276_v17 = vsel %vm1318_vm1, %v3082_v52, 0 }
 0x404   : > { %v1887_v4 = vrot.slane %v1879_v41, %v8176_v14  ;;  %v1894_v44 = vrot.slane %v1880_v42, %v8176_v14  ;;  %v1903_v55 = vrot.slane %v1895_v50, %v8176_v14  ;;  %v1910_v56 = vrot.slane %v1896_v51, %v8176_v14  ;;  %6677 = vmatprep.subr.msk.bf16.mxu1 %vm1318_vm1, %v3082_v52 }
 0x406   : > { %v1911_v19 = vcombine.low %v1887_v4, %v1903_v55  ;;  %v1912_v1 = vcombine.high %v1887_v4, %v1903_v55  ;;  %v1913_v11 = vcombine.low %v1894_v44, %v1910_v56  ;;  %v1914_v60 = vcombine.high %v1894_v44, %v1910_v56 }
 0x408   : > { %v1915_v62 = vpack.c.bf16 %v1911_v19, %v1843_v43  ;;  %v1916_v63 = vpack.c.bf16 %v1912_v1, %v1844_v59  ;;  %v1917_v0 = vpack.c.bf16 %v1913_v11, %v1845_v29  ;;  %v1918_v2 = vpack.c.bf16 %v1914_v60, %v1846_v48 }
 0x40a   : > { %1919 = vst.msk [vmem:[#allocation4] sm:$0xff] %vm1318_vm1, %v1915_v62  ;;  %1920 = vst.msk [vmem:[#allocation4 + $0x10] sm:$0xff] %vm1318_vm1, %v1916_v63  ;;  %6537 = vmatpush3.bf16.xpose.msra.mxu0 %v3215_v5 }
 0x40b   : > { %1921 = vst.msk [vmem:[#allocation4 + $0x20] sm:$0xff] %vm1318_vm1, %v1917_v0  ;;  %1922 = vst.msk [vmem:[#allocation4 + $0x30] sm:$0xff] %vm1318_vm1, %v1918_v2  ;;  %6545 = vmatpush3.bf16.xpose.msra.mxu1 %v3276_v17  ;;  %v8536_v17 = vpop.permute.xlu0 %2769 }
 0x411   : > { %v3527_v32 = vld [vmem:[#allocation4] sm:$0xff]  ;;  %v3529_v23 = vld [vmem:[#allocation4 + $0x10] sm:$0xff]  ;;  %6539 = vmatmul.mubr.msk.bf16.vlgmr.msra.gmra.mrb[12].mxu0 %vm1318_vm1, %v3072_v33 }
 0x412   : > { %6550 = vmatprep.subr.bf16.mxu0 %v3527_v32  ;;  %6558 = vmatprep.subr.bf16.mxu1 %v3529_v23 }
 0x413   : > { %6547 = vmatmul.mubr.msk.bf16.vlgmr.msra.gmra.mrb[12].mxu1 %vm1318_vm1, %v3074_v7  ;;  %6551 = vmatpush3.bf16.msra.mxu0 %v3527_v32  ;;  %v8538_v32 = vpop.permute.xlu1 %2771 }
 0x414   : > { %6559 = vmatpush3.bf16.msra.mxu1 %v3529_v23 }
 0x4d2   : > { %v6524_v8 = vpop.f32.mrb[8].mxu0 }
 0x4d3   : > { %v8464_v9 = vmul.f32 0.17677669, %v6524_v8  ;;  %v6532_v36 = vpop.f32.mrb[8].mxu1  ;;  %v3129_v47 = vpop.f32.mrb[9].mxu0 }
 0x4d4   : > { %v3190_v12 = vpop.f32.mrb[9].mxu1  ;;  %v6525_v13 = vpop.f32.mrb[10].mxu0  ;;  %v8466_v22 = vmul.f32 0.17677669, %v6532_v36  ;;  %v8476_v27 = vmul.f32 0.17677669, %v3129_v47 }
 0x4d5   : > { %v6533_v20 = vpop.f32.mrb[10].mxu1  ;;  %v3132_v21 = vpop.f32.mrb[11].mxu0  ;;  %v3349_v45 = vsel %vm1318_vm1, %v8464_v9, -inf  ;;  %v8484_v61 = vmul.f32 0.17677669, %v3190_v12 }
 0x4d6   : > { %v8468_v15 = vmul.f32 0.17677669, %v6533_v20  ;;  %v3193_v18 = vpop.f32.mrb[11].mxu1  ;;  %3350 = vmax.xlane.f32.xlu0 %v3349_v45  ;;  %v8472_v25 = vmul.f32 0.17677669, %v3132_v21  ;;  %v3361_v34 = vsel %vm1318_vm1, %v8466_v22, -inf }
 0x4d7   : > { %v8480_v35 = vmul.f32 0.17677669, %v3193_v18  ;;  %v3343_v37 = vsel %vm1318_vm1, %v8476_v27, -inf  ;;  %v8490_v39 = vmul.f32 0.17677669, %v6525_v13  ;;  %v3355_v41 = vsel %vm1318_vm1, %v8484_v61, -inf }
 0x4d8   : > { %v3364_v26 = vsel %vm1318_vm1, %v8468_v15, -inf  ;;  %v3346_v16 = vsel %vm1318_vm1, %v8472_v25, -inf }
 0x4d9   : > { %3365 = vmax.xlane.f32.xlu1 %v3364_v26  ;;  %v3358_v38 = vsel %vm1318_vm1, %v8480_v35, -inf  ;;  %v3352_v40 = vsel %vm1318_vm1, %v8490_v39, -inf }
 0x4da   : > { %3362 = vmax.xlane.f32.xlu0 %v3361_v34 }
 0x4dd   : > { %3347 = vmax.xlane.f32.xlu1 %v3346_v16 }
 0x4de   : > { %3344 = vmax.xlane.f32.xlu0 %v3343_v37 }
 0x4e1   : > { %3359 = vmax.xlane.f32.xlu1 %v3358_v38 }
 0x4e2   : > { %3356 = vmax.xlane.f32.xlu0 %v3355_v41 }
 0x4e4   : > { %v6540_v42 = vpop.f32.mrb[12].mxu0 }
 0x4e5   : > { %v3251_v51 = vpop.f32.mrb[13].mxu0  ;;  %v8512_v52 = vmul.f32 0.17677669, %v6540_v42 }
 0x4e6   : > { %v6548_v50 = vpop.f32.mrb[12].mxu1  ;;  %v6541_v31 = vpop.f32.mrb[14].mxu0  ;;  %3353 = vmax.xlane.f32.xlu0 %v3352_v40  ;;  %v8518_v11 = vmul.f32 0.17677669, %v3251_v51 }
 0x4e7   : > { %v3312_v43 = vpop.f32.mrb[13].mxu1  ;;  %v8496_v24 = vmul.f32 0.17677669, %v6541_v31  ;;  %v3254_v44 = vpop.f32.mrb[15].mxu0  ;;  %v8514_v19 = vmul.f32 0.17677669, %v6548_v50 }
 0x4e8   : > { %v6549_v4 = vpop.f32.mrb[14].mxu1  ;;  %v8502_v59 = vmul.f32 0.17677669, %v3254_v44  ;;  %v3373_v1 = vsel %vm1318_vm1, %v8512_v52, -inf  ;;  %v8522_v62 = vmul.f32 0.17677669, %v3312_v43 }
 0x4e9   : > { %v3315_v55 = vpop.f32.mrb[15].mxu1  ;;  %v8498_v56 = vmul.f32 0.17677669, %v6549_v4  ;;  %v3376_v58 = vsel %vm1318_vm1, %v8496_v24, -inf  ;;  %v3385_v60 = vsel %vm1318_vm1, %v8514_v19, -inf  ;;  %v3367_v0 = vsel %vm1318_vm1, %v8518_v11, -inf }
 0x4ea   : > { %3377 = vmax.xlane.f32.xlu1 %v3376_v58  ;;  %v3370_v48 = vsel %vm1318_vm1, %v8502_v59, -inf  ;;  %v8524_v63 = vmul.f32 0.17677669, %v3315_v55  ;;  %v3379_v5 = vsel %vm1318_vm1, %v8522_v62, -inf }
 0x4eb   : > { %v3388_v29 = vsel %vm1318_vm1, %v8498_v56, -inf }
 0x4ec   : > { %v3382_v2 = vsel %vm1318_vm1, %v8524_v63, -inf }
 0x4ee   : > { %3389 = vmax.xlane.f32.xlu1 %v3388_v29 }
 0x4f2   : > { %3371 = vmax.xlane.f32.xlu1 %v3370_v48 }
 0x4fc   : > { %2775 = vrot.lane.b32.xlu0 %v8116_v49, %s7571_s12 }
 0x503   : > { %2777 = vrot.lane.b32.xlu1 %v8124_v53, %s7571_s12  ;;  %s6314_s12 = sshll.u32 %s7685_s27, 8 }
 0x51b   : > { %3374 = vmax.xlane.f32.xlu0 %v3373_v1 }
 0x51f   : > { %3386 = vmax.xlane.f32.xlu0 %v3385_v60 }
 0x523   : > { %3368 = vmax.xlane.f32.xlu0 %v3367_v0 }
 0x527   : > { %3383 = vmax.xlane.f32.xlu1 %v3382_v2  ;;  %3380 = vmax.xlane.f32.xlu0 %v3379_v5 }
 0x538   : > { %2783 = vrot.lane.b32.xlu1 %v8124_v53, %s7572_s28 }
 0x53d   : > { %2781 = vrot.lane.b32.xlu0 %v8116_v49, %s7572_s28 }
 0x563   : > { %v3351_v23 = vpop.xlane.xlu0 %3350 }
 0x564   : > { %v3393_v8 = vsub.f32 %v8464_v9, %v3351_v23 }
 0x566   : > { %v3366_v33 = vpop.xlane.xlu1 %3365  ;;  %v3411_v18 = vmul.f32 1.442695, %v3393_v8 }
 0x567   : > { %v3363_v7 = vpop.xlane.xlu0 %3362  ;;  %v3398_v13 = vsub.f32 %v8468_v15, %v3366_v33 }
 0x569   : > { %v3421_v37 = vmul.f32 1.442695, %v3398_v13 }
 0x56a   : > { %v3348_v36 = vpop.xlane.xlu1 %3347 }
 0x56b   : > { %v3392_v47 = vsub.f32 %v8472_v25, %v3348_v36  ;;  %v3345_v12 = vpop.xlane.xlu0 %3344 }
 0x56c   : > { %v3391_v21 = vsub.f32 %v8476_v27, %v3345_v12  ;;  %v3397_v27 = vsub.f32 %v8466_v22, %v3363_v7 }
 0x56d   : > { %v3409_v20 = vmul.f32 1.442695, %v3392_v47 }
 0x56e   : > { %v3360_v45 = vpop.xlane.xlu1 %3359  ;;  %v3407_v26 = vmul.f32 1.442695, %v3391_v21  ;;  %v3419_v43 = vmul.f32 1.442695, %v3397_v27 }
 0x56f   : > { %7076 = vpow2.f32 %v3409_v20  ;;  %v3396_v34 = vsub.f32 %v8480_v35, %v3360_v45  ;;  %v3357_v16 = vpop.xlane.xlu0 %3356 }
 0x570   : > { %7078 = vpow2.f32 %v3407_v26  ;;  %v3395_v9 = vsub.f32 %v8484_v61, %v3357_v16 }
 0x571   : > { %v3417_v38 = vmul.f32 1.442695, %v3396_v34  ;;  %7080 = vpow2.f32 %v3411_v18 }
 0x572   : > { %v3415_v41 = vmul.f32 1.442695, %v3395_v9 }
 0x573   : > { %7082 = vpow2.f32 %v3417_v38  ;;  %v3354_v25 = vpop.xlane.xlu0 %3353 }
 0x574   : > { %7084 = vpow2.f32 %v3421_v37  ;;  %v3394_v15 = vsub.f32 %v8490_v39, %v3354_v25 }
 0x576   : > { %v3413_v42 = vmul.f32 1.442695, %v3394_v15 }
 0x577   : > { %v3378_v50 = vpop.xlane.xlu1 %3377  ;;  %v2776_v12 = vpop.permute.xlu0 %2775 }
 0x578   : > { %7086 = vpow2.f32 %v3413_v42  ;;  %v3402_v55 = vsub.f32 %v8496_v24, %v3378_v50 }
 0x579   : > { %v8548_v51 = vpop.eup %7076  ;;  %7088 = vpow2.f32 %v3415_v41 }
 0x57a   : > { %v3442_v35 = vsel %vm1318_vm1, %v8548_v51, 0.0  ;;  %v8552_v40 = vpop.eup %7078  ;;  %7090 = vpow2.f32 %v3419_v43  ;;  %v3429_v0 = vmul.f32 1.442695, %v3402_v55 }
 0x57b   : > { %3443 = vadd.xlane.f32.xlu1 %v3442_v35  ;;  %v8554_v61 = vpop.eup %7080  ;;  %v3390_v31 = vpop.xlane.xlu1 %3389  ;;  %v3439_v22 = vsel %vm1318_vm1, %v8552_v40, 0.0 }
 0x57c   : > { %3440 = vadd.xlane.f32.xlu0 %v3439_v22  ;;  %v3445_v29 = vsel %vm1318_vm1, %v8554_v61, 0.0  ;;  %v3406_v21 = vsub.f32 %v8498_v56, %v3390_v31 }
 0x57d   : > { %v8558_v39 = vpop.eup %7082 }
 0x57e   : > { %v3454_v4 = vsel %vm1318_vm1, %v8558_v39, 0.0  ;;  %v8562_v44 = vpop.eup %7084  ;;  %v3437_v37 = vmul.f32 1.442695, %v3406_v21 }
 0x57f   : > { %3455 = vadd.xlane.f32.xlu1 %v3454_v4  ;;  %v3372_v58 = vpop.xlane.xlu1 %3371  ;;  %v3460_v1 = vsel %vm1318_vm1, %v8562_v44, 0.0 }
 0x580   : > { %v3400_v48 = vsub.f32 %v8502_v59, %v3372_v58  ;;  %3446 = vadd.xlane.f32.xlu0 %v3445_v29 }
 0x582   : > { %v8570_v60 = vpop.eup %7086  ;;  %v3425_v2 = vmul.f32 1.442695, %v3400_v48 }
 0x583   : > { %3461 = vadd.xlane.f32.xlu1 %v3460_v1  ;;  %v3448_v5 = vsel %vm1318_vm1, %v8570_v60, 0.0  ;;  %v8574_v24 = vpop.eup %7088  ;;  %v2778_v18 = vpop.permute.xlu1 %2777 }
 0x584   : > { %7092 = vpow2.f32 %v3425_v2  ;;  %3449 = vadd.xlane.f32.xlu0 %v3448_v5  ;;  %v3451_v59 = vsel %vm1318_vm1, %v8574_v24, 0.0  ;;  %v8578_v23 = vpop.eup %7090  ;;  %v2855_v42 = vcombine.low %v8124_v53, %v2778_v18  ;;  %v2856_v56 = vcombine.high %v8124_v53, %v2778_v18 }
 0x585   : > { %7094 = vpow2.f32 %v3429_v0  ;;  %v3457_v33 = vsel %vm1318_vm1, %v8578_v23, 0.0 }
 0x586   : > { %7096 = vpow2.f32 %v3437_v37  ;;  %v2863_v53 = vrot.slane %v2855_v42, %v8173_v10  ;;  %v2870_v4 = vrot.slane %v2856_v56, %v8173_v10 }
 0x588   : > { %3452 = vadd.xlane.f32.xlu0 %v3451_v59 }
 0x58c   : > { %3458 = vadd.xlane.f32.xlu0 %v3457_v33 }
 0x58e   : > { %v8582_v7 = vpop.eup %7092 }
 0x58f   : > { %v3466_v8 = vsel %vm1318_vm1, %v8582_v7, 0.0  ;;  %v8586_v36 = vpop.eup %7094 }
 0x590   : > { %3467 = vadd.xlane.f32.xlu1 %v3466_v8  ;;  %v3472_v47 = vsel %vm1318_vm1, %v8586_v36, 0.0 }
 0x594   : > { %3473 = vadd.xlane.f32.xlu1 %v3472_v47 }
 0x5a8   : > { %v3375_v13 = vpop.xlane.xlu0 %3374 }
 0x5a9   : > { %v3401_v45 = vsub.f32 %v8512_v52, %v3375_v13 }
 0x5ab   : > { %v3427_v38 = vmul.f32 1.442695, %v3401_v45 }
 0x5ac   : > { %v3387_v20 = vpop.xlane.xlu0 %3386 }
 0x5ad   : > { %v3405_v34 = vsub.f32 %v8514_v19, %v3387_v20  ;;  %v2787_v19 = vcombine.low %v8116_v49, %v2776_v12  ;;  %7098 = vpow2.f32 %v3427_v38 }
 0x5af   : > { %v3435_v15 = vmul.f32 1.442695, %v3405_v34  ;;  %v2795_v48 = vrot.slane %v2787_v19, %v8173_v10 }
 0x5b0   : > { %v3369_v26 = vpop.xlane.xlu0 %3368 }
 0x5b1   : > { %v3399_v16 = vsub.f32 %v8518_v11, %v3369_v26  ;;  %v2788_v11 = vcombine.high %v8116_v49, %v2776_v12  ;;  %7100 = vpow2.f32 %v3435_v15 }
 0x5b3   : > { %v3423_v50 = vmul.f32 1.442695, %v3399_v16  ;;  %v8620_v16 = vpop.eup %7096 }
 0x5b4   : > { %v3384_v9 = vpop.xlane.xlu1 %3383  ;;  %v3381_v25 = vpop.xlane.xlu0 %3380 }
 0x5b5   : > { %v3404_v27 = vsub.f32 %v8524_v63, %v3384_v9  ;;  %v3403_v41 = vsub.f32 %v8522_v62, %v3381_v25  ;;  %7102 = vpow2.f32 %v3423_v50 }
 0x5b7   : > { %v3433_v52 = vmul.f32 1.442695, %v3404_v27  ;;  %v3431_v35 = vmul.f32 1.442695, %v3403_v41  ;;  %v8622_v15 = vpop.eup %7098 }
 0x5b8   : > { %v2784_v43 = vpop.permute.xlu1 %2783  ;;  %v2782_v31 = vpop.permute.xlu0 %2781 }
 0x5b9   : > { %v2871_v63 = vcombine.low %v8538_v32, %v2784_v43  ;;  %v2872_v62 = vcombine.high %v8538_v32, %v2784_v43  ;;  %v2803_v22 = vcombine.low %v8536_v17, %v2782_v31  ;;  %v2804_v55 = vcombine.high %v8536_v17, %v2782_v31 }
 0x5ba   : > { %7104 = vpow2.f32 %v3433_v52  ;;  %v2802_v32 = vrot.slane %v2788_v11, %v8173_v10 }
 0x5bb   : > { %v2879_v49 = vrot.slane %v2871_v63, %v8173_v10  ;;  %v2886_v58 = vrot.slane %v2872_v62, %v8173_v10  ;;  %v2811_v29 = vrot.slane %v2803_v22, %v8173_v10  ;;  %7106 = vpow2.f32 %v3431_v35  ;;  %v8624_v50 = vpop.eup %7100 }
 0x5bc   : > { %v2818_v1 = vrot.slane %v2804_v55, %v8173_v10 }
 0x5bd   : > { %v2887_v0 = vcombine.low %v2863_v53, %v2879_v49  ;;  %v2888_v2 = vcombine.high %v2863_v53, %v2879_v49  ;;  %v2903_v5 = vcombine.low %v2870_v4, %v2886_v58  ;;  %v2904_v59 = vcombine.high %v2870_v4, %v2886_v58 }
 0x5be   : > { %v2819_v33 = vcombine.low %v2795_v48, %v2811_v29  ;;  %v2820_v17 = vcombine.high %v2795_v48, %v2811_v29  ;;  %v2835_v8 = vcombine.low %v2802_v32, %v2818_v1  ;;  %v2836_v47 = vcombine.high %v2802_v32, %v2818_v1 }
 0x5bf   : > { %v2895_v12 = vrot.slane %v2887_v0, %v8176_v14  ;;  %v2902_v13 = vrot.slane %v2888_v2, %v8176_v14  ;;  %v2911_v20 = vrot.slane %v2903_v5, %v8176_v14  ;;  %v2918_v21 = vrot.slane %v2904_v59, %v8176_v14  ;;  %v8630_v43 = vpop.eup %7102 }
 0x5c0   : > { %v2827_v18 = vrot.slane %v2819_v33, %v8176_v14  ;;  %v2834_v45 = vrot.slane %v2820_v17, %v8176_v14  ;;  %v2843_v26 = vrot.slane %v2835_v8, %v8176_v14  ;;  %v2850_v34 = vrot.slane %v2836_v47, %v8176_v14 }
 0x5c1   : > { %v2991_v37 = vcombine.low %v2895_v12, %v2902_v13  ;;  %v6128_v38 = vcombine.high %v2895_v12, %v2902_v13  ;;  %v3007_v9 = vcombine.low %v2911_v20, %v2918_v21  ;;  %v6129_v25 = vcombine.high %v2911_v20, %v2918_v21 }
 0x5c2   : > { %v2923_v27 = vcombine.low %v2827_v18, %v2834_v45  ;;  %v6126_v41 = vcombine.high %v2827_v18, %v2834_v45  ;;  %v2939_v42 = vcombine.low %v2843_v26, %v2850_v34  ;;  %v6127_v56 = vcombine.high %v2843_v26, %v2850_v34 }
 0x5c3   : > { %v2998_v52 = vrot.slane %v2991_v37, %v8173_v10  ;;  %v3006_v19 = vrot.slane %v6128_v38, %v8173_v10  ;;  %v3014_v11 = vrot.slane %v3007_v9, %v8173_v10  ;;  %v3022_v35 = vrot.slane %v6129_v25, %v8173_v10 }
 0x5c4   : > { %v2930_v31 = vrot.slane %v2923_v27, %v8173_v10  ;;  %v2938_v63 = vrot.slane %v6126_v41, %v8173_v10  ;;  %v2946_v62 = vrot.slane %v2939_v42, %v8173_v10  ;;  %v2954_v22 = vrot.slane %v6127_v56, %v8173_v10  ;;  %v8636_v53 = vpop.eup %7104 }
 0x5c5   : > { %v3023_v4 = vcombine.low %v2998_v52, %v3006_v19  ;;  %v3024_v55 = vcombine.high %v2998_v52, %v3006_v19  ;;  %v3039_v49 = vcombine.low %v3014_v11, %v3022_v35  ;;  %v3040_v58 = vcombine.high %v3014_v11, %v3022_v35  ;;  %v8638_v29 = vpop.eup %7106  ;;  %v3531_v35 = vld [vmem:[#allocation4 + $0x20] sm:$0xff] }
 0x5c6   : > { %v2955_v48 = vcombine.low %v2930_v31, %v2938_v63  ;;  %v2956_v32 = vcombine.high %v2930_v31, %v2938_v63  ;;  %v2971_v1 = vcombine.low %v2946_v62, %v2954_v22  ;;  %v2972_v0 = vcombine.high %v2946_v62, %v2954_v22  ;;  %v3533_v31 = vld [vmem:[#allocation4 + $0x30] sm:$0xff] }
 0x5c7   : > { %v3031_v2 = vrot.slane %v3023_v4, %v8176_v14  ;;  %v3038_v5 = vrot.slane %v3024_v55, %v8176_v14  ;;  %v3047_v59 = vrot.slane %v3039_v49, %v8176_v14  ;;  %v3054_v10 = vrot.slane %v3040_v58, %v8176_v14 }
 0x5c8   : > { %v2963_v33 = vrot.slane %v2955_v48, %v8176_v14  ;;  %v2970_v17 = vrot.slane %v2956_v32, %v8176_v14  ;;  %v2979_v8 = vrot.slane %v2971_v1, %v8176_v14  ;;  %v2986_v47 = vrot.slane %v2972_v0, %v8176_v14 }
 0x5c9   : > { %v3055_v12 = vcombine.low %v3031_v2, %v3047_v59  ;;  %v3056_v13 = vcombine.high %v3031_v2, %v3047_v59  ;;  %v3057_v20 = vcombine.low %v3038_v5, %v3054_v10  ;;  %v3058_v21 = vcombine.high %v3038_v5, %v3054_v10 }
 0x5ca   : > { %v2987_v18 = vcombine.low %v2963_v33, %v2979_v8  ;;  %v2988_v45 = vcombine.high %v2963_v33, %v2979_v8  ;;  %v2989_v26 = vcombine.low %v2970_v17, %v2986_v47  ;;  %v2990_v34 = vcombine.high %v2970_v17, %v2986_v47 }
 0x5cb   : > { %v3463_v37 = vsel %vm1318_vm1, %v8630_v43, 0.0  ;;  %v3478_v38 = vsel %vm1318_vm1, %v8636_v53, 0.0  ;;  %v3469_v14 = vsel %vm1318_vm1, %v8622_v15, 0.0  ;;  %v3484_v42 = vsel %vm1318_vm1, %v8620_v16, 0.0 }
 0x5cc   : > { %v3059_v9 = vpack.c.bf16 %v3055_v12, %v2987_v18  ;;  %v3060_v25 = vpack.c.bf16 %v3056_v13, %v2988_v45  ;;  %v3061_v27 = vpack.c.bf16 %v3057_v20, %v2989_v26  ;;  %v3062_v41 = vpack.c.bf16 %v3058_v21, %v2990_v34  ;;  %3464 = vadd.xlane.f32.xlu0 %v3463_v37 }
 0x5cd   : > { %3479 = vadd.xlane.f32.xlu1 %v3478_v38  ;;  %v3475_v56 = vsel %vm1318_vm1, %v8638_v29, 0.0  ;;  %v3481_v11 = vsel %vm1318_vm1, %v8624_v50, 0.0 }
 0x5ce   : > { %3063 = vst.msk [vmem:[#allocation4 + $0x8] sm:$0xff] %vm1318_vm1, %v3059_v9  ;;  %3064 = vst.msk [vmem:[#allocation4 + $0x18] sm:$0xff] %vm1318_vm1, %v3060_v25 }
 0x5cf   : > { %3065 = vst.msk [vmem:[#allocation4 + $0x28] sm:$0xff] %vm1318_vm1, %v3061_v27  ;;  %3066 = vst.msk [vmem:[#allocation4 + $0x38] sm:$0xff] %vm1318_vm1, %v3062_v41 }
 0x5d0   : > { %3470 = vadd.xlane.f32.xlu0 %v3469_v14 }
 0x5d1   : > { %3485 = vadd.xlane.f32.xlu1 %v3484_v42 }
 0x5d4   : > { %3476 = vadd.xlane.f32.xlu0 %v3475_v56 }
 0x5d5   : > { %v3528_v52 = vld [vmem:[#allocation4 + $0x8] sm:$0xff]  ;;  %v3530_v19 = vld [vmem:[#allocation4 + $0x18] sm:$0xff] }
 0x5d6   : > { %6552 = vmatprep.subr.bf16.mxu0 %v3528_v52  ;;  %6560 = vmatprep.subr.bf16.mxu1 %v3530_v19  ;;  %v3532_v20 = vld [vmem:[#allocation4 + $0x28] sm:$0xff] }
 0x5d7   : > { %6553 = vmatpush3.bf16.msra.mxu0 %v3528_v52  ;;  %6561 = vmatpush3.bf16.msra.mxu1 %v3530_v19 }
 0x5d8   : > { %3482 = vadd.xlane.f32.xlu0 %v3481_v11  ;;  %6566 = vmatprep.subr.bf16.mxu0 %v3531_v35 }
 0x5d9   : > { %6574 = vmatprep.subr.bf16.mxu1 %v3533_v31 }
 0x608   : > { %v3444_v63 = vpop.xlane.xlu1 %3443 }
 0x609   : > { %7108 = vrcp.f32 %v3444_v63  ;;  %v3441_v62 = vpop.xlane.xlu0 %3440 }
 0x60a   : > { %7110 = vrcp.f32 %v3441_v62 }
 0x60c   : > { %v3456_v4 = vpop.xlane.xlu1 %3455 }
 0x60d   : > { %v3447_v22 = vpop.xlane.xlu0 %3446 }
 0x60e   : > { %7112 = vrcp.f32 %v3447_v22 }
 0x610   : > { %v3462_v48 = vpop.xlane.xlu1 %3461 }
 0x611   : > { %v3450_v55 = vpop.xlane.xlu0 %3449 }
 0x612   : > { %7114 = vrcp.f32 %v3450_v55 }
 0x613   : > { %v7109_v49 = vpop.eup %7108  ;;  %7116 = vrcp.f32 %v3456_v4 }
 0x614   : > { %v7111_v58 = vpop.eup %7110  ;;  %v3504_v0 = vmul.f32 %v7109_v49, %v8548_v51  ;;  %v6892_v49 = vld [vmem:[#allocation13] sm:$0xff]  }
 0x615   : > { %v3453_v32 = vpop.xlane.xlu0 %3452  ;;  %v3503_v1 = vmul.f32 %v7111_v58, %v8552_v40 }
 0x616   : > { %7118 = vrcp.f32 %v3453_v32  ;;  %v6896_v32 = vld [vmem:[#allocation13 + $0x10] sm:$0xff]  }
 0x617   : > { %v3519_v2 = vpack.c.bf16 %v3504_v0, %v3503_v1  ;;  %7120 = vrcp.f32 %v3462_v48 }
 0x618   : > { %v7113_v59 = vpop.eup %7112 }
 0x619   : > { %v3459_v5 = vpop.xlane.xlu0 %3458  ;;  %6554 = vmatprep.mubr.msk.bf16.mxu0 %vm1318_vm1, %v3519_v2  ;;  %v3505_v33 = vmul.f32 %v7113_v59, %v8554_v61  ;;  %v6897_v2 = vld [vmem:[#allocation11 + $0x10] sm:$0xff]   ;;  %v6898_v59 = vld [vmem:[#allocation13 + $0x18] sm:$0xff]  }
 0x61a   : > { %7122 = vrcp.f32 %v3459_v5 }
 0x61c   : > { %v7115_v10 = vpop.eup %7114 }
 0x61d   : > { %v3506_v17 = vmul.f32 %v7115_v10, %v8570_v60  ;;  %v7117_v8 = vpop.eup %7116  ;;  %v6899_v10 = vld [vmem:[#allocation11 + $0x18] sm:$0xff]  }
 0x61e   : > { %v3508_v40 = vmul.f32 %v7117_v8, %v8558_v39  ;;  %v3534_v39 = vld [vmem:[#allocation4 + $0x38] sm:$0xff] }
 0x61f   : > { %v3520_v47 = vpack.c.bf16 %v3506_v17, %v3505_v33 }
 0x620   : > { %v7119_v12 = vpop.eup %7118 }
 0x621   : > { %6555 = vmatmul.mubr.msk.bf16.vlgmr.msra.gmra.mrb[16].mxu0 %vm1318_vm1, %v3520_v47  ;;  %v3507_v51 = vmul.f32 %v7119_v12, %v8574_v24  ;;  %v7121_v13 = vpop.eup %7120  ;;  %v3468_v24 = vpop.xlane.xlu1 %3467 }
 0x622   : > { %6567 = vmatpush3.bf16.msra.mxu0 %v3531_v35  ;;  %v3510_v45 = vmul.f32 %v7121_v13, %v8562_v44  ;;  %7124 = vrcp.f32 %v3468_v24  ;;  %v6900_v13 = vld [vmem:[#allocation11 + $0x20] sm:$0xff]  }
 0x623   : > { %6568 = vmatprep.subr.bf16.mxu0 %v3532_v20  ;;  %v3521_v21 = vpack.c.bf16 %v3508_v40, %v3507_v51  ;;  %v6901_v40 = vld [vmem:[#allocation13 + $0x20] sm:$0xff]  }
 0x624   : > { %v7123_v18 = vpop.eup %7122 }
 0x625   : > { %v3509_v61 = vmul.f32 %v7123_v18, %v8578_v23  ;;  %6562 = vmatprep.mubr.msk.bf16.mxu1 %vm1318_vm1, %v3521_v21  ;;  %v3474_v26 = vpop.xlane.xlu1 %3473  ;;  %v6902_v21 = vld [vmem:[#allocation11 + $0x28] sm:$0xff]  }
 0x626   : > { %6569 = vmatpush3.bf16.msra.mxu0 %v3532_v20  ;;  %v6903_v20 = vld [vmem:[#allocation13 + $0x28] sm:$0xff]  }
 0x627   : > { %v3522_v60 = vpack.c.bf16 %v3510_v45, %v3509_v61  ;;  %6582 = vmatprep.subr.bf16.mxu0 %v7567_v6 }
 0x629   : > { %6563 = vmatmul.mubr.msk.bf16.vlgmr.msra.gmra.mrb[16].mxu1 %vm1318_vm1, %v3522_v60  ;;  %v6905_v60 = vld [vmem:[#allocation13 + $0x30] sm:$0xff]  }
 0x62a   : > { %6575 = vmatpush3.bf16.msra.mxu1 %v3533_v31  ;;  %v6893_v31 = vld [vmem:[#allocation11] sm:$0xff]  }
 0x62b   : > { %6576 = vmatprep.subr.bf16.mxu1 %v3534_v39 }
 0x62c   : > { %v7125_v9 = vpop.eup %7124 }
 0x62d   : > { %v3512_v14 = vmul.f32 %v7125_v9, %v8582_v7 }
 0x62e   : > { %6577 = vmatpush3.bf16.msra.mxu1 %v3534_v39 }
 0x62f   : > { %6614 = vmatprep.subr.bf16.mxu1 %v7567_v6 }
 0x659   : > { %v3465_v44 = vpop.xlane.xlu0 %3464 }
 0x65a   : > { %7126 = vrcp.f32 %v3465_v44  ;;  %v3480_v23 = vpop.xlane.xlu1 %3479 }
 0x65b   : > { %7128 = vrcp.f32 %v3474_v26  ;;  %v6904_v26 = vld [vmem:[#allocation11 + $0x30] sm:$0xff]  }
 0x65d   : > { %v3471_v34 = vpop.xlane.xlu0 %3470 }
 0x65e   : > { %7130 = vrcp.f32 %v3471_v34  ;;  %v3486_v37 = vpop.xlane.xlu1 %3485  ;;  %v6906_v34 = vld [vmem:[#allocation11 + $0x38] sm:$0xff]  }
 0x65f   : > { %7132 = vrcp.f32 %v3480_v23  ;;  %v6907_v23 = vld [vmem:[#allocation13 + $0x38] sm:$0xff]  }
 0x661   : > { %v3477_v38 = vpop.xlane.xlu0 %3476 }
 0x662   : > { %7134 = vrcp.f32 %v3477_v38 }
 0x663   : > { %7136 = vrcp.f32 %v3486_v37 }
 0x664   : > { %v7127_v25 = vpop.eup %7126 }
 0x665   : > { %v3483_v27 = vpop.xlane.xlu0 %3482  ;;  %v3511_v41 = vmul.f32 %v7127_v25, %v8630_v43  ;;  %v7129_v42 = vpop.eup %7128 }
 0x666   : > { %7138 = vrcp.f32 %v3483_v27  ;;  %v3514_v19 = vmul.f32 %v7129_v42, %v8586_v36 }
 0x667   : > { %v3523_v56 = vpack.c.bf16 %v3512_v14, %v3511_v41  ;;  %v6170_v14 = vld [vmem:[%s8036_s10 + $0x2] ss:$0 sm:$0xff] }
 0x668   : > { %v7131_v52 = vpop.eup %7130 }
 0x669   : > { %v3513_v11 = vmul.f32 %v7131_v52, %v8622_v15  ;;  %6570 = vmatprep.mubr.msk.bf16.mxu0 %vm1318_vm1, %v3523_v56  ;;  %v7133_v35 = vpop.eup %7132 }
 0x66a   : > { %v3516_v7 = vmul.f32 %v7133_v35, %v8636_v53  ;;  %v6894_v53 = vld [vmem:[#allocation13 + $0x8] sm:$0xff]  }
 0x66b   : > { %v3524_v63 = vpack.c.bf16 %v3514_v19, %v3513_v11 }
 0x66c   : > { %v7135_v62 = vpop.eup %7134 }
 0x66d   : > { %6571 = vmatmul.mubr.msk.bf16.vlgmr.msra.gmra.mrb[20].mxu0 %vm1318_vm1, %v3524_v63  ;;  %v3515_v43 = vmul.f32 %v7135_v62, %v8638_v29  ;;  %v7137_v22 = vpop.eup %7136  ;;  %v6895_v29 = vld [vmem:[#allocation11 + $0x8] sm:$0xff]  }
 0x66e   : > { %6583 = vmatpush3.bf16.msra.mxu0 %v6893_v31  ;;  %6586 = vmatprep.mubr.msk.bf16.mxu0 %vm7569_vm0, %v7567_v6  ;;  %v3518_v4 = vmul.f32 %v7137_v22, %v8620_v16 }
 0x66f   : > { %v3525_v36 = vpack.c.bf16 %v3516_v7, %v3515_v43  ;;  %6584 = vmatprep.subr.bf16.mxu0 %v7567_v6 }
 0x670   : > { %v7139_v15 = vpop.eup %7138 }
 0x671   : > { %v3517_v55 = vmul.f32 %v7139_v15, %v8624_v50  ;;  %6578 = vmatprep.mubr.msk.bf16.mxu1 %vm1318_vm1, %v3525_v36  ;;  %v6908_v15 = vld [vmem:[#allocation14] ss:$16 sps:$4 sm:$0xff]  }
 0x672   : > { %6585 = vmatpush3.bf16.msra.mxu0 %v6895_v29  ;;  %v6914_v29 = vld [vmem:[#allocation14 + $0x20] ss:$16 sps:$4 sm:$0xff]  }
 0x673   : > { %v3526_v58 = vpack.c.bf16 %v3518_v4, %v3517_v55  ;;  %6590 = vmatprep.subr.bf16.mxu0 %v7567_v6  ;;  %v6910_v4 = vld [vmem:[#allocation14 + $0x4] ss:$16 sps:$4 sm:$0xff]   ;;  %v6911_v55 = vld [vmem:[#allocation14 + $0x8] ss:$16 sps:$4 sm:$0xff]  }
 0x675   : > { %6579 = vmatmul.mubr.msk.bf16.vlgmr.msra.gmra.mrb[20].mxu1 %vm1318_vm1, %v3526_v58  ;;  %v6916_v58 = vld [vmem:[#allocation14 + $0x24] ss:$16 sps:$4 sm:$0xff]  }
 0x676   : > { %6615 = vmatpush3.bf16.msra.mxu1 %v6892_v49  ;;  %6618 = vmatprep.mubr.msk.bf16.mxu1 %vm7569_vm0, %v7567_v6  ;;  %v6913_v49 = vld [vmem:[#allocation14 + $0xc] ss:$16 sps:$4 sm:$0xff]  }
 0x677   : > { %6616 = vmatprep.subr.bf16.mxu1 %v7567_v6 }
 0x67a   : > { %6617 = vmatpush3.bf16.msra.mxu1 %v6894_v53  ;;  %v6919_v53 = vld [vmem:[#allocation14 + $0x2c] ss:$16 sps:$4 sm:$0xff]  }
 0x67b   : > { %6622 = vmatprep.subr.bf16.mxu1 %v7567_v6 }
 0x6f4   : > { %v6556_v16 = vpop.f32.mrb[16].mxu0 }
 0x6f5   : > { %v3575_v50 = vpop.f32.mrb[17].mxu0 }
 0x6f6   : > { %v6557_v48 = vpop.f32.mrb[18].mxu0 }
 0x6f7   : > { %v3756_v1 = vpack.c.bf16 %v6557_v48, %v6556_v16  ;;  %v3578_v0 = vpop.f32.mrb[19].mxu0  ;;  %v6917_v16 = vld [vmem:[#allocation14 + $0x28] ss:$16 sps:$4 sm:$0xff]  }
 0x6f8   : > { %v3755_v5 = vpack.c.bf16 %v3578_v0, %v3575_v50 }
 0x6f9   : > { %6619 = vmatmul.mubr.msk.bf16.vlgmr.msra.gmra.mrb[24].mxu1 %vm1318_vm1, %v3756_v1 }
 0x6fa   : > { %6587 = vmatmul.mubr.msk.bf16.vlgmr.msra.gmra.mrb[24].mxu0 %vm1318_vm1, %v3755_v5  ;;  %6623 = vmatpush3.bf16.msra.mxu1 %v6896_v32 }
 0x6fb   : > { %6591 = vmatpush3.bf16.msra.mxu0 %v6897_v2  ;;  %6624 = vmatprep.subr.bf16.mxu1 %v7567_v6 }
 0x6fc   : > { %v6564_v33 = vpop.f32.mrb[16].mxu1  ;;  %6592 = vmatprep.subr.bf16.mxu0 %v7567_v6  ;;  %6626 = vmatprep.mubr.msk.bf16.mxu1 %vm7569_vm0, %v7567_v6 }
 0x6fd   : > { %v3630_v17 = vpop.f32.mrb[17].mxu1  ;;  %6594 = vmatprep.mubr.msk.bf16.mxu0 %vm7569_vm0, %v7567_v6 }
 0x6fe   : > { %v6565_v8 = vpop.f32.mrb[18].mxu1  ;;  %6625 = vmatpush3.bf16.msra.mxu1 %v6898_v59 }
 0x6ff   : > { %v3758_v47 = vpack.c.bf16 %v6565_v8, %v6564_v33  ;;  %v3633_v12 = vpop.f32.mrb[19].mxu1  ;;  %6593 = vmatpush3.bf16.msra.mxu0 %v6899_v10  ;;  %6630 = vmatprep.subr.bf16.mxu1 %v7567_v6  ;;  %v6922_v8 = vld [vmem:[#allocation14 + $0x44] ss:$16 sps:$4 sm:$0xff]  }
 0x700   : > { %v3757_v51 = vpack.c.bf16 %v3633_v12, %v3630_v17  ;;  %6598 = vmatprep.subr.bf16.mxu0 %v7567_v6  ;;  %v6920_v17 = vld [vmem:[#allocation14 + $0x40] ss:$16 sps:$4 sm:$0xff]   ;;  %v6925_v12 = vld [vmem:[#allocation14 + $0x4c] ss:$16 sps:$4 sm:$0xff]  }
 0x705   : > { %6627 = vmatmul.mubr.msk.bf16.vlgmr.msra.gmra.mrb[24].mxu1 %vm1318_vm1, %v3758_v47  ;;  %v6923_v47 = vld [vmem:[#allocation14 + $0x48] ss:$16 sps:$4 sm:$0xff]  }
 0x706   : > { %6595 = vmatmul.mubr.msk.bf16.vlgmr.msra.gmra.mrb[24].mxu0 %vm1318_vm1, %v3757_v51  ;;  %6631 = vmatpush3.bf16.msra.mxu1 %v6901_v40  ;;  %v6928_v51 = vld [vmem:[#allocation14 + $0x64] ss:$16 sps:$4 sm:$0xff]   ;;  %v6926_v40 = vld [vmem:[#allocation14 + $0x60] ss:$16 sps:$4 sm:$0xff]  }
 0x707   : > { %6599 = vmatpush3.bf16.msra.mxu0 %v6900_v13  ;;  %6632 = vmatprep.subr.bf16.mxu1 %v7567_v6  ;;  %v6931_v13 = vld [vmem:[#allocation14 + $0x6c] ss:$16 sps:$4 sm:$0xff]  }
 0x708   : > { %6600 = vmatprep.subr.bf16.mxu0 %v7567_v6  ;;  %6634 = vmatprep.mubr.msk.bf16.mxu1 %vm7569_vm0, %v7567_v6 }
 0x709   : > { %6602 = vmatprep.mubr.msk.bf16.mxu0 %vm7569_vm0, %v7567_v6 }
 0x70a   : > { %6633 = vmatpush3.bf16.msra.mxu1 %v6903_v20  ;;  %v6929_v20 = vld [vmem:[#allocation14 + $0x68] ss:$16 sps:$4 sm:$0xff]  }
 0x70b   : > { %6601 = vmatpush3.bf16.msra.mxu0 %v6902_v21  ;;  %6638 = vmatprep.subr.bf16.mxu1 %v7567_v6  ;;  %v6934_v21 = vld [vmem:[#allocation14 + $0x84] ss:$16 sps:$4 sm:$0xff]  }
 0x70c   : > { %6606 = vmatprep.subr.bf16.mxu0 %v7567_v6 }
 0x740   : > { %v6572_v18 = vpop.f32.mrb[20].mxu0 }
 0x741   : > { %v3685_v45 = vpop.f32.mrb[21].mxu0 }
 0x742   : > { %v6573_v61 = vpop.f32.mrb[22].mxu0 }
 0x743   : > { %v3760_v39 = vpack.c.bf16 %v6573_v61, %v6572_v18  ;;  %v3688_v24 = vpop.f32.mrb[23].mxu0  ;;  %v6937_v18 = vld [vmem:[#allocation14 + $0x8c] ss:$16 sps:$4 sm:$0xff]   ;;  %v6935_v61 = vld [vmem:[#allocation14 + $0x88] ss:$16 sps:$4 sm:$0xff]  }
 0x744   : > { %v3759_v44 = vpack.c.bf16 %v3688_v24, %v3685_v45  ;;  %v6932_v45 = vld [vmem:[#allocation14 + $0x80] ss:$16 sps:$4 sm:$0xff]  }
 0x745   : > { %6635 = vmatmul.mubr.msk.bf16.vlgmr.msra.gmra.mrb[24].mxu1 %vm1318_vm1, %v3760_v39  ;;  %v6943_v39 = vld [vmem:[#allocation14 + $0xac] ss:$16 sps:$4 sm:$0xff]   ;;  %v6938_v24 = vld [vmem:[#allocation14 + $0xa0] ss:$16 sps:$4 sm:$0xff]  }
 0x746   : > { %6603 = vmatmul.mubr.msk.bf16.vlgmr.msra.gmra.mrb[24].mxu0 %vm1318_vm1, %v3759_v44  ;;  %6639 = vmatpush3.bf16.msra.mxu1 %v6905_v60  ;;  %v6940_v60 = vld [vmem:[#allocation14 + $0xa4] ss:$16 sps:$4 sm:$0xff]  }
 0x747   : > { %6607 = vmatpush3.bf16.msra.mxu0 %v6904_v26  ;;  %6640 = vmatprep.subr.bf16.mxu1 %v7567_v6  ;;  %v6941_v26 = vld [vmem:[#allocation14 + $0xa8] ss:$16 sps:$4 sm:$0xff]   ;;  %v6946_v44 = vld [vmem:[#allocation14 + $0xc4] ss:$16 sps:$4 sm:$0xff]  }
 0x748   : > { %v6580_v37 = vpop.f32.mrb[20].mxu1  ;;  %6608 = vmatprep.subr.bf16.mxu0 %v7567_v6  ;;  %6642 = vmatprep.mubr.msk.bf16.mxu1 %vm7569_vm0, %v7567_v6 }
 0x749   : > { %v3740_v38 = vpop.f32.mrb[21].mxu1  ;;  %6610 = vmatprep.mubr.msk.bf16.mxu0 %vm7569_vm0, %v7567_v6 }
 0x74a   : > { %v6581_v9 = vpop.f32.mrb[22].mxu1  ;;  %6641 = vmatpush3.bf16.msra.mxu1 %v6907_v23  ;;  %v6949_v23 = vld [vmem:[#allocation14 + $0xcc] ss:$16 sps:$4 sm:$0xff]  }
 0x74b   : > { %v3762_v25 = vpack.c.bf16 %v6581_v9, %v6580_v37  ;;  %v3743_v27 = vpop.f32.mrb[23].mxu1  ;;  %6609 = vmatpush3.bf16.msra.mxu0 %v6906_v34  ;;  %4586 = vmatprep.subr.bf16.mxu1 %v6913_v49  ;;  %v6944_v34 = vld [vmem:[#allocation14 + $0xc0] ss:$16 sps:$4 sm:$0xff]   ;;  %v6947_v37 = vld [vmem:[#allocation14 + $0xc8] ss:$16 sps:$4 sm:$0xff]  }
 0x74c   : > { %v3761_v41 = vpack.c.bf16 %v3743_v27, %v3740_v38  ;;  %4543 = vmatprep.subr.bf16.mxu0 %v6910_v4  ;;  %v6952_v38 = vld [vmem:[#allocation14 + $0xe4] ss:$16 sps:$4 sm:$0xff]   ;;  %v6955_v9 = vld [vmem:[#allocation14 + $0xec] ss:$16 sps:$4 sm:$0xff]   ;;  %v6953_v27 = vld [vmem:[#allocation14 + $0xe8] ss:$16 sps:$4 sm:$0xff]  }
 0x751   : > { %6643 = vmatmul.mubr.msk.bf16.vlgmr.msra.gmra.mrb[24].mxu1 %vm1318_vm1, %v3762_v25  ;;  %v6950_v25 = vld [vmem:[#allocation14 + $0xe0] ss:$16 sps:$4 sm:$0xff]  }
 0x752   : > { %6611 = vmatmul.mubr.msk.bf16.vlgmr.msra.gmra.mrb[24].mxu0 %vm1318_vm1, %v3761_v41  ;;  %4618 = vmatprep.mubr.bf16.mxu1 %v7568_v46 }
 0x753   : > { %4575 = vmatprep.mubr.bf16.mxu0 %v7568_v46  ;;  %4544 = vmatpush1.bf16.msra.mxu0 %v6908_v15 }
 0x754   : > { %4587 = vmatpush1.bf16.msra.mxu1 %v6911_v55  ;;  %4545 = vmatprep.subr.bf16.mxu0 %v6916_v58  ;;  %v8766_v58 = vld [vmem:[%s8036_s10 + $0x4] ss:$0 sm:$0xff] }
 0x755   : > { %4588 = vmatprep.subr.bf16.mxu1 %v6919_v53 }
 0x757   : > { %4546 = vmatpush1.bf16.msra.mxu0 %v6914_v29 }
 0x758   : > { %4589 = vmatpush1.bf16.msra.mxu1 %v6917_v16  ;;  %4547 = vmatprep.subr.bf16.mxu0 %v6922_v8  ;;  %v6966_v8 = vld [vmem:[#allocation16 + $0x10] sm:$0xff]  }
 0x759   : > { %4590 = vmatprep.subr.bf16.mxu1 %v6925_v12  ;;  %v6968_v12 = vld [vmem:[#allocation16 + $0x58] sm:$0xff]  }
 0x75b   : > { %4548 = vmatpush1.bf16.msra.mxu0 %v6920_v17  ;;  %v6965_v17 = vld [vmem:[#allocation16 + $0xd0] sm:$0xff]  }
 0x75c   : > { %4591 = vmatpush1.bf16.msra.mxu1 %v6923_v47  ;;  %4549 = vmatprep.subr.bf16.mxu0 %v6928_v51  ;;  %v6967_v47 = vld [vmem:[#allocation16 + $0x90] sm:$0xff]   ;;  %v6969_v51 = vld [vmem:[#allocation16 + $0xd8] sm:$0xff]  }
 0x75d   : > { %4592 = vmatprep.subr.bf16.mxu1 %v6931_v13  ;;  %v6971_v13 = vld [vmem:[#allocation16 + $0x98] sm:$0xff]  }
 0x75f   : > { %4550 = vmatpush1.bf16.msra.mxu0 %v6926_v40  ;;  %v6970_v40 = vld [vmem:[#allocation16 + $0x18] sm:$0xff]  }
 0x760   : > { %4593 = vmatpush1.bf16.msra.mxu1 %v6929_v20  ;;  %4551 = vmatprep.subr.bf16.mxu0 %v6934_v21  ;;  %v6972_v20 = vld [vmem:[#allocation16 + $0x60] sm:$0xff]  }
 0x761   : > { %4594 = vmatprep.subr.bf16.mxu1 %v6937_v18  ;;  %v6973_v21 = vld [vmem:[#allocation16 + $0xe0] sm:$0xff]  }
 0x762   : > { %v6974_v18 = vld [vmem:[#allocation16 + $0x20] sm:$0xff]  }
 0x763   : > { %4552 = vmatpush1.bf16.msra.mxu0 %v6932_v45  ;;  %v6975_v45 = vld [vmem:[#allocation16 + $0xa0] sm:$0xff]  }
 0x764   : > { %4595 = vmatpush1.bf16.msra.mxu1 %v6935_v61  ;;  %4553 = vmatprep.subr.bf16.mxu0 %v6940_v60  ;;  %v6976_v61 = vld [vmem:[#allocation16 + $0x68] sm:$0xff]  }
 0x765   : > { %4596 = vmatprep.subr.bf16.mxu1 %v6943_v39  ;;  %v6977_v60 = vld [vmem:[#allocation16 + $0xe8] sm:$0xff]  }
 0x766   : > { %v6978_v39 = vld [vmem:[#allocation16 + $0x28] sm:$0xff]  }
 0x767   : > { %4554 = vmatpush1.bf16.msra.mxu0 %v6938_v24  ;;  %v6979_v24 = vld [vmem:[#allocation16 + $0xa8] sm:$0xff]  }
 0x768   : > { %4597 = vmatpush1.bf16.msra.mxu1 %v6941_v26  ;;  %4555 = vmatprep.subr.bf16.mxu0 %v6946_v44  ;;  %v6980_v26 = vld [vmem:[#allocation16 + $0x70] sm:$0xff]  }
 0x769   : > { %4598 = vmatprep.subr.bf16.mxu1 %v6949_v23  ;;  %v6981_v44 = vld [vmem:[#allocation16 + $0xf0] sm:$0xff]  }
 0x76a   : > { %v6982_v23 = vld [vmem:[#allocation16 + $0x30] sm:$0xff]  }
 0x76b   : > { %4556 = vmatpush1.bf16.msra.mxu0 %v6944_v34  ;;  %v6983_v34 = vld [vmem:[#allocation16 + $0xb0] sm:$0xff]  }
 0x76c   : > { %4599 = vmatpush1.bf16.msra.mxu1 %v6947_v37  ;;  %4557 = vmatprep.subr.bf16.mxu0 %v6952_v38  ;;  %v6984_v37 = vld [vmem:[#allocation16 + $0x78] sm:$0xff]  }
 0x76d   : > { %4600 = vmatprep.subr.bf16.mxu1 %v6955_v9  ;;  %v6985_v38 = vld [vmem:[#allocation16 + $0xf8] sm:$0xff]  }
 0x76e   : > { %v6986_v9 = vld [vmem:[#allocation16 + $0x38] sm:$0xff]  }
 0x76f   : > { %4558 = vmatpush1.bf16.msra.mxu0 %v6950_v25  ;;  %v6987_v25 = vld [vmem:[#allocation16 + $0xb8] sm:$0xff]  }
 0x770   : > { %4601 = vmatpush1.bf16.msra.mxu1 %v6953_v27  ;;  %v6990_v27 = vld [vmem:[#allocation17 + $0x4] ss:$16 sps:$4 sm:$0xff]  }
 0x824   : > { %v4242_v42 = vpop.f32.mrb[24].mxu1 }
 0x825   : > { %v4263_v56 = vmul.f32 %v6170_v14, %v4242_v42  ;;  %v3996_v52 = vpop.f32.mrb[24].mxu0  ;;  %v6644_v19 = vpop.f32.mrb[25].mxu1 }
 0x826   : > { %v4259_v6 = vmul.f32 %v6170_v14, %v3996_v52  ;;  %v6612_v11 = vpop.f32.mrb[25].mxu0  ;;  %v4245_v35 = vpop.f32.mrb[26].mxu1 }
 0x827   : > { %v4264_v31 = vmul.f32 %v6170_v14, %v4245_v35  ;;  %v3999_v63 = vpop.f32.mrb[26].mxu0  ;;  %v6645_v62 = vpop.f32.mrb[27].mxu1  ;;  %v8742_v10 = vadd.f32 %v4263_v56, %v8068_v30 }
 0x828   : > { %v4260_v43 = vmul.f32 %v6170_v14, %v3999_v63  ;;  %v6613_v7 = vpop.f32.mrb[27].mxu0  ;;  %v4261_v22 = vadd.f32 %v4259_v6, %v8039_v54 }
 0x829   : > { %v8746_v33 = vadd.f32 %v4264_v31, %v8064_v28 }
 0x82a   : > { %4267 = vadd.xlane.f32.xlu0 %v4261_v22  ;;  %v4262_v36 = vadd.f32 %v4260_v43, %v8045_v57 }
 0x82c   : > { %4269 = vadd.xlane.f32.xlu1 %v4262_v36 }
 0x8b7   : > { %v4268_v50 = vpop.xlane.xlu0 %4267 }
 0x8b8   : > { %v4271_v48 = vmul.f32 0.0078125, %v4268_v50 }
 0x8b9   : > { %v4270_v32 = vpop.xlane.xlu1 %4269 }
 0x8ba   : > { %v8733_v1 = vsub.f32 %v4261_v22, %v4271_v48  ;;  %v4272_v0 = vmul.f32 0.0078125, %v4270_v32  ;;  %v6956_v48 = vld [vmem:[#allocation16 + $0x40] sm:$0xff]  }
 0x8bb   : > { %v6957_v32 = vld [vmem:[#allocation16 + $0xc0] sm:$0xff]   ;;  %6390 = vmatprep.subr.bf16.mxu0 %v6956_v48 }
 0x8bc   : > { %v8735_v2 = vsub.f32 %v4262_v36, %v4272_v0  ;;  %v4275_v5 = vmul.f32 %v8733_v1, %v8733_v1  ;;  %v8760_v36 = vld [vmem:[%s8036_s10 + $0x3] ss:$0 sm:$0xff]  ;;  %6412 = vmatprep.subr.bf16.mxu1 %v6957_v32 }
 0x8bd   : > { %v6959_v0 = vld [vmem:[#allocation16 + $0x80] sm:$0xff]  }
 0x8be   : > { %4277 = vadd.xlane.f32.xlu0 %v4275_v5  ;;  %v4276_v59 = vmul.f32 %v8735_v2, %v8735_v2  ;;  %v6961_v5 = vld [vmem:[#allocation16 + $0xc8] sm:$0xff]  }
 0x8c0   : > { %4279 = vadd.xlane.f32.xlu1 %v4276_v59  ;;  %v6962_v59 = vld [vmem:[#allocation16 + $0x8] sm:$0xff]  }
 0x8c2   : > { %4302 = vadd.xlane.f32.xlu0 %v8742_v10 }
 0x8c4   : > { %4304 = vadd.xlane.f32.xlu1 %v8746_v33 }
 0x94b   : > { %v4278_v41 = vpop.xlane.xlu0 %4277 }
 0x94c   : > { %v4281_v14 = vmul.f32 0.0078125, %v4278_v41  ;;  %v6993_v41 = vld [vmem:[#allocation17 + $0xc] ss:$16 sps:$4 sm:$0xff]  }
 0x94d   : > { %v4280_v42 = vpop.xlane.xlu1 %4279 }
 0x94e   : > { %v4283_v56 = vadd.f32 1e-06, %v4281_v14  ;;  %v4282_v52 = vmul.f32 0.0078125, %v4280_v42  ;;  %v4365_v14 = vsub.s32 0, %v8168_v3  ;;  %v4373_v42 = vsub.s32 2, %v8168_v3 }
 0x94f   : > { %v4303_v19 = vpop.xlane.xlu0 %4302 }
 0x950   : > { %7140 = vrsqrt.f32 %v4283_v56  ;;  %v4284_v6 = vadd.f32 1e-06, %v4282_v52  ;;  %v4306_v11 = vmul.f32 0.0078125, %v4303_v19  ;;  %v4361_v56 = vld [vmem:[%s9068_s20] sm:$0xf]  ;;  %v4369_v52 = vsub.s32 1, %v8168_v3  ;;  %s8911_s20 = scalar_lea.hbm %s9071_s19, %s6314_s12 }
 0x951   : > { %v4305_v35 = vpop.xlane.xlu1 %4304  ;;  %v4377_v19 = vsub.s32 3, %v8168_v3 }
 0x952   : > { %7142 = vrsqrt.f32 %v4284_v6  ;;  %v8750_v31 = vsub.f32 %v8742_v10, %v4306_v11  ;;  %v4307_v63 = vmul.f32 0.0078125, %v4305_v35  ;;  %v6963_v10 = vld [vmem:[#allocation16 + $0x88] sm:$0xff]   ;;  %v4366_v6 = vrot.slane %v4361_v56, %v4365_v14 }
 0x953   : > { %v4374_v11 = vrot.slane %v4361_v56, %v4373_v42  ;;  %v4370_v35 = vrot.slane %v4361_v56, %v4369_v52 }
 0x954   : > { %v8753_v62 = vsub.f32 %v8746_v33, %v4307_v63  ;;  %v4310_v43 = vmul.f32 %v8750_v31, %v8750_v31  ;;  %v6964_v33 = vld [vmem:[#allocation16 + $0x50] sm:$0xff]   ;;  %v4378_v63 = vrot.slane %v4361_v56, %v4377_v19 }
 0x956   : > { %4312 = vadd.xlane.f32.xlu0 %v4310_v43  ;;  %v4311_v7 = vmul.f32 %v8753_v62, %v8753_v62 }
 0x958   : > { %4314 = vadd.xlane.f32.xlu1 %v4311_v7 }
 0x95a   : > { %v7141_v22 = vpop.eup %7140 }
 0x95b   : > { %v4287_v15 = vmul.f32 %v7141_v22, %v8733_v1  ;;  %v6958_v1 = vld [vmem:[#allocation16] sm:$0xff]  }
 0x95c   : > { %v7143_v4 = vpop.eup %7142 }
 0x95d   : > { %v4288_v55 = vmul.f32 %v7143_v4, %v8735_v2  ;;  %v4293_v49 = vmul.f32 %v8760_v36, %v4287_v15  ;;  %v6960_v2 = vld [vmem:[#allocation16 + $0x48] sm:$0xff]  }
 0x95f   : > { %v4294_v53 = vmul.f32 %v8760_v36, %v4288_v55  ;;  %v4299_v29 = vadd.f32 %v8766_v58, %v4293_v49 }
 0x961   : > { %v4300_v16 = vadd.f32 %v8766_v58, %v4294_v53 }
 0x963   : > { %v4301_v50 = vpack.c.bf16 %v4300_v16, %v4299_v29 }
 0x965   : > { %4576 = vmatmul.mubr.bf16.vlgmr.msra.gmra.mrb[28].mxu0 %v4301_v50  ;;  %4619 = vmatmul.mubr.bf16.vlgmr.msra.gmra.mrb[28].mxu1 %v4301_v50 }
 0x966   : > { %6391 = vmatpush3.bf16.msra.mxu0 %v6958_v1  ;;  %6413 = vmatpush3.bf16.msra.mxu1 %v6959_v0 }
 0x967   : > { %6392 = vmatprep.subr.bf16.mxu0 %v6960_v2  ;;  %6414 = vmatprep.subr.bf16.mxu1 %v6961_v5 }
 0x96a   : > { %6393 = vmatpush3.bf16.msra.mxu0 %v6962_v59  ;;  %6415 = vmatpush3.bf16.msra.mxu1 %v6963_v10 }
 0x96b   : > { %6394 = vmatprep.subr.bf16.mxu0 %v6964_v33  ;;  %6416 = vmatprep.subr.bf16.mxu1 %v6965_v17 }
 0x96e   : > { %6395 = vmatpush3.bf16.msra.mxu0 %v6966_v8  ;;  %6417 = vmatpush3.bf16.msra.mxu1 %v6967_v47 }
 0x96f   : > { %6396 = vmatprep.subr.bf16.mxu0 %v6968_v12  ;;  %6418 = vmatprep.subr.bf16.mxu1 %v6969_v51 }
 0x972   : > { %6397 = vmatpush3.bf16.msra.mxu0 %v6970_v40  ;;  %6419 = vmatpush3.bf16.msra.mxu1 %v6971_v13 }
 0x973   : > { %6398 = vmatprep.subr.bf16.mxu0 %v6972_v20  ;;  %6420 = vmatprep.subr.bf16.mxu1 %v6973_v21 }
 0x976   : > { %6399 = vmatpush3.bf16.msra.mxu0 %v6974_v18  ;;  %6421 = vmatpush3.bf16.msra.mxu1 %v6975_v45 }
 0x977   : > { %6400 = vmatprep.subr.bf16.mxu0 %v6976_v61  ;;  %6422 = vmatprep.subr.bf16.mxu1 %v6977_v60 }
 0x97a   : > { %6401 = vmatpush3.bf16.msra.mxu0 %v6978_v39  ;;  %6423 = vmatpush3.bf16.msra.mxu1 %v6979_v24 }
 0x97b   : > { %6402 = vmatprep.subr.bf16.mxu0 %v6980_v26  ;;  %6424 = vmatprep.subr.bf16.mxu1 %v6981_v44 }
 0x97e   : > { %6403 = vmatpush3.bf16.msra.mxu0 %v6982_v23  ;;  %6425 = vmatpush3.bf16.msra.mxu1 %v6983_v34 }
 0x97f   : > { %6404 = vmatprep.subr.bf16.mxu0 %v6984_v37  ;;  %6426 = vmatprep.subr.bf16.mxu1 %v6985_v38 }
 0x982   : > { %6405 = vmatpush3.bf16.msra.mxu0 %v6986_v9  ;;  %6427 = vmatpush3.bf16.msra.mxu1 %v6987_v25 }
 0x983   : > { %5264 = vmatprep.subr.bf16.mxu0 %v6990_v27  ;;  %5307 = vmatprep.subr.bf16.mxu1 %v6993_v41 }
 0xa38   : > { %v4577_v43 = vpop.f32.mrb[28].mxu0  ;;  %v4620_v7 = vpop.f32.mrb[28].mxu1 }
 0xa39   : > { %v8786_v22 = vadd.f32 %v4577_v43, %v4366_v6  ;;  %v8788_v15 = vadd.f32 %v4620_v7, %v4374_v11  ;;  %v4579_v4 = vpop.f32.mrb[29].mxu0  ;;  %v4622_v55 = vpop.f32.mrb[29].mxu1 }
 0xa3a   : > { %v8790_v49 = vadd.f32 %v4579_v4, %v4370_v35  ;;  %v8792_v53 = vadd.f32 %v4622_v55, %v4378_v63  ;;  %v4581_v29 = vpop.f32.mrb[30].mxu0  ;;  %v4624_v16 = vpop.f32.mrb[30].mxu1 }
 0xa3b   : > { %v4637_v50 = vmul.f32 0.044715, %v8786_v22  ;;  %v4639_v48 = vmul.f32 0.044715, %v8788_v15  ;;  %v4582_v32 = vadd.f32 %v4581_v29, %v4366_v6  ;;  %v4625_v1 = vadd.f32 %v4624_v16, %v4374_v11  ;;  %v4583_v0 = vpop.f32.mrb[31].mxu0  ;;  %v4626_v2 = vpop.f32.mrb[31].mxu1 }
 0xa3c   : > { %v4638_v5 = vmul.f32 0.044715, %v8790_v49  ;;  %v4640_v59 = vmul.f32 0.044715, %v8792_v53  ;;  %v8798_v10 = vadd.f32 %v4583_v0, %v4370_v35  ;;  %v8800_v33 = vadd.f32 %v4626_v2, %v4378_v63 }
 0xa3d   : > { %v4645_v17 = vmul.f32 %v4637_v50, %v8786_v22  ;;  %v4647_v8 = vmul.f32 %v4639_v48, %v8788_v15  ;;  %v4641_v47 = vmul.f32 0.044715, %v4582_v32  ;;  %v4643_v12 = vmul.f32 0.044715, %v4625_v1 }
 0xa3e   : > { %v4646_v51 = vmul.f32 %v4638_v5, %v8790_v49  ;;  %v4648_v40 = vmul.f32 %v4640_v59, %v8792_v53  ;;  %v4642_v13 = vmul.f32 0.044715, %v8798_v10  ;;  %v4644_v20 = vmul.f32 0.044715, %v8800_v33 }
 0xa3f   : > { %v4653_v21 = vmul.f32 %v4645_v17, %v8786_v22  ;;  %v4655_v18 = vmul.f32 %v4647_v8, %v8788_v15  ;;  %v4649_v45 = vmul.f32 %v4641_v47, %v4582_v32  ;;  %v4651_v61 = vmul.f32 %v4643_v12, %v4625_v1 }
 0xa40   : > { %v4654_v60 = vmul.f32 %v4646_v51, %v8790_v49  ;;  %v4656_v39 = vmul.f32 %v4648_v40, %v8792_v53  ;;  %v4650_v24 = vmul.f32 %v4642_v13, %v8798_v10  ;;  %v4652_v26 = vmul.f32 %v4644_v20, %v8800_v33 }
 0xa41   : > { %v4661_v44 = vadd.f32 %v4653_v21, %v8786_v22  ;;  %v4663_v23 = vadd.f32 %v4655_v18, %v8788_v15  ;;  %v4657_v34 = vmul.f32 %v4649_v45, %v4582_v32  ;;  %v4659_v37 = vmul.f32 %v4651_v61, %v4625_v1 }
 0xa42   : > { %v4658_v38 = vmul.f32 %v4650_v24, %v8798_v10  ;;  %v4660_v9 = vmul.f32 %v4652_v26, %v8800_v33  ;;  %v4662_v6 = vadd.f32 %v4654_v60, %v8790_v49  ;;  %v4664_v43 = vadd.f32 %v4656_v39, %v8792_v53 }
 0xa43   : > { %v4669_v25 = vmul.f32 0.7978846, %v4661_v44  ;;  %v4671_v27 = vmul.f32 0.7978846, %v4663_v23  ;;  %v4665_v41 = vadd.f32 %v4657_v34, %v4582_v32  ;;  %v4667_v56 = vadd.f32 %v4659_v37, %v4625_v1 }
 0xa44   : > { %v4666_v11 = vadd.f32 %v4658_v38, %v8798_v10  ;;  %v4670_v7 = vmul.f32 0.7978846, %v4662_v6  ;;  %v4668_v55 = vadd.f32 %v4660_v9, %v8800_v33  ;;  %v4672_v29 = vmul.f32 0.7978846, %v4664_v43  ;;  %v6988_v6 = vld [vmem:[#allocation17] ss:$16 sps:$4 sm:$0xff]  }
 0xa45   : > { %7144 = vtanh.f32 %v4669_v25  ;;  %v4673_v35 = vmul.f32 0.7978846, %v4665_v41  ;;  %v4675_v63 = vmul.f32 0.7978846, %v4667_v56  ;;  %v4629_v17 = vmul.f32 0.5, %v8786_v22  ;;  %v4313_v25 = vpop.xlane.xlu0 %4312 }
 0xa46   : > { %7146 = vtanh.f32 %v4671_v27  ;;  %v4674_v4 = vmul.f32 0.7978846, %v4666_v11  ;;  %v4676_v16 = vmul.f32 0.7978846, %v4668_v55  ;;  %v4633_v8 = vmul.f32 0.5, %v4582_v32  ;;  %v4315_v32 = vpop.xlane.xlu1 %4314 }
 0xa47   : > { %7148 = vtanh.f32 %v4673_v35  ;;  %v4631_v51 = vmul.f32 0.5, %v8788_v15  ;;  %v4635_v40 = vmul.f32 0.5, %v4625_v1  ;;  %v4630_v21 = vmul.f32 0.5, %v8790_v49  ;;  %v6996_v11 = vld [vmem:[#allocation17 + $0x24] ss:$16 sps:$4 sm:$0xff]  }
 0xa48   : > { %7150 = vtanh.f32 %v4675_v63  ;;  %v4634_v39 = vmul.f32 0.5, %v8798_v10  ;;  %v4632_v23 = vmul.f32 0.5, %v8792_v53  ;;  %v4636_v15 = vmul.f32 0.5, %v8800_v33  ;;  %v6991_v43 = vld [vmem:[#allocation17 + $0x8] ss:$16 sps:$4 sm:$0xff]  }
 0xa49   : > { %7152 = vtanh.f32 %v4670_v7  ;;  %v4317_v27 = vmul.f32 0.0078125, %v4315_v32  ;;  %v4316_v35 = vmul.f32 0.0078125, %v4313_v25  ;;  %v6999_v53 = vld [vmem:[#allocation17 + $0x2c] ss:$16 sps:$4 sm:$0xff]   ;;  %v6994_v7 = vld [vmem:[#allocation17 + $0x20] ss:$16 sps:$4 sm:$0xff]  }
 0xa4a   : > { %7154 = vtanh.f32 %v4674_v4  ;;  %v7002_v4 = vld [vmem:[#allocation17 + $0x44] ss:$16 sps:$4 sm:$0xff]   ;;  %v7030_v32 = vld [vmem:[#allocation17 + $0xe0] ss:$16 sps:$4 sm:$0xff]   ;;  %v7042_v25 = vld [vmem:[#allocation19 + $0x8] sm:$0xff]  }
 0xa4b   : > { %7156 = vtanh.f32 %v4672_v29  ;;  %v4319_v33 = vadd.f32 1e-06, %v4317_v27  ;;  %v4318_v55 = vadd.f32 1e-06, %v4316_v35  ;;  %v6997_v29 = vld [vmem:[#allocation17 + $0x28] ss:$16 sps:$4 sm:$0xff]  }
 0xa4c   : > { %7158 = vtanh.f32 %v4676_v16  ;;  %v7005_v16 = vld [vmem:[#allocation17 + $0x4c] ss:$16 sps:$4 sm:$0xff]  }
 0xa4d   : > { %7160 = vrsqrt.f32 %v4319_v33  ;;  %v7043_v27 = vld [vmem:[#allocation19 + $0x88] sm:$0xff]   ;;  %v7050_v35 = vld [vmem:[#allocation19 + $0x18] sm:$0xff]   ;;  %v7054_v33 = vld [vmem:[#allocation19 + $0x20] sm:$0xff]  }
 0xa4e   : > { %7162 = vrsqrt.f32 %v4318_v55  ;;  %v7057_v55 = vld [vmem:[#allocation19 + $0xe8] sm:$0xff]  }
 0xa4f   : > { %v7145_v50 = vpop.eup %7144 }
 0xa50   : > { %v7147_v48 = vpop.eup %7146  ;;  %v4685_v0 = vadd.f32 1.0, %v7145_v50  ;;  %v7000_v50 = vld [vmem:[#allocation17 + $0x40] ss:$16 sps:$4 sm:$0xff]  }
 0xa51   : > { %v7149_v2 = vpop.eup %7148  ;;  %v4687_v5 = vadd.f32 1.0, %v7147_v48  ;;  %v7008_v48 = vld [vmem:[#allocation17 + $0x64] ss:$16 sps:$4 sm:$0xff]  }
 0xa52   : > { %v7151_v59 = vpop.eup %7150  ;;  %v4689_v47 = vadd.f32 1.0, %v7149_v2  ;;  %v4693_v45 = vmul.f32 %v4685_v0, %v4629_v17  ;;  %v7003_v0 = vld [vmem:[#allocation17 + $0x48] ss:$16 sps:$4 sm:$0xff]   ;;  %v7011_v2 = vld [vmem:[#allocation17 + $0x6c] ss:$16 sps:$4 sm:$0xff]  }
 0xa53   : > { %v7153_v12 = vpop.eup %7152  ;;  %v4691_v13 = vadd.f32 1.0, %v7151_v59  ;;  %v4695_v26 = vmul.f32 %v4687_v5, %v4631_v51  ;;  %v7006_v5 = vld [vmem:[#allocation17 + $0x60] ss:$16 sps:$4 sm:$0xff]   ;;  %v7014_v59 = vld [vmem:[#allocation17 + $0x84] ss:$16 sps:$4 sm:$0xff]  }
 0xa54   : > { %v7155_v20 = vpop.eup %7154  ;;  %v4686_v18 = vadd.f32 1.0, %v7153_v12  ;;  %v4697_v61 = vmul.f32 %v4689_v47, %v4633_v8  ;;  %v7009_v17 = vld [vmem:[#allocation17 + $0x68] ss:$16 sps:$4 sm:$0xff]   ;;  %v7017_v8 = vld [vmem:[#allocation17 + $0x8c] ss:$16 sps:$4 sm:$0xff]  }
 0xa55   : > { %v7157_v60 = vpop.eup %7156  ;;  %v4690_v24 = vadd.f32 1.0, %v7155_v20  ;;  %v4699_v44 = vmul.f32 %v4691_v13, %v4635_v40  ;;  %v7020_v47 = vld [vmem:[#allocation17 + $0xa4] ss:$16 sps:$4 sm:$0xff]   ;;  %v7015_v51 = vld [vmem:[#allocation17 + $0x88] ss:$16 sps:$4 sm:$0xff]  }
 0xa56   : > { %v7159_v22 = vpop.eup %7158  ;;  %v4688_v1 = vadd.f32 1.0, %v7157_v60  ;;  %v4701_v34 = vpack.c.bf16 %v4697_v61, %v4693_v45  ;;  %v4694_v37 = vmul.f32 %v4686_v18, %v4630_v21  ;;  %v7023_v40 = vld [vmem:[#allocation17 + $0xac] ss:$16 sps:$4 sm:$0xff]   ;;  %v7018_v20 = vld [vmem:[#allocation17 + $0xa0] ss:$16 sps:$4 sm:$0xff]  }
 0xa57   : > { %v4698_v38 = vmul.f32 %v4690_v24, %v4634_v39  ;;  %v4692_v49 = vadd.f32 1.0, %v7159_v22  ;;  %v4703_v9 = vpack.c.bf16 %v4699_v44, %v4695_v26  ;;  %v7161_v12 = vpop.eup %7160  ;;  %v7026_v18 = vld [vmem:[#allocation17 + $0xc4] ss:$16 sps:$4 sm:$0xff]   ;;  %v7021_v45 = vld [vmem:[#allocation17 + $0xa8] ss:$16 sps:$4 sm:$0xff]  }
 0xa58   : > { %v4696_v56 = vmul.f32 %v4688_v1, %v4632_v23  ;;  %v7163_v13 = vpop.eup %7162  ;;  %v4323_v21 = vmul.f32 %v7161_v12, %v8753_v62  ;;  %v7029_v60 = vld [vmem:[#allocation17 + $0xcc] ss:$16 sps:$4 sm:$0xff]   ;;  %v7024_v39 = vld [vmem:[#allocation17 + $0xc0] ss:$16 sps:$4 sm:$0xff]   ;;  %v7032_v24 = vld [vmem:[#allocation17 + $0xe4] ss:$16 sps:$4 sm:$0xff]  }
 0xa59   : > { %v4702_v41 = vpack.c.bf16 %v4698_v38, %v4694_v37  ;;  %v4700_v10 = vmul.f32 %v4692_v49, %v4636_v15  ;;  %v4322_v61 = vmul.f32 %v7163_v13, %v8750_v31  ;;  %v7027_v44 = vld [vmem:[#allocation17 + $0xc8] ss:$16 sps:$4 sm:$0xff]   ;;  %v7035_v22 = vld [vmem:[#allocation17 + $0xec] ss:$16 sps:$4 sm:$0xff]   ;;  %v7037_v37 = vld [vmem:[#allocation19 + $0xc0] sm:$0xff]  }
 0xa5a   : > { %v4325_v26 = vmul.f32 %v8760_v36, %v4323_v21  ;;  %v7033_v31 = vld [vmem:[#allocation17 + $0xe8] ss:$16 sps:$4 sm:$0xff]   ;;  %v7038_v38 = vld [vmem:[#allocation19] sm:$0xff]  }
 0xa5b   : > { %5000 = vmatprep.mubr.bf16.mxu0 %v4702_v41  ;;  %v4704_v63 = vpack.c.bf16 %v4700_v10, %v4696_v56  ;;  %v4324_v62 = vmul.f32 %v8760_v36, %v4322_v61  ;;  %v7039_v49 = vld [vmem:[#allocation19 + $0x80] sm:$0xff]   ;;  %v7040_v36 = vld [vmem:[#allocation19 + $0x48] sm:$0xff]   ;;  %v7045_v41 = vld [vmem:[#allocation19 + $0xd0] sm:$0xff]  }
 0xa5c   : > { %5001 = vmatmul.mubr.bf16.vlgmr.msra.gmra.mrb[32].mxu0 %v4701_v34  ;;  %v4327_v23 = vadd.f32 %v8766_v58, %v4325_v26  ;;  %v7036_v34 = vld [vmem:[#allocation19 + $0x40] sm:$0xff]   ;;  %v7046_v56 = vld [vmem:[#allocation19 + $0x10] sm:$0xff]  }
 0xa5d   : > { %5041 = vmatprep.mubr.bf16.mxu1 %v4704_v63  ;;  %5265 = vmatpush1.bf16.msra.mxu0 %v6988_v6  ;;  %v4326_v15 = vadd.f32 %v8766_v58, %v4324_v62  ;;  %v7044_v58 = vld [vmem:[#allocation19 + $0x50] sm:$0xff]   ;;  %v7048_v6 = vld [vmem:[#allocation19 + $0x58] sm:$0xff]  }
 0xa5e   : > { %5042 = vmatmul.mubr.bf16.vlgmr.msra.gmra.mrb[32].mxu1 %v4703_v9  ;;  %5266 = vmatprep.subr.bf16.mxu0 %v6996_v11  ;;  %v7041_v9 = vld [vmem:[#allocation19 + $0xc8] sm:$0xff]   ;;  %v7047_v10 = vld [vmem:[#allocation19 + $0x90] sm:$0xff]   ;;  %v7049_v11 = vld [vmem:[#allocation19 + $0xd8] sm:$0xff]  }
 0xa5f   : > { %5308 = vmatpush1.bf16.msra.mxu1 %v6991_v43  ;;  %5296 = vmatprep.mubr.bf16.mxu0 %v7568_v46  ;;  %v4328_v1 = vpack.c.bf16 %v4327_v23, %v4326_v15  ;;  %v7051_v63 = vld [vmem:[#allocation19 + $0x98] sm:$0xff]   ;;  %v7052_v43 = vld [vmem:[#allocation19 + $0x60] sm:$0xff]  }
 0xa60   : > { %5309 = vmatprep.subr.bf16.mxu1 %v6999_v53  ;;  %5339 = vmatprep.mubr.bf16.mxu1 %v7568_v46  ;;  %v7012_v46 = vld [vmem:[#allocation17 + $0x80] ss:$16 sps:$4 sm:$0xff]  }
 0xa61   : > { %5267 = vmatpush1.bf16.msra.mxu0 %v6994_v7  ;;  %v7053_v53 = vld [vmem:[#allocation19 + $0xe0] sm:$0xff]  }
 0xa62   : > { %5268 = vmatprep.subr.bf16.mxu0 %v7002_v4  ;;  %v7055_v7 = vld [vmem:[#allocation19 + $0xa0] sm:$0xff]   ;;  %v7056_v4 = vld [vmem:[#allocation19 + $0x68] sm:$0xff]  }
 0xa63   : > { %5310 = vmatpush1.bf16.msra.mxu1 %v6997_v29  ;;  %v7058_v29 = vld [vmem:[#allocation19 + $0x28] sm:$0xff]  }
 0xa64   : > { %5311 = vmatprep.subr.bf16.mxu1 %v7005_v16  ;;  %v7059_v16 = vld [vmem:[#allocation19 + $0xa8] sm:$0xff]  }
 0xa65   : > { %5269 = vmatpush1.bf16.msra.mxu0 %v7000_v50  ;;  %v7060_v50 = vld [vmem:[#allocation19 + $0x70] sm:$0xff]  }
 0xa66   : > { %5270 = vmatprep.subr.bf16.mxu0 %v7008_v48  ;;  %v7061_v48 = vld [vmem:[#allocation19 + $0xf0] sm:$0xff]  }
 0xa67   : > { %5312 = vmatpush1.bf16.msra.mxu1 %v7003_v0  ;;  %v7062_v0 = vld [vmem:[#allocation19 + $0x30] sm:$0xff]  }
 0xa68   : > { %5313 = vmatprep.subr.bf16.mxu1 %v7011_v2  ;;  %v7063_v2 = vld [vmem:[#allocation19 + $0xb0] sm:$0xff]  }
 0xa69   : > { %5271 = vmatpush1.bf16.msra.mxu0 %v7006_v5  ;;  %v7064_v5 = vld [vmem:[#allocation19 + $0x78] sm:$0xff]  }
 0xa6a   : > { %5272 = vmatprep.subr.bf16.mxu0 %v7014_v59  ;;  %v7065_v59 = vld [vmem:[#allocation19 + $0xf8] sm:$0xff]  }
 0xa6b   : > { %5314 = vmatpush1.bf16.msra.mxu1 %v7009_v17  ;;  %v7066_v17 = vld [vmem:[#allocation19 + $0x38] sm:$0xff]  }
 0xa6c   : > { %5315 = vmatprep.subr.bf16.mxu1 %v7017_v8  ;;  %v7067_v8 = vld [vmem:[#allocation19 + $0xb8] sm:$0xff]  }
 0xa6d   : > { %5273 = vmatpush1.bf16.msra.mxu0 %v7012_v46 }
 0xa6e   : > { %5274 = vmatprep.subr.bf16.mxu0 %v7020_v47  ;;  %v6205_v47 = vld [vmem:[%s9069_s16] ss:$0 sm:$0xff]  ;;  %s7575_s16 = smov [#allocation20]  }
 0xa6f   : > { %5316 = vmatpush1.bf16.msra.mxu1 %v7015_v51 }
 0xa70   : > { %5317 = vmatprep.subr.bf16.mxu1 %v7023_v40 }
 0xa71   : > { %5275 = vmatpush1.bf16.msra.mxu0 %v7018_v20 }
 0xa72   : > { %5276 = vmatprep.subr.bf16.mxu0 %v7026_v18 }
 0xa73   : > { %5318 = vmatpush1.bf16.msra.mxu1 %v7021_v45 }
 0xa74   : > { %5319 = vmatprep.subr.bf16.mxu1 %v7029_v60 }
 0xa75   : > { %5277 = vmatpush1.bf16.msra.mxu0 %v7024_v39  ;;  %v8840_v39 = vld [vmem:[%s8036_s10 + $0x5] ss:$0 sm:$0xff]  ;;  %s9070_s10 = sld [smem:[#allocation36_spill]] }
 0xa76   : > { %5278 = vmatprep.subr.bf16.mxu0 %v7032_v24 }
 0xa77   : > { %5320 = vmatpush1.bf16.msra.mxu1 %v7027_v44 }
 0xa78   : > { %5321 = vmatprep.subr.bf16.mxu1 %v7035_v22 }
 0xa79   : > { %5279 = vmatpush1.bf16.msra.mxu0 %v7030_v32 }
 0xa7a   : > { %6434 = vmatprep.subr.bf16.mxu0 %v7036_v34 }
 0xa7b   : > { %5322 = vmatpush1.bf16.msra.mxu1 %v7033_v31 }
 0xa7c   : > { %5297 = vmatmul.mubr.bf16.vlgmr.msra.gmra.mrb[36].mxu0 %v4328_v1  ;;  %6456 = vmatprep.subr.bf16.mxu1 %v7037_v37 }
 0xa7d   : > { %6435 = vmatpush3.bf16.msra.mxu0 %v7038_v38 }
 0xa7e   : > { %5340 = vmatmul.mubr.bf16.vlgmr.msra.gmra.mrb[36].mxu1 %v4328_v1  ;;  %6436 = vmatprep.subr.bf16.mxu0 %v7040_v36  ;;  %v5082_v1 = vld [vmem:[%s9070_s10] sm:$0xf] }
 0xa7f   : > { %6457 = vmatpush3.bf16.msra.mxu1 %v7039_v49  ;;  %v5087_v34 = vrot.slane %v5082_v1, %v4365_v14  ;;  %v5095_v37 = vrot.slane %v5082_v1, %v4373_v42  ;;  %v5099_v49 = vrot.slane %v5082_v1, %v4377_v19 }
 0xa80   : > { %6458 = vmatprep.subr.bf16.mxu1 %v7041_v9 }
 0xa81   : > { %6437 = vmatpush3.bf16.msra.mxu0 %v7042_v25 }
 0xa82   : > { %6438 = vmatprep.subr.bf16.mxu0 %v7044_v58 }
 0xa83   : > { %6459 = vmatpush3.bf16.msra.mxu1 %v7043_v27 }
 0xa84   : > { %6460 = vmatprep.subr.bf16.mxu1 %v7045_v41 }
 0xa85   : > { %6439 = vmatpush3.bf16.msra.mxu0 %v7046_v56 }
 0xa86   : > { %6440 = vmatprep.subr.bf16.mxu0 %v7048_v6 }
 0xa87   : > { %6461 = vmatpush3.bf16.msra.mxu1 %v7047_v10 }
 0xa88   : > { %6462 = vmatprep.subr.bf16.mxu1 %v7049_v11 }
 0xa89   : > { %6441 = vmatpush3.bf16.msra.mxu0 %v7050_v35 }
 0xa8a   : > { %6442 = vmatprep.subr.bf16.mxu0 %v7052_v43 }
 0xa8b   : > { %6463 = vmatpush3.bf16.msra.mxu1 %v7051_v63 }
 0xa8c   : > { %6464 = vmatprep.subr.bf16.mxu1 %v7053_v53 }
 0xa8d   : > { %6443 = vmatpush3.bf16.msra.mxu0 %v7054_v33 }
 0xa8e   : > { %6444 = vmatprep.subr.bf16.mxu0 %v7056_v4 }
 0xa8f   : > { %6465 = vmatpush3.bf16.msra.mxu1 %v7055_v7 }
 0xa90   : > { %6466 = vmatprep.subr.bf16.mxu1 %v7057_v55 }
 0xa91   : > { %6445 = vmatpush3.bf16.msra.mxu0 %v7058_v29 }
 0xa92   : > { %6446 = vmatprep.subr.bf16.mxu0 %v7060_v50 }
 0xa93   : > { %6467 = vmatpush3.bf16.msra.mxu1 %v7059_v16 }
 0xa94   : > { %6468 = vmatprep.subr.bf16.mxu1 %v7061_v48 }
 0xa95   : > { %6447 = vmatpush3.bf16.msra.mxu0 %v7062_v0 }
 0xa96   : > { %6448 = vmatprep.subr.bf16.mxu0 %v7064_v5 }
 0xa97   : > { %6469 = vmatpush3.bf16.msra.mxu1 %v7063_v2 }
 0xa98   : > { %6470 = vmatprep.subr.bf16.mxu1 %v7065_v59 }
 0xa99   : > { %6449 = vmatpush3.bf16.msra.mxu0 %v7066_v17 }
 0xa9b   : > { %6471 = vmatpush3.bf16.msra.mxu1 %v7067_v8 }
 0xb2f   : > { %v6406_v46 = vpop.f32.mrb[32].mxu0 }
 0xb30   : > { %v6407_v12 = vpop.f32.mrb[33].mxu0 }
 0xb31   : > { %v6428_v51 = vpop.f32.mrb[32].mxu1  ;;  %v6408_v40 = vadd.f32 %v6407_v12, %v6406_v46  ;;  %v6409_v13 = vpop.f32.mrb[34].mxu0 }
 0xb32   : > { %v6429_v20 = vpop.f32.mrb[33].mxu1  ;;  %v6410_v21 = vpop.f32.mrb[35].mxu0 }
 0xb33   : > { %v5003_v18 = vadd.f32 %v6408_v40, %v6205_v47  ;;  %v6430_v45 = vadd.f32 %v6429_v20, %v6428_v51  ;;  %v6431_v61 = vpop.f32.mrb[34].mxu1  ;;  %v6411_v60 = vadd.f32 %v6410_v21, %v6409_v13 }
 0xb34   : > { %v6432_v24 = vpop.f32.mrb[35].mxu1 }
 0xb35   : > { %v5044_v26 = vadd.f32 %v6430_v45, %v5003_v18  ;;  %v5006_v44 = vadd.f32 %v6411_v60, %v6205_v47  ;;  %v6433_v22 = vadd.f32 %v6432_v24, %v6431_v61 }
 0xb37   : > { %v5775_v62 = vmul.f32 %v8840_v39, %v5044_v26  ;;  %v5047_v32 = vadd.f32 %v6433_v22, %v5006_v44 }
 0xb39   : > { %v5777_v23 = vadd.f32 %v5775_v62, %v8039_v54  ;;  %v5776_v31 = vmul.f32 %v8840_v39, %v5047_v32  ;;  %v5091_v54 = vrot.slane %v5082_v1, %v4369_v52 }
 0xb3b   : > { %5779 = vst [vmem:[%s8846_s3] sm:$0xff] %v5777_v23  ;;  %v5778_v15 = vadd.f32 %v5776_v31, %v8045_v57 }
 0xb3d   : > { %5780 = vst [vmem:[%s8846_s3 + $0x8] sm:$0xff] %v5778_v15  ;;  %s7438_s3 = sshll.u32 %s7575_s16, 4  ;;  %s7439_s3 = int_to_ptr.vmem [resolvable:$false] %s7438_s3 }
 0xb3e   : > { %s7440_s26 = scalar_lea.vmem %s7439_s3, 512  ;;  %p7441_p8 = scmp.lt.s32.totalorder %s8913_s2, %s7439_s3 }
 0xb3f   : > { %p7442_p7 = scmp.lt.s32.totalorder %s7440_s26, %s7434_s0 }
 0xb41   : > { %p7443_p9 = por %p7442_p7, %p7441_p8 }
 0xb43   : > { %p7444_p4 = pnand %p7443_p9, %p7437_p13 }
 0xb4f   : > { %v5298_v38 = vpop.f32.mrb[36].mxu0 }
 0xb50   : > { %v8862_v36 = vadd.f32 %v5298_v38, %v5087_v34  ;;  %v5300_v57 = vpop.f32.mrb[37].mxu0 }
 0xb51   : > { %v5341_v9 = vpop.f32.mrb[36].mxu1  ;;  %v8864_v25 = vadd.f32 %v5300_v57, %v5091_v54  ;;  %v5302_v27 = vpop.f32.mrb[38].mxu0 }
 0xb52   : > { %v5358_v58 = vmul.f32 0.044715, %v8862_v36  ;;  %v8867_v14 = vadd.f32 %v5341_v9, %v5095_v37  ;;  %v5343_v41 = vpop.f32.mrb[37].mxu1  ;;  %v5303_v52 = vadd.f32 %v5302_v27, %v5087_v34  ;;  %v5304_v56 = vpop.f32.mrb[39].mxu0  ;;  %v5350_v57 = vmul.f32 0.5, %v8862_v36 }
 0xb53   : > { %v5359_v42 = vmul.f32 0.044715, %v8864_v25  ;;  %v8870_v10 = vadd.f32 %v5343_v41, %v5099_v49  ;;  %v5345_v3 = vpop.f32.mrb[38].mxu1  ;;  %v8872_v19 = vadd.f32 %v5304_v56, %v5091_v54 }
 0xb54   : > { %v5366_v6 = vmul.f32 %v5358_v58, %v8862_v36  ;;  %v5360_v11 = vmul.f32 0.044715, %v8867_v14  ;;  %v5362_v35 = vmul.f32 0.044715, %v5303_v52  ;;  %v5346_v63 = vadd.f32 %v5345_v3, %v5095_v37  ;;  %v5347_v43 = vpop.f32.mrb[39].mxu1 }
 0xb55   : > { %v5367_v53 = vmul.f32 %v5359_v42, %v8864_v25  ;;  %v5361_v33 = vmul.f32 0.044715, %v8870_v10  ;;  %v5363_v7 = vmul.f32 0.044715, %v8872_v19  ;;  %v8879_v4 = vadd.f32 %v5347_v43, %v5099_v49 }
 0xb56   : > { %v5374_v55 = vmul.f32 %v5366_v6, %v8862_v36  ;;  %v5368_v29 = vmul.f32 %v5360_v11, %v8867_v14  ;;  %v5370_v16 = vmul.f32 %v5362_v35, %v5303_v52  ;;  %v5364_v50 = vmul.f32 0.044715, %v5346_v63 }
 0xb57   : > { %v5375_v48 = vmul.f32 %v5367_v53, %v8864_v25  ;;  %v5369_v0 = vmul.f32 %v5361_v33, %v8870_v10  ;;  %v5371_v2 = vmul.f32 %v5363_v7, %v8872_v19  ;;  %v5365_v5 = vmul.f32 0.044715, %v8879_v4 }
 0xb58   : > { %v5382_v59 = vadd.f32 %v5374_v55, %v8862_v36  ;;  %v5376_v17 = vmul.f32 %v5368_v29, %v8867_v14  ;;  %v5378_v8 = vmul.f32 %v5370_v16, %v5303_v52  ;;  %v5372_v46 = vmul.f32 %v5364_v50, %v5346_v63 }
 0xb59   : > { %v5377_v47 = vmul.f32 %v5369_v0, %v8870_v10  ;;  %v5379_v12 = vmul.f32 %v5371_v2, %v8872_v19  ;;  %v5373_v51 = vmul.f32 %v5365_v5, %v8879_v4  ;;  %v5383_v45 = vadd.f32 %v5375_v48, %v8864_v25 }
 0xb5a   : > { %v5390_v40 = vmul.f32 0.7978846, %v5382_v59  ;;  %v5384_v13 = vadd.f32 %v5376_v17, %v8867_v14  ;;  %v5386_v20 = vadd.f32 %v5378_v8, %v5303_v52  ;;  %v5380_v21 = vmul.f32 %v5372_v46, %v5346_v63 }
 0xb5b   : > { %v5381_v18 = vmul.f32 %v5373_v51, %v8879_v4  ;;  %v5387_v61 = vadd.f32 %v5379_v12, %v8872_v19  ;;  %v5391_v44 = vmul.f32 0.7978846, %v5383_v45  ;;  %v5385_v22 = vadd.f32 %v5377_v47, %v8870_v10 }
 0xb5c   : > { %7164 = vtanh.f32 %v5390_v40  ;;  %v5392_v60 = vmul.f32 0.7978846, %v5384_v13  ;;  %v5394_v24 = vmul.f32 0.7978846, %v5386_v20  ;;  %v5388_v26 = vadd.f32 %v5380_v21, %v5346_v63 }
 0xb5d   : > { %v5395_v32 = vmul.f32 0.7978846, %v5387_v61  ;;  %v5389_v23 = vadd.f32 %v5381_v18, %v8879_v4  ;;  %v5393_v31 = vmul.f32 0.7978846, %v5385_v22  ;;  %v5354_v9 = vmul.f32 0.5, %v5303_v52 }
 0xb5e   : > { %7166 = vtanh.f32 %v5392_v60  ;;  %v5396_v62 = vmul.f32 0.7978846, %v5388_v26  ;;  %v5352_v41 = vmul.f32 0.5, %v8867_v14  ;;  %v5356_v56 = vmul.f32 0.5, %v5346_v63 }
 0xb5f   : > { %7168 = vtanh.f32 %v5394_v24  ;;  %v5397_v15 = vmul.f32 0.7978846, %v5389_v23  ;;  %v5351_v6 = vmul.f32 0.5, %v8864_v25  ;;  %v5355_v33 = vmul.f32 0.5, %v8872_v19 }
 0xb60   : > { %7170 = vtanh.f32 %v5396_v62  ;;  %v5353_v52 = vmul.f32 0.5, %v8870_v10  ;;  %v5357_v14 = vmul.f32 0.5, %v8879_v4 }
 0xb61   : > { %7172 = vtanh.f32 %v5391_v44 }
 0xb62   : > { %7174 = vtanh.f32 %v5395_v32 }
 0xb63   : > { %7176 = vtanh.f32 %v5393_v31 }
 0xb64   : > { %7178 = vtanh.f32 %v5397_v15 }
 0xb66   : > { %v7165_v1 = vpop.eup %7164 }
 0xb67   : > { %v5406_v54 = vadd.f32 1.0, %v7165_v1 }
 0xb68   : > { %v7167_v34 = vpop.eup %7166 }
 0xb69   : > { %v7169_v37 = vpop.eup %7168  ;;  %v5408_v38 = vadd.f32 1.0, %v7167_v34  ;;  %v5414_v35 = vmul.f32 %v5406_v54, %v5350_v57 }
 0xb6a   : > { %v7171_v49 = vpop.eup %7170  ;;  %v5410_v27 = vadd.f32 1.0, %v7169_v37 }
 0xb6b   : > { %v7173_v58 = vpop.eup %7172  ;;  %v5412_v42 = vadd.f32 1.0, %v7171_v49  ;;  %v5416_v55 = vmul.f32 %v5408_v38, %v5352_v41 }
 0xb6c   : > { %v7175_v3 = vpop.eup %7174  ;;  %v5407_v11 = vadd.f32 1.0, %v7173_v58  ;;  %v5418_v43 = vmul.f32 %v5410_v27, %v5354_v9 }
 0xb6d   : > { %v7177_v53 = vpop.eup %7176  ;;  %v5411_v7 = vadd.f32 1.0, %v7175_v3  ;;  %v5420_v29 = vmul.f32 %v5412_v42, %v5356_v56 }
 0xb6e   : > { %v7179_v36 = vpop.eup %7178  ;;  %v5409_v63 = vadd.f32 1.0, %v7177_v53  ;;  %v5422_v16 = vpack.c.bf16 %v5418_v43, %v5414_v35  ;;  %v5415_v25 = vmul.f32 %v5407_v11, %v5351_v6 }
 0xb6f   : > { %v5419_v50 = vmul.f32 %v5411_v7, %v5355_v33  ;;  %v5413_v48 = vadd.f32 1.0, %v7179_v36  ;;  %v5424_v0 = vpack.c.bf16 %v5420_v29, %v5416_v55 }
 0xb70   : > { %v5417_v2 = vmul.f32 %v5409_v63, %v5353_v52 }
 0xb71   : > { %v5423_v19 = vpack.c.bf16 %v5419_v50, %v5415_v25  ;;  %v5421_v5 = vmul.f32 %v5413_v48, %v5357_v14 }
 0xb73   : > { %5721 = vmatprep.mubr.bf16.mxu0 %v5423_v19  ;;  %v5425_v59 = vpack.c.bf16 %v5421_v5, %v5417_v2 }
 0xb74   : > { %5722 = vmatmul.mubr.bf16.vlgmr.msra.gmra.mrb[40].mxu0 %v5422_v16 }
 0xb75   : > { %5762 = vmatprep.mubr.bf16.mxu1 %v5425_v59 }
 0xb76   : > { %5763 = vmatmul.mubr.bf16.vlgmr.msra.gmra.mrb[40].mxu1 %v5424_v0 }
 0xb77   : > { %7447 = shalt.err (!%p7444_p4)
}
 0xb78   : > { %s7448_s15 = scalar_lea.hbm %s8911_s20, 256  ;;  %s7452_s30 = scalar_lea.hbm %s9071_s19, 512 }
 0xb79   : > { %p7449_p3 = scmp.ne.s32.totalorder %s8911_s20, %s7448_s15  ;;  %p7453_p6 = scmp.lt.u32.totalorder %s8911_s20, %s9071_s19 }
 0xb7a   : > { %p7454_p5 = scmp.lt.u32.totalorder %s7452_s30, %s7448_s15  ;;  %p7456_p1 = scmp.lt.u32.totalorder %s7448_s15, %s8911_s20 }
 0xb7b   : > { %p7450_p0 = pnand %p7449_p3, %p9072_p11 }
 0xb7c   : > { %p7455_p10 = por %p7454_p5, %p7453_p6 }
 0xb7d   : > { %p7451_p2 = pneg %p7450_p0 }
 0xb7e   : > { %p7457_p12 = por %p7456_p1, %p7455_p10 }
 0xb80   : > { %p7458_p13 = pnand %p7457_p12, %p7451_p2 }
 0xb82   : > { %7461 = shalt.err (!%p7458_p13)
}
 0xb83   : > { %s7576_s0 = smov 128   ;;  %s7577_s26 = smov 8  }
 0xb84   : > { %6712 = dma.vmem_to_hbm [thread:$0]  (%p9072_p11), %s8913_s2, 256, %s8911_s20, %s5788_s17, %s7576_s0, %s7576_s0, %s7577_s26  }
 0xb85   : > { %s9073_s30 = sld [smem:[#allocation37_spill]]  ;;  %s694_s2 = scalar_lea.vmem [#allocation21], %s7972_s5 }
 0xb86   : > { %s5822_s20 = sshll.u32 %s694_s2, 4  ;;  %s9074_s16 = sld [smem:[#allocation39_spill]]  ;;  %s8957_s20 = int_to_ptr.vmem [resolvable:$true] %s5822_s20 }
 0xb87   : > { %s5793_s5 = scalar_lea.sflag [#allocation22], %s7969_s8  ;;  %s7462_s10 = scalar_lea.vmem %s8957_s20, 256 }
 0xb88   : > { %p7463_p8 = scmp.ne.s32.totalorder %s8957_s20, %s7462_s10  ;;  %s7578_s28 = smov [#allocation21]  }
 0xb8a   : > { %p7464_p7 = pnand %p7463_p8, %p9072_p11 }
 0xb8b   : > { %v6270_v4 = vld [vmem:[%s9073_s30] ss:$0 sm:$0xff]  ;;  %s7466_s30 = sshll.u32 %s7578_s28, 4  ;;  %s7467_s30 = int_to_ptr.vmem [resolvable:$false] %s7466_s30 }
 0xb8c   : > { %s8955_s3 = scalar_lea.hbm %s9074_s16, %s6314_s12  ;;  %p7465_p9 = pneg %p7464_p7 }
 0xb8d   : > { %s7468_s27 = scalar_lea.vmem %s7467_s30, 512  ;;  %p7469_p4 = scmp.lt.s32.totalorder %s8957_s20, %s7467_s30 }
 0xb8e   : > { %p7470_p3 = scmp.lt.s32.totalorder %s7468_s27, %s7462_s10 }
 0xb90   : > { %p7471_p0 = por %p7470_p3, %p7469_p4 }
 0xb92   : > { %p7472_p2 = pnand %p7471_p0, %p7465_p9 }
 0xc47   : > { %v6450_v10 = vpop.f32.mrb[40].mxu0 }
 0xc48   : > { %v6451_v17 = vpop.f32.mrb[41].mxu0 }
 0xc49   : > { %v6472_v8 = vpop.f32.mrb[40].mxu1  ;;  %v6452_v46 = vadd.f32 %v6451_v17, %v6450_v10  ;;  %v6453_v47 = vpop.f32.mrb[42].mxu0 }
 0xc4a   : > { %v6473_v12 = vpop.f32.mrb[41].mxu1  ;;  %v6454_v51 = vpop.f32.mrb[43].mxu0 }
 0xc4b   : > { %v5724_v40 = vadd.f32 %v6452_v46, %v6270_v4  ;;  %v6474_v13 = vadd.f32 %v6473_v12, %v6472_v8  ;;  %v6475_v20 = vpop.f32.mrb[42].mxu1  ;;  %v6455_v21 = vadd.f32 %v6454_v51, %v6453_v47 }
 0xc4c   : > { %v6476_v18 = vpop.f32.mrb[43].mxu1 }
 0xc4d   : > { %v5765_v45 = vadd.f32 %v6474_v13, %v5724_v40  ;;  %v5727_v61 = vadd.f32 %v6455_v21, %v6270_v4  ;;  %v6477_v60 = vadd.f32 %v6476_v18, %v6475_v20 }
 0xc4f   : > { %v5781_v24 = vmul.f32 %v8840_v39, %v5765_v45  ;;  %v5768_v26 = vadd.f32 %v6477_v60, %v5727_v61 }
 0xc51   : > { %v5783_v44 = vadd.f32 %v5781_v24, %v8068_v30  ;;  %v5782_v22 = vmul.f32 %v8840_v39, %v5768_v26 }
 0xc53   : > { %5785 = vst [vmem:[%s694_s2] sm:$0xff] %v5783_v44  ;;  %v5784_v62 = vadd.f32 %v5782_v22, %v8064_v28 }
 0xc55   : > { %5786 = vst [vmem:[%s694_s2 + $0x8] sm:$0xff] %v5784_v62 }
 0xc56   : > { %7475 = shalt.err (!%p7472_p2)
}
 0xc57   : > { %s7476_s12 = scalar_lea.hbm %s8955_s3, 256  ;;  %s7480_s15 = scalar_lea.hbm %s9074_s16, 512 }
 0xc58   : > { %p7477_p6 = scmp.ne.s32.totalorder %s8955_s3, %s7476_s12  ;;  %p7481_p1 = scmp.lt.u32.totalorder %s8955_s3, %s9074_s16 }
 0xc59   : > { %p7482_p12 = scmp.lt.u32.totalorder %s7480_s15, %s7476_s12  ;;  %p7484_p8 = scmp.lt.u32.totalorder %s7476_s12, %s8955_s3 }
 0xc5a   : > { %p7478_p5 = pnand %p7477_p6, %p9072_p11 }
 0xc5b   : > { %p7483_p13 = por %p7482_p12, %p7481_p1 }
 0xc5c   : > { %p7479_p10 = pneg %p7478_p5 }
 0xc5d   : > { %p7485_p7 = por %p7484_p8, %p7483_p13 }
 0xc5f   : > { %p7486_p9 = pnand %p7485_p7, %p7479_p10 }
 0xc61   : > { %7489 = shalt.err (!%p7486_p9)
}
 0xc62   : > { %6713 = dma.vmem_to_hbm [thread:$0]  (%p9072_p11), %s8957_s20, 256, %s8955_s3, %s5793_s5, %s7576_s0, %s7576_s0, %s7577_s26  }
 0xc63 PF: > { %s5837_s10 = sand.u32 1, %s7536_s21   ;;  %p9075_p4 = scmp.ne.s32.totalorder %s9055_s18, 0 }
 0xc64   : > { %p9076_p3 = scmp.ge.s32.totalorder %s7548_s24, 2  ;;  %s5838_s27 = scalar_lea.sflag [#allocation7], %s5837_s10 }
 0xc66   : > { %p6746_p0 = pnand %p9076_p3, %p9075_p4 }
 0xc68   : > { %7527 = dma.done.wait (!%p6746_p0), %s5838_s27, 256  }
 0xc69   : > { %7529 = vsyncadd (!%p6746_p0), %s5838_s27, 4294967040  ;;  %s5847_s25 = scalar_lea.sflag [#allocation22], %s5837_s10 }
 0xc6a   : > { %7531 = dma.done.wait (!%p6746_p0), %s5847_s25, 256  }
 0xc6b   : > { %7533 = vsyncadd (!%p6746_p0), %s5847_s25, 4294967040  ;;  %p37_p11 = scmp.ge.s32.totalorder %s7890_s29, 4   ;;  %s9077_s21 = smov %s7540_s22 }
 0xc6c   : > { %s9078_s22 = smov %s7544_s23  ;;  %s9079_s23 = smov %s7901_s14 }
 0xc6d   : > { %s9080_s24 = smov %s7890_s29  ;;  %39 = sbr.rel (!%p37_p11) target bundleno = 22 (0x16), region = 180 }
 0xc74   :  { %5852 = vsyncpa [#allocation6], 1 }
 0xc75   :  { %5854 = vsyncpa [#allocation6 + $0x1], 1 }
 0xc76   :  { %5855 = vsyncpa [#allocation9], 1 }
 0xc77   :  { %5856 = vsyncpa [#allocation12], 1 }
 0xc78   :  { %5857 = vsyncpa [#allocation15], 1 }
 0xc79   :  { %5858 = vsyncpa [#allocation18], 1 }
 0xc7a   :  { %5859 = vsyncpa [#allocation7], 1 }
 0xc7b   :  { %5861 = vsyncpa [#allocation7 + $0x1], 1 }
 0xc7c   :  { %5862 = vsyncpa [#allocation22], 1 }
 0xc7d   :  { %5864 = vsyncpa [#allocation22 + $0x1], 1 }

</bundles_post_ra>
